<compile_context>
chip_gen: v6e
topology: v6e:2x2x1
jax: 0.10.0
libtpu: 0.0.40
codegen_flags: <defaults>
</compile_context>

<pallas_src>
import functools

import jax
import jax.numpy as jnp
from jax import lax
from jax.experimental import pallas as pl
from jax.experimental.pallas import tpu as pltpu

_MIB = 1024 * 1024
_BN_EPS = 1e-5


def _vmem_capacity_bytes():
    try:
        return int(pltpu.get_tpu_info().vmem_capacity_bytes)
    except Exception:
        return 64 * _MIB  # conservative default (v7x per-TensorCore VMEM)


# ------------------------- Pallas kernels -------------------------

def _conv_bn_lrelu_kernel(p_ref, w_ref, scale_ref, shift_ref, o_ref):
    """One (tm, tn) output tile: full-K bf16 MXU matmul -> f32 -> folded BN -> LeakyReLU."""
    y = jnp.dot(p_ref[...], w_ref[...], preferred_element_type=jnp.float32)
    y = y * scale_ref[...] + shift_ref[...]           # folded conv-bias + BatchNorm(eval)
    o_ref[...] = jnp.where(y >= 0, y, 0.1 * y).astype(o_ref.dtype)


def _tail_kernel(x_ref, w_ref, scale_ref, shift_ref, o_ref, *, n_layers):
    """Fused chain of 1x1-spatial conv blocks: n_layers back-to-back matmuls with all
    (center-tap) weights resident in VMEM; BN affine + LeakyReLU between layers."""
    h = x_ref[...]                                     # [M, Cpad] bf16
    for l in range(n_layers):                          # static unroll
        y = jnp.dot(h, w_ref[l], preferred_element_type=jnp.float32)
        y = y * scale_ref[l:l + 1, :] + shift_ref[l:l + 1, :]
        y = jnp.where(y >= 0, y, 0.1 * y)
        if l + 1 < n_layers:
            h = y.astype(jnp.bfloat16)
        else:
            o_ref[...] = y.astype(o_ref.dtype)


# ------------------------- tiling helpers -------------------------

def _conv_tile_bytes(tm, K, tn):
    # double-buffered bf16 patches + bf16 weights + (1,tn) f32 scale/shift + bf16 output
    return 2 * tm * K * 2 + 2 * K * tn * 2 + 2 * 2 * tn * 4 + 2 * tm * tn * 2


def _pick_tm(M, K, tn, budget_bytes):
    # >= 2 M-blocks on the big-M layers so both v7x TensorCores get work; full block on
    # tiny-M layers (extra grid steps would be pure overhead there).
    cap = M // 2 if M >= 128 else M
    for t in (4096, 2048, 1024, 512, 256, 128, 64, 32, 16, 8):
        if t <= cap and M % t == 0 and _conv_tile_bytes(t, K, tn) <= budget_bytes:
            return t
    return M  # tiny / odd M -> single full-extent block (allowed by BlockSpec rules)


def _fold_bn(b, gamma, beta, mean, var):
    scale = gamma / jnp.sqrt(var + _BN_EPS)
    shift = (b - mean) * scale + beta
    return scale.astype(jnp.float32), shift.astype(jnp.float32)


# ------------------------- wrappers -------------------------

def conv_block(x, params, kernel_size, stride, padding):
    """Conv2d + BatchNorm2d(eval) + LeakyReLU(0.1).  x: [N,H,W,Cin] -> [N,OH,OW,Cout] bf16."""
    w, b, gamma, beta, mean, var = params
    N, H, W, Cin = x.shape
    KH = KW = kernel_size
    Cout = w.shape[-1]
    OH = (H + 2 * padding - KH) // stride + 1
    OW = (W + 2 * padding - KW) // stride + 1

    # im2col glue (plain JAX, fused by XLA), built directly in bf16.
    xp = jnp.pad(x, ((0, 0), (padding, padding), (padding, padding), (0, 0)))
    views = []
    for i in range(KH):
        for j in range(KW):
            views.append(lax.slice(
                xp, (0, i, j, 0),
                (N, i + stride * (OH - 1) + 1, j + stride * (OW - 1) + 1, Cin),
                (1, stride, stride, 1)))
    M = N * OH * OW
    K = KH * KW * Cin
    patches = jnp.stack(views, axis=3).reshape(M, K).astype(jnp.bfloat16)
    w_flat = w.reshape(K, Cout).astype(jnp.bfloat16)

    scale_v, shift_v = _fold_bn(b, gamma, beta, mean, var)
    scale = scale_v.reshape(1, Cout)
    shift = shift_v.reshape(1, Cout)

    # Tile selection (generation-aware VMEM budget).  K is never split for this net, so
    # each grid point is one MXU GEMM with the epilogue applied in-register.
    cap = _vmem_capacity_bytes()
    budget = min(40 * _MIB, max(16 * _MIB, (2 * cap) // 5))
    tn = Cout if Cout <= 256 else 256
    tm = _pick_tm(M, K, tn, budget)
    tile_bytes = _conv_tile_bytes(tm, K, tn)
    vmem_limit = int(min((3 * cap) // 4, max(8 * _MIB, 4 * _MIB + 2 * tile_bytes)))

    grid = (M // tm, Cout // tn)
    out = pl.pallas_call(
        _conv_bn_lrelu_kernel,
        out_shape=jax.ShapeDtypeStruct((M, Cout), jnp.bfloat16),
        grid=grid,
        in_specs=[
            pl.BlockSpec((tm, K), lambda i, j: (i, 0)),   # patches (bf16)
            pl.BlockSpec((K, tn), lambda i, j: (0, j)),   # weights (bf16)
            pl.BlockSpec((1, tn), lambda i, j: (0, j)),   # BN scale (f32)
            pl.BlockSpec((1, tn), lambda i, j: (0, j)),   # BN shift (f32)
        ],
        out_specs=pl.BlockSpec((tm, tn), lambda i, j: (i, j)),
        compiler_params=pltpu.CompilerParams(
            dimension_semantics=("parallel", "parallel"),
            vmem_limit_bytes=vmem_limit,
        ),
    )(patches, w_flat, scale, shift)
    return out.reshape(N, OH, OW, Cout)


def fused_pointwise_tail(x, tail):
    """Fuse a chain of conv blocks whose input spatial map is 1x1.  On a 1x1 map a conv
    with padding p < k reduces exactly to `x @ w[p, p] + bias` (zero padding contributes
    nothing) and MaxPool(3,2,1) is the identity, so the whole tail is one pallas_call
    with all (center-tap) weights resident in VMEM.

    x: [N, 1, 1, Cin]; tail: list of (params, (cin, cout, k, s, p))."""
    N = x.shape[0]
    cin0 = x.shape[-1]
    couts = [cfg[1] for _, cfg in tail]
    cpad = max([cin0] + couts)
    cpad = ((cpad + 127) // 128) * 128

    ws, scales, shifts = [], [], []
    for (w, b, gamma, beta, mean, var), (cin, cout, k, s, p) in tail:
        wc = w[p, p]                                    # [Cin, Cout] center tap (exact on 1x1)
        wc = jnp.pad(wc, ((0, cpad - cin), (0, cpad - cout))).astype(jnp.bfloat16)
        sc, sh = _fold_bn(b, gamma, beta, mean, var)
        ws.append(wc)
        scales.append(jnp.pad(sc, (0, cpad - cout)))    # padded channels stay exactly 0
        shifts.append(jnp.pad(sh, (0, cpad - cout)))
    w_stack = jnp.stack(ws)                             # [L, Cpad, Cpad] bf16 (~1.8 MiB here)
    scale = jnp.stack(scales)                           # [L, Cpad] f32
    shift = jnp.stack(shifts)                           # [L, Cpad] f32

    x2 = jnp.pad(x.reshape(N, cin0).astype(jnp.bfloat16), ((0, 0), (0, cpad - cin0)))

    out = pl.pallas_call(
        functools.partial(_tail_kernel, n_layers=len(tail)),
        out_shape=jax.ShapeDtypeStruct((N, cpad), jnp.float32),
        in_specs=[pl.BlockSpec(memory_space=pltpu.MemorySpace.VMEM)] * 4,
        out_specs=pl.BlockSpec(memory_space=pltpu.MemorySpace.VMEM),
    )(x2, w_stack, scale, shift)
    cout_last = couts[-1]
    return out[:, :cout_last].reshape(N, 1, 1, cout_last)


def maxpool_3x3_s2_p1(x):
    """MaxPool2d(kernel=3, stride=2, padding=1) on NHWC.  Identity on 1x1 maps; otherwise
    plain lax.reduce_window (per review: these pools are tiny, a pallas_call is overhead)."""
    N, H, W, C = x.shape
    if H == 1 and W == 1:
        return x
    neg_inf = jnp.asarray(-jnp.inf, dtype=x.dtype)
    return lax.reduce_window(
        x, neg_inf, lax.max,
        window_dimensions=(1, 3, 3, 1),
        window_strides=(1, 2, 2, 1),
        padding=((0, 0), (1, 1), (1, 1), (0, 0)))


# ------------------------- model -------------------------

_CONV_CFGS = [
    # (cin, cout, kernel, stride, padding)
    (1, 64, 7, 2, 3),      # conv1
    (64, 128, 5, 2, 2),    # conv2
    (128, 256, 5, 2, 2),   # conv3
    (256, 256, 3, 1, 1),   # conv3_1
    (256, 512, 3, 2, 1),   # conv4
    (512, 512, 3, 1, 1),   # conv4_1
    (512, 512, 3, 2, 1),   # conv5
    (512, 512, 3, 1, 1),   # conv5_1
]
_POOL_AFTER = {0, 1, 3, 5, 7}   # pool after conv1, conv2, conv3_1, conv4_1, conv5_1


def init_params(key):
    params = []
    for idx, (cin, cout, k, s, p) in enumerate(_CONV_CFGS):
        kk = jax.random.fold_in(key, idx)
        k1, k2, k3, k4, k5, k6 = jax.random.split(kk, 6)
        w = 0.05 * jax.random.normal(k1, (k, k, cin, cout), jnp.float32)
        b = 0.05 * jax.random.normal(k2, (cout,), jnp.float32)
        gamma = 1.0 + 0.1 * jax.random.normal(k3, (cout,), jnp.float32)
        beta = 0.1 * jax.random.normal(k4, (cout,), jnp.float32)
        mean = 0.1 * jax.random.normal(k5, (cout,), jnp.float32)
        var = 1.0 + 0.1 * jnp.abs(jax.random.normal(k6, (cout,), jnp.float32))
        params.append((w, b, gamma, beta, mean, var))
    return params


def _is_pointwise_on_1x1(cfg):
    _, _, k, s, p = cfg
    return p < k and (1 + 2 * p - k) // s + 1 == 1


# TODO(synk): conv3/conv3_1 (M=8) could additionally be folded into the fused tail with an
#             in-kernel im2col; kept as single-step pallas_calls to limit complexity.
@functools.partial(jax.jit, static_argnames=("use_pooling",))
def extract_features(x_nchw, params, use_pooling=True):
    x = jnp.transpose(x_nchw, (0, 2, 3, 1))   # NCHW -> NHWC
    i, n = 0, len(_CONV_CFGS)
    while i < n:
        _, H, W, _ = x.shape
        if H == 1 and W == 1 and all(_is_pointwise_on_1x1(c) for c in _CONV_CFGS[i:]):
            # Every remaining conv keeps the map at 1x1 and every remaining pool is the
            # identity -> fuse the rest of the network into one VMEM-resident pallas_call.
            x = fused_pointwise_tail(x, [(params[j], _CONV_CFGS[j]) for j in range(i, n)])
            break
        _, _, k, s, pad = _CONV_CFGS[i]
        x = conv_block(x, params[i], k, s, pad)
        # TODO(synk): Dropout(p=0.35) omitted (eval mode => identity).
        if use_pooling and i in _POOL_AFTER:
            x = maxpool_3x3_s2_p1(x)
        i += 1
    return jnp.transpose(x, (0, 3, 1, 2)).astype(jnp.float32)   # NHWC -> NCHW (PyTorch)


if __name__ == "__main__":
    key = jax.random.PRNGKey(0)
    kx, kp = jax.random.split(key)
    # grayscale input (Cin=1 as required by conv1), batch=2, 64x64
    x = jax.random.normal(kx, (2, 1, 64, 64), jnp.float32)
    params = init_params(kp)
    out = extract_features(x, params, use_pooling=True)
    out = jax.block_until_ready(out)
    assert out.shape == (2, 512, 1, 1), out.shape
    assert bool(jnp.all(jnp.isfinite(out)))
    print("KERNEL_OK")
</pallas_src>

<mosaic_0001>
module attributes {stable_mosaic.version = 11 : i64} {
  func.func @_conv_bn_lrelu_kernel(%arg0: i32, %arg1: i32, %arg2: memref<1024x49xbf16, #tpu.memory_space<vmem>>, %arg3: memref<49x64xbf16, #tpu.memory_space<vmem>>, %arg4: memref<1x64xf32, #tpu.memory_space<vmem>>, %arg5: memref<1x64xf32, #tpu.memory_space<vmem>>, %arg6: memref<1024x64xbf16, #tpu.memory_space<vmem>>) attributes {dimension_semantics = [#tpu.dimension_semantics<parallel>, #tpu.dimension_semantics<parallel>], iteration_bounds = array<i64: 2, 1>, scalar_prefetch = 0 : i64, scratch_operands = 0 : i64, tpu.core_type = #tpu.core_type<tc>, window_params = [{transform_indices = @transform_0, window_bounds = array<i64: 1024, 49>}, {transform_indices = @transform_1, window_bounds = array<i64: 49, 64>}, {transform_indices = @transform_2, window_bounds = array<i64: 1, 64>}, {transform_indices = @transform_3, window_bounds = array<i64: 1, 64>}, {transform_indices = @transform_4, window_bounds = array<i64: 1024, 64>}]} {
    %c0 = arith.constant 0 : index
    %c0_0 = arith.constant 0 : index
    %0 = vector.load %arg2[%c0, %c0_0] : memref<1024x49xbf16, #tpu.memory_space<vmem>>, vector<1024x49xbf16>
    %c0_1 = arith.constant 0 : index
    %c0_2 = arith.constant 0 : index
    %1 = vector.load %arg3[%c0_1, %c0_2] : memref<49x64xbf16, #tpu.memory_space<vmem>>, vector<49x64xbf16>
    %cst = arith.constant dense<0.000000e+00> : vector<1024x64xf32>
    %2 = tpu.matmul %0, %1, %cst {dimension_numbers = #tpu.dot_dimension_numbers<[1], [0], [0], [1], [0, 0, 1, 1], [], []>} : vector<1024x49xbf16>, vector<49x64xbf16>, vector<1024x64xf32> -> vector<1024x64xf32>
    %c0_3 = arith.constant 0 : index
    %c0_4 = arith.constant 0 : index
    %3 = vector.load %arg4[%c0_3, %c0_4] : memref<1x64xf32, #tpu.memory_space<vmem>>, vector<1x64xf32>
    %4 = vector.broadcast %3 : vector<1x64xf32> to vector<1024x64xf32>
    %5 = arith.mulf %2, %4 : vector<1024x64xf32>
    %c0_5 = arith.constant 0 : index
    %c0_6 = arith.constant 0 : index
    %6 = vector.load %arg5[%c0_5, %c0_6] : memref<1x64xf32, #tpu.memory_space<vmem>>, vector<1x64xf32>
    %7 = vector.broadcast %6 : vector<1x64xf32> to vector<1024x64xf32>
    %8 = arith.addf %5, %7 : vector<1024x64xf32>
    %cst_7 = arith.constant 0.000000e+00 : f32
    %9 = vector.broadcast %cst_7 : f32 to vector<1024x64xf32>
    %10 = arith.cmpf oge, %8, %9 : vector<1024x64xf32>
    %cst_8 = arith.constant 1.000000e-01 : f32
    %11 = vector.broadcast %cst_8 : f32 to vector<1024x64xf32>
    %12 = arith.mulf %11, %8 : vector<1024x64xf32>
    %13 = arith.select %10, %8, %12 : vector<1024x64xi1>, vector<1024x64xf32>
    %14 = arith.truncf %13 : vector<1024x64xf32> to vector<1024x64xbf16>
    %c0_9 = arith.constant 0 : index
    %c0_10 = arith.constant 0 : index
    %15 = vector.load %arg6[%c0_9, %c0_10] : memref<1024x64xbf16, #tpu.memory_space<vmem>>, vector<1024x64xbf16>
    tpu.vector_store %arg6[%c0_9, %c0_10], %14 {strides = array<i32>} : memref<1024x64xbf16, #tpu.memory_space<vmem>>, vector<1024x64xbf16>,
    return
  }
  func.func @transform_0(%arg0: i32, %arg1: i32) -> (i32, i32) {
    %c0_i32 = arith.constant 0 : i32
    %c0_i32_0 = arith.constant 0 : i32
    return %arg0, %c0_i32 : i32, i32
  }
  func.func @transform_1(%arg0: i32, %arg1: i32) -> (i32, i32) {
    %c0_i32 = arith.constant 0 : i32
    %c0_i32_0 = arith.constant 0 : i32
    return %c0_i32, %arg1 : i32, i32
  }
  func.func @transform_2(%arg0: i32, %arg1: i32) -> (i32, i32) {
    %c0_i32 = arith.constant 0 : i32
    %c0_i32_0 = arith.constant 0 : i32
    return %c0_i32, %arg1 : i32, i32
  }
  func.func @transform_3(%arg0: i32, %arg1: i32) -> (i32, i32) {
    %c0_i32 = arith.constant 0 : i32
    %c0_i32_0 = arith.constant 0 : i32
    return %c0_i32, %arg1 : i32, i32
  }
  func.func @transform_4(%arg0: i32, %arg1: i32) -> (i32, i32) {
    %c0_i32 = arith.constant 0 : i32
    return %arg0, %arg1 : i32, i32
  }
}

module attributes {stable_mosaic.version = 11 : i64} {
  func.func @_conv_bn_lrelu_kernel(%arg0: i32, %arg1: i32, %arg2: memref<64x1600xbf16, #tpu.memory_space<vmem>>, %arg3: memref<1600x128xbf16, #tpu.memory_space<vmem>>, %arg4: memref<1x128xf32, #tpu.memory_space<vmem>>, %arg5: memref<1x128xf32, #tpu.memory_space<vmem>>, %arg6: memref<64x128xbf16, #tpu.memory_space<vmem>>) attributes {dimension_semantics = [#tpu.dimension_semantics<parallel>, #tpu.dimension_semantics<parallel>], iteration_bounds = array<i64: 2, 1>, scalar_prefetch = 0 : i64, scratch_operands = 0 : i64, tpu.core_type = #tpu.core_type<tc>, window_params = [{transform_indices = @transform_0, window_bounds = array<i64: 64, 1600>}, {transform_indices = @transform_1, window_bounds = array<i64: 1600, 128>}, {transform_indices = @transform_2, window_bounds = array<i64: 1, 128>}, {transform_indices = @transform_3, window_bounds = array<i64: 1, 128>}, {transform_indices = @transform_4, window_bounds = array<i64: 64, 128>}]} {
    %c0 = arith.constant 0 : index
    %c0_0 = arith.constant 0 : index
    %0 = vector.load %arg2[%c0, %c0_0] : memref<64x1600xbf16, #tpu.memory_space<vmem>>, vector<64x1600xbf16>
    %c0_1 = arith.constant 0 : index
    %c0_2 = arith.constant 0 : index
    %1 = vector.load %arg3[%c0_1, %c0_2] : memref<1600x128xbf16, #tpu.memory_space<vmem>>, vector<1600x128xbf16>
    %cst = arith.constant dense<0.000000e+00> : vector<64x128xf32>
    %2 = tpu.matmul %0, %1, %cst {dimension_numbers = #tpu.dot_dimension_numbers<[1], [0], [0], [1], [0, 0, 1, 1], [], []>} : vector<64x1600xbf16>, vector<1600x128xbf16>, vector<64x128xf32> -> vector<64x128xf32>
    %c0_3 = arith.constant 0 : index
    %c0_4 = arith.constant 0 : index
    %3 = vector.load %arg4[%c0_3, %c0_4] : memref<1x128xf32, #tpu.memory_space<vmem>>, vector<1x128xf32>
    %4 = vector.broadcast %3 : vector<1x128xf32> to vector<64x128xf32>
    %5 = arith.mulf %2, %4 : vector<64x128xf32>
    %c0_5 = arith.constant 0 : index
    %c0_6 = arith.constant 0 : index
    %6 = vector.load %arg5[%c0_5, %c0_6] : memref<1x128xf32, #tpu.memory_space<vmem>>, vector<1x128xf32>
    %7 = vector.broadcast %6 : vector<1x128xf32> to vector<64x128xf32>
    %8 = arith.addf %5, %7 : vector<64x128xf32>
    %cst_7 = arith.constant 0.000000e+00 : f32
    %9 = vector.broadcast %cst_7 : f32 to vector<64x128xf32>
    %10 = arith.cmpf oge, %8, %9 : vector<64x128xf32>
    %cst_8 = arith.constant 1.000000e-01 : f32
    %11 = vector.broadcast %cst_8 : f32 to vector<64x128xf32>
    %12 = arith.mulf %11, %8 : vector<64x128xf32>
    %13 = arith.select %10, %8, %12 : vector<64x128xi1>, vector<64x128xf32>
    %14 = arith.truncf %13 : vector<64x128xf32> to vector<64x128xbf16>
    %c0_9 = arith.constant 0 : index
    %c0_10 = arith.constant 0 : index
    %15 = vector.load %arg6[%c0_9, %c0_10] : memref<64x128xbf16, #tpu.memory_space<vmem>>, vector<64x128xbf16>
    tpu.vector_store %arg6[%c0_9, %c0_10], %14 {strides = array<i32>} : memref<64x128xbf16, #tpu.memory_space<vmem>>, vector<64x128xbf16>,
    return
  }
  func.func @transform_0(%arg0: i32, %arg1: i32) -> (i32, i32) {
    %c0_i32 = arith.constant 0 : i32
    %c0_i32_0 = arith.constant 0 : i32
    return %arg0, %c0_i32 : i32, i32
  }
  func.func @transform_1(%arg0: i32, %arg1: i32) -> (i32, i32) {
    %c0_i32 = arith.constant 0 : i32
    %c0_i32_0 = arith.constant 0 : i32
    return %c0_i32, %arg1 : i32, i32
  }
  func.func @transform_2(%arg0: i32, %arg1: i32) -> (i32, i32) {
    %c0_i32 = arith.constant 0 : i32
    %c0_i32_0 = arith.constant 0 : i32
    return %c0_i32, %arg1 : i32, i32
  }
  func.func @transform_3(%arg0: i32, %arg1: i32) -> (i32, i32) {
    %c0_i32 = arith.constant 0 : i32
    %c0_i32_0 = arith.constant 0 : i32
    return %c0_i32, %arg1 : i32, i32
  }
  func.func @transform_4(%arg0: i32, %arg1: i32) -> (i32, i32) {
    %c0_i32 = arith.constant 0 : i32
    return %arg0, %arg1 : i32, i32
  }
}

module attributes {stable_mosaic.version = 11 : i64} {
  func.func @_conv_bn_lrelu_kernel(%arg0: i32, %arg1: i32, %arg2: memref<8x3200xbf16, #tpu.memory_space<vmem>>, %arg3: memref<3200x256xbf16, #tpu.memory_space<vmem>>, %arg4: memref<1x256xf32, #tpu.memory_space<vmem>>, %arg5: memref<1x256xf32, #tpu.memory_space<vmem>>, %arg6: memref<8x256xbf16, #tpu.memory_space<vmem>>) attributes {dimension_semantics = [#tpu.dimension_semantics<parallel>, #tpu.dimension_semantics<parallel>], iteration_bounds = array<i64: 1, 1>, scalar_prefetch = 0 : i64, scratch_operands = 0 : i64, tpu.core_type = #tpu.core_type<tc>, window_params = [{transform_indices = @transform_0, window_bounds = array<i64: 8, 3200>}, {transform_indices = @transform_1, window_bounds = array<i64: 3200, 256>}, {transform_indices = @transform_2, window_bounds = array<i64: 1, 256>}, {transform_indices = @transform_3, window_bounds = array<i64: 1, 256>}, {transform_indices = @transform_4, window_bounds = array<i64: 8, 256>}]} {
    %c0 = arith.constant 0 : index
    %c0_0 = arith.constant 0 : index
    %0 = vector.load %arg2[%c0, %c0_0] : memref<8x3200xbf16, #tpu.memory_space<vmem>>, vector<8x3200xbf16>
    %c0_1 = arith.constant 0 : index
    %c0_2 = arith.constant 0 : index
    %1 = vector.load %arg3[%c0_1, %c0_2] : memref<3200x256xbf16, #tpu.memory_space<vmem>>, vector<3200x256xbf16>
    %cst = arith.constant dense<0.000000e+00> : vector<8x256xf32>
    %2 = tpu.matmul %0, %1, %cst {dimension_numbers = #tpu.dot_dimension_numbers<[1], [0], [0], [1], [0, 0, 1, 1], [], []>} : vector<8x3200xbf16>, vector<3200x256xbf16>, vector<8x256xf32> -> vector<8x256xf32>
    %c0_3 = arith.constant 0 : index
    %c0_4 = arith.constant 0 : index
    %3 = vector.load %arg4[%c0_3, %c0_4] : memref<1x256xf32, #tpu.memory_space<vmem>>, vector<1x256xf32>
    %4 = vector.broadcast %3 : vector<1x256xf32> to vector<8x256xf32>
    %5 = arith.mulf %2, %4 : vector<8x256xf32>
    %c0_5 = arith.constant 0 : index
    %c0_6 = arith.constant 0 : index
    %6 = vector.load %arg5[%c0_5, %c0_6] : memref<1x256xf32, #tpu.memory_space<vmem>>, vector<1x256xf32>
    %7 = vector.broadcast %6 : vector<1x256xf32> to vector<8x256xf32>
    %8 = arith.addf %5, %7 : vector<8x256xf32>
    %cst_7 = arith.constant 0.000000e+00 : f32
    %9 = vector.broadcast %cst_7 : f32 to vector<8x256xf32>
    %10 = arith.cmpf oge, %8, %9 : vector<8x256xf32>
    %cst_8 = arith.constant 1.000000e-01 : f32
    %11 = vector.broadcast %cst_8 : f32 to vector<8x256xf32>
    %12 = arith.mulf %11, %8 : vector<8x256xf32>
    %13 = arith.select %10, %8, %12 : vector<8x256xi1>, vector<8x256xf32>
    %14 = arith.truncf %13 : vector<8x256xf32> to vector<8x256xbf16>
    %c0_9 = arith.constant 0 : index
    %c0_10 = arith.constant 0 : index
    %15 = vector.load %arg6[%c0_9, %c0_10] : memref<8x256xbf16, #tpu.memory_space<vmem>>, vector<8x256xbf16>
    tpu.vector_store %arg6[%c0_9, %c0_10], %14 {strides = array<i32>} : memref<8x256xbf16, #tpu.memory_space<vmem>>, vector<8x256xbf16>,
    return
  }
  func.func @transform_0(%arg0: i32, %arg1: i32) -> (i32, i32) {
    %c0_i32 = arith.constant 0 : i32
    %c0_i32_0 = arith.constant 0 : i32
    return %arg0, %c0_i32 : i32, i32
  }
  func.func @transform_1(%arg0: i32, %arg1: i32) -> (i32, i32) {
    %c0_i32 = arith.constant 0 : i32
    %c0_i32_0 = arith.constant 0 : i32
    return %c0_i32, %arg1 : i32, i32
  }
  func.func @transform_2(%arg0: i32, %arg1: i32) -> (i32, i32) {
    %c0_i32 = arith.constant 0 : i32
    %c0_i32_0 = arith.constant 0 : i32
    return %c0_i32, %arg1 : i32, i32
  }
  func.func @transform_3(%arg0: i32, %arg1: i32) -> (i32, i32) {
    %c0_i32 = arith.constant 0 : i32
    %c0_i32_0 = arith.constant 0 : i32
    return %c0_i32, %arg1 : i32, i32
  }
  func.func @transform_4(%arg0: i32, %arg1: i32) -> (i32, i32) {
    %c0_i32 = arith.constant 0 : i32
    return %arg0, %arg1 : i32, i32
  }
}

module attributes {stable_mosaic.version = 11 : i64} {
  func.func @_conv_bn_lrelu_kernel(%arg0: i32, %arg1: i32, %arg2: memref<8x2304xbf16, #tpu.memory_space<vmem>>, %arg3: memref<2304x256xbf16, #tpu.memory_space<vmem>>, %arg4: memref<1x256xf32, #tpu.memory_space<vmem>>, %arg5: memref<1x256xf32, #tpu.memory_space<vmem>>, %arg6: memref<8x256xbf16, #tpu.memory_space<vmem>>) attributes {dimension_semantics = [#tpu.dimension_semantics<parallel>, #tpu.dimension_semantics<parallel>], iteration_bounds = array<i64: 1, 1>, scalar_prefetch = 0 : i64, scratch_operands = 0 : i64, tpu.core_type = #tpu.core_type<tc>, window_params = [{transform_indices = @transform_0, window_bounds = array<i64: 8, 2304>}, {transform_indices = @transform_1, window_bounds = array<i64: 2304, 256>}, {transform_indices = @transform_2, window_bounds = array<i64: 1, 256>}, {transform_indices = @transform_3, window_bounds = array<i64: 1, 256>}, {transform_indices = @transform_4, window_bounds = array<i64: 8, 256>}]} {
    %c0 = arith.constant 0 : index
    %c0_0 = arith.constant 0 : index
    %0 = vector.load %arg2[%c0, %c0_0] : memref<8x2304xbf16, #tpu.memory_space<vmem>>, vector<8x2304xbf16>
    %c0_1 = arith.constant 0 : index
    %c0_2 = arith.constant 0 : index
    %1 = vector.load %arg3[%c0_1, %c0_2] : memref<2304x256xbf16, #tpu.memory_space<vmem>>, vector<2304x256xbf16>
    %cst = arith.constant dense<0.000000e+00> : vector<8x256xf32>
    %2 = tpu.matmul %0, %1, %cst {dimension_numbers = #tpu.dot_dimension_numbers<[1], [0], [0], [1], [0, 0, 1, 1], [], []>} : vector<8x2304xbf16>, vector<2304x256xbf16>, vector<8x256xf32> -> vector<8x256xf32>
    %c0_3 = arith.constant 0 : index
    %c0_4 = arith.constant 0 : index
    %3 = vector.load %arg4[%c0_3, %c0_4] : memref<1x256xf32, #tpu.memory_space<vmem>>, vector<1x256xf32>
    %4 = vector.broadcast %3 : vector<1x256xf32> to vector<8x256xf32>
    %5 = arith.mulf %2, %4 : vector<8x256xf32>
    %c0_5 = arith.constant 0 : index
    %c0_6 = arith.constant 0 : index
    %6 = vector.load %arg5[%c0_5, %c0_6] : memref<1x256xf32, #tpu.memory_space<vmem>>, vector<1x256xf32>
    %7 = vector.broadcast %6 : vector<1x256xf32> to vector<8x256xf32>
    %8 = arith.addf %5, %7 : vector<8x256xf32>
    %cst_7 = arith.constant 0.000000e+00 : f32
    %9 = vector.broadcast %cst_7 : f32 to vector<8x256xf32>
    %10 = arith.cmpf oge, %8, %9 : vector<8x256xf32>
    %cst_8 = arith.constant 1.000000e-01 : f32
    %11 = vector.broadcast %cst_8 : f32 to vector<8x256xf32>
    %12 = arith.mulf %11, %8 : vector<8x256xf32>
    %13 = arith.select %10, %8, %12 : vector<8x256xi1>, vector<8x256xf32>
    %14 = arith.truncf %13 : vector<8x256xf32> to vector<8x256xbf16>
    %c0_9 = arith.constant 0 : index
    %c0_10 = arith.constant 0 : index
    %15 = vector.load %arg6[%c0_9, %c0_10] : memref<8x256xbf16, #tpu.memory_space<vmem>>, vector<8x256xbf16>
    tpu.vector_store %arg6[%c0_9, %c0_10], %14 {strides = array<i32>} : memref<8x256xbf16, #tpu.memory_space<vmem>>, vector<8x256xbf16>,
    return
  }
  func.func @transform_0(%arg0: i32, %arg1: i32) -> (i32, i32) {
    %c0_i32 = arith.constant 0 : i32
    %c0_i32_0 = arith.constant 0 : i32
    return %arg0, %c0_i32 : i32, i32
  }
  func.func @transform_1(%arg0: i32, %arg1: i32) -> (i32, i32) {
    %c0_i32 = arith.constant 0 : i32
    %c0_i32_0 = arith.constant 0 : i32
    return %c0_i32, %arg1 : i32, i32
  }
  func.func @transform_2(%arg0: i32, %arg1: i32) -> (i32, i32) {
    %c0_i32 = arith.constant 0 : i32
    %c0_i32_0 = arith.constant 0 : i32
    return %c0_i32, %arg1 : i32, i32
  }
  func.func @transform_3(%arg0: i32, %arg1: i32) -> (i32, i32) {
    %c0_i32 = arith.constant 0 : i32
    %c0_i32_0 = arith.constant 0 : i32
    return %c0_i32, %arg1 : i32, i32
  }
  func.func @transform_4(%arg0: i32, %arg1: i32) -> (i32, i32) {
    %c0_i32 = arith.constant 0 : i32
    return %arg0, %arg1 : i32, i32
  }
}

module attributes {stable_mosaic.version = 11 : i64} {
  func.func @_tail_kernel(%arg0: memref<2x512xbf16, #tpu.memory_space<vmem>>, %arg1: memref<4x512x512xbf16, #tpu.memory_space<vmem>>, %arg2: memref<4x512xf32, #tpu.memory_space<vmem>>, %arg3: memref<4x512xf32, #tpu.memory_space<vmem>>, %arg4: memref<2x512xf32, #tpu.memory_space<vmem>>) attributes {dimension_semantics = [], scalar_prefetch = 0 : i64, scratch_operands = 0 : i64, tpu.core_type = #tpu.core_type<tc>} {
    %c0 = arith.constant 0 : index
    %c0_0 = arith.constant 0 : index
    %0 = vector.load %arg0[%c0, %c0_0] : memref<2x512xbf16, #tpu.memory_space<vmem>>, vector<2x512xbf16>
    %c0_1 = arith.constant 0 : index
    %c0_2 = arith.constant 0 : index
    %c0_3 = arith.constant 0 : index
    %1 = vector.load %arg1[%c0_1, %c0_2, %c0_3] : memref<4x512x512xbf16, #tpu.memory_space<vmem>>, vector<1x512x512xbf16>
    %2 = vector.shape_cast %1 : vector<1x512x512xbf16> to vector<512x512xbf16>
    %cst = arith.constant dense<0.000000e+00> : vector<2x512xf32>
    %3 = tpu.matmul %0, %2, %cst {dimension_numbers = #tpu.dot_dimension_numbers<[1], [0], [0], [1], [0, 0, 1, 1], [], []>} : vector<2x512xbf16>, vector<512x512xbf16>, vector<2x512xf32> -> vector<2x512xf32>
    %c0_4 = arith.constant 0 : index
    %c0_5 = arith.constant 0 : index
    %4 = vector.load %arg2[%c0_4, %c0_5] : memref<4x512xf32, #tpu.memory_space<vmem>>, vector<1x512xf32>
    %5 = vector.broadcast %4 : vector<1x512xf32> to vector<2x512xf32>
    %6 = arith.mulf %3, %5 : vector<2x512xf32>
    %c0_6 = arith.constant 0 : index
    %c0_7 = arith.constant 0 : index
    %7 = vector.load %arg3[%c0_6, %c0_7] : memref<4x512xf32, #tpu.memory_space<vmem>>, vector<1x512xf32>
    %8 = vector.broadcast %7 : vector<1x512xf32> to vector<2x512xf32>
    %9 = arith.addf %6, %8 : vector<2x512xf32>
    %cst_8 = arith.constant 0.000000e+00 : f32
    %10 = vector.broadcast %cst_8 : f32 to vector<2x512xf32>
    %11 = arith.cmpf oge, %9, %10 : vector<2x512xf32>
    %cst_9 = arith.constant 1.000000e-01 : f32
    %12 = vector.broadcast %cst_9 : f32 to vector<2x512xf32>
    %13 = arith.mulf %12, %9 : vector<2x512xf32>
    %14 = arith.select %11, %9, %13 : vector<2x512xi1>, vector<2x512xf32>
    %15 = arith.truncf %14 : vector<2x512xf32> to vector<2x512xbf16>
    %c1 = arith.constant 1 : index
    %c0_10 = arith.constant 0 : index
    %c0_11 = arith.constant 0 : index
    %16 = vector.load %arg1[%c1, %c0_10, %c0_11] : memref<4x512x512xbf16, #tpu.memory_space<vmem>>, vector<1x512x512xbf16>
    %17 = vector.shape_cast %16 : vector<1x512x512xbf16> to vector<512x512xbf16>
    %cst_12 = arith.constant dense<0.000000e+00> : vector<2x512xf32>
    %18 = tpu.matmul %15, %17, %cst_12 {dimension_numbers = #tpu.dot_dimension_numbers<[1], [0], [0], [1], [0, 0, 1, 1], [], []>} : vector<2x512xbf16>, vector<512x512xbf16>, vector<2x512xf32> -> vector<2x512xf32>
    %c1_13 = arith.constant 1 : index
    %c0_14 = arith.constant 0 : index
    %19 = vector.load %arg2[%c1_13, %c0_14] : memref<4x512xf32, #tpu.memory_space<vmem>>, vector<1x512xf32>
    %20 = vector.broadcast %19 : vector<1x512xf32> to vector<2x512xf32>
    %21 = arith.mulf %18, %20 : vector<2x512xf32>
    %c1_15 = arith.constant 1 : index
    %c0_16 = arith.constant 0 : index
    %22 = vector.load %arg3[%c1_15, %c0_16] : memref<4x512xf32, #tpu.memory_space<vmem>>, vector<1x512xf32>
    %23 = vector.broadcast %22 : vector<1x512xf32> to vector<2x512xf32>
    %24 = arith.addf %21, %23 : vector<2x512xf32>
    %cst_17 = arith.constant 0.000000e+00 : f32
    %25 = vector.broadcast %cst_17 : f32 to vector<2x512xf32>
    %26 = arith.cmpf oge, %24, %25 : vector<2x512xf32>
    %cst_18 = arith.constant 1.000000e-01 : f32
    %27 = vector.broadcast %cst_18 : f32 to vector<2x512xf32>
    %28 = arith.mulf %27, %24 : vector<2x512xf32>
    %29 = arith.select %26, %24, %28 : vector<2x512xi1>, vector<2x512xf32>
    %30 = arith.truncf %29 : vector<2x512xf32> to vector<2x512xbf16>
    %c2 = arith.constant 2 : index
    %c0_19 = arith.constant 0 : index
    %c0_20 = arith.constant 0 : index
    %31 = vector.load %arg1[%c2, %c0_19, %c0_20] : memref<4x512x512xbf16, #tpu.memory_space<vmem>>, vector<1x512x512xbf16>
    %32 = vector.shape_cast %31 : vector<1x512x512xbf16> to vector<512x512xbf16>
    %cst_21 = arith.constant dense<0.000000e+00> : vector<2x512xf32>
    %33 = tpu.matmul %30, %32, %cst_21 {dimension_numbers = #tpu.dot_dimension_numbers<[1], [0], [0], [1], [0, 0, 1, 1], [], []>} : vector<2x512xbf16>, vector<512x512xbf16>, vector<2x512xf32> -> vector<2x512xf32>
    %c2_22 = arith.constant 2 : index
    %c0_23 = arith.constant 0 : index
    %34 = vector.load %arg2[%c2_22, %c0_23] : memref<4x512xf32, #tpu.memory_space<vmem>>, vector<1x512xf32>
    %35 = vector.broadcast %34 : vector<1x512xf32> to vector<2x512xf32>
    %36 = arith.mulf %33, %35 : vector<2x512xf32>
    %c2_24 = arith.constant 2 : index
    %c0_25 = arith.constant 0 : index
    %37 = vector.load %arg3[%c2_24, %c0_25] : memref<4x512xf32, #tpu.memory_space<vmem>>, vector<1x512xf32>
    %38 = vector.broadcast %37 : vector<1x512xf32> to vector<2x512xf32>
    %39 = arith.addf %36, %38 : vector<2x512xf32>
    %cst_26 = arith.constant 0.000000e+00 : f32
    %40 = vector.broadcast %cst_26 : f32 to vector<2x512xf32>
    %41 = arith.cmpf oge, %39, %40 : vector<2x512xf32>
    %cst_27 = arith.constant 1.000000e-01 : f32
    %42 = vector.broadcast %cst_27 : f32 to vector<2x512xf32>
    %43 = arith.mulf %42, %39 : vector<2x512xf32>
    %44 = arith.select %41, %39, %43 : vector<2x512xi1>, vector<2x512xf32>
    %45 = arith.truncf %44 : vector<2x512xf32> to vector<2x512xbf16>
    %c3 = arith.constant 3 : index
    %c0_28 = arith.constant 0 : index
    %c0_29 = arith.constant 0 : index
    %46 = vector.load %arg1[%c3, %c0_28, %c0_29] : memref<4x512x512xbf16, #tpu.memory_space<vmem>>, vector<1x512x512xbf16>
    %47 = vector.shape_cast %46 : vector<1x512x512xbf16> to vector<512x512xbf16>
    %cst_30 = arith.constant dense<0.000000e+00> : vector<2x512xf32>
    %48 = tpu.matmul %45, %47, %cst_30 {dimension_numbers = #tpu.dot_dimension_numbers<[1], [0], [0], [1], [0, 0, 1, 1], [], []>} : vector<2x512xbf16>, vector<512x512xbf16>, vector<2x512xf32> -> vector<2x512xf32>
    %c3_31 = arith.constant 3 : index
    %c0_32 = arith.constant 0 : index
    %49 = vector.load %arg2[%c3_31, %c0_32] : memref<4x512xf32, #tpu.memory_space<vmem>>, vector<1x512xf32>
    %50 = vector.broadcast %49 : vector<1x512xf32> to vector<2x512xf32>
    %51 = arith.mulf %48, %50 : vector<2x512xf32>
    %c3_33 = arith.constant 3 : index
    %c0_34 = arith.constant 0 : index
    %52 = vector.load %arg3[%c3_33, %c0_34] : memref<4x512xf32, #tpu.memory_space<vmem>>, vector<1x512xf32>
    %53 = vector.broadcast %52 : vector<1x512xf32> to vector<2x512xf32>
    %54 = arith.addf %51, %53 : vector<2x512xf32>
    %cst_35 = arith.constant 0.000000e+00 : f32
    %55 = vector.broadcast %cst_35 : f32 to vector<2x512xf32>
    %56 = arith.cmpf oge, %54, %55 : vector<2x512xf32>
    %cst_36 = arith.constant 1.000000e-01 : f32
    %57 = vector.broadcast %cst_36 : f32 to vector<2x512xf32>
    %58 = arith.mulf %57, %54 : vector<2x512xf32>
    %59 = arith.select %56, %54, %58 : vector<2x512xi1>, vector<2x512xf32>
    %c0_37 = arith.constant 0 : index
    %c0_38 = arith.constant 0 : index
    %60 = vector.load %arg4[%c0_37, %c0_38] : memref<2x512xf32, #tpu.memory_space<vmem>>, vector<2x512xf32>
    tpu.vector_store %arg4[%c0_37, %c0_38], %59 {strides = array<i32>} : memref<2x512xf32, #tpu.memory_space<vmem>>, vector<2x512xf32>,
    return
  }
}

</mosaic_0001>

<bundles_post_ra>
// kernel: extract_features.5
= control target key start
LH: loop header
LB: loop body
LE: loop exit
PB: predicated region body
PF: predicated region fallthrough
CT: control target
= control target key end

     0   :  { %s3657_s15 = smov 0   ;;  %s3659_s16 = smov 0   ;;  %s4634_s0 = inlined_call_operand.vmem [shape: bf16[2048,49], index: 0, kind: input, shape index: {}]   ;;  %s4635_s1 = inlined_call_operand.vmem [shape: bf16[49,64], index: 1, kind: input, shape index: {}]   ;;  %s4636_s2 = inlined_call_operand.vmem [shape: f32[1,64], index: 2, kind: input, shape index: {}]   ;;  %s4637_s3 = inlined_call_operand.vmem [shape: f32[1,64], index: 3, kind: input, shape index: {}]   ;;  %s4638_s4 = inlined_call_operand.vmem [shape: bf16[2048,64], index: 4, kind: output, shape index: {}]  }
   0x1   :  { %s3661_s17 = smov 0  }
   0x2 LB: > { %s26_s18 = sadd.s32 1, %s3625_s16  ;;  %p2903_p0 = scmp.ge.s32.totalorder %s3629_s17, 1  ;;  %s3629_s17 = sphi %s3661_s17, %s14_s17   ;;  %s3625_s16 = sphi %s3659_s16, %s4640_s16   ;;  %s3621_s15 = sphi %s3657_s15, %s4639_s15  }
   0x3   : > { %p28_p1 = scmp.ge.s32.totalorder %s26_s18, 2  ;;  %p202_p2 = scmp.lt.s32.totalorder %s3629_s17, 3 }
   0x5   : > { %s4642_s18 = smov (%p28_p1, %s26_s18), 0  ;;  %p203_p3 = pnand %p2903_p0, %p202_p2 }
   0x6   : > { %s2904_s23 = sshll.u32 (!%p203_p3), %s3621_s15, 7 }
   0x7   : > { %206 = sbr.rel (%p203_p3) target bundleno = 424 (0x1a8), region = 36  ;;  %p242_p4 = scmp.lt.s32.totalorder (!%p203_p3), %s2904_s23, 255 }
   0xc   : > { %v3537_v0 = vld [vmem:[%s4635_s1 + $0x18] ss:$0 sps:$4 sm:$0x11]   ;;  %vm936_vm0 = vcmask 1040384   ;;  %v3631_v1 = vmov 0   ;;  %v3538_v4 = vld [vmem:[%s4635_s1 + $0x10] sm:$0xff]  }
   0xd   : > { %v938_v2 = vsel %vm936_vm0, 65535, %v3631_v1  ;;  %s4644_s23 = smov (!%p242_p4, %s2904_s23), 255  ;;  %v3539_v5 = vld [vmem:[%s4635_s1 + $0x8] sm:$0xff]   ;;  %v3540_v6 = vld [vmem:[%s4635_s1] sm:$0xff]   ;;  %vm743_vm1 = vcmask 400384   ;;  %vm2653_vm2 = vcmask 519168  }
   0xe   : > { %v940_v3 = vand.u32 %v3537_v0, %v938_v2  ;;  %s2905_s26 = sshll.u32 %s4644_s23, 2 }
   0xf   : > { %s3695_s5 = scalar_lea.vmem %s4634_s0, %s2905_s26  ;;  %s3850_s12 = scalar_lea.vmem %s4638_s4, %s2905_s26 }
  0x10   : > { %3368 = vmatprep.subr.bf16.mxu0 %v940_v3  ;;  %3504 = vmatprep.subr.bf16.mxu1 %v940_v3  ;;  %v3541_v7 = vld [vmem:[%s3695_s5] sm:$0xff]   ;;  %v3543_v9 = vld [vmem:[%s3695_s5 + $0x8] sm:$0xff]   ;;  %v3545_v11 = vld [vmem:[%s3695_s5 + $0x10] sm:$0xff]  }
  0x11   : > { %3369 = vmatpush3.bf16.msra.mxu0 %v940_v3  ;;  %3508 = vmatpush3.bf16.msra.mxu1 %v940_v3  ;;  %v3542_v8 = vld [vmem:[%s3695_s5 + $0x100] sm:$0xff]   ;;  %v3544_v10 = vld [vmem:[%s3695_s5 + $0x108] sm:$0xff]   ;;  %v3546_v12 = vld [vmem:[%s3695_s5 + $0x110] sm:$0xff]  }
  0x12   : > { %3370 = vmatprep.subr.bf16.mxu0 %v3538_v4  ;;  %3505 = vmatprep.subr.bf16.mxu1 %v3538_v4  ;;  %v3547_v13 = vld [vmem:[%s3695_s5 + $0x18] sm:$0xff]   ;;  %v3549_v15 = vld [vmem:[%s3695_s5 + $0x20] sm:$0xff]   ;;  %v3551_v17 = vld [vmem:[%s3695_s5 + $0x28] sm:$0xff]  }
  0x13   : > { %3376 = vmatprep.mubr.msk.bf16.mxu0 %vm743_vm1, %v3541_v7  ;;  %3440 = vmatprep.mubr.msk.bf16.mxu1 %vm743_vm1, %v3542_v8  ;;  %v3548_v14 = vld [vmem:[%s3695_s5 + $0x118] sm:$0xff]   ;;  %v3550_v16 = vld [vmem:[%s3695_s5 + $0x120] sm:$0xff]   ;;  %v3552_v18 = vld [vmem:[%s3695_s5 + $0x128] sm:$0xff]  }
  0x14   : > { %v3553_v19 = vld [vmem:[%s3695_s5 + $0x30] sm:$0xff]   ;;  %v3555_v21 = vld [vmem:[%s3695_s5 + $0x38] sm:$0xff]   ;;  %v3557_v23 = vld [vmem:[%s3695_s5 + $0x40] sm:$0xff]  }
  0x15   : > { %3371 = vmatpush3.bf16.msra.mxu0 %v3538_v4  ;;  %3509 = vmatpush3.bf16.msra.mxu1 %v3538_v4  ;;  %v3554_v20 = vld [vmem:[%s3695_s5 + $0x130] sm:$0xff]   ;;  %v3556_v22 = vld [vmem:[%s3695_s5 + $0x138] sm:$0xff]   ;;  %v3558_v24 = vld [vmem:[%s3695_s5 + $0x140] sm:$0xff]  }
  0x16   : > { %3372 = vmatprep.subr.bf16.mxu0 %v3539_v5  ;;  %3506 = vmatprep.subr.bf16.mxu1 %v3539_v5  ;;  %v3559_v25 = vld [vmem:[%s3695_s5 + $0x48] sm:$0xff]   ;;  %v3561_v27 = vld [vmem:[%s3695_s5 + $0x50] sm:$0xff]   ;;  %v3563_v29 = vld [vmem:[%s3695_s5 + $0x58] sm:$0xff]  }
  0x17   : > { %v3560_v26 = vld [vmem:[%s3695_s5 + $0x148] sm:$0xff]   ;;  %v3562_v28 = vld [vmem:[%s3695_s5 + $0x150] sm:$0xff]   ;;  %v3564_v30 = vld [vmem:[%s3695_s5 + $0x158] sm:$0xff]  }
  0x18   : > { %v3565_v31 = vld [vmem:[%s3695_s5 + $0x60] sm:$0xff]   ;;  %v3567_v33 = vld [vmem:[%s3695_s5 + $0x68] sm:$0xff]   ;;  %v3569_v35 = vld [vmem:[%s3695_s5 + $0x70] sm:$0xff]  }
  0x19   : > { %3373 = vmatpush3.bf16.msra.mxu0 %v3539_v5  ;;  %3510 = vmatpush3.bf16.msra.mxu1 %v3539_v5  ;;  %v3566_v32 = vld [vmem:[%s3695_s5 + $0x160] sm:$0xff]   ;;  %v3568_v34 = vld [vmem:[%s3695_s5 + $0x168] sm:$0xff]   ;;  %v3570_v36 = vld [vmem:[%s3695_s5 + $0x170] sm:$0xff]  }
  0x1a   : > { %3374 = vmatprep.subr.bf16.mxu0 %v3540_v6  ;;  %3507 = vmatprep.subr.bf16.mxu1 %v3540_v6  ;;  %v3571_v37 = vld [vmem:[%s3695_s5 + $0x78] sm:$0xff]   ;;  %v3573_v39 = vld [vmem:[%s3695_s5 + $0x80] sm:$0xff]   ;;  %v3575_v41 = vld [vmem:[%s3695_s5 + $0x88] sm:$0xff]  }
  0x1b   : > { %v3572_v38 = vld [vmem:[%s3695_s5 + $0x178] sm:$0xff]   ;;  %v3574_v40 = vld [vmem:[%s3695_s5 + $0x180] sm:$0xff]   ;;  %v3576_v42 = vld [vmem:[%s3695_s5 + $0x188] sm:$0xff]  }
  0x1c   : > { %v3577_v43 = vld [vmem:[%s3695_s5 + $0x90] sm:$0xff]   ;;  %v3579_v45 = vld [vmem:[%s3695_s5 + $0x98] sm:$0xff]   ;;  %v3581_v47 = vld [vmem:[%s3695_s5 + $0xa0] sm:$0xff]  }
  0x1d   : > { %3375 = vmatpush3.bf16.msra.mxu0 %v3540_v6  ;;  %3511 = vmatpush3.bf16.msra.mxu1 %v3540_v6  ;;  %v3578_v44 = vld [vmem:[%s3695_s5 + $0x190] sm:$0xff]   ;;  %v3580_v46 = vld [vmem:[%s3695_s5 + $0x198] sm:$0xff]   ;;  %v3582_v48 = vld [vmem:[%s3695_s5 + $0x1a0] sm:$0xff]  }
  0x1e   : > { %v3583_v49 = vld [vmem:[%s3695_s5 + $0xa8] sm:$0xff]   ;;  %v3585_v51 = vld [vmem:[%s3695_s5 + $0xb0] sm:$0xff]   ;;  %v3587_v53 = vld [vmem:[%s3695_s5 + $0xb8] sm:$0xff]  }
  0x1f   : > { %v3584_v50 = vld [vmem:[%s3695_s5 + $0x1a8] sm:$0xff]   ;;  %v3586_v52 = vld [vmem:[%s3695_s5 + $0x1b0] sm:$0xff]   ;;  %v3588_v54 = vld [vmem:[%s3695_s5 + $0x1b8] sm:$0xff]  }
  0x20   : > { %3377 = vmatmul.mubr.msk.bf16.vlgmr.msra.gmra.mxu0 %vm743_vm1, %v3543_v9  ;;  %3441 = vmatmul.mubr.msk.bf16.vlgmr.msra.gmra.mxu1 %vm743_vm1, %v3544_v10  ;;  %v3589_v55 = vld [vmem:[%s3695_s5 + $0xc0] sm:$0xff]   ;;  %v3591_v57 = vld [vmem:[%s3695_s5 + $0xc8] sm:$0xff]   ;;  %v3593_v59 = vld [vmem:[%s3695_s5 + $0xd0] sm:$0xff]  }
  0x21   : > { %3380 = vmatprep.mubr.msk.bf16.mxu0 %vm743_vm1, %v3545_v11  ;;  %3444 = vmatprep.mubr.msk.bf16.mxu1 %vm743_vm1, %v3546_v12  ;;  %v3590_v56 = vld [vmem:[%s3695_s5 + $0x1c0] sm:$0xff]   ;;  %v3592_v58 = vld [vmem:[%s3695_s5 + $0x1c8] sm:$0xff]   ;;  %v3594_v60 = vld [vmem:[%s3695_s5 + $0x1d0] sm:$0xff]  }
  0x22   : > { %v3595_v61 = vld [vmem:[%s3695_s5 + $0xd8] sm:$0xff]   ;;  %v3597_v63 = vld [vmem:[%s3695_s5 + $0xe0] sm:$0xff]   ;;  %v3599_v1 = vld [vmem:[%s3695_s5 + $0xe8] sm:$0xff]  }
  0x23   : > { %v3596_v62 = vld [vmem:[%s3695_s5 + $0x1d8] sm:$0xff]   ;;  %v3598_v0 = vld [vmem:[%s3695_s5 + $0x1e0] sm:$0xff]   ;;  %v3600_v2 = vld [vmem:[%s3695_s5 + $0x1e8] sm:$0xff]  }
  0x24   : > { %v3601_v3 = vld [vmem:[%s3695_s5 + $0xf0] sm:$0xff]   ;;  %v3603_v5 = vld [vmem:[%s3695_s5 + $0xf8] sm:$0xff]   ;;  %v3828_v7 = vld [vmem:[%s4636_s2] ss:$0 sm:$0xff] }
  0x25   : > { %v3602_v4 = vld [vmem:[%s3695_s5 + $0x1f0] sm:$0xff]   ;;  %v3604_v6 = vld [vmem:[%s3695_s5 + $0x1f8] sm:$0xff]   ;;  %v3833_v9 = vld [vmem:[%s4637_s3] ss:$0 sm:$0xff] }
  0x28   : > { %3381 = vmatmul.mubr.msk.bf16.gmra.mxu0 %vm743_vm1, %v3547_v13  ;;  %3445 = vmatmul.mubr.msk.bf16.gmra.mxu1 %vm743_vm1, %v3548_v14 }
  0x29   : > { %3384 = vmatprep.mubr.msk.bf16.mxu0 %vm743_vm1, %v3549_v15  ;;  %3448 = vmatprep.mubr.msk.bf16.mxu1 %vm743_vm1, %v3550_v16 }
  0x30   : > { %3385 = vmatmul.mubr.msk.bf16.gmra.mxu0 %vm743_vm1, %v3551_v17  ;;  %3449 = vmatmul.mubr.msk.bf16.gmra.mxu1 %vm743_vm1, %v3552_v18 }
  0x31   : > { %3388 = vmatprep.mubr.msk.bf16.mxu0 %vm743_vm1, %v3553_v19  ;;  %3452 = vmatprep.mubr.msk.bf16.mxu1 %vm743_vm1, %v3554_v20 }
  0x38   : > { %3389 = vmatmul.mubr.msk.bf16.gmra.mxu0 %vm743_vm1, %v3555_v21  ;;  %3453 = vmatmul.mubr.msk.bf16.gmra.mxu1 %vm743_vm1, %v3556_v22 }
  0x39   : > { %3392 = vmatprep.mubr.msk.bf16.mxu0 %vm743_vm1, %v3557_v23  ;;  %3456 = vmatprep.mubr.msk.bf16.mxu1 %vm743_vm1, %v3558_v24 }
  0x40   : > { %3393 = vmatmul.mubr.msk.bf16.gmra.mxu0 %vm743_vm1, %v3559_v25  ;;  %3457 = vmatmul.mubr.msk.bf16.gmra.mxu1 %vm743_vm1, %v3560_v26 }
  0x41   : > { %3396 = vmatprep.mubr.msk.bf16.mxu0 %vm743_vm1, %v3561_v27  ;;  %3460 = vmatprep.mubr.msk.bf16.mxu1 %vm743_vm1, %v3562_v28 }
  0x48   : > { %3397 = vmatmul.mubr.msk.bf16.gmra.mxu0 %vm743_vm1, %v3563_v29  ;;  %3461 = vmatmul.mubr.msk.bf16.gmra.mxu1 %vm743_vm1, %v3564_v30 }
  0x49   : > { %3400 = vmatprep.mubr.msk.bf16.mxu0 %vm743_vm1, %v3565_v31  ;;  %3464 = vmatprep.mubr.msk.bf16.mxu1 %vm743_vm1, %v3566_v32 }
  0x50   : > { %3401 = vmatmul.mubr.msk.bf16.gmra.mxu0 %vm743_vm1, %v3567_v33  ;;  %3465 = vmatmul.mubr.msk.bf16.gmra.mxu1 %vm743_vm1, %v3568_v34 }
  0x51   : > { %3404 = vmatprep.mubr.msk.bf16.mxu0 %vm743_vm1, %v3569_v35  ;;  %3468 = vmatprep.mubr.msk.bf16.mxu1 %vm743_vm1, %v3570_v36 }
  0x58   : > { %3405 = vmatmul.mubr.msk.bf16.gmra.mxu0 %vm743_vm1, %v3571_v37  ;;  %3469 = vmatmul.mubr.msk.bf16.gmra.mxu1 %vm743_vm1, %v3572_v38 }
  0x59   : > { %3408 = vmatprep.mubr.msk.bf16.mxu0 %vm743_vm1, %v3573_v39  ;;  %3472 = vmatprep.mubr.msk.bf16.mxu1 %vm743_vm1, %v3574_v40 }
  0x60   : > { %3409 = vmatmul.mubr.msk.bf16.gmra.mxu0 %vm743_vm1, %v3575_v41  ;;  %3473 = vmatmul.mubr.msk.bf16.gmra.mxu1 %vm743_vm1, %v3576_v42 }
  0x61   : > { %3412 = vmatprep.mubr.msk.bf16.mxu0 %vm743_vm1, %v3577_v43  ;;  %3476 = vmatprep.mubr.msk.bf16.mxu1 %vm743_vm1, %v3578_v44 }
  0x68   : > { %3413 = vmatmul.mubr.msk.bf16.gmra.mxu0 %vm743_vm1, %v3579_v45  ;;  %3477 = vmatmul.mubr.msk.bf16.gmra.mxu1 %vm743_vm1, %v3580_v46 }
  0x69   : > { %3416 = vmatprep.mubr.msk.bf16.mxu0 %vm743_vm1, %v3581_v47  ;;  %3480 = vmatprep.mubr.msk.bf16.mxu1 %vm743_vm1, %v3582_v48 }
  0x70   : > { %3417 = vmatmul.mubr.msk.bf16.gmra.mxu0 %vm743_vm1, %v3583_v49  ;;  %3481 = vmatmul.mubr.msk.bf16.gmra.mxu1 %vm743_vm1, %v3584_v50 }
  0x71   : > { %3420 = vmatprep.mubr.msk.bf16.mxu0 %vm743_vm1, %v3585_v51  ;;  %3484 = vmatprep.mubr.msk.bf16.mxu1 %vm743_vm1, %v3586_v52 }
  0x78   : > { %3421 = vmatmul.mubr.msk.bf16.gmra.mxu0 %vm743_vm1, %v3587_v53  ;;  %3485 = vmatmul.mubr.msk.bf16.gmra.mxu1 %vm743_vm1, %v3588_v54 }
  0x79   : > { %3424 = vmatprep.mubr.msk.bf16.mxu0 %vm743_vm1, %v3589_v55  ;;  %3488 = vmatprep.mubr.msk.bf16.mxu1 %vm743_vm1, %v3590_v56 }
  0x80   : > { %3425 = vmatmul.mubr.msk.bf16.gmra.mxu0 %vm743_vm1, %v3591_v57  ;;  %3489 = vmatmul.mubr.msk.bf16.gmra.mxu1 %vm743_vm1, %v3592_v58 }
  0x81   : > { %3428 = vmatprep.mubr.msk.bf16.mxu0 %vm743_vm1, %v3593_v59  ;;  %3492 = vmatprep.mubr.msk.bf16.mxu1 %vm743_vm1, %v3594_v60 }
  0x88   : > { %3429 = vmatmul.mubr.msk.bf16.gmra.mxu0 %vm743_vm1, %v3595_v61  ;;  %3493 = vmatmul.mubr.msk.bf16.gmra.mxu1 %vm743_vm1, %v3596_v62 }
  0x89   : > { %3432 = vmatprep.mubr.msk.bf16.mxu0 %vm743_vm1, %v3597_v63  ;;  %3496 = vmatprep.mubr.msk.bf16.mxu1 %vm743_vm1, %v3598_v0 }
  0x90   : > { %3433 = vmatmul.mubr.msk.bf16.gmra.mxu0 %vm743_vm1, %v3599_v1  ;;  %3497 = vmatmul.mubr.msk.bf16.gmra.mxu1 %vm743_vm1, %v3600_v2 }
  0x91   : > { %3436 = vmatprep.mubr.msk.bf16.mxu0 %vm743_vm1, %v3601_v3  ;;  %3500 = vmatprep.mubr.msk.bf16.mxu1 %vm743_vm1, %v3602_v4 }
  0x98   : > { %3437 = vmatmul.mubr.msk.bf16.gmra.mxu0 %vm743_vm1, %v3603_v5  ;;  %3501 = vmatmul.mubr.msk.bf16.gmra.mxu1 %vm743_vm1, %v3604_v6 }
  0xe0   : > { %v3378_v8 = vpop.f32.mrf.mxu0  ;;  %v3442_v10 = vpop.f32.mrf.mxu1 }
  0xe1   : > { %v1496_v11 = vmul.f32 %v3378_v8, %v3828_v7  ;;  %v1560_v12 = vmul.f32 %v3442_v10, %v3828_v7 }
  0xe2   : > { %v976_v13 = vpop.f32.mrf.mxu0  ;;  %v1232_v14 = vpop.f32.mrf.mxu1 }
  0xe3   : > { %v1631_v15 = vadd.f32 %v3833_v9, %v1496_v11  ;;  %v1695_v16 = vadd.f32 %v3833_v9, %v1560_v12  ;;  %v1494_v17 = vmul.f32 %v3828_v7, %v976_v13  ;;  %v1558_v18 = vmul.f32 %v3828_v7, %v1232_v14 }
  0xe4   : > { %v3379_v19 = vpop.f32.mrf.mxu0  ;;  %v3443_v20 = vpop.f32.mrf.mxu1 }
  0xe5   : > { %vm1759_vm3 = vcmp.ge.f32.partialorder %v1631_v15, 0.0  ;;  %v1887_v21 = vmul.f32 0.1, %v1631_v15  ;;  %vm1823_vm4 = vcmp.ge.f32.partialorder %v1695_v16, 0.0  ;;  %v1951_v22 = vmul.f32 0.1, %v1695_v16 }
  0xe6   : > { %v1629_v23 = vadd.f32 %v3833_v9, %v1494_v17  ;;  %v1693_v24 = vadd.f32 %v3833_v9, %v1558_v18  ;;  %v1497_v25 = vmul.f32 %v3379_v19, %v3828_v7  ;;  %v1561_v26 = vmul.f32 %v3443_v20, %v3828_v7  ;;  %v979_v27 = vpop.f32.mrf.mxu0  ;;  %v1235_v28 = vpop.f32.mrf.mxu1 }
  0xe7   : > { %v2015_v29 = vsel %vm1759_vm3, %v1631_v15, %v1887_v21  ;;  %v2079_v30 = vsel %vm1823_vm4, %v1695_v16, %v1951_v22  ;;  %v1495_v31 = vmul.f32 %v3828_v7, %v979_v27  ;;  %v1559_v32 = vmul.f32 %v3828_v7, %v1235_v28 }
  0xe8   : > { %v3174_v33 = vpack.c.bf16 %v2015_v29, %v2015_v29  ;;  %v3238_v34 = vpack.c.bf16 %v2079_v30, %v2079_v30  ;;  %vm1757_vm5 = vcmp.ge.f32.partialorder %v1629_v23, 0.0  ;;  %v1885_v35 = vmul.f32 0.1, %v1629_v23  ;;  %v3382_v36 = vpop.f32.mrf.mxu0  ;;  %v3446_v37 = vpop.f32.mrf.mxu1 }
  0xe9   : > { %vm1821_vm6 = vcmp.ge.f32.partialorder %v1693_v24, 0.0  ;;  %v1949_v38 = vmul.f32 0.1, %v1693_v24  ;;  %v1632_v39 = vadd.f32 %v3833_v9, %v1497_v25  ;;  %v1696_v40 = vadd.f32 %v3833_v9, %v1561_v26 }
  0xea   : > { %2656 = vst.msk [vmem:[%s3850_s12 + $0x8] sm:$0xf] %vm2653_vm2, %v3174_v33  ;;  %2720 = vst.msk [vmem:[%s3850_s12 + $0x108] sm:$0xf] %vm2653_vm2, %v3238_v34  ;;  %v2013_v41 = vsel %vm1757_vm5, %v1629_v23, %v1885_v35  ;;  %v1630_v42 = vadd.f32 %v3833_v9, %v1495_v31  ;;  %v1694_v43 = vadd.f32 %v3833_v9, %v1559_v32  ;;  %v992_v45 = vpop.f32.mrf.mxu0  ;;  %v1248_v46 = vpop.f32.mrf.mxu1 }
  0xeb   : > { %v1500_v44 = vmul.f32 %v3382_v36, %v3828_v7  ;;  %v3172_v47 = vpack.c.bf16 %v2013_v41, %v2013_v41  ;;  %v2077_v48 = vsel %vm1821_vm6, %v1693_v24, %v1949_v38  ;;  %vm1760_vm7 = vcmp.ge.f32.partialorder %v1632_v39, 0.0 }
  0xec   : > { %v1888_v49 = vmul.f32 0.1, %v1632_v39  ;;  %v3236_v50 = vpack.c.bf16 %v2077_v48, %v2077_v48  ;;  %vm1824_vm8 = vcmp.ge.f32.partialorder %v1696_v40, 0.0  ;;  %v1952_v51 = vmul.f32 0.1, %v1696_v40  ;;  %v3383_v52 = vpop.f32.mrf.mxu0  ;;  %v3447_v53 = vpop.f32.mrf.mxu1 }
  0xed   : > { %vm1758_vm9 = vcmp.ge.f32.partialorder %v1630_v42, 0.0  ;;  %2654 = vst.msk [vmem:[%s3850_s12] sm:$0xf] %vm2653_vm2, %v3172_v47  ;;  %v1886_v55 = vmul.f32 0.1, %v1630_v42  ;;  %vm1822_vm10 = vcmp.ge.f32.partialorder %v1694_v43, 0.0  ;;  %v1635_v59 = vadd.f32 %v3833_v9, %v1500_v44 }
  0xee   : > { %v2016_v54 = vsel %vm1760_vm7, %v1632_v39, %v1888_v49  ;;  %v1950_v56 = vmul.f32 0.1, %v1694_v43  ;;  %2718 = vst.msk [vmem:[%s3850_s12 + $0x100] sm:$0xf] %vm2653_vm2, %v3236_v50  ;;  %v2080_v58 = vsel %vm1824_vm8, %v1696_v40, %v1952_v51  ;;  %v1564_v60 = vmul.f32 %v3446_v37, %v3828_v7  ;;  %v995_v61 = vpop.f32.mrf.mxu0  ;;  %v1251_v62 = vpop.f32.mrf.mxu1 }
  0xef   : > { %v3175_v57 = vpack.c.bf16 %v2016_v54, %v2016_v54  ;;  %v3239_v63 = vpack.c.bf16 %v2080_v58, %v2080_v58  ;;  %v2014_v0 = vsel %vm1758_vm9, %v1630_v42, %v1886_v55  ;;  %v1498_v2 = vmul.f32 %v3828_v7, %v992_v45 }
  0xf0   : > { %v2078_v1 = vsel %vm1822_vm10, %v1694_v43, %v1950_v56  ;;  %v3173_v3 = vpack.c.bf16 %v2014_v0, %v2014_v0  ;;  %vm1763_vm11 = vcmp.ge.f32.partialorder %v1635_v59, 0.0  ;;  %v1891_v5 = vmul.f32 0.1, %v1635_v59  ;;  %v3386_v6 = vpop.f32.mrf.mxu0  ;;  %v3450_v8 = vpop.f32.mrf.mxu1 }
  0xf1   : > { %2657 = vst.msk [vmem:[%s3850_s12 + $0xc] sm:$0xf] %vm2653_vm2, %v3175_v57  ;;  %v3237_v4 = vpack.c.bf16 %v2078_v1, %v2078_v1  ;;  %2721 = vst.msk [vmem:[%s3850_s12 + $0x10c] sm:$0xf] %vm2653_vm2, %v3239_v63  ;;  %v1699_v10 = vadd.f32 %v3833_v9, %v1564_v60  ;;  %v1633_v11 = vadd.f32 %v3833_v9, %v1498_v2 }
  0xf2   : > { %v1562_v12 = vmul.f32 %v3828_v7, %v1248_v46  ;;  %v1501_v13 = vmul.f32 %v3383_v52, %v3828_v7  ;;  %2655 = vst.msk [vmem:[%s3850_s12 + $0x4] sm:$0xf] %vm2653_vm2, %v3173_v3  ;;  %v2019_v14 = vsel %vm1763_vm11, %v1635_v59, %v1891_v5  ;;  %v1565_v15 = vmul.f32 %v3447_v53, %v3828_v7  ;;  %v1008_v18 = vpop.f32.mrf.mxu0  ;;  %v1264_v19 = vpop.f32.mrf.mxu1 }
  0xf3   : > { %2719 = vst.msk [vmem:[%s3850_s12 + $0x104] sm:$0xf] %vm2653_vm2, %v3237_v4  ;;  %v1499_v16 = vmul.f32 %v3828_v7, %v995_v61  ;;  %v1563_v17 = vmul.f32 %v3828_v7, %v1251_v62  ;;  %v3178_v20 = vpack.c.bf16 %v2019_v14, %v2019_v14  ;;  %vm1827_vm12 = vcmp.ge.f32.partialorder %v1699_v10, 0.0 }
  0xf4   : > { %v1955_v21 = vmul.f32 0.1, %v1699_v10  ;;  %vm1761_vm13 = vcmp.ge.f32.partialorder %v1633_v11, 0.0  ;;  %v1889_v22 = vmul.f32 0.1, %v1633_v11  ;;  %v1697_v23 = vadd.f32 %v3833_v9, %v1562_v12  ;;  %v3387_v26 = vpop.f32.mrf.mxu0  ;;  %v3451_v27 = vpop.f32.mrf.mxu1 }
  0xf5   : > { %v1636_v24 = vadd.f32 %v3833_v9, %v1501_v13  ;;  %v1700_v25 = vadd.f32 %v3833_v9, %v1565_v15  ;;  %2660 = vst.msk [vmem:[%s3850_s12 + $0x18] sm:$0xf] %vm2653_vm2, %v3178_v20  ;;  %v1634_v29 = vadd.f32 %v3833_v9, %v1499_v16  ;;  %v1698_v30 = vadd.f32 %v3833_v9, %v1563_v17 }
  0xf6   : > { %v2083_v28 = vsel %vm1827_vm12, %v1699_v10, %v1955_v21  ;;  %v1504_v31 = vmul.f32 %v3386_v6, %v3828_v7  ;;  %v2017_v33 = vsel %vm1761_vm13, %v1633_v11, %v1889_v22  ;;  %vm1825_vm14 = vcmp.ge.f32.partialorder %v1697_v23, 0.0  ;;  %v1011_v35 = vpop.f32.mrf.mxu0  ;;  %v1267_v36 = vpop.f32.mrf.mxu1 }
  0xf7   : > { %v3242_v32 = vpack.c.bf16 %v2083_v28, %v2083_v28  ;;  %v1953_v34 = vmul.f32 0.1, %v1697_v23  ;;  %v3176_v37 = vpack.c.bf16 %v2017_v33, %v2017_v33  ;;  %vm1764_vm15 = vcmp.ge.f32.partialorder %v1636_v24, 0.0 }
  0xf8   : > { %v1892_v38 = vmul.f32 0.1, %v1636_v24  ;;  %vm1828_vm0 = vcmp.ge.f32.partialorder %v1700_v25, 0.0  ;;  %v1956_v40 = vmul.f32 0.1, %v1700_v25  ;;  %vm1762_vm1 = vcmp.ge.f32.partialorder %v1634_v29, 0.0  ;;  %v3896_v42 = vpop.f32.mrf.mxu0  ;;  %v3898_v43 = vpop.f32.mrf.mxu1 }
  0xf9   : > { %2724 = vst.msk [vmem:[%s3850_s12 + $0x118] sm:$0xf] %vm2653_vm2, %v3242_v32  ;;  %v2081_v39 = vsel %vm1825_vm14, %v1697_v23, %v1953_v34  ;;  %v1890_v41 = vmul.f32 0.1, %v1634_v29  ;;  %2658 = vst.msk [vmem:[%s3850_s12 + $0x10] sm:$0xf] %vm2653_vm2, %v3176_v37  ;;  %v1639_v50 = vadd.f32 %v3833_v9, %v1504_v31  ;;  %v1568_v56 = vmul.f32 %v3450_v8, %v3828_v7 }
  0xfa   : > { %v3240_v44 = vpack.c.bf16 %v2081_v39, %v2081_v39  ;;  %v2020_v45 = vsel %vm1764_vm15, %v1636_v24, %v1892_v38  ;;  %vm1826_vm3 = vcmp.ge.f32.partialorder %v1698_v30, 0.0  ;;  %v1954_v46 = vmul.f32 0.1, %v1698_v30  ;;  %v3903_v51 = vpop.f32.mrf.mxu0  ;;  %v3905_v52 = vpop.f32.mrf.mxu1 }
  0xfb   : > { %v3179_v47 = vpack.c.bf16 %v2020_v45, %v2020_v45  ;;  %v2084_v48 = vsel %vm1828_vm0, %v1700_v25, %v1956_v40  ;;  %v2018_v49 = vsel %vm1762_vm1, %v1634_v29, %v1890_v41  ;;  %vm1767_vm4 = vcmp.ge.f32.partialorder %v1639_v50, 0.0 }
  0xfc   : > { %2722 = vst.msk [vmem:[%s3850_s12 + $0x110] sm:$0xf] %vm2653_vm2, %v3240_v44  ;;  %v3243_v53 = vpack.c.bf16 %v2084_v48, %v2084_v48  ;;  %v3177_v54 = vpack.c.bf16 %v2018_v49, %v2018_v49  ;;  %v2082_v55 = vsel %vm1826_vm3, %v1698_v30, %v1954_v46  ;;  %v1895_v58 = vmul.f32 0.1, %v1639_v50  ;;  %v3913_v60 = vpop.f32.mrf.mxu0  ;;  %v3915_v61 = vpop.f32.mrf.mxu1 }
  0xfd   : > { %2661 = vst.msk [vmem:[%s3850_s12 + $0x1c] sm:$0xf] %vm2653_vm2, %v3179_v47  ;;  %v3241_v57 = vpack.c.bf16 %v2082_v55, %v2082_v55  ;;  %v1502_v59 = vmul.f32 %v3828_v7, %v1008_v18  ;;  %v1703_v62 = vadd.f32 %v3833_v9, %v1568_v56  ;;  %v1566_v63 = vmul.f32 %v3828_v7, %v1264_v19 }
  0xfe   : > { %2725 = vst.msk [vmem:[%s3850_s12 + $0x11c] sm:$0xf] %vm2653_vm2, %v3243_v53  ;;  %2659 = vst.msk [vmem:[%s3850_s12 + $0x14] sm:$0xf] %vm2653_vm2, %v3177_v54  ;;  %v1505_v0 = vmul.f32 %v3387_v26, %v3828_v7  ;;  %v1569_v1 = vmul.f32 %v3451_v27, %v3828_v7  ;;  %v2023_v2 = vsel %vm1767_vm4, %v1639_v50, %v1895_v58  ;;  %v3930_v6 = vpop.f32.mrf.mxu0  ;;  %v3932_v8 = vpop.f32.mrf.mxu1 }
  0xff   : > { %2723 = vst.msk [vmem:[%s3850_s12 + $0x114] sm:$0xf] %vm2653_vm2, %v3241_v57  ;;  %v1637_v3 = vadd.f32 %v3833_v9, %v1502_v59  ;;  %v1503_v4 = vmul.f32 %v3828_v7, %v1011_v35  ;;  %v1567_v5 = vmul.f32 %v3828_v7, %v1267_v36  ;;  %v3182_v10 = vpack.c.bf16 %v2023_v2, %v2023_v2 }
 0x100   : > { %vm1831_vm5 = vcmp.ge.f32.partialorder %v1703_v62, 0.0  ;;  %v1959_v11 = vmul.f32 0.1, %v1703_v62  ;;  %v1701_v12 = vadd.f32 %v3833_v9, %v1566_v63  ;;  %v1640_v14 = vadd.f32 %v3833_v9, %v1505_v0  ;;  %v3937_v16 = vpop.f32.mrf.mxu0  ;;  %v3939_v17 = vpop.f32.mrf.mxu1 }
 0x101   : > { %vm1765_vm6 = vcmp.ge.f32.partialorder %v1637_v3, 0.0  ;;  %v1893_v13 = vmul.f32 0.1, %v1637_v3  ;;  %v1704_v15 = vadd.f32 %v3833_v9, %v1569_v1  ;;  %2664 = vst.msk [vmem:[%s3850_s12 + $0x28] sm:$0xf] %vm2653_vm2, %v3182_v10  ;;  %v1638_v20 = vadd.f32 %v3833_v9, %v1503_v4 }
 0x102   : > { %v2087_v18 = vsel %vm1831_vm5, %v1703_v62, %v1959_v11  ;;  %vm1829_vm7 = vcmp.ge.f32.partialorder %v1701_v12, 0.0  ;;  %v1957_v19 = vmul.f32 0.1, %v1701_v12  ;;  %vm1768_vm8 = vcmp.ge.f32.partialorder %v1640_v14, 0.0  ;;  %v3944_v24 = vpop.f32.mrf.mxu0  ;;  %v3946_v25 = vpop.f32.mrf.mxu1 }
 0x103   : > { %v3246_v21 = vpack.c.bf16 %v2087_v18, %v2087_v18  ;;  %v2021_v22 = vsel %vm1765_vm6, %v1637_v3, %v1893_v13  ;;  %v1896_v23 = vmul.f32 0.1, %v1640_v14  ;;  %vm1832_vm9 = vcmp.ge.f32.partialorder %v1704_v15, 0.0 }
 0x104   : > { %v3180_v26 = vpack.c.bf16 %v2021_v22, %v2021_v22  ;;  %v2085_v27 = vsel %vm1829_vm7, %v1701_v12, %v1957_v19  ;;  %v1960_v28 = vmul.f32 0.1, %v1704_v15  ;;  %vm1766_vm10 = vcmp.ge.f32.partialorder %v1638_v20, 0.0  ;;  %v3950_v32 = vpop.f32.mrf.mxu0  ;;  %v3952_v33 = vpop.f32.mrf.mxu1 }
 0x105   : > { %2728 = vst.msk [vmem:[%s3850_s12 + $0x128] sm:$0xf] %vm2653_vm2, %v3246_v21  ;;  %v3244_v29 = vpack.c.bf16 %v2085_v27, %v2085_v27  ;;  %v2024_v30 = vsel %vm1768_vm8, %v1640_v14, %v1896_v23  ;;  %v1894_v31 = vmul.f32 0.1, %v1638_v20  ;;  %v1702_v36 = vadd.f32 %v3833_v9, %v1567_v5 }
 0x106   : > { %2662 = vst.msk [vmem:[%s3850_s12 + $0x20] sm:$0xf] %vm2653_vm2, %v3180_v26  ;;  %v3183_v34 = vpack.c.bf16 %v2024_v30, %v2024_v30  ;;  %v2088_v35 = vsel %vm1832_vm9, %v1704_v15, %v1960_v28  ;;  %v1508_v37 = vmul.f32 %v3896_v42, %v3828_v7  ;;  %v1572_v40 = vmul.f32 %v3898_v43, %v3828_v7  ;;  %v3965_v44 = vpop.f32.mrf.mxu0  ;;  %v3967_v45 = vpop.f32.mrf.mxu1 }
 0x107   : > { %2726 = vst.msk [vmem:[%s3850_s12 + $0x120] sm:$0xf] %vm2653_vm2, %v3244_v29  ;;  %v3247_v38 = vpack.c.bf16 %v2088_v35, %v2088_v35  ;;  %v2022_v39 = vsel %vm1766_vm10, %v1638_v20, %v1894_v31  ;;  %v1506_v41 = vmul.f32 %v3828_v7, %v3903_v51  ;;  %vm1830_vm11 = vcmp.ge.f32.partialorder %v1702_v36, 0.0 }
 0x108   : > { %2665 = vst.msk [vmem:[%s3850_s12 + $0x2c] sm:$0xf] %vm2653_vm2, %v3183_v34  ;;  %v3181_v46 = vpack.c.bf16 %v2022_v39, %v2022_v39  ;;  %v1958_v42 = vmul.f32 0.1, %v1702_v36  ;;  %v1643_v47 = vadd.f32 %v3833_v9, %v1508_v37  ;;  %v1707_v48 = vadd.f32 %v3833_v9, %v1572_v40  ;;  %v3980_v51 = vpop.f32.mrf.mxu0  ;;  %v3982_v53 = vpop.f32.mrf.mxu1 }
 0x109   : > { %2729 = vst.msk [vmem:[%s3850_s12 + $0x12c] sm:$0xf] %vm2653_vm2, %v3247_v38  ;;  %v1641_v43 = vadd.f32 %v3833_v9, %v1506_v41  ;;  %v1570_v49 = vmul.f32 %v3828_v7, %v3905_v52  ;;  %v1509_v50 = vmul.f32 %v3913_v60, %v3828_v7  ;;  %v1573_v56 = vmul.f32 %v3915_v61, %v3828_v7 }
 0x10a   : > { %2663 = vst.msk [vmem:[%s3850_s12 + $0x24] sm:$0xf] %vm2653_vm2, %v3181_v46  ;;  %v2086_v54 = vsel %vm1830_vm11, %v1702_v36, %v1958_v42  ;;  %vm1771_vm12 = vcmp.ge.f32.partialorder %v1643_v47, 0.0  ;;  %v1899_v55 = vmul.f32 0.1, %v1643_v47  ;;  %vm1835_vm13 = vcmp.ge.f32.partialorder %v1707_v48, 0.0  ;;  %v3988_v52 = vpop.f32.mrf.mxu0  ;;  %v3990_v59 = vpop.f32.mrf.mxu1 }
 0x10b   : > { %v3245_v57 = vpack.c.bf16 %v2086_v54, %v2086_v54  ;;  %v1963_v58 = vmul.f32 0.1, %v1707_v48  ;;  %vm1769_vm14 = vcmp.ge.f32.partialorder %v1641_v43, 0.0  ;;  %v1897_v62 = vmul.f32 0.1, %v1641_v43 }
 0x10c   : > { %v2027_v60 = vsel %vm1771_vm12, %v1643_v47, %v1899_v55  ;;  %v1705_v63 = vadd.f32 %v3833_v9, %v1570_v49  ;;  %v1644_v0 = vadd.f32 %v3833_v9, %v1509_v50  ;;  %v1708_v61 = vadd.f32 %v3833_v9, %v1573_v56  ;;  %v3999_v4 = vpop.f32.mrf.mxu0  ;;  %v4001_v5 = vpop.f32.mrf.mxu1 }
 0x10d   : > { %2727 = vst.msk [vmem:[%s3850_s12 + $0x124] sm:$0xf] %vm2653_vm2, %v3245_v57  ;;  %v3186_v1 = vpack.c.bf16 %v2027_v60, %v2027_v60  ;;  %v2091_v2 = vsel %vm1835_vm13, %v1707_v48, %v1963_v58  ;;  %v1507_v3 = vmul.f32 %v3828_v7, %v3930_v6  ;;  %v2025_v11 = vsel %vm1769_vm14, %v1641_v43, %v1897_v62 }
 0x10e   : > { %v3250_v10 = vpack.c.bf16 %v2091_v2, %v2091_v2  ;;  %vm1833_vm15 = vcmp.ge.f32.partialorder %v1705_v63, 0.0  ;;  %v1961_v12 = vmul.f32 0.1, %v1705_v63  ;;  %v3184_v13 = vpack.c.bf16 %v2025_v11, %v2025_v11  ;;  %v4005_v15 = vpop.f32.mrf.mxu0  ;;  %v4007_v18 = vpop.f32.mrf.mxu1 }
 0x10f   : > { %2668 = vst.msk [vmem:[%s3850_s12 + $0x38] sm:$0xf] %vm2653_vm2, %v3186_v1  ;;  %vm1772_vm0 = vcmp.ge.f32.partialorder %v1644_v0, 0.0  ;;  %v1900_v14 = vmul.f32 0.1, %v1644_v0  ;;  %vm1836_vm1 = vcmp.ge.f32.partialorder %v1708_v61, 0.0  ;;  %v1642_v20 = vadd.f32 %v3833_v9, %v1507_v3 }
 0x110   : > { %2732 = vst.msk [vmem:[%s3850_s12 + $0x138] sm:$0xf] %vm2653_vm2, %v3250_v10  ;;  %v2089_v6 = vsel %vm1833_vm15, %v1705_v63, %v1961_v12  ;;  %v1964_v19 = vmul.f32 0.1, %v1708_v61  ;;  %v1571_v21 = vmul.f32 %v3828_v7, %v3932_v8  ;;  %2666 = vst.msk [vmem:[%s3850_s12 + $0x30] sm:$0xf] %vm2653_vm2, %v3184_v13  ;;  %v1512_v26 = vmul.f32 %v3937_v16, %v3828_v7  ;;  %v4020_v28 = vpop.f32.mrf.mxu0  ;;  %v4022_v29 = vpop.f32.mrf.mxu1 }
 0x111   : > { %v3248_v22 = vpack.c.bf16 %v2089_v6, %v2089_v6  ;;  %v2028_v23 = vsel %vm1772_vm0, %v1644_v0, %v1900_v14  ;;  %v1576_v27 = vmul.f32 %v3939_v17, %v3828_v7  ;;  %vm1770_vm3 = vcmp.ge.f32.partialorder %v1642_v20, 0.0 }
 0x112   : > { %v3187_v30 = vpack.c.bf16 %v2028_v23, %v2028_v23  ;;  %v2092_v31 = vsel %vm1836_vm1, %v1708_v61, %v1964_v19  ;;  %v1898_v8 = vmul.f32 0.1, %v1642_v20  ;;  %v1706_v35 = vadd.f32 %v3833_v9, %v1571_v21  ;;  %v4030_v17 = vpop.f32.mrf.mxu0  ;;  %v4032_v37 = vpop.f32.mrf.mxu1 }
 0x113   : > { %2730 = vst.msk [vmem:[%s3850_s12 + $0x130] sm:$0xf] %vm2653_vm2, %v3248_v22  ;;  %v3251_v34 = vpack.c.bf16 %v2092_v31, %v2092_v31  ;;  %v1647_v16 = vadd.f32 %v3833_v9, %v1512_v26  ;;  %v1711_v36 = vadd.f32 %v3833_v9, %v1576_v27  ;;  %v1510_v39 = vmul.f32 %v3828_v7, %v3944_v24 }
 0x114   : > { %2669 = vst.msk [vmem:[%s3850_s12 + $0x3c] sm:$0xf] %vm2653_vm2, %v3187_v30  ;;  %v2026_v38 = vsel %vm1770_vm3, %v1642_v20, %v1898_v8  ;;  %v1574_v40 = vmul.f32 %v3828_v7, %v3946_v25  ;;  %v1513_v41 = vmul.f32 %v3950_v32, %v3828_v7  ;;  %vm1834_vm4 = vcmp.ge.f32.partialorder %v1706_v35, 0.0  ;;  %v4044_v47 = vpop.f32.mrf.mxu0  ;;  %v4046_v48 = vpop.f32.mrf.mxu1 }
 0x115   : > { %2733 = vst.msk [vmem:[%s3850_s12 + $0x13c] sm:$0xf] %vm2653_vm2, %v3251_v34  ;;  %v3185_v46 = vpack.c.bf16 %v2026_v38, %v2026_v38  ;;  %v1962_v42 = vmul.f32 0.1, %v1706_v35  ;;  %vm1775_vm5 = vcmp.ge.f32.partialorder %v1647_v16, 0.0  ;;  %vm1839_vm6 = vcmp.ge.f32.partialorder %v1711_v36, 0.0 }
 0x116   : > { %v1903_v43 = vmul.f32 0.1, %v1647_v16  ;;  %v1967_v49 = vmul.f32 0.1, %v1711_v36  ;;  %v1645_v24 = vadd.f32 %v3833_v9, %v1510_v39  ;;  %v1709_v32 = vadd.f32 %v3833_v9, %v1574_v40  ;;  %v4055_v55 = vpop.f32.mrf.mxu0  ;;  %v4057_v56 = vpop.f32.mrf.mxu1 }
 0x117   : > { %2667 = vst.msk [vmem:[%s3850_s12 + $0x34] sm:$0xf] %vm2653_vm2, %v3185_v46  ;;  %v2090_v25 = vsel %vm1834_vm4, %v1706_v35, %v1962_v42  ;;  %v1648_v50 = vadd.f32 %v3833_v9, %v1513_v41  ;;  %v1577_v54 = vmul.f32 %v3952_v33, %v3828_v7  ;;  %v1511_v11 = vmul.f32 %v3828_v7, %v3965_v44 }
 0x118   : > { %v3249_v57 = vpack.c.bf16 %v2090_v25, %v2090_v25  ;;  %v2031_v58 = vsel %vm1775_vm5, %v1647_v16, %v1903_v43  ;;  %v2095_v60 = vsel %vm1839_vm6, %v1711_v36, %v1967_v49  ;;  %vm1773_vm7 = vcmp.ge.f32.partialorder %v1645_v24, 0.0  ;;  %v4059_v1 = vpop.f32.mrf.mxu0  ;;  %v4061_v2 = vpop.f32.mrf.mxu1 }
 0x119   : > { %v3190_v62 = vpack.c.bf16 %v2031_v58, %v2031_v58  ;;  %v3254_v63 = vpack.c.bf16 %v2095_v60, %v2095_v60  ;;  %v1901_v0 = vmul.f32 0.1, %v1645_v24  ;;  %vm1837_vm8 = vcmp.ge.f32.partialorder %v1709_v32, 0.0 }
 0x11a   : > { %2731 = vst.msk [vmem:[%s3850_s12 + $0x134] sm:$0xf] %vm2653_vm2, %v3249_v57  ;;  %v1965_v33 = vmul.f32 0.1, %v1709_v32  ;;  %vm1776_vm9 = vcmp.ge.f32.partialorder %v1648_v50, 0.0  ;;  %v1712_v3 = vadd.f32 %v3833_v9, %v1577_v54  ;;  %v1575_v12 = vmul.f32 %v3828_v7, %v3967_v45  ;;  %v4076_v14 = vpop.f32.mrf.mxu0  ;;  %v4078_v6 = vpop.f32.mrf.mxu1 }
 0x11b   : > { %v1904_v61 = vmul.f32 0.1, %v1648_v50  ;;  %2672 = vst.msk [vmem:[%s3850_s12 + $0x48] sm:$0xf] %vm2653_vm2, %v3190_v62  ;;  %2736 = vst.msk [vmem:[%s3850_s12 + $0x148] sm:$0xf] %vm2653_vm2, %v3254_v63  ;;  %v2029_v10 = vsel %vm1773_vm7, %v1645_v24, %v1901_v0  ;;  %v1516_v13 = vmul.f32 %v3980_v51, %v3828_v7  ;;  %v1646_v26 = vadd.f32 %v3833_v9, %v1511_v11 }
 0x11c   : > { %v3188_v19 = vpack.c.bf16 %v2029_v10, %v2029_v10  ;;  %v2093_v20 = vsel %vm1837_vm8, %v1709_v32, %v1965_v33  ;;  %vm1840_vm10 = vcmp.ge.f32.partialorder %v1712_v3, 0.0  ;;  %v1968_v44 = vmul.f32 0.1, %v1712_v3  ;;  %v4082_v45 = vpop.f32.mrf.mxu0  ;;  %v4084_v27 = vpop.f32.mrf.mxu1 }
 0x11d   : > { %v2032_v21 = vsel %vm1776_vm9, %v1648_v50, %v1904_v61  ;;  %v3252_v22 = vpack.c.bf16 %v2093_v20, %v2093_v20  ;;  %v1710_v51 = vadd.f32 %v3833_v9, %v1575_v12  ;;  %v1651_v30 = vadd.f32 %v3833_v9, %v1516_v13 }
 0x11e   : > { %v3191_v23 = vpack.c.bf16 %v2032_v21, %v2032_v21  ;;  %2670 = vst.msk [vmem:[%s3850_s12 + $0x40] sm:$0xf] %vm2653_vm2, %v3188_v19  ;;  %v1580_v31 = vmul.f32 %v3982_v53, %v3828_v7  ;;  %v1514_v8 = vmul.f32 %v3828_v7, %v3988_v52  ;;  %v2096_v34 = vsel %vm1840_vm10, %v1712_v3, %v1968_v44  ;;  %v4100_v36 = vpop.f32.mrf.mxu0  ;;  %v4102_v38 = vpop.f32.mrf.mxu1 }
 0x11f   : > { %2734 = vst.msk [vmem:[%s3850_s12 + $0x140] sm:$0xf] %vm2653_vm2, %v3252_v22  ;;  %vm1774_vm11 = vcmp.ge.f32.partialorder %v1646_v26, 0.0  ;;  %v1902_v35 = vmul.f32 0.1, %v1646_v26  ;;  %v1578_v16 = vmul.f32 %v3828_v7, %v3990_v59  ;;  %v3255_v39 = vpack.c.bf16 %v2096_v34, %v2096_v34 }
 0x120   : > { %2673 = vst.msk [vmem:[%s3850_s12 + $0x4c] sm:$0xf] %vm2653_vm2, %v3191_v23  ;;  %vm1838_vm12 = vcmp.ge.f32.partialorder %v1710_v51, 0.0  ;;  %v1966_v53 = vmul.f32 0.1, %v1710_v51  ;;  %vm1779_vm13 = vcmp.ge.f32.partialorder %v1651_v30, 0.0  ;;  %v1715_v41 = vadd.f32 %v3833_v9, %v1580_v31  ;;  %v4106_v42 = vpop.f32.mrf.mxu0  ;;  %v4108_v43 = vpop.f32.mrf.mxu1 }
 0x121   : > { %v2030_v52 = vsel %vm1774_vm11, %v1646_v26, %v1902_v35  ;;  %v1907_v40 = vmul.f32 0.1, %v1651_v30  ;;  %v1649_v46 = vadd.f32 %v3833_v9, %v1514_v8  ;;  %2737 = vst.msk [vmem:[%s3850_s12 + $0x14c] sm:$0xf] %vm2653_vm2, %v3255_v39  ;;  %v1713_v24 = vadd.f32 %v3833_v9, %v1578_v16 }
 0x122   : > { %v3189_v59 = vpack.c.bf16 %v2030_v52, %v2030_v52  ;;  %v2094_v49 = vsel %vm1838_vm12, %v1710_v51, %v1966_v53  ;;  %v1517_v25 = vmul.f32 %v3999_v4, %v3828_v7  ;;  %vm1843_vm14 = vcmp.ge.f32.partialorder %v1715_v41, 0.0  ;;  %v4115_v57 = vpop.f32.mrf.mxu0  ;;  %v4117_v58 = vpop.f32.mrf.mxu1 }
 0x123   : > { %v3253_v32 = vpack.c.bf16 %v2094_v49, %v2094_v49  ;;  %v2035_v50 = vsel %vm1779_vm13, %v1651_v30, %v1907_v40  ;;  %v1971_v54 = vmul.f32 0.1, %v1715_v41  ;;  %vm1777_vm15 = vcmp.ge.f32.partialorder %v1649_v46, 0.0 }
 0x124   : > { %2671 = vst.msk [vmem:[%s3850_s12 + $0x44] sm:$0xf] %vm2653_vm2, %v3189_v59  ;;  %v3194_v60 = vpack.c.bf16 %v2035_v50, %v2035_v50  ;;  %v1905_v62 = vmul.f32 0.1, %v1649_v46  ;;  %vm1841_vm0 = vcmp.ge.f32.partialorder %v1713_v24, 0.0  ;;  %v1652_v0 = vadd.f32 %v3833_v9, %v1517_v25  ;;  %v4126_v61 = vpop.f32.mrf.mxu0  ;;  %v4134_v13 = vpop.f32.mrf.mxu1 }
 0x125   : > { %2735 = vst.msk [vmem:[%s3850_s12 + $0x144] sm:$0xf] %vm2653_vm2, %v3253_v32  ;;  %v2099_v63 = vsel %vm1843_vm14, %v1715_v41, %v1971_v54  ;;  %v1969_v4 = vmul.f32 0.1, %v1713_v24  ;;  %v1581_v33 = vmul.f32 %v4001_v5, %v3828_v7  ;;  %v1515_v11 = vmul.f32 %v3828_v7, %v4005_v15 }
 0x126   : > { %2676 = vst.msk [vmem:[%s3850_s12 + $0x58] sm:$0xf] %vm2653_vm2, %v3194_v60  ;;  %v3258_v3 = vpack.c.bf16 %v2099_v63, %v2099_v63  ;;  %v2033_v10 = vsel %vm1777_vm15, %v1649_v46, %v1905_v62  ;;  %v1579_v12 = vmul.f32 %v3828_v7, %v4007_v18  ;;  %vm1780_vm1 = vcmp.ge.f32.partialorder %v1652_v0, 0.0  ;;  %v4149_v30 = vpop.f32.mrf.mxu0  ;;  %v4153_v34 = vpop.f32.mrf.mxu1 }
 0x127   : > { %v3192_v19 = vpack.c.bf16 %v2033_v10, %v2033_v10  ;;  %v2097_v20 = vsel %vm1841_vm0, %v1713_v24, %v1969_v4  ;;  %v1908_v5 = vmul.f32 0.1, %v1652_v0  ;;  %v1716_v22 = vadd.f32 %v3833_v9, %v1581_v33 }
 0x128   : > { %2740 = vst.msk [vmem:[%s3850_s12 + $0x158] sm:$0xf] %vm2653_vm2, %v3258_v3  ;;  %v3256_v21 = vpack.c.bf16 %v2097_v20, %v2097_v20  ;;  %v1650_v23 = vadd.f32 %v3833_v9, %v1515_v11  ;;  %v1714_v44 = vadd.f32 %v3833_v9, %v1579_v12  ;;  %v1520_v18 = vmul.f32 %v4020_v28, %v3828_v7  ;;  %v4162_v46 = vpop.f32.mrf.mxu0  ;;  %v4164_v25 = vpop.f32.mrf.mxu1 }
 0x129   : > { %2674 = vst.msk [vmem:[%s3850_s12 + $0x50] sm:$0xf] %vm2653_vm2, %v3192_v19  ;;  %v2036_v15 = vsel %vm1780_vm1, %v1652_v0, %v1908_v5  ;;  %v1584_v26 = vmul.f32 %v4022_v29, %v3828_v7  ;;  %v1518_v51 = vmul.f32 %v3828_v7, %v4030_v17  ;;  %vm1844_vm3 = vcmp.ge.f32.partialorder %v1716_v22, 0.0 }
 0x12a   : > { %2738 = vst.msk [vmem:[%s3850_s12 + $0x150] sm:$0xf] %vm2653_vm2, %v3256_v21  ;;  %v3195_v31 = vpack.c.bf16 %v2036_v15, %v2036_v15  ;;  %v1972_v8 = vmul.f32 0.1, %v1716_v22  ;;  %vm1778_vm4 = vcmp.ge.f32.partialorder %v1650_v23, 0.0  ;;  %vm1842_vm5 = vcmp.ge.f32.partialorder %v1714_v44, 0.0  ;;  %v4179_v3 = vpop.f32.mrf.mxu0 }
 0x12b   : > { %v1906_v35 = vmul.f32 0.1, %v1650_v23  ;;  %v1970_v16 = vmul.f32 0.1, %v1714_v44  ;;  %v1655_v28 = vadd.f32 %v3833_v9, %v1520_v18  ;;  %v1719_v17 = vadd.f32 %v3833_v9, %v1584_v26 }
 0x12c   : > { %2677 = vst.msk [vmem:[%s3850_s12 + $0x5c] sm:$0xf] %vm2653_vm2, %v3195_v31  ;;  %v2100_v29 = vsel %vm1844_vm3, %v1716_v22, %v1972_v8  ;;  %v1653_v39 = vadd.f32 %v3833_v9, %v1518_v51  ;;  %v1582_v53 = vmul.f32 %v3828_v7, %v4032_v37  ;;  %v1521_v60 = vmul.f32 %v4044_v47, %v3828_v7  ;;  %v4182_v47 = vpop.f32.mrf.mxu1 }
 0x12d   : > { %v3259_v52 = vpack.c.bf16 %v2100_v29, %v2100_v29  ;;  %v2034_v40 = vsel %vm1778_vm4, %v1650_v23, %v1906_v35  ;;  %v2098_v41 = vsel %vm1842_vm5, %v1714_v44, %v1970_v16  ;;  %vm1783_vm6 = vcmp.ge.f32.partialorder %v1655_v28, 0.0 }
 0x12e   : > { %v3193_v59 = vpack.c.bf16 %v2034_v40, %v2034_v40  ;;  %v3257_v49 = vpack.c.bf16 %v2098_v41, %v2098_v41  ;;  %v1911_v24 = vmul.f32 0.1, %v1655_v28  ;;  %vm1847_vm7 = vcmp.ge.f32.partialorder %v1719_v17, 0.0  ;;  %v4202_v31 = vpop.f32.mrf.mxu1 }
 0x12f   : > { %2741 = vst.msk [vmem:[%s3850_s12 + $0x15c] sm:$0xf] %vm2653_vm2, %v3259_v52  ;;  %v1975_v32 = vmul.f32 0.1, %v1719_v17  ;;  %vm1781_vm8 = vcmp.ge.f32.partialorder %v1653_v39, 0.0  ;;  %v1717_v37 = vadd.f32 %v3833_v9, %v1582_v53  ;;  %v1585_v62 = vmul.f32 %v4046_v48, %v3828_v7 }
 0x130   : > { %v1909_v50 = vmul.f32 0.1, %v1653_v39  ;;  %2675 = vst.msk [vmem:[%s3850_s12 + $0x54] sm:$0xf] %vm2653_vm2, %v3193_v59  ;;  %2739 = vst.msk [vmem:[%s3850_s12 + $0x154] sm:$0xf] %vm2653_vm2, %v3257_v49  ;;  %v2039_v54 = vsel %vm1783_vm6, %v1655_v28, %v1911_v24  ;;  %v1519_v63 = vmul.f32 %v3828_v7, %v4055_v55  ;;  %v1656_v19 = vadd.f32 %v3833_v9, %v1521_v60  ;;  %v4218_v49 = vpop.f32.mrf.mxu1 }
 0x131   : > { %v3198_v4 = vpack.c.bf16 %v2039_v54, %v2039_v54  ;;  %v2103_v0 = vsel %vm1847_vm7, %v1719_v17, %v1975_v32  ;;  %vm1845_vm9 = vcmp.ge.f32.partialorder %v1717_v37, 0.0  ;;  %v1973_v12 = vmul.f32 0.1, %v1717_v37 }
 0x132   : > { %v2037_v33 = vsel %vm1781_vm8, %v1653_v39, %v1909_v50  ;;  %v3262_v10 = vpack.c.bf16 %v2103_v0, %v2103_v0  ;;  %v1720_v48 = vadd.f32 %v3833_v9, %v1585_v62  ;;  %v1654_v55 = vadd.f32 %v3833_v9, %v1519_v63 }
 0x133   : > { %v3196_v11 = vpack.c.bf16 %v2037_v33, %v2037_v33  ;;  %2680 = vst.msk [vmem:[%s3850_s12 + $0x68] sm:$0xf] %vm2653_vm2, %v3198_v4  ;;  %v1583_v20 = vmul.f32 %v3828_v7, %v4057_v56  ;;  %v1524_v5 = vmul.f32 %v4059_v1, %v3828_v7  ;;  %v2101_v21 = vsel %vm1845_vm9, %v1717_v37, %v1973_v12  ;;  %v4198_v56 = vpop.f32.mrf.mxu0  ;;  %v4241_v12 = vpop.f32.mrf.mxu1 }
 0x134   : > { %2744 = vst.msk [vmem:[%s3850_s12 + $0x168] sm:$0xf] %vm2653_vm2, %v3262_v10  ;;  %vm1784_vm10 = vcmp.ge.f32.partialorder %v1656_v19, 0.0  ;;  %v1912_v22 = vmul.f32 0.1, %v1656_v19  ;;  %v1588_v23 = vmul.f32 %v4061_v2, %v3828_v7  ;;  %v3260_v44 = vpack.c.bf16 %v2101_v21, %v2101_v21 }
 0x135   : > { %2678 = vst.msk [vmem:[%s3850_s12 + $0x60] sm:$0xf] %vm2653_vm2, %v3196_v11  ;;  %vm1848_vm11 = vcmp.ge.f32.partialorder %v1720_v48, 0.0  ;;  %v1976_v15 = vmul.f32 0.1, %v1720_v48  ;;  %vm1782_vm12 = vcmp.ge.f32.partialorder %v1654_v55, 0.0  ;;  %v1718_v26 = vadd.f32 %v3833_v9, %v1583_v20  ;;  %v4211_v52 = vpop.f32.mrf.mxu0 }
 0x136   : > { %v2040_v18 = vsel %vm1784_vm10, %v1656_v19, %v1912_v22  ;;  %v1910_v1 = vmul.f32 0.1, %v1654_v55  ;;  %v1659_v51 = vadd.f32 %v3833_v9, %v1524_v5  ;;  %2742 = vst.msk [vmem:[%s3850_s12 + $0x160] sm:$0xf] %vm2653_vm2, %v3260_v44  ;;  %v1723_v35 = vadd.f32 %v3833_v9, %v1588_v23  ;;  %v4258_v21 = vld [vmem:[%s4636_s2] ss:$0 sm:$0xff] }
 0x137   : > { %v3199_v8 = vpack.c.bf16 %v2040_v18, %v2040_v18  ;;  %v2104_v2 = vsel %vm1848_vm11, %v1720_v48, %v1976_v15  ;;  %v1522_v16 = vmul.f32 %v3828_v7, %v4076_v14  ;;  %vm1846_vm13 = vcmp.ge.f32.partialorder %v1718_v26, 0.0  ;;  %v4231_v33 = vpop.f32.mrf.mxu0  ;;  %v4264_v18 = vpop.f32.mrf.mxu1 }
 0x138   : > { %v3263_v28 = vpack.c.bf16 %v2104_v2, %v2104_v2  ;;  %v2038_v29 = vsel %vm1782_vm12, %v1654_v55, %v1910_v1  ;;  %v1974_v17 = vmul.f32 0.1, %v1718_v26  ;;  %vm1787_vm14 = vcmp.ge.f32.partialorder %v1659_v51, 0.0 }
 0x139   : > { %2681 = vst.msk [vmem:[%s3850_s12 + $0x6c] sm:$0xf] %vm2653_vm2, %v3199_v8  ;;  %v3197_v39 = vpack.c.bf16 %v2038_v29, %v2038_v29  ;;  %v1915_v53 = vmul.f32 0.1, %v1659_v51  ;;  %vm1851_vm15 = vcmp.ge.f32.partialorder %v1723_v35, 0.0  ;;  %v1657_v14 = vadd.f32 %v3833_v9, %v1522_v16  ;;  %v4262_v22 = vpop.f32.mrf.mxu0 }
 0x13a   : > { %2745 = vst.msk [vmem:[%s3850_s12 + $0x16c] sm:$0xf] %vm2653_vm2, %v3263_v28  ;;  %v2102_v40 = vsel %vm1846_vm13, %v1718_v26, %v1974_v17  ;;  %v1979_v41 = vmul.f32 0.1, %v1723_v35  ;;  %v1586_v59 = vmul.f32 %v3828_v7, %v4078_v6  ;;  %v1525_v50 = vmul.f32 %v4082_v45, %v3828_v7 }
 0x13b   : > { %2679 = vst.msk [vmem:[%s3850_s12 + $0x64] sm:$0xf] %vm2653_vm2, %v3197_v39  ;;  %v3261_v24 = vpack.c.bf16 %v2102_v40, %v2102_v40  ;;  %v2043_v32 = vsel %vm1787_vm14, %v1659_v51, %v1915_v53  ;;  %v1589_v37 = vmul.f32 %v4084_v27, %v3828_v7  ;;  %vm1785_vm0 = vcmp.ge.f32.partialorder %v1657_v14, 0.0  ;;  %v4279_v17 = vpop.f32.mrf.mxu0 }
 0x13c   : > { %v3202_v54 = vpack.c.bf16 %v2043_v32, %v2043_v32  ;;  %v2107_v60 = vsel %vm1851_vm15, %v1723_v35, %v1979_v41  ;;  %v1913_v62 = vmul.f32 0.1, %v1657_v14  ;;  %v1721_v63 = vadd.f32 %v3833_v9, %v1586_v59  ;;  %v4281_v41 = vpop.f32.mrf.mxu1 }
 0x13d   : > { %2743 = vst.msk [vmem:[%s3850_s12 + $0x164] sm:$0xf] %vm2653_vm2, %v3261_v24  ;;  %v3266_v6 = vpack.c.bf16 %v2107_v60, %v2107_v60  ;;  %v1660_v4 = vadd.f32 %v3833_v9, %v1525_v50  ;;  %v1724_v0 = vadd.f32 %v3833_v9, %v1589_v37  ;;  %v1523_v27 = vmul.f32 %v3828_v7, %v4100_v36 }
 0x13e   : > { %2684 = vst.msk [vmem:[%s3850_s12 + $0x78] sm:$0xf] %vm2653_vm2, %v3202_v54  ;;  %v2041_v45 = vsel %vm1785_vm0, %v1657_v14, %v1913_v62  ;;  %v1587_v10 = vmul.f32 %v3828_v7, %v4102_v38  ;;  %v1528_v11 = vmul.f32 %v4106_v42, %v3828_v7  ;;  %vm1849_vm1 = vcmp.ge.f32.partialorder %v1721_v63, 0.0  ;;  %v4251_v7 = vld [vmem:[%s4637_s3] ss:$0 sm:$0xff]  ;;  %v4298_v62 = vpop.f32.mrf.mxu0 }
 0x13f   : > { %2748 = vst.msk [vmem:[%s3850_s12 + $0x178] sm:$0xf] %vm2653_vm2, %v3266_v6  ;;  %v3200_v19 = vpack.c.bf16 %v2041_v45, %v2041_v45  ;;  %v1977_v48 = vmul.f32 0.1, %v1721_v63  ;;  %vm1788_vm3 = vcmp.ge.f32.partialorder %v1660_v4, 0.0  ;;  %vm1852_vm4 = vcmp.ge.f32.partialorder %v1724_v0, 0.0 }
 0x140   : > { %v1916_v55 = vmul.f32 0.1, %v1660_v4  ;;  %v1980_v20 = vmul.f32 0.1, %v1724_v0  ;;  %v1658_v5 = vadd.f32 %v3833_v9, %v1523_v27  ;;  %v1722_v38 = vadd.f32 %v4251_v7, %v1587_v10 }
 0x141   : > { %2682 = vst.msk [vmem:[%s3850_s12 + $0x70] sm:$0xf] %vm2653_vm2, %v3200_v19  ;;  %v2105_v36 = vsel %vm1849_vm1, %v1721_v63, %v1977_v48  ;;  %v1663_v42 = vadd.f32 %v4251_v7, %v1528_v11  ;;  %v1592_v9 = vmul.f32 %v4258_v21, %v4108_v43  ;;  %v1526_v16 = vmul.f32 %v4258_v21, %v4115_v57 }
 0x142   : > { %v3264_v23 = vpack.c.bf16 %v2105_v36, %v2105_v36  ;;  %v2044_v44 = vsel %vm1788_vm3, %v1660_v4, %v1916_v55  ;;  %v2108_v15 = vsel %vm1852_vm4, %v1724_v0, %v1980_v20  ;;  %vm1786_vm5 = vcmp.ge.f32.partialorder %v1658_v5, 0.0  ;;  %v4309_v20 = vpop.f32.mrf.mxu0 }
 0x143   : > { %v3203_v1 = vpack.c.bf16 %v2044_v44, %v2044_v44  ;;  %v3267_v26 = vpack.c.bf16 %v2108_v15, %v2108_v15  ;;  %v1914_v51 = vmul.f32 0.1, %v1658_v5  ;;  %vm1850_vm6 = vcmp.ge.f32.partialorder %v1722_v38, 0.0 }
 0x144   : > { %2746 = vst.msk [vmem:[%s3850_s12 + $0x170] sm:$0xf] %vm2653_vm2, %v3264_v23  ;;  %v1978_v8 = vmul.f32 0.1, %v1722_v38  ;;  %vm1791_vm7 = vcmp.ge.f32.partialorder %v1663_v42, 0.0  ;;  %v1727_v43 = vadd.f32 %v4251_v7, %v1592_v9  ;;  %v1590_v28 = vmul.f32 %v4258_v21, %v4117_v58 }
 0x145   : > { %v1919_v2 = vmul.f32 0.1, %v1663_v42  ;;  %2685 = vst.msk [vmem:[%s3850_s12 + $0x7c] sm:$0xf] %vm2653_vm2, %v3203_v1  ;;  %2749 = vst.msk [vmem:[%s3850_s12 + $0x17c] sm:$0xf] %vm2653_vm2, %v3267_v26  ;;  %v2042_v35 = vsel %vm1786_vm5, %v1658_v5, %v1914_v51  ;;  %v1529_v29 = vmul.f32 %v4258_v21, %v4126_v61  ;;  %v1661_v57 = vadd.f32 %v4251_v7, %v1526_v16 }
 0x146   : > { %v3201_v39 = vpack.c.bf16 %v2042_v35, %v2042_v35  ;;  %v2106_v53 = vsel %vm1850_vm6, %v1722_v38, %v1978_v8  ;;  %vm1855_vm8 = vcmp.ge.f32.partialorder %v1727_v43, 0.0  ;;  %v1983_v24 = vmul.f32 0.1, %v1727_v43 }
 0x147   : > { %v2047_v40 = vsel %vm1791_vm7, %v1663_v42, %v1919_v2  ;;  %v3265_v14 = vpack.c.bf16 %v2106_v53, %v2106_v53  ;;  %v1725_v58 = vadd.f32 %v4251_v7, %v1590_v28  ;;  %v1664_v61 = vadd.f32 %v4251_v7, %v1529_v29 }
 0x148   : > { %v3206_v59 = vpack.c.bf16 %v2047_v40, %v2047_v40  ;;  %2683 = vst.msk [vmem:[%s3850_s12 + $0x74] sm:$0xf] %vm2653_vm2, %v3201_v39  ;;  %v1593_v32 = vmul.f32 %v4258_v21, %v4134_v13  ;;  %v1527_v50 = vmul.f32 %v4258_v21, %v4149_v30  ;;  %v2111_v37 = vsel %vm1855_vm8, %v1727_v43, %v1983_v24  ;;  %v4300_v13 = vpop.f32.mrf.mxu1  ;;  %v4326_v43 = vpop.f32.mrf.mxu0 }
 0x149   : > { %2747 = vst.msk [vmem:[%s3850_s12 + $0x174] sm:$0xf] %vm2653_vm2, %v3265_v14  ;;  %vm1789_vm9 = vcmp.ge.f32.partialorder %v1661_v57, 0.0  ;;  %v1917_v54 = vmul.f32 0.1, %v1661_v57  ;;  %v1591_v60 = vmul.f32 %v4258_v21, %v4153_v34  ;;  %v3270_v6 = vpack.c.bf16 %v2111_v37, %v2111_v37 }
 0x14a   : > { %2688 = vst.msk [vmem:[%s3850_s12 + $0x88] sm:$0xf] %vm2653_vm2, %v3206_v59  ;;  %vm1853_vm10 = vcmp.ge.f32.partialorder %v1725_v58, 0.0  ;;  %v1981_v63 = vmul.f32 0.1, %v1725_v58  ;;  %vm1792_vm11 = vcmp.ge.f32.partialorder %v1664_v61, 0.0  ;;  %v1728_v0 = vadd.f32 %v4251_v7, %v1593_v32  ;;  %v4313_v38 = vpop.f32.mrf.mxu1 }
 0x14b   : > { %v2045_v30 = vsel %vm1789_vm9, %v1661_v57, %v1917_v54  ;;  %v1920_v4 = vmul.f32 0.1, %v1664_v61  ;;  %v1662_v45 = vadd.f32 %v4251_v7, %v1527_v50  ;;  %2752 = vst.msk [vmem:[%s3850_s12 + $0x188] sm:$0xf] %vm2653_vm2, %v3270_v6  ;;  %v1726_v10 = vadd.f32 %v4251_v7, %v1591_v60 }
 0x14c   : > { %v3204_v27 = vpack.c.bf16 %v2045_v30, %v2045_v30  ;;  %v2109_v34 = vsel %vm1853_vm10, %v1725_v58, %v1981_v63  ;;  %v1532_v11 = vmul.f32 %v4258_v21, %v4162_v46  ;;  %vm1856_vm12 = vcmp.ge.f32.partialorder %v1728_v0, 0.0  ;;  %v4346_v58 = vpop.f32.mrf.mxu0 }
 0x14d   : > { %v3268_v19 = vpack.c.bf16 %v2109_v34, %v2109_v34  ;;  %v2048_v48 = vsel %vm1792_vm11, %v1664_v61, %v1920_v4  ;;  %v1984_v55 = vmul.f32 0.1, %v1728_v0  ;;  %vm1790_vm13 = vcmp.ge.f32.partialorder %v1662_v45, 0.0 }
 0x14e   : > { %2686 = vst.msk [vmem:[%s3850_s12 + $0x80] sm:$0xf] %vm2653_vm2, %v3204_v27  ;;  %v3207_v5 = vpack.c.bf16 %v2048_v48, %v2048_v48  ;;  %v1918_v36 = vmul.f32 0.1, %v1662_v45  ;;  %vm1854_vm14 = vcmp.ge.f32.partialorder %v1726_v10, 0.0  ;;  %v1667_v9 = vadd.f32 %v4251_v7, %v1532_v11 }
 0x14f   : > { %2750 = vst.msk [vmem:[%s3850_s12 + $0x180] sm:$0xf] %vm2653_vm2, %v3268_v19  ;;  %v2112_v42 = vsel %vm1856_vm12, %v1728_v0, %v1984_v55  ;;  %v1982_v46 = vmul.f32 0.1, %v1726_v10  ;;  %v1596_v23 = vmul.f32 %v4258_v21, %v4164_v25  ;;  %v1530_v1 = vmul.f32 %v4258_v21, %v4179_v3  ;;  %v4333_v3 = vpop.f32.mrf.mxu1 }
 0x150   : > { %2689 = vst.msk [vmem:[%s3850_s12 + $0x8c] sm:$0xf] %vm2653_vm2, %v3207_v5  ;;  %v3271_v44 = vpack.c.bf16 %v2112_v42, %v2112_v42  ;;  %v2046_v15 = vsel %vm1790_vm13, %v1662_v45, %v1918_v36  ;;  %v1594_v26 = vmul.f32 %v4258_v21, %v4182_v47  ;;  %vm1795_vm15 = vcmp.ge.f32.partialorder %v1667_v9, 0.0 }
 0x151   : > { %v3205_v51 = vpack.c.bf16 %v2046_v15, %v2046_v15  ;;  %v2110_v8 = vsel %vm1854_vm14, %v1726_v10, %v1982_v46  ;;  %v1923_v2 = vmul.f32 0.1, %v1667_v9  ;;  %v1731_v35 = vadd.f32 %v4251_v7, %v1596_v23  ;;  %v4354_v32 = vpop.f32.mrf.mxu1 }
 0x152   : > { %2753 = vst.msk [vmem:[%s3850_s12 + $0x18c] sm:$0xf] %vm2653_vm2, %v3271_v44  ;;  %v3269_v25 = vpack.c.bf16 %v2110_v8, %v2110_v8  ;;  %v1665_v16 = vadd.f32 %v4251_v7, %v1530_v1  ;;  %v1729_v28 = vadd.f32 %v4251_v7, %v1594_v26  ;;  %v1533_v29 = vmul.f32 %v4258_v21, %v4198_v56 }
 0x153   : > { %2687 = vst.msk [vmem:[%s3850_s12 + $0x84] sm:$0xf] %vm2653_vm2, %v3205_v51  ;;  %v2051_v47 = vsel %vm1795_vm15, %v1667_v9, %v1923_v2  ;;  %v1597_v39 = vmul.f32 %v4258_v21, %v4202_v31  ;;  %v1531_v53 = vmul.f32 %v4258_v21, %v4211_v52  ;;  %vm1859_vm0 = vcmp.ge.f32.partialorder %v1731_v35, 0.0  ;;  %v4371_v11 = vpop.f32.mrf.mxu1 }
 0x154   : > { %2751 = vst.msk [vmem:[%s3850_s12 + $0x184] sm:$0xf] %vm2653_vm2, %v3269_v25  ;;  %v3210_v40 = vpack.c.bf16 %v2051_v47, %v2051_v47  ;;  %v1987_v14 = vmul.f32 0.1, %v1731_v35  ;;  %vm1793_vm1 = vcmp.ge.f32.partialorder %v1665_v16, 0.0  ;;  %vm1857_vm3 = vcmp.ge.f32.partialorder %v1729_v28, 0.0 }
 0x155   : > { %v1921_v59 = vmul.f32 0.1, %v1665_v16  ;;  %v1985_v24 = vmul.f32 0.1, %v1729_v28  ;;  %v1668_v57 = vadd.f32 %v4251_v7, %v1533_v29  ;;  %v1732_v31 = vadd.f32 %v4251_v7, %v1597_v39  ;;  %v4390_v26 = vpop.f32.mrf.mxu1 }
 0x156   : > { %2692 = vst.msk [vmem:[%s3850_s12 + $0x98] sm:$0xf] %vm2653_vm2, %v3210_v40  ;;  %v2115_v56 = vsel %vm1859_vm0, %v1731_v35, %v1987_v14  ;;  %v1666_v52 = vadd.f32 %v4251_v7, %v1531_v53  ;;  %v1595_v61 = vmul.f32 %v4258_v21, %v4218_v49  ;;  %v4359_v49 = vpop.f32.mrf.mxu0  ;;  %v1536_v27 = vmul.f32 %v4258_v21, %v4231_v33 }
 0x157   : > { %v3274_v50 = vpack.c.bf16 %v2115_v56, %v2115_v56  ;;  %v2049_v37 = vsel %vm1793_vm1, %v1665_v16, %v1921_v59  ;;  %v2113_v54 = vsel %vm1857_vm3, %v1729_v28, %v1985_v24  ;;  %vm1796_vm4 = vcmp.ge.f32.partialorder %v1668_v57, 0.0  ;;  %v4401_v40 = vpop.f32.mrf.mxu1 }
 0x158   : > { %v3208_v60 = vpack.c.bf16 %v2049_v37, %v2049_v37  ;;  %v3272_v6 = vpack.c.bf16 %v2113_v54, %v2113_v54  ;;  %v1924_v63 = vmul.f32 0.1, %v1668_v57  ;;  %vm1860_vm5 = vcmp.ge.f32.partialorder %v1732_v31, 0.0  ;;  %v4382_v23 = vpop.f32.mrf.mxu0 }
 0x159   : > { %2756 = vst.msk [vmem:[%s3850_s12 + $0x198] sm:$0xf] %vm2653_vm2, %v3274_v50  ;;  %v1988_v30 = vmul.f32 0.1, %v1732_v31  ;;  %vm1794_vm6 = vcmp.ge.f32.partialorder %v1666_v52, 0.0  ;;  %v1730_v0 = vadd.f32 %v4251_v7, %v1595_v61  ;;  %v1600_v34 = vmul.f32 %v4258_v21, %v4241_v12 }
 0x15a   : > { %v1922_v4 = vmul.f32 0.1, %v1666_v52  ;;  %2690 = vst.msk [vmem:[%s3850_s12 + $0x90] sm:$0xf] %vm2653_vm2, %v3208_v60  ;;  %2754 = vst.msk [vmem:[%s3850_s12 + $0x190] sm:$0xf] %vm2653_vm2, %v3272_v6  ;;  %v2052_v45 = vsel %vm1796_vm4, %v1668_v57, %v1924_v63  ;;  %v1534_v10 = vmul.f32 %v4258_v21, %v4262_v22  ;;  %v1671_v46 = vadd.f32 %v4251_v7, %v1536_v27  ;;  %v4399_v47 = vpop.f32.mrf.mxu0  ;;  %v4418_v63 = vpop.f32.mrf.mxu1 }
 0x15b   : > { %v3211_v19 = vpack.c.bf16 %v2052_v45, %v2052_v45  ;;  %v2116_v48 = vsel %vm1860_vm5, %v1732_v31, %v1988_v30  ;;  %vm1858_vm7 = vcmp.ge.f32.partialorder %v1730_v0, 0.0  ;;  %v1986_v42 = vmul.f32 0.1, %v1730_v0 }
 0x15c   : > { %v2050_v55 = vsel %vm1794_vm6, %v1666_v52, %v1922_v4  ;;  %v3275_v5 = vpack.c.bf16 %v2116_v48, %v2116_v48  ;;  %v1735_v33 = vadd.f32 %v4251_v7, %v1600_v34  ;;  %v1669_v12 = vadd.f32 %v4251_v7, %v1534_v10  ;;  %v4416_v37 = vpop.f32.mrf.mxu0 }
 0x15d   : > { %v3209_v36 = vpack.c.bf16 %v2050_v55, %v2050_v55  ;;  %2693 = vst.msk [vmem:[%s3850_s12 + $0x9c] sm:$0xf] %vm2653_vm2, %v3211_v19  ;;  %v1598_v22 = vmul.f32 %v4258_v21, %v4264_v18  ;;  %v1537_v9 = vmul.f32 %v4258_v21, %v4279_v17  ;;  %v2114_v44 = vsel %vm1858_vm7, %v1730_v0, %v1986_v42 }
 0x15e   : > { %2757 = vst.msk [vmem:[%s3850_s12 + $0x19c] sm:$0xf] %vm2653_vm2, %v3275_v5  ;;  %vm1799_vm8 = vcmp.ge.f32.partialorder %v1671_v46, 0.0  ;;  %v1927_v15 = vmul.f32 0.1, %v1671_v46  ;;  %v1601_v1 = vmul.f32 %v4258_v21, %v4281_v41  ;;  %v3273_v51 = vpack.c.bf16 %v2114_v44, %v2114_v44  ;;  %v4435_v19 = vpop.f32.mrf.mxu0 }
 0x15f   : > { %2691 = vst.msk [vmem:[%s3850_s12 + $0x94] sm:$0xf] %vm2653_vm2, %v3209_v36  ;;  %vm1863_vm9 = vcmp.ge.f32.partialorder %v1735_v33, 0.0  ;;  %v1991_v18 = vmul.f32 0.1, %v1735_v33  ;;  %vm1797_vm10 = vcmp.ge.f32.partialorder %v1669_v12, 0.0  ;;  %v1733_v2 = vadd.f32 %v4251_v7, %v1598_v22 }
 0x160   : > { %v2055_v17 = vsel %vm1799_vm8, %v1671_v46, %v1927_v15  ;;  %v1925_v8 = vmul.f32 0.1, %v1669_v12  ;;  %v1672_v25 = vadd.f32 %v4251_v7, %v1537_v9  ;;  %2755 = vst.msk [vmem:[%s3850_s12 + $0x194] sm:$0xf] %vm2653_vm2, %v3273_v51  ;;  %v1736_v41 = vadd.f32 %v4251_v7, %v1601_v1  ;;  %v4446_v15 = vpop.f32.mrf.mxu0 }
 0x161   : > { %v3214_v35 = vpack.c.bf16 %v2055_v17, %v2055_v17  ;;  %v2119_v16 = vsel %vm1863_vm9, %v1735_v33, %v1991_v18  ;;  %v1535_v28 = vmul.f32 %v4258_v21, %v4298_v62  ;;  %vm1861_vm11 = vcmp.ge.f32.partialorder %v1733_v2, 0.0 }
 0x162   : > { %v3278_v29 = vpack.c.bf16 %v2119_v16, %v2119_v16  ;;  %v2053_v39 = vsel %vm1797_vm10, %v1669_v12, %v1925_v8  ;;  %v1989_v53 = vmul.f32 0.1, %v1733_v2  ;;  %vm1800_vm12 = vcmp.ge.f32.partialorder %v1672_v25, 0.0 }
 0x163   : > { %2696 = vst.msk [vmem:[%s3850_s12 + $0xa8] sm:$0xf] %vm2653_vm2, %v3214_v35  ;;  %v3212_v14 = vpack.c.bf16 %v2053_v39, %v2053_v39  ;;  %v1928_v59 = vmul.f32 0.1, %v1672_v25  ;;  %vm1864_vm13 = vcmp.ge.f32.partialorder %v1736_v41, 0.0  ;;  %v1670_v57 = vadd.f32 %v4251_v7, %v1535_v28 }
 0x164   : > { %2760 = vst.msk [vmem:[%s3850_s12 + $0x1a8] sm:$0xf] %vm2653_vm2, %v3278_v29  ;;  %v2117_v24 = vsel %vm1861_vm11, %v1733_v2, %v1989_v53  ;;  %v1992_v62 = vmul.f32 0.1, %v1736_v41  ;;  %v1599_v56 = vmul.f32 %v4258_v21, %v4300_v13  ;;  %v1540_v61 = vmul.f32 %v4258_v21, %v4309_v20 }
 0x165   : > { %2694 = vst.msk [vmem:[%s3850_s12 + $0xa0] sm:$0xf] %vm2653_vm2, %v3212_v14  ;;  %v3276_v31 = vpack.c.bf16 %v2117_v24, %v2117_v24  ;;  %v2056_v52 = vsel %vm1800_vm12, %v1672_v25, %v1928_v59  ;;  %v1604_v50 = vmul.f32 %v4258_v21, %v4313_v38  ;;  %vm1798_vm14 = vcmp.ge.f32.partialorder %v1670_v57, 0.0  ;;  %v1184_v14 = vpop.f32.mrf.mxu0 }
 0x166   : > { %v3215_v54 = vpack.c.bf16 %v2056_v52, %v2056_v52  ;;  %v2120_v60 = vsel %vm1864_vm13, %v1736_v41, %v1992_v62  ;;  %v1926_v6 = vmul.f32 0.1, %v1670_v57  ;;  %v1734_v30 = vadd.f32 %v4251_v7, %v1599_v56 }
 0x167   : > { %2758 = vst.msk [vmem:[%s3850_s12 + $0x1a0] sm:$0xf] %vm2653_vm2, %v3276_v31  ;;  %v3279_v13 = vpack.c.bf16 %v2120_v60, %v2120_v60  ;;  %v1675_v4 = vadd.f32 %v4251_v7, %v1540_v61  ;;  %v1739_v20 = vadd.f32 %v4251_v7, %v1604_v50  ;;  %v1538_v0 = vmul.f32 %v4258_v21, %v4326_v43  ;;  %v4438_v43 = vpop.f32.mrf.mxu1 }
 0x168   : > { %2697 = vst.msk [vmem:[%s3850_s12 + $0xac] sm:$0xf] %vm2653_vm2, %v3215_v54  ;;  %v2054_v38 = vsel %vm1798_vm14, %v1670_v57, %v1926_v6  ;;  %v1602_v45 = vmul.f32 %v4258_v21, %v4333_v3  ;;  %v1541_v27 = vmul.f32 %v4258_v21, %v4346_v58  ;;  %vm1862_vm15 = vcmp.ge.f32.partialorder %v1734_v30, 0.0  ;;  %v4482_v54 = vpop.f32.mrf.mxu0 }
 0x169   : > { %2761 = vst.msk [vmem:[%s3850_s12 + $0x1ac] sm:$0xf] %vm2653_vm2, %v3279_v13  ;;  %v3213_v34 = vpack.c.bf16 %v2054_v38, %v2054_v38  ;;  %v1990_v10 = vmul.f32 0.1, %v1734_v30  ;;  %vm1803_vm0 = vcmp.ge.f32.partialorder %v1675_v4, 0.0  ;;  %vm1867_vm1 = vcmp.ge.f32.partialorder %v1739_v20, 0.0 }
 0x16a   : > { %v1931_v48 = vmul.f32 0.1, %v1675_v4  ;;  %v1995_v55 = vmul.f32 0.1, %v1739_v20  ;;  %v1673_v5 = vadd.f32 %v4251_v7, %v1538_v0  ;;  %v1737_v58 = vadd.f32 %v4251_v7, %v1602_v45 }
 0x16b   : > { %2695 = vst.msk [vmem:[%s3850_s12 + $0xa4] sm:$0xf] %vm2653_vm2, %v3213_v34  ;;  %v2118_v3 = vsel %vm1862_vm15, %v1734_v30, %v1990_v10  ;;  %v1676_v36 = vadd.f32 %v4251_v7, %v1541_v27  ;;  %v1605_v42 = vmul.f32 %v4258_v21, %v4354_v32  ;;  %v4451_v32 = vpop.f32.mrf.mxu1  ;;  %v1539_v8 = vmul.f32 %v4258_v21, %v4359_v49 }
 0x16c   : > { %v3277_v46 = vpack.c.bf16 %v2118_v3, %v2118_v3  ;;  %v2059_v33 = vsel %vm1803_vm0, %v1675_v4, %v1931_v48  ;;  %v2123_v12 = vsel %vm1867_vm1, %v1739_v20, %v1995_v55  ;;  %vm1801_vm3 = vcmp.ge.f32.partialorder %v1673_v5, 0.0  ;;  %v1187_v48 = vpop.f32.mrf.mxu0 }
 0x16d   : > { %v3218_v22 = vpack.c.bf16 %v2059_v33, %v2059_v33  ;;  %v3282_v9 = vpack.c.bf16 %v2123_v12, %v2123_v12  ;;  %v1929_v44 = vmul.f32 0.1, %v1673_v5  ;;  %vm1865_vm4 = vcmp.ge.f32.partialorder %v1737_v58, 0.0  ;;  %v4472_v24 = vpop.f32.mrf.mxu1 }
 0x16e   : > { %2759 = vst.msk [vmem:[%s3850_s12 + $0x1a4] sm:$0xf] %vm2653_vm2, %v3277_v46  ;;  %v1993_v1 = vmul.f32 0.1, %v1737_v58  ;;  %vm1804_vm5 = vcmp.ge.f32.partialorder %v1676_v36, 0.0  ;;  %v1740_v18 = vadd.f32 %v4251_v7, %v1605_v42  ;;  %v1603_v2 = vmul.f32 %v4258_v21, %v4371_v11 }
 0x16f   : > { %v1932_v51 = vmul.f32 0.1, %v1676_v36  ;;  %2700 = vst.msk [vmem:[%s3850_s12 + $0xb8] sm:$0xf] %vm2653_vm2, %v3218_v22  ;;  %2764 = vst.msk [vmem:[%s3850_s12 + $0x1b8] sm:$0xf] %vm2653_vm2, %v3282_v9  ;;  %v2057_v17 = vsel %vm1801_vm3, %v1673_v5, %v1929_v44  ;;  %v1544_v25 = vmul.f32 %v4258_v21, %v4382_v23  ;;  %v1674_v53 = vadd.f32 %v4251_v7, %v1539_v8  ;;  %v4489_v30 = vpop.f32.mrf.mxu1 }
 0x170   : > { %v3216_v35 = vpack.c.bf16 %v2057_v17, %v2057_v17  ;;  %v2121_v16 = vsel %vm1865_vm4, %v1737_v58, %v1993_v1  ;;  %vm1868_vm6 = vcmp.ge.f32.partialorder %v1740_v18, 0.0  ;;  %v1996_v39 = vmul.f32 0.1, %v1740_v18 }
 0x171   : > { %v2060_v41 = vsel %vm1804_vm5, %v1676_v36, %v1932_v51  ;;  %v3280_v28 = vpack.c.bf16 %v2121_v16, %v2121_v16  ;;  %v1738_v49 = vadd.f32 %v4251_v7, %v1603_v2  ;;  %v1679_v11 = vadd.f32 %v4251_v7, %v1544_v25  ;;  %v4504_v36 = vpop.f32.mrf.mxu1  ;;  %v3434_v51 = vpop.f32.mrf.mxu0 }
 0x172   : > { %v3219_v29 = vpack.c.bf16 %v2060_v41, %v2060_v41  ;;  %2698 = vst.msk [vmem:[%s3850_s12 + $0xb0] sm:$0xf] %vm2653_vm2, %v3216_v35  ;;  %v1608_v23 = vmul.f32 %v4258_v21, %v4390_v26  ;;  %v1542_v59 = vmul.f32 %v4258_v21, %v4399_v47  ;;  %v2124_v62 = vsel %vm1868_vm6, %v1740_v18, %v1996_v39 }
 0x173   : > { %2762 = vst.msk [vmem:[%s3850_s12 + $0x1b0] sm:$0xf] %vm2653_vm2, %v3280_v28  ;;  %vm1802_vm7 = vcmp.ge.f32.partialorder %v1674_v53, 0.0  ;;  %v1930_v57 = vmul.f32 0.1, %v1674_v53  ;;  %v1606_v56 = vmul.f32 %v4258_v21, %v4401_v40  ;;  %v3283_v31 = vpack.c.bf16 %v2124_v62, %v2124_v62  ;;  %v3498_v8 = vpop.f32.mrf.mxu1 }
 0x174   : > { %2701 = vst.msk [vmem:[%s3850_s12 + $0xbc] sm:$0xf] %vm2653_vm2, %v3219_v29  ;;  %vm1866_vm8 = vcmp.ge.f32.partialorder %v1738_v49, 0.0  ;;  %v1994_v52 = vmul.f32 0.1, %v1738_v49  ;;  %vm1807_vm9 = vcmp.ge.f32.partialorder %v1679_v11, 0.0  ;;  %v1743_v61 = vadd.f32 %v4251_v7, %v1608_v23 }
 0x175   : > { %v2058_v26 = vsel %vm1802_vm7, %v1674_v53, %v1930_v57  ;;  %v1935_v47 = vmul.f32 0.1, %v1679_v11  ;;  %v1677_v50 = vadd.f32 %v4251_v7, %v1542_v59  ;;  %2765 = vst.msk [vmem:[%s3850_s12 + $0x1bc] sm:$0xf] %vm2653_vm2, %v3283_v31  ;;  %v1741_v40 = vadd.f32 %v4251_v7, %v1606_v56  ;;  %v1200_v53 = vpop.f32.mrf.mxu0  ;;  %v1456_v23 = vpop.f32.mrf.mxu1 }
 0x176   : > { %v3217_v60 = vpack.c.bf16 %v2058_v26, %v2058_v26  ;;  %v2122_v6 = vsel %vm1866_vm8, %v1738_v49, %v1994_v52  ;;  %v1545_v13 = vmul.f32 %v4258_v21, %v4416_v37  ;;  %vm1871_vm10 = vcmp.ge.f32.partialorder %v1743_v61, 0.0 }
 0x177   : > { %v3281_v4 = vpack.c.bf16 %v2122_v6, %v2122_v6  ;;  %v2063_v20 = vsel %vm1807_vm9, %v1679_v11, %v1935_v47  ;;  %v1999_v38 = vmul.f32 0.1, %v1743_v61  ;;  %vm1805_vm11 = vcmp.ge.f32.partialorder %v1677_v50, 0.0 }
 0x178   : > { %2699 = vst.msk [vmem:[%s3850_s12 + $0xb4] sm:$0xf] %vm2653_vm2, %v3217_v60  ;;  %v3222_v0 = vpack.c.bf16 %v2063_v20, %v2063_v20  ;;  %v1933_v45 = vmul.f32 0.1, %v1677_v50  ;;  %vm1869_vm12 = vcmp.ge.f32.partialorder %v1741_v40, 0.0  ;;  %v1680_v37 = vadd.f32 %v4251_v7, %v1545_v13 }
 0x179   : > { %2763 = vst.msk [vmem:[%s3850_s12 + $0x1b4] sm:$0xf] %vm2653_vm2, %v3281_v4  ;;  %v2127_v27 = vsel %vm1871_vm10, %v1743_v61, %v1999_v38  ;;  %v1997_v34 = vmul.f32 0.1, %v1741_v40  ;;  %v1609_v10 = vmul.f32 %v4258_v21, %v4418_v63  ;;  %v1543_v3 = vmul.f32 %v4258_v21, %v4435_v19  ;;  %v3499_v4 = vpop.f32.mrf.mxu1 }
 0x17a   : > { %2704 = vst.msk [vmem:[%s3850_s12 + $0xc8] sm:$0xf] %vm2653_vm2, %v3222_v0  ;;  %v3286_v55 = vpack.c.bf16 %v2127_v27, %v2127_v27  ;;  %v2061_v5 = vsel %vm1805_vm11, %v1677_v50, %v1933_v45  ;;  %v1607_v58 = vmul.f32 %v4258_v21, %v4438_v43  ;;  %vm1808_vm13 = vcmp.ge.f32.partialorder %v1680_v37, 0.0  ;;  %v3435_v50 = vpop.f32.mrf.mxu0 }
 0x17b   : > { %v3220_v42 = vpack.c.bf16 %v2061_v5, %v2061_v5  ;;  %v2125_v46 = vsel %vm1869_vm12, %v1741_v40, %v1997_v34  ;;  %v1936_v33 = vmul.f32 0.1, %v1680_v37  ;;  %v1744_v12 = vadd.f32 %v4251_v7, %v1609_v10 }
 0x17c   : > { %2768 = vst.msk [vmem:[%s3850_s12 + $0x1c8] sm:$0xf] %vm2653_vm2, %v3286_v55  ;;  %v3284_v63 = vpack.c.bf16 %v2125_v46, %v2125_v46  ;;  %v1678_v22 = vadd.f32 %v4251_v7, %v1543_v3  ;;  %v1742_v9 = vadd.f32 %v4251_v7, %v1607_v58  ;;  %v1548_v43 = vmul.f32 %v4258_v21, %v4446_v15  ;;  %v1203_v10 = vpop.f32.mrf.mxu0  ;;  %v1459_v58 = vpop.f32.mrf.mxu1 }
 0x17d   : > { %2702 = vst.msk [vmem:[%s3850_s12 + $0xc0] sm:$0xf] %vm2653_vm2, %v3220_v42  ;;  %v2064_v19 = vsel %vm1808_vm13, %v1680_v37, %v1936_v33  ;;  %v1612_v44 = vmul.f32 %v4258_v21, %v4451_v32  ;;  %v1546_v1 = vmul.f32 %v4258_v21, %v1184_v14  ;;  %vm1872_vm14 = vcmp.ge.f32.partialorder %v1744_v12, 0.0 }
 0x17e   : > { %2766 = vst.msk [vmem:[%s3850_s12 + $0x1c0] sm:$0xf] %vm2653_vm2, %v3284_v63  ;;  %v3223_v18 = vpack.c.bf16 %v2064_v19, %v2064_v19  ;;  %v2000_v17 = vmul.f32 0.1, %v1744_v12  ;;  %vm1806_vm15 = vcmp.ge.f32.partialorder %v1678_v22, 0.0  ;;  %vm1870_vm0 = vcmp.ge.f32.partialorder %v1742_v9, 0.0 }
 0x17f   : > { %v1934_v2 = vmul.f32 0.1, %v1678_v22  ;;  %v1998_v25 = vmul.f32 0.1, %v1742_v9  ;;  %v1683_v35 = vadd.f32 %v4251_v7, %v1548_v43  ;;  %v1747_v32 = vadd.f32 %v4251_v7, %v1612_v44  ;;  %v3438_v43 = vpop.f32.mrf.mxu0 }
 0x180   : > { %2705 = vst.msk [vmem:[%s3850_s12 + $0xcc] sm:$0xf] %vm2653_vm2, %v3223_v18  ;;  %v2128_v15 = vsel %vm1872_vm14, %v1744_v12, %v2000_v17  ;;  %v1681_v16 = vadd.f32 %v4251_v7, %v1546_v1  ;;  %v1610_v41 = vmul.f32 %v4258_v21, %v4472_v24  ;;  %v1549_v56 = vmul.f32 %v4258_v21, %v4482_v54  ;;  %v3502_v17 = vpop.f32.mrf.mxu1 }
 0x181   : > { %v3287_v28 = vpack.c.bf16 %v2128_v15, %v2128_v15  ;;  %v2062_v29 = vsel %vm1806_vm15, %v1678_v22, %v1934_v2  ;;  %v2126_v39 = vsel %vm1870_vm0, %v1742_v9, %v1998_v25  ;;  %vm1811_vm1 = vcmp.ge.f32.partialorder %v1683_v35, 0.0 }
 0x182   : > { %v3221_v14 = vpack.c.bf16 %v2062_v29, %v2062_v29  ;;  %v3285_v49 = vpack.c.bf16 %v2126_v39, %v2126_v39  ;;  %v1939_v11 = vmul.f32 0.1, %v1683_v35  ;;  %vm1875_vm3 = vcmp.ge.f32.partialorder %v1747_v32, 0.0 }
 0x183   : > { %2769 = vst.msk [vmem:[%s3850_s12 + $0x1cc] sm:$0xf] %vm2653_vm2, %v3287_v28  ;;  %v2003_v59 = vmul.f32 0.1, %v1747_v32  ;;  %vm1809_vm4 = vcmp.ge.f32.partialorder %v1681_v16, 0.0  ;;  %v1745_v57 = vadd.f32 %v4251_v7, %v1610_v41  ;;  %v1613_v31 = vmul.f32 %v4258_v21, %v4489_v30 }
 0x184   : > { %v1937_v62 = vmul.f32 0.1, %v1681_v16  ;;  %2703 = vst.msk [vmem:[%s3850_s12 + $0xc4] sm:$0xf] %vm2653_vm2, %v3221_v14  ;;  %2767 = vst.msk [vmem:[%s3850_s12 + $0x1c4] sm:$0xf] %vm2653_vm2, %v3285_v49  ;;  %v2067_v24 = vsel %vm1811_vm1, %v1683_v35, %v1939_v11  ;;  %v1547_v52 = vmul.f32 %v4258_v21, %v1187_v48  ;;  %v1684_v13 = vadd.f32 %v4251_v7, %v1549_v56 }
 0x185   : > { %v3226_v26 = vpack.c.bf16 %v2067_v24, %v2067_v24  ;;  %v2131_v47 = vsel %vm1875_vm3, %v1747_v32, %v2003_v59  ;;  %vm1873_vm5 = vcmp.ge.f32.partialorder %v1745_v57, 0.0  ;;  %v2001_v40 = vmul.f32 0.1, %v1745_v57  ;;  %v1472_v59 = vpop.f32.mrf.mxu1 }
 0x186   : > { %v2065_v61 = vsel %vm1809_vm4, %v1681_v16, %v1937_v62  ;;  %v3290_v60 = vpack.c.bf16 %v2131_v47, %v2131_v47  ;;  %v1748_v54 = vadd.f32 %v4251_v7, %v1613_v31  ;;  %v1682_v30 = vadd.f32 %v4251_v7, %v1547_v52 }
 0x187   : > { %v3224_v6 = vpack.c.bf16 %v2065_v61, %v2065_v61  ;;  %2708 = vst.msk [vmem:[%s3850_s12 + $0xd8] sm:$0xf] %vm2653_vm2, %v3226_v26  ;;  %v1611_v20 = vmul.f32 %v4258_v21, %v4504_v36  ;;  %v1552_v38 = vmul.f32 %v4258_v21, %v3434_v51  ;;  %v2129_v0 = vsel %vm1873_vm5, %v1745_v57, %v2001_v40 }
 0x188   : > { %2772 = vst.msk [vmem:[%s3850_s12 + $0x1d8] sm:$0xf] %vm2653_vm2, %v3290_v60  ;;  %vm1812_vm6 = vcmp.ge.f32.partialorder %v1684_v13, 0.0  ;;  %v1940_v45 = vmul.f32 0.1, %v1684_v13  ;;  %v1616_v27 = vmul.f32 %v4258_v21, %v3498_v8  ;;  %v3288_v34 = vpack.c.bf16 %v2129_v0, %v2129_v0 }
 0x189   : > { %2706 = vst.msk [vmem:[%s3850_s12 + $0xd0] sm:$0xf] %vm2653_vm2, %v3224_v6  ;;  %vm1876_vm7 = vcmp.ge.f32.partialorder %v1748_v54, 0.0  ;;  %v2004_v37 = vmul.f32 0.1, %v1748_v54  ;;  %vm1810_vm8 = vcmp.ge.f32.partialorder %v1682_v30, 0.0  ;;  %v1746_v5 = vadd.f32 %v4251_v7, %v1611_v20 }
 0x18a   : > { %v2068_v48 = vsel %vm1812_vm6, %v1684_v13, %v1940_v45  ;;  %v1938_v55 = vmul.f32 0.1, %v1682_v30  ;;  %v1687_v3 = vadd.f32 %v4251_v7, %v1552_v38  ;;  %2770 = vst.msk [vmem:[%s3850_s12 + $0x1d0] sm:$0xf] %vm2653_vm2, %v3288_v34  ;;  %v1751_v46 = vadd.f32 %v4251_v7, %v1616_v27  ;;  %v3503_v13 = vpop.f32.mrf.mxu1 }
 0x18b   : > { %v3227_v36 = vpack.c.bf16 %v2068_v48, %v2068_v48  ;;  %v2132_v42 = vsel %vm1876_vm7, %v1748_v54, %v2004_v37  ;;  %v1550_v33 = vmul.f32 %v4258_v21, %v1200_v53  ;;  %vm1874_vm9 = vcmp.ge.f32.partialorder %v1746_v5, 0.0  ;;  %v1216_v53 = vpop.f32.mrf.mxu0 }
 0x18c   : > { %v3291_v63 = vpack.c.bf16 %v2132_v42, %v2132_v42  ;;  %v2066_v12 = vsel %vm1810_vm8, %v1682_v30, %v1938_v55  ;;  %v2002_v22 = vmul.f32 0.1, %v1746_v5  ;;  %vm1815_vm10 = vcmp.ge.f32.partialorder %v1687_v3, 0.0 }
 0x18d   : > { %2709 = vst.msk [vmem:[%s3850_s12 + $0xdc] sm:$0xf] %vm2653_vm2, %v3227_v36  ;;  %v3225_v9 = vpack.c.bf16 %v2066_v12, %v2066_v12  ;;  %v1943_v19 = vmul.f32 0.1, %v1687_v3  ;;  %vm1879_vm11 = vcmp.ge.f32.partialorder %v1751_v46, 0.0  ;;  %v1685_v51 = vadd.f32 %v4251_v7, %v1550_v33 }
 0x18e   : > { %2773 = vst.msk [vmem:[%s3850_s12 + $0x1dc] sm:$0xf] %vm2653_vm2, %v3291_v63  ;;  %v2130_v44 = vsel %vm1874_vm9, %v1746_v5, %v2002_v22  ;;  %v2007_v1 = vmul.f32 0.1, %v1751_v46  ;;  %v1614_v18 = vmul.f32 %v4258_v21, %v1456_v23  ;;  %v1553_v25 = vmul.f32 %v4258_v21, %v3435_v50  ;;  %v3439_v50 = vpop.f32.mrf.mxu0 }
 0x18f   : > { %2707 = vst.msk [vmem:[%s3850_s12 + $0xd4] sm:$0xf] %vm2653_vm2, %v3225_v9  ;;  %v3289_v8 = vpack.c.bf16 %v2130_v44, %v2130_v44  ;;  %v2071_v2 = vsel %vm1815_vm10, %v1687_v3, %v1943_v19  ;;  %v1617_v35 = vmul.f32 %v4258_v21, %v3499_v4  ;;  %vm1813_vm12 = vcmp.ge.f32.partialorder %v1685_v51, 0.0  ;;  %v1475_v3 = vpop.f32.mrf.mxu1 }
 0x190   : > { %v3230_v15 = vpack.c.bf16 %v2071_v2, %v2071_v2  ;;  %v2135_v32 = vsel %vm1879_vm11, %v1751_v46, %v2007_v1  ;;  %v1941_v16 = vmul.f32 0.1, %v1685_v51  ;;  %v1749_v28 = vadd.f32 %v4251_v7, %v1614_v18 }
 0x191   : > { %2771 = vst.msk [vmem:[%s3850_s12 + $0x1d4] sm:$0xf] %vm2653_vm2, %v3289_v8  ;;  %v3294_v41 = vpack.c.bf16 %v2135_v32, %v2135_v32  ;;  %v1688_v29 = vadd.f32 %v4251_v7, %v1553_v25  ;;  %v1752_v39 = vadd.f32 %v4251_v7, %v1617_v35  ;;  %v1551_v49 = vmul.f32 %v4258_v21, %v1203_v10  ;;  %v1219_v10 = vpop.f32.mrf.mxu0 }
 0x192   : > { %2712 = vst.msk [vmem:[%s3850_s12 + $0xe8] sm:$0xf] %vm2653_vm2, %v3230_v15  ;;  %v2069_v14 = vsel %vm1813_vm12, %v1685_v51, %v1941_v16  ;;  %v1615_v11 = vmul.f32 %v4258_v21, %v1459_v58  ;;  %v1556_v23 = vmul.f32 %v4258_v21, %v3438_v43  ;;  %vm1877_vm13 = vcmp.ge.f32.partialorder %v1749_v28, 0.0 }
 0x193   : > { %2776 = vst.msk [vmem:[%s3850_s12 + $0x1e8] sm:$0xf] %vm2653_vm2, %v3294_v41  ;;  %v3228_v62 = vpack.c.bf16 %v2069_v14, %v2069_v14  ;;  %v2005_v57 = vmul.f32 0.1, %v1749_v28  ;;  %vm1816_vm14 = vcmp.ge.f32.partialorder %v1688_v29, 0.0  ;;  %vm1880_vm15 = vcmp.ge.f32.partialorder %v1752_v39, 0.0 }
 0x194   : > { %v1944_v24 = vmul.f32 0.1, %v1688_v29  ;;  %v2008_v56 = vmul.f32 0.1, %v1752_v39  ;;  %v1686_v31 = vadd.f32 %v4251_v7, %v1551_v49  ;;  %v1750_v26 = vadd.f32 %v4251_v7, %v1615_v11 }
 0x195   : > { %2710 = vst.msk [vmem:[%s3850_s12 + $0xe0] sm:$0xf] %vm2653_vm2, %v3228_v62  ;;  %v2133_v52 = vsel %vm1877_vm13, %v1749_v28, %v2005_v57  ;;  %v1691_v47 = vadd.f32 %v4251_v7, %v1556_v23  ;;  %v1620_v61 = vmul.f32 %v4258_v21, %v3502_v17  ;;  %v1554_v27 = vmul.f32 %v4258_v21, %v1216_v53 }
 0x196   : > { %v3292_v60 = vpack.c.bf16 %v2133_v52, %v2133_v52  ;;  %v2072_v6 = vsel %vm1816_vm14, %v1688_v29, %v1944_v24  ;;  %v2136_v40 = vsel %vm1880_vm15, %v1752_v39, %v2008_v56  ;;  %vm1814_vm0 = vcmp.ge.f32.partialorder %v1686_v31, 0.0 }
 0x197   : > { %v3231_v4 = vpack.c.bf16 %v2072_v6, %v2072_v6  ;;  %v3295_v54 = vpack.c.bf16 %v2136_v40, %v2136_v40  ;;  %v1942_v30 = vmul.f32 0.1, %v1686_v31  ;;  %vm1878_vm1 = vcmp.ge.f32.partialorder %v1750_v26, 0.0 }
 0x198   : > { %2774 = vst.msk [vmem:[%s3850_s12 + $0x1e0] sm:$0xf] %vm2653_vm2, %v3292_v60  ;;  %v2006_v20 = vmul.f32 0.1, %v1750_v26  ;;  %vm1819_vm3 = vcmp.ge.f32.partialorder %v1691_v47, 0.0  ;;  %v1755_v0 = vadd.f32 %v4251_v7, %v1620_v61  ;;  %v1618_v34 = vmul.f32 %v4258_v21, %v1472_v59 }
 0x199   : > { %v1947_v38 = vmul.f32 0.1, %v1691_v47  ;;  %2713 = vst.msk [vmem:[%s3850_s12 + $0xec] sm:$0xf] %vm2653_vm2, %v3231_v4  ;;  %2777 = vst.msk [vmem:[%s3850_s12 + $0x1ec] sm:$0xf] %vm2653_vm2, %v3295_v54  ;;  %v2070_v45 = vsel %vm1814_vm0, %v1686_v31, %v1942_v30  ;;  %v1557_v37 = vmul.f32 %v4258_v21, %v3439_v50  ;;  %v1689_v46 = vadd.f32 %v4251_v7, %v1554_v27 }
 0x19a   : > { %v3229_v48 = vpack.c.bf16 %v2070_v45, %v2070_v45  ;;  %v2134_v55 = vsel %vm1878_vm1, %v1750_v26, %v2006_v20  ;;  %vm1883_vm4 = vcmp.ge.f32.partialorder %v1755_v0, 0.0  ;;  %v2011_v42 = vmul.f32 0.1, %v1755_v0 }
 0x19b   : > { %v2075_v5 = vsel %vm1819_vm3, %v1691_v47, %v1947_v38  ;;  %v3293_v58 = vpack.c.bf16 %v2134_v55, %v2134_v55  ;;  %v1753_v33 = vadd.f32 %v4251_v7, %v1618_v34  ;;  %v1692_v63 = vadd.f32 %v4251_v7, %v1557_v37 }
 0x19c   : > { %v3234_v36 = vpack.c.bf16 %v2075_v5, %v2075_v5  ;;  %2711 = vst.msk [vmem:[%s3850_s12 + $0xe4] sm:$0xf] %vm2653_vm2, %v3229_v48  ;;  %v1621_v12 = vmul.f32 %v4258_v21, %v3503_v13  ;;  %v1555_v22 = vmul.f32 %v4258_v21, %v1219_v10  ;;  %v2139_v9 = vsel %vm1883_vm4, %v1755_v0, %v2011_v42 }
 0x19d   : > { %2775 = vst.msk [vmem:[%s3850_s12 + $0x1e4] sm:$0xf] %vm2653_vm2, %v3293_v58  ;;  %vm1817_vm5 = vcmp.ge.f32.partialorder %v1689_v46, 0.0  ;;  %v1945_v19 = vmul.f32 0.1, %v1689_v46  ;;  %v1619_v43 = vmul.f32 %v4258_v21, %v1475_v3  ;;  %v3298_v44 = vpack.c.bf16 %v2139_v9, %v2139_v9 }
 0x19e   : > { %2716 = vst.msk [vmem:[%s3850_s12 + $0xf8] sm:$0xf] %vm2653_vm2, %v3234_v36  ;;  %vm1881_vm6 = vcmp.ge.f32.partialorder %v1753_v33, 0.0  ;;  %v2009_v1 = vmul.f32 0.1, %v1753_v33  ;;  %vm1820_vm7 = vcmp.ge.f32.partialorder %v1692_v63, 0.0  ;;  %v1756_v17 = vadd.f32 %v4251_v7, %v1621_v12 }
 0x19f   : > { %v2073_v51 = vsel %vm1817_vm5, %v1689_v46, %v1945_v19  ;;  %v1948_v18 = vmul.f32 0.1, %v1692_v63  ;;  %v1690_v8 = vadd.f32 %v4251_v7, %v1555_v22  ;;  %2780 = vst.msk [vmem:[%s3850_s12 + $0x1f8] sm:$0xf] %vm2653_vm2, %v3298_v44  ;;  %v1754_v35 = vadd.f32 %v4251_v7, %v1619_v43 }
 0x1a0   : > { %v3232_v2 = vpack.c.bf16 %v2073_v51, %v2073_v51  ;;  %v2137_v25 = vsel %vm1881_vm6, %v1753_v33, %v2009_v1  ;;  %vm1884_vm8 = vcmp.ge.f32.partialorder %v1756_v17, 0.0  ;;  %v2012_v32 = vmul.f32 0.1, %v1756_v17 }
 0x1a1   : > { %v3296_v21 = vpack.c.bf16 %v2137_v25, %v2137_v25  ;;  %v2076_v15 = vsel %vm1820_vm7, %v1692_v63, %v1948_v18  ;;  %vm1818_vm9 = vcmp.ge.f32.partialorder %v1690_v8, 0.0  ;;  %v1946_v41 = vmul.f32 0.1, %v1690_v8 }
 0x1a2   : > { %2714 = vst.msk [vmem:[%s3850_s12 + $0xf0] sm:$0xf] %vm2653_vm2, %v3232_v2  ;;  %v3235_v16 = vpack.c.bf16 %v2076_v15, %v2076_v15  ;;  %vm1882_vm10 = vcmp.ge.f32.partialorder %v1754_v35, 0.0  ;;  %v2140_v28 = vsel %vm1884_vm8, %v1756_v17, %v2012_v32  ;;  %v2010_v29 = vmul.f32 0.1, %v1754_v35 }
 0x1a3   : > { %2778 = vst.msk [vmem:[%s3850_s12 + $0x1f0] sm:$0xf] %vm2653_vm2, %v3296_v21  ;;  %v3299_v7 = vpack.c.bf16 %v2140_v28, %v2140_v28  ;;  %v2074_v39 = vsel %vm1818_vm9, %v1690_v8, %v1946_v41 }
 0x1a4   : > { %2717 = vst.msk [vmem:[%s3850_s12 + $0xfc] sm:$0xf] %vm2653_vm2, %v3235_v16  ;;  %v3233_v53 = vpack.c.bf16 %v2074_v39, %v2074_v39  ;;  %v2138_v14 = vsel %vm1882_vm10, %v1754_v35, %v2010_v29 }
 0x1a5   : > { %2781 = vst.msk [vmem:[%s3850_s12 + $0x1fc] sm:$0xf] %vm2653_vm2, %v3299_v7  ;;  %v3297_v49 = vpack.c.bf16 %v2138_v14, %v2138_v14 }
 0x1a6   : > { %2715 = vst.msk [vmem:[%s3850_s12 + $0xf4] sm:$0xf] %vm2653_vm2, %v3233_v53 }
 0x1a7   : > { %2779 = vst.msk [vmem:[%s3850_s12 + $0x1f4] sm:$0xf] %vm2653_vm2, %v3297_v49 }
 0x1a8 PF: > { %s14_s17 = sadd.s32 1, %s3629_s17   ;;  %s4639_s15 = smov %s3625_s16 }
 0x1a9   : > { %p11_p5 = scmp.ge.s32.totalorder %s14_s17, 4   ;;  %s4640_s16 = smov %s4642_s18 }
 0x1ab   :  { %13 = sbr.rel (!%p11_p5) target bundleno = 2 (0x2), region = 75 }

// kernel: extract_features.6
= control target key start
LH: loop header
LB: loop body
LE: loop exit
PB: predicated region body
PF: predicated region fallthrough
CT: control target
= control target key end

     0   :  { %s2795_s15 = smov 0   ;;  %s2797_s16 = smov 0   ;;  %s3261_s0 = inlined_call_operand.vmem [shape: bf16[128,1600], index: 0, kind: input, shape index: {}]   ;;  %s3262_s1 = inlined_call_operand.vmem [shape: bf16[1600,128], index: 1, kind: input, shape index: {}]   ;;  %s3263_s2 = inlined_call_operand.vmem [shape: f32[1,128], index: 2, kind: input, shape index: {}]   ;;  %s3264_s3 = inlined_call_operand.vmem [shape: f32[1,128], index: 3, kind: input, shape index: {}]   ;;  %s3265_s4 = inlined_call_operand.vmem [shape: bf16[128,128], index: 4, kind: output, shape index: {}]  }
   0x1   :  { %s2799_s17 = smov 0  }
   0x2 LB: > { %s26_s18 = sadd.s32 1, %s2764_s16  ;;  %p2069_p0 = scmp.ge.s32.totalorder %s2768_s17, 1  ;;  %s2768_s17 = sphi %s2799_s17, %s14_s17   ;;  %s2764_s16 = sphi %s2797_s16, %s3287_s16   ;;  %s2760_s15 = sphi %s2795_s15, %s3286_s15  }
   0x3   : > { %p28_p1 = scmp.ge.s32.totalorder %s26_s18, 2  ;;  %p203_p2 = scmp.lt.s32.totalorder %s2768_s17, 3 }
   0x5   : > { %s3289_s18 = smov (%p28_p1, %s26_s18), 0  ;;  %p204_p3 = pnand %p2069_p0, %p203_p2 }
   0x7   : > { %207 = sbr.rel (%p204_p3) target bundleno = 355 (0x163), region = 36 }
   0xc   : > { %v2570_v0 = vld [vmem:[%s3262_s1 + $0x78] sm:$0xff]   ;;  %v2574_v4 = vld [vmem:[%s3262_s1 + $0x70] sm:$0xff]   ;;  %v2578_v8 = vld [vmem:[%s3262_s1 + $0x68] sm:$0xff]   ;;  %s2070_s27 = sshll.u32 %s2760_s15, 3  ;;  %vm1386_vm0 = vcmask 523264  }
   0xd   : > { %v2571_v1 = vld [vmem:[%s3262_s1 + $0xf8] sm:$0xff]   ;;  %2273 = vmatprep.subr.bf16.mxu0 %v2570_v0  ;;  %v2575_v5 = vld [vmem:[%s3262_s1 + $0xf0] sm:$0xff]   ;;  %v2579_v9 = vld [vmem:[%s3262_s1 + $0xe8] sm:$0xff]   ;;  %p244_p4 = scmp.lt.s32.totalorder %s2070_s27, 15 }
   0xe   : > { %v2572_v2 = vld [vmem:[%s3262_s1 + $0x38] sm:$0xff]   ;;  %2313 = vmatprep.subr.bf16.mxu1 %v2571_v1  ;;  %v2576_v6 = vld [vmem:[%s3262_s1 + $0x30] sm:$0xff]   ;;  %v2580_v10 = vld [vmem:[%s3262_s1 + $0x28] sm:$0xff]  }
   0xf   : > { %v2573_v3 = vld [vmem:[%s3262_s1 + $0xb8] sm:$0xff]   ;;  %2274 = vmatpush3.bf16.msra.mxu0 %v2572_v2  ;;  %v2577_v7 = vld [vmem:[%s3262_s1 + $0xb0] sm:$0xff]   ;;  %v2581_v11 = vld [vmem:[%s3262_s1 + $0xa8] sm:$0xff]   ;;  %s3291_s27 = smov (!%p244_p4, %s2070_s27), 15 }
  0x10   : > { %2314 = vmatpush3.bf16.msra.mxu1 %v2573_v3  ;;  %2275 = vmatprep.subr.bf16.mxu0 %v2574_v4  ;;  %v2582_v12 = vld [vmem:[%s3262_s1 + $0x60] sm:$0xff]   ;;  %v2586_v16 = vld [vmem:[%s3262_s1 + $0x58] sm:$0xff]   ;;  %v2590_v20 = vld [vmem:[%s3262_s1 + $0x50] sm:$0xff]   ;;  %s2545_s28 = smul.u32 52, %s3291_s27  ;;  %s2073_s9 = sshll.u32 %s3291_s27, 2 }
  0x11   : > { %2315 = vmatprep.subr.bf16.mxu1 %v2575_v5  ;;  %v2583_v13 = vld [vmem:[%s3262_s1 + $0xe0] sm:$0xff]   ;;  %v2587_v17 = vld [vmem:[%s3262_s1 + $0xd8] sm:$0xff]   ;;  %v2591_v21 = vld [vmem:[%s3262_s1 + $0xd0] sm:$0xff]   ;;  %s267_s11 = scalar_lea.vmem %s3265_s4, %s2073_s9 }
  0x12   : > { %v2584_v14 = vld [vmem:[%s3262_s1 + $0x20] sm:$0xff]   ;;  %v2588_v18 = vld [vmem:[%s3262_s1 + $0x18] sm:$0xff]   ;;  %v2592_v22 = vld [vmem:[%s3262_s1 + $0x10] sm:$0xff]   ;;  %s2912_s12 = scalar_lea.vmem %s3261_s0, %s2545_s28 }
  0x13   : > { %2276 = vmatpush3.bf16.msra.mxu0 %v2576_v6  ;;  %v2585_v15 = vld [vmem:[%s3262_s1 + $0xa0] sm:$0xff]   ;;  %v2589_v19 = vld [vmem:[%s3262_s1 + $0x98] sm:$0xff]   ;;  %v2593_v23 = vld [vmem:[%s3262_s1 + $0x90] sm:$0xff]  }
  0x14   : > { %2316 = vmatpush3.bf16.msra.mxu1 %v2577_v7  ;;  %2277 = vmatprep.subr.bf16.mxu0 %v2578_v8  ;;  %v2594_v24 = vld [vmem:[%s3262_s1 + $0x48] sm:$0xff]   ;;  %v2598_v28 = vld [vmem:[%s3262_s1 + $0x40] sm:$0xff]   ;;  %v2608_v36 = vld [vmem:[%s3262_s1 + $0x178] sm:$0xff]  }
  0x15   : > { %2317 = vmatprep.subr.bf16.mxu1 %v2579_v9  ;;  %v2595_v25 = vld [vmem:[%s3262_s1 + $0xc8] sm:$0xff]   ;;  %v2599_v29 = vld [vmem:[%s3262_s1 + $0xc0] sm:$0xff]   ;;  %v2609_v37 = vld [vmem:[%s3262_s1 + $0x1f8] sm:$0xff]  }
  0x16   : > { %v2596_v26 = vld [vmem:[%s3262_s1 + $0x8] sm:$0xff]   ;;  %v2600_v30 = vld [vmem:[%s3262_s1] sm:$0xff]   ;;  %v2610_v38 = vld [vmem:[%s3262_s1 + $0x138] sm:$0xff]  }
  0x17   : > { %2278 = vmatpush3.bf16.msra.mxu0 %v2580_v10  ;;  %v2597_v27 = vld [vmem:[%s3262_s1 + $0x88] sm:$0xff]   ;;  %v2601_v31 = vld [vmem:[%s3262_s1 + $0x80] sm:$0xff]   ;;  %v2611_v39 = vld [vmem:[%s3262_s1 + $0x1b8] sm:$0xff]  }
  0x18   : > { %2318 = vmatpush3.bf16.msra.mxu1 %v2581_v11  ;;  %2279 = vmatprep.subr.bf16.mxu0 %v2582_v12  ;;  %v2602_v32 = vld [vmem:[%s2912_s12] ss:$52 sps:$4 sm:$0xff]   ;;  %v2604_v33 = vld [vmem:[%s2912_s12 + $0x4] ss:$52 sps:$4 sm:$0xff]   ;;  %v2605_v34 = vld [vmem:[%s2912_s12 + $0x8] ss:$52 sps:$4 sm:$0xff]  }
  0x19   : > { %2319 = vmatprep.subr.bf16.mxu1 %v2583_v13  ;;  %v2607_v35 = vld [vmem:[%s2912_s12 + $0xc] ss:$52 sps:$4 sm:$0xff]   ;;  %1431 = vmatprep.mubr.bf16.mxu0 %v2604_v33  ;;  %v2612_v40 = vld [vmem:[%s3262_s1 + $0x170] sm:$0xff]   ;;  %v2620_v46 = vld [vmem:[%s2912_s12 + $0x68] ss:$52 sps:$4 sm:$0xff]  }
  0x1a   : > { %1496 = vmatprep.mubr.bf16.mxu1 %v2607_v35  ;;  %v2613_v41 = vld [vmem:[%s3262_s1 + $0x1f0] sm:$0xff]   ;;  %v2616_v44 = vld [vmem:[%s2912_s12 + $0x6c] ss:$52 sps:$4 sm:$0xff]   ;;  %v2636_v60 = vld [vmem:[%s3262_s1 + $0x158] sm:$0xff]  }
  0x1b   : > { %2280 = vmatpush3.bf16.msra.mxu0 %v2584_v14  ;;  %v2614_v42 = vld [vmem:[%s3262_s1 + $0x130] sm:$0xff]   ;;  %v2622_v48 = vld [vmem:[%s3262_s1 + $0x168] sm:$0xff]   ;;  %v2626_v52 = vld [vmem:[%s3262_s1 + $0x160] sm:$0xff]  }
  0x1c   : > { %2320 = vmatpush3.bf16.msra.mxu1 %v2585_v15  ;;  %2281 = vmatprep.subr.bf16.mxu0 %v2586_v16  ;;  %v2615_v43 = vld [vmem:[%s3262_s1 + $0x1b0] sm:$0xff]   ;;  %v2623_v49 = vld [vmem:[%s3262_s1 + $0x1e8] sm:$0xff]   ;;  %v2627_v53 = vld [vmem:[%s3262_s1 + $0x1e0] sm:$0xff]  }
  0x1d   : > { %2321 = vmatprep.subr.bf16.mxu1 %v2587_v17  ;;  %v2618_v45 = vld [vmem:[%s2912_s12 + $0x74] ss:$52 sps:$4 sm:$0xff]   ;;  %v2621_v47 = vld [vmem:[%s2912_s12 + $0x70] ss:$52 sps:$4 sm:$0xff]   ;;  %v2635_v59 = vld [vmem:[%s2912_s12 + $0xd8] ss:$52 sps:$4 sm:$0xff]  }
  0x1e   : > { %v2624_v50 = vld [vmem:[%s3262_s1 + $0x128] sm:$0xff]   ;;  %v2628_v54 = vld [vmem:[%s3262_s1 + $0x120] sm:$0xff]   ;;  %v2632_v57 = vld [vmem:[%s2912_s12 + $0xdc] ss:$52 sps:$4 sm:$0xff]  }
  0x1f   : > { %2282 = vmatpush3.bf16.msra.mxu0 %v2588_v18  ;;  %v2625_v51 = vld [vmem:[%s3262_s1 + $0x1a8] sm:$0xff]   ;;  %v2629_v55 = vld [vmem:[%s3262_s1 + $0x1a0] sm:$0xff]   ;;  %v2637_v61 = vld [vmem:[%s3262_s1 + $0x1d8] sm:$0xff]  }
  0x20   : > { %2322 = vmatpush3.bf16.msra.mxu1 %v2589_v19  ;;  %2283 = vmatprep.subr.bf16.mxu0 %v2590_v20  ;;  %v2630_v56 = vld [vmem:[%s2912_s12 + $0xd4] ss:$52 sps:$4 sm:$0xff]   ;;  %v2634_v58 = vld [vmem:[%s2912_s12 + $0xd0] ss:$52 sps:$4 sm:$0xff]   ;;  %v2638_v62 = vld [vmem:[%s3262_s1 + $0x118] sm:$0xff]  }
  0x21   : > { %2323 = vmatprep.subr.bf16.mxu1 %v2591_v21  ;;  %v2639_v63 = vld [vmem:[%s3262_s1 + $0x198] sm:$0xff]   ;;  %v2640_v0 = vld [vmem:[%s3262_s1 + $0x150] sm:$0xff]   ;;  %v2650_v8 = vld [vmem:[%s3262_s1 + $0x148] sm:$0xff]  }
  0x22   : > { %v2641_v1 = vld [vmem:[%s3262_s1 + $0x1d0] sm:$0xff]   ;;  %v2646_v5 = vld [vmem:[%s2912_s12 + $0x144] ss:$52 sps:$4 sm:$0xff]   ;;  %v2651_v9 = vld [vmem:[%s3262_s1 + $0x1c8] sm:$0xff]  }
  0x23   : > { %2284 = vmatpush3.bf16.msra.mxu0 %v2592_v22  ;;  %v2642_v2 = vld [vmem:[%s3262_s1 + $0x110] sm:$0xff]   ;;  %v2648_v6 = vld [vmem:[%s2912_s12 + $0x138] ss:$52 sps:$4 sm:$0xff]   ;;  %v2654_v12 = vld [vmem:[%s3262_s1 + $0x140] sm:$0xff]  }
  0x24   : > { %2324 = vmatpush3.bf16.msra.mxu1 %v2593_v23  ;;  %2285 = vmatprep.subr.bf16.mxu0 %v2594_v24  ;;  %v2643_v3 = vld [vmem:[%s3262_s1 + $0x190] sm:$0xff]   ;;  %v2652_v10 = vld [vmem:[%s3262_s1 + $0x108] sm:$0xff]   ;;  %v2655_v13 = vld [vmem:[%s3262_s1 + $0x1c0] sm:$0xff]  }
  0x25   : > { %2325 = vmatprep.subr.bf16.mxu1 %v2595_v25  ;;  %v2644_v4 = vld [vmem:[%s2912_s12 + $0x13c] ss:$52 sps:$4 sm:$0xff]   ;;  %v2649_v7 = vld [vmem:[%s2912_s12 + $0x140] ss:$52 sps:$4 sm:$0xff]   ;;  %v2653_v11 = vld [vmem:[%s3262_s1 + $0x188] sm:$0xff]  }
  0x26   : > { %v2656_v14 = vld [vmem:[%s3262_s1 + $0x100] sm:$0xff]   ;;  %v2660_v17 = vld [vmem:[%s2912_s12 + $0x14] ss:$52 sps:$4 sm:$0xff]   ;;  %v2661_v18 = vld [vmem:[%s2912_s12 + $0x18] ss:$52 sps:$4 sm:$0xff]  }
  0x27   : > { %2286 = vmatpush3.bf16.msra.mxu0 %v2596_v26  ;;  %v2657_v15 = vld [vmem:[%s3262_s1 + $0x180] sm:$0xff]   ;;  %v2663_v19 = vld [vmem:[%s2912_s12 + $0x1c] ss:$52 sps:$4 sm:$0xff]   ;;  %v2679_v33 = vld [vmem:[%s3262_s1 + $0x2e8] sm:$0xff]  }
  0x28   : > { %2326 = vmatpush3.bf16.msra.mxu1 %v2597_v27  ;;  %2287 = vmatprep.subr.bf16.mxu0 %v2598_v28  ;;  %v2658_v16 = vld [vmem:[%s2912_s12 + $0x10] ss:$52 sps:$4 sm:$0xff]   ;;  %v2664_v20 = vld [vmem:[%s3262_s1 + $0x278] sm:$0xff]   ;;  %v2681_v35 = vld [vmem:[%s3262_s1 + $0x2a8] sm:$0xff]  }
  0x29   : > { %2327 = vmatprep.subr.bf16.mxu1 %v2599_v29  ;;  %v2665_v21 = vld [vmem:[%s3262_s1 + $0x2f8] sm:$0xff]   ;;  %v2668_v24 = vld [vmem:[%s3262_s1 + $0x270] sm:$0xff]  }
  0x2a   : > { %v2666_v22 = vld [vmem:[%s3262_s1 + $0x238] sm:$0xff]   ;;  %v2669_v25 = vld [vmem:[%s3262_s1 + $0x2f0] sm:$0xff]  }
  0x2b   : > { %2288 = vmatpush3.bf16.msra.mxu0 %v2600_v30  ;;  %v2667_v23 = vld [vmem:[%s3262_s1 + $0x2b8] sm:$0xff]   ;;  %v2670_v26 = vld [vmem:[%s3262_s1 + $0x230] sm:$0xff]  }
  0x2c   : > { %2328 = vmatpush3.bf16.msra.mxu1 %v2601_v31  ;;  %2353 = vmatprep.subr.bf16.mxu0 %v2608_v36  ;;  %v2671_v27 = vld [vmem:[%s3262_s1 + $0x2b0] sm:$0xff]   ;;  %v2674_v29 = vld [vmem:[%s2912_s12 + $0x84] ss:$52 sps:$4 sm:$0xff]  }
  0x2d   : > { %2393 = vmatprep.subr.bf16.mxu1 %v2609_v37  ;;  %v2672_v28 = vld [vmem:[%s2912_s12 + $0x7c] ss:$52 sps:$4 sm:$0xff]   ;;  %v2676_v30 = vld [vmem:[%s2912_s12 + $0x78] ss:$52 sps:$4 sm:$0xff]   ;;  %v2677_v31 = vld [vmem:[%s2912_s12 + $0x80] ss:$52 sps:$4 sm:$0xff]  }
  0x2e   : > { %1432 = vmatmul.mubr.bf16.vlgmr.msra.gmra.mxu0 %v2602_v32  ;;  %v2678_v32 = vld [vmem:[%s3262_s1 + $0x268] sm:$0xff]   ;;  %v2682_v36 = vld [vmem:[%s3262_s1 + $0x260] sm:$0xff]  }
  0x2f   : > { %1497 = vmatmul.mubr.bf16.vlgmr.msra.gmra.mxu1 %v2605_v34  ;;  %2354 = vmatpush3.bf16.msra.mxu0 %v2610_v38  ;;  %v2680_v34 = vld [vmem:[%s3262_s1 + $0x228] sm:$0xff]   ;;  %v2683_v37 = vld [vmem:[%s3262_s1 + $0x2e0] sm:$0xff]  }
  0x30   : > { %2394 = vmatpush3.bf16.msra.mxu1 %v2611_v39  ;;  %2355 = vmatprep.subr.bf16.mxu0 %v2612_v40  ;;  %v2684_v38 = vld [vmem:[%s3262_s1 + $0x220] sm:$0xff]  }
  0x31   : > { %2395 = vmatprep.subr.bf16.mxu1 %v2613_v41  ;;  %1439 = vmatprep.mubr.bf16.mxu0 %v2616_v44  ;;  %v2685_v39 = vld [vmem:[%s3262_s1 + $0x2a0] sm:$0xff]   ;;  %v2692_v44 = vld [vmem:[%s3262_s1 + $0x258] sm:$0xff]  }
  0x32   : > { %1504 = vmatprep.mubr.bf16.mxu1 %v2618_v45  ;;  %v2686_v40 = vld [vmem:[%s2912_s12 + $0xe4] ss:$52 sps:$4 sm:$0xff]   ;;  %v2688_v41 = vld [vmem:[%s2912_s12 + $0xec] ss:$52 sps:$4 sm:$0xff]  }
  0x33   : > { %2356 = vmatpush3.bf16.msra.mxu0 %v2614_v42  ;;  %v2690_v42 = vld [vmem:[%s2912_s12 + $0xe0] ss:$52 sps:$4 sm:$0xff]   ;;  %v2693_v45 = vld [vmem:[%s3262_s1 + $0x2d8] sm:$0xff]  }
  0x34   : > { %2396 = vmatpush3.bf16.msra.mxu1 %v2615_v43  ;;  %2357 = vmatprep.subr.bf16.mxu0 %v2622_v48  ;;  %v2691_v43 = vld [vmem:[%s2912_s12 + $0xe8] ss:$52 sps:$4 sm:$0xff]   ;;  %v2696_v48 = vld [vmem:[%s3262_s1 + $0x250] sm:$0xff]  }
  0x35   : > { %2397 = vmatprep.subr.bf16.mxu1 %v2623_v49  ;;  %v2697_v49 = vld [vmem:[%s3262_s1 + $0x2d0] sm:$0xff]  }
  0x36   : > { %1440 = vmatmul.mubr.bf16.gmra.mxu0 %v2620_v46  ;;  %v2694_v46 = vld [vmem:[%s3262_s1 + $0x218] sm:$0xff]  }
  0x37   : > { %1505 = vmatmul.mubr.bf16.gmra.mxu1 %v2621_v47  ;;  %2358 = vmatpush3.bf16.msra.mxu0 %v2624_v50  ;;  %v2695_v47 = vld [vmem:[%s3262_s1 + $0x298] sm:$0xff]   ;;  %v2698_v50 = vld [vmem:[%s3262_s1 + $0x210] sm:$0xff]  }
  0x38   : > { %2398 = vmatpush3.bf16.msra.mxu1 %v2625_v51  ;;  %2359 = vmatprep.subr.bf16.mxu0 %v2626_v52  ;;  %v2699_v51 = vld [vmem:[%s3262_s1 + $0x290] sm:$0xff]   ;;  %v2700_v52 = vld [vmem:[%s2912_s12 + $0x14c] ss:$52 sps:$4 sm:$0xff]  }
  0x39   : > { %2399 = vmatprep.subr.bf16.mxu1 %v2627_v53  ;;  %1447 = vmatprep.mubr.bf16.mxu0 %v2630_v56  ;;  %v2702_v53 = vld [vmem:[%s2912_s12 + $0x154] ss:$52 sps:$4 sm:$0xff]  }
  0x3a   : > { %1512 = vmatprep.mubr.bf16.mxu1 %v2632_v57  ;;  %v2706_v56 = vld [vmem:[%s3262_s1 + $0x248] sm:$0xff]  }
  0x3b   : > { %2360 = vmatpush3.bf16.msra.mxu0 %v2628_v54  ;;  %v2704_v54 = vld [vmem:[%s2912_s12 + $0x148] ss:$52 sps:$4 sm:$0xff]  }
  0x3c   : > { %2400 = vmatpush3.bf16.msra.mxu1 %v2629_v55  ;;  %2361 = vmatprep.subr.bf16.mxu0 %v2636_v60  ;;  %v2705_v55 = vld [vmem:[%s2912_s12 + $0x150] ss:$52 sps:$4 sm:$0xff]   ;;  %v2707_v57 = vld [vmem:[%s3262_s1 + $0x2c8] sm:$0xff]  }
  0x3d   : > { %2401 = vmatprep.subr.bf16.mxu1 %v2637_v61  ;;  %v2710_v60 = vld [vmem:[%s3262_s1 + $0x240] sm:$0xff]  }
  0x3e   : > { %1448 = vmatmul.mubr.bf16.gmra.mxu0 %v2634_v58  ;;  %v2708_v58 = vld [vmem:[%s3262_s1 + $0x208] sm:$0xff]   ;;  %v2711_v61 = vld [vmem:[%s3262_s1 + $0x2c0] sm:$0xff]  }
  0x3f   : > { %1513 = vmatmul.mubr.bf16.gmra.mxu1 %v2635_v59  ;;  %2362 = vmatpush3.bf16.msra.mxu0 %v2638_v62  ;;  %v2709_v59 = vld [vmem:[%s3262_s1 + $0x288] sm:$0xff]   ;;  %v2712_v62 = vld [vmem:[%s3262_s1 + $0x200] sm:$0xff]  }
  0x40   : > { %2402 = vmatpush3.bf16.msra.mxu1 %v2639_v63  ;;  %2363 = vmatprep.subr.bf16.mxu0 %v2640_v0  ;;  %v2713_v63 = vld [vmem:[%s3262_s1 + $0x280] sm:$0xff]  }
  0x41   : > { %2403 = vmatprep.subr.bf16.mxu1 %v2641_v1  ;;  %1455 = vmatprep.mubr.bf16.mxu0 %v2644_v4  ;;  %v2714_v0 = vld [vmem:[%s2912_s12 + $0x20] ss:$52 sps:$4 sm:$0xff]   ;;  %v2716_v1 = vld [vmem:[%s2912_s12 + $0x24] ss:$52 sps:$4 sm:$0xff]  }
  0x42   : > { %1520 = vmatprep.mubr.bf16.mxu1 %v2646_v5  ;;  %v2720_v4 = vld [vmem:[%s3262_s1 + $0x318] sm:$0xff]   ;;  %v2721_v5 = vld [vmem:[%s2912_s12 + $0x8c] ss:$52 sps:$4 sm:$0xff]  }
  0x43   : > { %2364 = vmatpush3.bf16.msra.mxu0 %v2642_v2  ;;  %v2717_v2 = vld [vmem:[%s2912_s12 + $0x28] ss:$52 sps:$4 sm:$0xff]  }
  0x44   : > { %2404 = vmatpush3.bf16.msra.mxu1 %v2643_v3  ;;  %2365 = vmatprep.subr.bf16.mxu0 %v2650_v8  ;;  %v2719_v3 = vld [vmem:[%s2912_s12 + $0x2c] ss:$52 sps:$4 sm:$0xff]   ;;  %v2725_v8 = vld [vmem:[%s2912_s12 + $0x88] ss:$52 sps:$4 sm:$0xff]  }
  0x45   : > { %2405 = vmatprep.subr.bf16.mxu1 %v2651_v9  ;;  %v2726_v9 = vld [vmem:[%s2912_s12 + $0x90] ss:$52 sps:$4 sm:$0xff]  }
  0x46   : > { %1456 = vmatmul.mubr.bf16.gmra.mxu0 %v2648_v6  ;;  %v2723_v6 = vld [vmem:[%s2912_s12 + $0x94] ss:$52 sps:$4 sm:$0xff]  }
  0x47   : > { %1521 = vmatmul.mubr.bf16.gmra.mxu1 %v2649_v7  ;;  %2366 = vmatpush3.bf16.msra.mxu0 %v2652_v10  ;;  %v2727_v7 = vld [vmem:[%s3262_s1 + $0x310] sm:$0xff]  }
  0x48   : > { %2406 = vmatpush3.bf16.msra.mxu1 %v2653_v11  ;;  %2367 = vmatprep.subr.bf16.mxu0 %v2654_v12  ;;  %v2728_v10 = vld [vmem:[%s2912_s12 + $0xf4] ss:$52 sps:$4 sm:$0xff]   ;;  %v2730_v11 = vld [vmem:[%s2912_s12 + $0xfc] ss:$52 sps:$4 sm:$0xff]  }
  0x49   : > { %2407 = vmatprep.subr.bf16.mxu1 %v2655_v13  ;;  %1561 = vmatprep.mubr.bf16.mxu0 %v2660_v17  ;;  %v2734_v12 = vld [vmem:[%s3262_s1 + $0x308] sm:$0xff]   ;;  %v2741_v13 = vld [vmem:[%s3262_s1 + $0x300] sm:$0xff]  }
  0x4a   : > { %1626 = vmatprep.mubr.bf16.mxu1 %v2663_v19  ;;  %v2737_v17 = vld [vmem:[%s2912_s12 + $0x164] ss:$52 sps:$4 sm:$0xff]   ;;  %v2740_v19 = vld [vmem:[%s2912_s12 + $0x160] ss:$52 sps:$4 sm:$0xff]  }
  0x4b   : > { %2368 = vmatpush3.bf16.msra.mxu0 %v2656_v14  ;;  %v2732_v14 = vld [vmem:[%s2912_s12 + $0xf0] ss:$52 sps:$4 sm:$0xff]  }
  0x4c   : > { %2408 = vmatpush3.bf16.msra.mxu1 %v2657_v15  ;;  %2433 = vmatprep.subr.bf16.mxu0 %v2664_v20  ;;  %v2733_v15 = vld [vmem:[%s2912_s12 + $0xf8] ss:$52 sps:$4 sm:$0xff]   ;;  %v2742_v20 = vld [vmem:[%s2912_s12 + $0x30] ss:$52 sps:$4 sm:$0xff]  }
  0x4d   : > { %2473 = vmatprep.subr.bf16.mxu1 %v2665_v21  ;;  %v2743_v21 = vld [vmem:[%s2912_s12 + $0x100] ss:$52 sps:$4 sm:$0xff]  }
  0x4e   : > { %1562 = vmatmul.mubr.bf16.vlgmr.msra.gmra.mxu0 %v2658_v16  ;;  %v2735_v16 = vld [vmem:[%s2912_s12 + $0x15c] ss:$52 sps:$4 sm:$0xff]  }
  0x4f   : > { %1627 = vmatmul.mubr.bf16.vlgmr.msra.gmra.mxu1 %v2661_v18  ;;  %2434 = vmatpush3.bf16.msra.mxu0 %v2666_v22  ;;  %v2739_v18 = vld [vmem:[%s2912_s12 + $0x158] ss:$52 sps:$4 sm:$0xff]  }
  0x50   : > { %2474 = vmatpush3.bf16.msra.mxu1 %v2667_v23  ;;  %2435 = vmatprep.subr.bf16.mxu0 %v2668_v24  ;;  %v2744_v22 = vld [vmem:[%s2912_s12 + $0x98] ss:$52 sps:$4 sm:$0xff]   ;;  %v2745_v23 = vld [vmem:[%s2912_s12 + $0x168] ss:$52 sps:$4 sm:$0xff]  }
  0x51   : > { %2475 = vmatprep.subr.bf16.mxu1 %v2669_v25  ;;  %1569 = vmatprep.mubr.bf16.mxu0 %v2672_v28 }
  0x52   : > { %1634 = vmatprep.mubr.bf16.mxu1 %v2674_v29 }
  0x53   : > { %2436 = vmatpush3.bf16.msra.mxu0 %v2670_v26 }
  0x54   : > { %2476 = vmatpush3.bf16.msra.mxu1 %v2671_v27  ;;  %2437 = vmatprep.subr.bf16.mxu0 %v2678_v32 }
  0x55   : > { %2477 = vmatprep.subr.bf16.mxu1 %v2679_v33 }
  0x56   : > { %1570 = vmatmul.mubr.bf16.gmra.mxu0 %v2676_v30 }
  0x57   : > { %1635 = vmatmul.mubr.bf16.gmra.mxu1 %v2677_v31  ;;  %2438 = vmatpush3.bf16.msra.mxu0 %v2680_v34 }
  0x58   : > { %2478 = vmatpush3.bf16.msra.mxu1 %v2681_v35  ;;  %2439 = vmatprep.subr.bf16.mxu0 %v2682_v36 }
  0x59   : > { %2479 = vmatprep.subr.bf16.mxu1 %v2683_v37  ;;  %1577 = vmatprep.mubr.bf16.mxu0 %v2686_v40 }
  0x5a   : > { %1642 = vmatprep.mubr.bf16.mxu1 %v2688_v41 }
  0x5b   : > { %2440 = vmatpush3.bf16.msra.mxu0 %v2684_v38 }
  0x5c   : > { %2480 = vmatpush3.bf16.msra.mxu1 %v2685_v39  ;;  %2441 = vmatprep.subr.bf16.mxu0 %v2692_v44 }
  0x5d   : > { %2481 = vmatprep.subr.bf16.mxu1 %v2693_v45 }
  0x5e   : > { %1578 = vmatmul.mubr.bf16.gmra.mxu0 %v2690_v42 }
  0x5f   : > { %1643 = vmatmul.mubr.bf16.gmra.mxu1 %v2691_v43  ;;  %2442 = vmatpush3.bf16.msra.mxu0 %v2694_v46 }
  0x60   : > { %2482 = vmatpush3.bf16.msra.mxu1 %v2695_v47  ;;  %2443 = vmatprep.subr.bf16.mxu0 %v2696_v48 }
  0x61   : > { %2483 = vmatprep.subr.bf16.mxu1 %v2697_v49  ;;  %1585 = vmatprep.mubr.bf16.mxu0 %v2700_v52 }
  0x62   : > { %1650 = vmatprep.mubr.bf16.mxu1 %v2702_v53 }
  0x63   : > { %2444 = vmatpush3.bf16.msra.mxu0 %v2698_v50 }
  0x64   : > { %2484 = vmatpush3.bf16.msra.mxu1 %v2699_v51  ;;  %2445 = vmatprep.subr.bf16.mxu0 %v2706_v56 }
  0x65   : > { %2485 = vmatprep.subr.bf16.mxu1 %v2707_v57 }
  0x66   : > { %1586 = vmatmul.mubr.bf16.gmra.mxu0 %v2704_v54 }
  0x67   : > { %1651 = vmatmul.mubr.bf16.gmra.mxu1 %v2705_v55  ;;  %2446 = vmatpush3.bf16.msra.mxu0 %v2708_v58 }
  0x68   : > { %2486 = vmatpush3.bf16.msra.mxu1 %v2709_v59  ;;  %2447 = vmatprep.subr.bf16.mxu0 %v2710_v60 }
  0x69   : > { %2487 = vmatprep.subr.bf16.mxu1 %v2711_v61  ;;  %1691 = vmatprep.mubr.bf16.mxu0 %v2716_v1 }
  0x6a   : > { %1756 = vmatprep.mubr.bf16.mxu1 %v2719_v3 }
  0x6b   : > { %2448 = vmatpush3.bf16.msra.mxu0 %v2712_v62 }
  0x6c   : > { %2488 = vmatpush3.bf16.msra.mxu1 %v2713_v63  ;;  %2521 = vmatprep.subr.bf16.mxu0 %v2720_v4 }
  0x6d   : > { %2537 = vmatprep.subr.bf16.mxu1 %v2720_v4 }
  0x6e   : > { %1692 = vmatmul.mubr.bf16.vlgmr.msra.gmra.mxu0 %v2714_v0 }
  0x6f   : > { %1757 = vmatmul.mubr.bf16.vlgmr.msra.gmra.mxu1 %v2717_v2  ;;  %2522 = vmatpush3.bf16.msra.mxu0 %v2720_v4 }
  0x70   : > { %2541 = vmatpush3.bf16.msra.mxu1 %v2720_v4  ;;  %1699 = vmatprep.mubr.bf16.mxu0 %v2721_v5 }
  0x71   : > { %1764 = vmatprep.mubr.bf16.mxu1 %v2723_v6  ;;  %2523 = vmatprep.subr.bf16.mxu0 %v2727_v7 }
  0x72   : > { %2538 = vmatprep.subr.bf16.mxu1 %v2727_v7 }
  0x73   : > { %2524 = vmatpush3.bf16.msra.mxu0 %v2727_v7 }
  0x74   : > { %2542 = vmatpush3.bf16.msra.mxu1 %v2727_v7  ;;  %2525 = vmatprep.subr.bf16.mxu0 %v2734_v12 }
  0x75   : > { %2539 = vmatprep.subr.bf16.mxu1 %v2734_v12 }
  0x76   : > { %1700 = vmatmul.mubr.bf16.gmra.mxu0 %v2725_v8 }
  0x77   : > { %1765 = vmatmul.mubr.bf16.gmra.mxu1 %v2726_v9  ;;  %1707 = vmatprep.mubr.bf16.mxu0 %v2728_v10 }
  0x78   : > { %1772 = vmatprep.mubr.bf16.mxu1 %v2730_v11  ;;  %2526 = vmatpush3.bf16.msra.mxu0 %v2734_v12 }
  0x79   : > { %2543 = vmatpush3.bf16.msra.mxu1 %v2734_v12  ;;  %2527 = vmatprep.subr.bf16.mxu0 %v2741_v13 }
  0x7a   : > { %2540 = vmatprep.subr.bf16.mxu1 %v2741_v13 }
  0x7c   : > { %2528 = vmatpush3.bf16.msra.mxu0 %v2741_v13 }
  0x7d   : > { %2544 = vmatpush3.bf16.msra.mxu1 %v2741_v13 }
  0x7e   : > { %1708 = vmatmul.mubr.bf16.gmra.mxu0 %v2732_v14 }
  0x7f   : > { %1773 = vmatmul.mubr.bf16.gmra.mxu1 %v2733_v15  ;;  %1715 = vmatprep.mubr.bf16.mxu0 %v2735_v16 }
  0x80   : > { %1780 = vmatprep.mubr.bf16.mxu1 %v2737_v17 }
  0x86   : > { %1716 = vmatmul.mubr.bf16.gmra.mxu0 %v2739_v18 }
  0x87   : > { %1781 = vmatmul.mubr.bf16.gmra.mxu1 %v2740_v19  ;;  %2529 = vmatprep.mubr.msk.bf16.mxu0 %vm1386_vm0, %v2742_v20 }
  0x88   : > { %2533 = vmatprep.mubr.msk.bf16.mxu1 %vm1386_vm0, %v2743_v21 }
  0x8e   : > { %2530 = vmatmul.mubr.msk.bf16.vlgmr.msra.gmra.mxu0 %vm1386_vm0, %v2744_v22 }
  0x8f   : > { %2534 = vmatmul.mubr.msk.bf16.vlgmr.msra.gmra.mxu1 %vm1386_vm0, %v2745_v23 }
  0xee   : > { %v2289_v24 = vpop.f32.mrf.mxu0 }
  0xef   : > { %v2329_v25 = vpop.f32.mrf.mxu1 }
  0xf0   : > { %v2290_v26 = vpop.f32.mrf.mxu0 }
  0xf1   : > { %v2291_v27 = vadd.f32 %v2290_v26, %v2289_v24  ;;  %v2330_v28 = vpop.f32.mrf.mxu1 }
  0xf2   : > { %v2331_v29 = vadd.f32 %v2330_v28, %v2329_v25  ;;  %v2292_v30 = vpop.f32.mrf.mxu0 }
  0xf3   : > { %v2332_v31 = vpop.f32.mrf.mxu1 }
  0xf4   : > { %v1499_v32 = vadd.f32 %v2331_v29, %v2291_v27  ;;  %v2293_v33 = vpop.f32.mrf.mxu0 }
  0xf5   : > { %v2294_v34 = vadd.f32 %v2293_v33, %v2292_v30  ;;  %v2333_v35 = vpop.f32.mrf.mxu1 }
  0xf6   : > { %v2334_v36 = vadd.f32 %v2333_v35, %v2332_v31  ;;  %v2295_v38 = vpop.f32.mrf.mxu0 }
  0xf7   : > { %v2335_v39 = vpop.f32.mrf.mxu1 }
  0xf8   : > { %v3176_v37 = vadd.f32 %v2334_v36, %v2294_v34  ;;  %v2296_v40 = vpop.f32.mrf.mxu0 }
  0xf9   : > { %v2297_v41 = vadd.f32 %v2296_v40, %v2295_v38  ;;  %v2336_v42 = vpop.f32.mrf.mxu1 }
  0xfa   : > { %v2337_v43 = vadd.f32 %v2336_v42, %v2335_v39  ;;  %v2298_v44 = vpop.f32.mrf.mxu0 }
  0xfb   : > { %v2338_v45 = vpop.f32.mrf.mxu1 }
  0xfc   : > { %v3178_v46 = vadd.f32 %v2337_v43, %v2297_v41  ;;  %v2299_v47 = vpop.f32.mrf.mxu0 }
  0xfd   : > { %v2300_v48 = vadd.f32 %v2299_v47, %v2298_v44  ;;  %v2339_v49 = vpop.f32.mrf.mxu1 }
  0xfe   : > { %v2340_v50 = vadd.f32 %v2339_v49, %v2338_v45  ;;  %v2301_v52 = vpop.f32.mrf.mxu0 }
  0xff   : > { %v2341_v53 = vpop.f32.mrf.mxu1 }
 0x100   : > { %v3180_v51 = vadd.f32 %v2340_v50, %v2300_v48  ;;  %v2302_v54 = vpop.f32.mrf.mxu0 }
 0x101   : > { %v2303_v55 = vadd.f32 %v2302_v54, %v2301_v52  ;;  %v2342_v56 = vpop.f32.mrf.mxu1 }
 0x102   : > { %v2343_v57 = vadd.f32 %v2342_v56, %v2341_v53  ;;  %v2304_v58 = vpop.f32.mrf.mxu0 }
 0x103   : > { %v2344_v59 = vpop.f32.mrf.mxu1 }
 0x104   : > { %v3182_v60 = vadd.f32 %v2343_v57, %v2303_v55  ;;  %v2305_v61 = vpop.f32.mrf.mxu0 }
 0x105   : > { %v2306_v62 = vadd.f32 %v2305_v61, %v2304_v58  ;;  %v2345_v63 = vpop.f32.mrf.mxu1 }
 0x106   : > { %v2346_v0 = vadd.f32 %v2345_v63, %v2344_v59  ;;  %v2307_v2 = vpop.f32.mrf.mxu0 }
 0x107   : > { %v2347_v3 = vpop.f32.mrf.mxu1 }
 0x108   : > { %v3184_v1 = vadd.f32 %v2346_v0, %v2306_v62  ;;  %v2308_v4 = vpop.f32.mrf.mxu0 }
 0x109   : > { %v2348_v5 = vpop.f32.mrf.mxu1  ;;  %v2309_v6 = vadd.f32 %v2308_v4, %v2307_v2 }
 0x10a   : > { %3266 = vst [vmem:[#allocation2_spill] sm:$0xff] %v3184_v1  ;;  %v2349_v7 = vadd.f32 %v2348_v5, %v2347_v3  ;;  %v2310_v8 = vpop.f32.mrf.mxu0 }
 0x10b   : > { %v2350_v9 = vpop.f32.mrf.mxu1 }
 0x10c   : > { %v3186_v10 = vadd.f32 %v2349_v7, %v2309_v6  ;;  %v2311_v11 = vpop.f32.mrf.mxu0 }
 0x10d   : > { %v2351_v12 = vpop.f32.mrf.mxu1 }
 0x10e   : > { %v2369_v13 = vpop.f32.mrf.mxu0 }
 0x10f   : > { %v2409_v14 = vpop.f32.mrf.mxu1 }
 0x110   : > { %v2370_v15 = vpop.f32.mrf.mxu0 }
 0x111   : > { %v2371_v16 = vadd.f32 %v2370_v15, %v2369_v13  ;;  %v2410_v17 = vpop.f32.mrf.mxu1  ;;  %v2312_v15 = vadd.f32 %v2311_v11, %v2310_v8 }
 0x112   : > { %v2372_v18 = vpop.f32.mrf.mxu0  ;;  %v2411_v20 = vadd.f32 %v2410_v17, %v2409_v14 }
 0x113   : > { %v1564_v19 = vadd.f32 %v2371_v16, %v1499_v32  ;;  %v3188_v21 = vpop.f32.mrf.mxu1  ;;  %v2352_v16 = vadd.f32 %v2351_v12, %v2350_v9 }
 0x114   : > { %v2373_v23 = vpop.f32.mrf.mxu0 }
 0x115   : > { %v3190_v22 = vadd.f32 %v2411_v20, %v1564_v19  ;;  %v3192_v24 = vpop.f32.mrf.mxu1  ;;  %v2374_v20 = vadd.f32 %v2373_v23, %v2372_v18  ;;  %v1526_v1 = vadd.f32 %v2352_v16, %v2312_v15  ;;  %v2230_v15 = vld [vmem:[%s3263_s2] ss:$0 sm:$0xff] }
 0x116   : > { %v2375_v25 = vpop.f32.mrf.mxu0 }
 0x117   : > { %v2415_v26 = vpop.f32.mrf.mxu1  ;;  %v1567_v8 = vadd.f32 %v2374_v20, %v3176_v37 }
 0x118   : > { %v2376_v27 = vpop.f32.mrf.mxu0 }
 0x119   : > { %v2416_v28 = vpop.f32.mrf.mxu1  ;;  %v2377_v7 = vadd.f32 %v2376_v27, %v2375_v25 }
 0x11a   : > { %v2378_v29 = vpop.f32.mrf.mxu0 }
 0x11b   : > { %v3194_v30 = vpop.f32.mrf.mxu1 }
 0x11c   : > { %v2379_v31 = vpop.f32.mrf.mxu0 }
 0x11d   : > { %v2419_v33 = vpop.f32.mrf.mxu1 }
 0x11e   : > { %v2381_v34 = vpop.f32.mrf.mxu0 }
 0x11f   : > { %v2421_v35 = vpop.f32.mrf.mxu1 }
 0x120   : > { %v2382_v32 = vpop.f32.mrf.mxu0 }
 0x121   : > { %v2422_v36 = vpop.f32.mrf.mxu1 }
 0x122   : > { %v2384_v38 = vpop.f32.mrf.mxu0 }
 0x123   : > { %v3196_v39 = vpop.f32.mrf.mxu1 }
 0x124   : > { %v2385_v40 = vpop.f32.mrf.mxu0 }
 0x125   : > { %v3198_v41 = vpop.f32.mrf.mxu1 }
 0x126   : > { %3267 = vst [vmem:[#allocation3_spill] sm:$0xff] %v3198_v41  ;;  %v2387_v42 = vpop.f32.mrf.mxu0 }
 0x127   : > { %v2427_v43 = vpop.f32.mrf.mxu1 }
 0x128   : > { %v2388_v44 = vpop.f32.mrf.mxu0 }
 0x129   : > { %v2428_v45 = vpop.f32.mrf.mxu1  ;;  %v2389_v17 = vadd.f32 %v2388_v44, %v2387_v42 }
 0x12a   : > { %v2390_v47 = vpop.f32.mrf.mxu0 }
 0x12b   : > { %v2430_v48 = vpop.f32.mrf.mxu1  ;;  %v1588_v25 = vadd.f32 %v2389_v17, %v3186_v10  ;;  %v2423_v10 = vadd.f32 %v2422_v36, %v2421_v35 }
 0x12c   : > { %v2391_v49 = vpop.f32.mrf.mxu0 }
 0x12d   : > { %v2431_v50 = vpop.f32.mrf.mxu1 }
 0x12e   : > { %v2449_v52 = vpop.f32.mrf.mxu0 }
 0x12f   : > { %v3200_v53 = vpop.f32.mrf.mxu1 }
 0x130   : > { %3268 = vst [vmem:[#allocation4_spill] sm:$0xff] %v3200_v53  ;;  %v2450_v54 = vpop.f32.mrf.mxu0 }
 0x131   : > { %v3202_v55 = vpop.f32.mrf.mxu1  ;;  %v2451_v12 = vadd.f32 %v2450_v54, %v2449_v52  ;;  %v2432_v54 = vadd.f32 %v2431_v50, %v2430_v48 }
 0x132   : > { %3269 = vst [vmem:[#allocation5_spill] sm:$0xff] %v3202_v55  ;;  %v3204_v56 = vpop.f32.mrf.mxu0 }
 0x133   : > { %3270 = vst [vmem:[#allocation6_spill] sm:$0xff] %v3204_v56  ;;  %v3206_v57 = vpop.f32.mrf.mxu1  ;;  %v1572_v56 = vadd.f32 %v2377_v7, %v3178_v46  ;;  %v2414_v46 = vadd.f32 %v3192_v24, %v3188_v21  ;;  %v1694_v21 = vadd.f32 %v2451_v12, %v3190_v22 }
 0x134   : > { %3271 = vst [vmem:[#allocation7_spill] sm:$0xff] %v3206_v57  ;;  %v3208_v58 = vpop.f32.mrf.mxu0  ;;  %v2383_v57 = vadd.f32 %v2382_v32, %v2381_v34 }
 0x135   : > { %3272 = vst [vmem:[#allocation8_spill] sm:$0xff] %v3208_v58  ;;  %v3210_v59 = vpop.f32.mrf.mxu1 }
 0x136   : > { %3273 = vst [vmem:[#allocation9_spill] sm:$0xff] %v3210_v59  ;;  %v2455_v61 = vpop.f32.mrf.mxu0  ;;  %v2380_v59 = vadd.f32 %v2379_v31, %v2378_v29  ;;  %v1580_v11 = vadd.f32 %v2383_v57, %v3182_v60  ;;  %v2420_v29 = vadd.f32 %v2419_v33, %v3194_v30  ;;  %v2386_v31 = vadd.f32 %v2385_v40, %v2384_v38  ;;  %v3276_v30 = vld [vmem:[#allocation3_spill] sm:$0xff]  ;;  %v3277_v38 = vld [vmem:[#allocation2_spill] sm:$0xff] }
 0x137   : > { %v2495_v62 = vpop.f32.mrf.mxu1  ;;  %v2426_v33 = vadd.f32 %v3276_v30, %v3196_v39 }
 0x138   : > { %v2456_v63 = vpop.f32.mrf.mxu0  ;;  %v1575_v9 = vadd.f32 %v2380_v59, %v3180_v51  ;;  %v1645_v52 = vadd.f32 %v2423_v10, %v1580_v11  ;;  %v1583_v40 = vadd.f32 %v2386_v31, %v3277_v38  ;;  %v1632_v11 = vadd.f32 %v2414_v46, %v1567_v8 }
 0x139   : > { %v2496_v0 = vpop.f32.mrf.mxu1  ;;  %v2457_v27 = vadd.f32 %v2456_v63, %v2455_v61  ;;  %v3279_v57 = vld [vmem:[#allocation5_spill] sm:$0xff] }
 0x13a   : > { %v2458_v2 = vpop.f32.mrf.mxu0  ;;  %v1648_v12 = vadd.f32 %v2426_v33, %v1583_v40 }
 0x13b   : > { %v3212_v3 = vpop.f32.mrf.mxu1 }
 0x13c   : > { %3274 = vst [vmem:[#allocation10_spill] sm:$0xff] %v3212_v3  ;;  %v2459_v4 = vpop.f32.mrf.mxu0  ;;  %v2392_v3 = vadd.f32 %v2391_v49, %v2390_v47  ;;  %v1640_v49 = vadd.f32 %v2420_v29, %v1575_v9 }
 0x13d   : > { %v3214_v5 = vpop.f32.mrf.mxu1  ;;  %v2460_v51 = vadd.f32 %v2459_v4, %v2458_v2  ;;  %v3280_v4 = vld [vmem:[#allocation6_spill] sm:$0xff] }
 0x13e   : > { %3275 = vst [vmem:[#allocation11_spill] sm:$0xff] %v3214_v5  ;;  %v2461_v6 = vpop.f32.mrf.mxu0  ;;  %v2417_v5 = vadd.f32 %v2416_v28, %v2415_v26  ;;  %v2429_v26 = vadd.f32 %v2428_v45, %v2427_v43  ;;  %v1591_v34 = vadd.f32 %v2392_v3, %v1526_v1  ;;  %v2497_v43 = vadd.f32 %v2496_v0, %v2495_v62 }
 0x13f   : > { %v2501_v13 = vpop.f32.mrf.mxu1  ;;  %v1705_v2 = vadd.f32 %v2460_v51, %v1640_v49  ;;  %v3285_v49 = vld [vmem:[#allocation9_spill] sm:$0xff] }
 0x140   : > { %v2462_v14 = vpop.f32.mrf.mxu0  ;;  %v1637_v23 = vadd.f32 %v2417_v5, %v1572_v56  ;;  %v1653_v37 = vadd.f32 %v2429_v26, %v1588_v25  ;;  %v1656_v45 = vadd.f32 %v2432_v54, %v1591_v34  ;;  %v3278_v56 = vld [vmem:[#allocation4_spill] sm:$0xff] }
 0x141   : > { %v2502_v19 = vpop.f32.mrf.mxu1  ;;  %v2463_v32 = vadd.f32 %v2462_v14, %v2461_v6  ;;  %v2491_v59 = vadd.f32 %v3279_v57, %v3278_v56  ;;  %v3281_v5 = vld [vmem:[#allocation8_spill] sm:$0xff] }
 0x142   : > { %v2464_v58 = vpop.f32.mrf.mxu0  ;;  %v1702_v44 = vadd.f32 %v2457_v27, %v1637_v23  ;;  %v2454_v39 = vadd.f32 %v3281_v5, %v3280_v4  ;;  %v2503_v7 = vadd.f32 %v2502_v19, %v2501_v13 }
 0x143   : > { %v3217_v55 = vpop.f32.mrf.mxu1  ;;  %v1710_v61 = vadd.f32 %v2463_v32, %v1645_v52  ;;  %v3282_v62 = vld [vmem:[#allocation10_spill] sm:$0xff]  ;;  %v1759_v16 = vadd.f32 %v2491_v59, %v1694_v21 }
 0x144   : > { %v2465_v53 = vpop.f32.mrf.mxu0  ;;  %v1767_v22 = vadd.f32 %v2497_v43, %v1702_v44  ;;  %v1697_v32 = vadd.f32 %v2454_v39, %v1632_v11 }
 0x145   : > { %v3220_v41 = vpop.f32.mrf.mxu1  ;;  %v3283_v0 = vld [vmem:[#allocation11_spill] sm:$0xff]  ;;  %v2466_v17 = vadd.f32 %v2465_v53, %v2464_v58  ;;  %v1775_v13 = vadd.f32 %v2503_v7, %v1710_v61 }
 0x146   : > { %v2467_v18 = vpop.f32.mrf.mxu0  ;;  %v2500_v6 = vadd.f32 %v3283_v0, %v3282_v62  ;;  %v2506_v54 = vadd.f32 %v3220_v41, %v3217_v55 }
 0x147   : > { %v2507_v28 = vpop.f32.mrf.mxu1 }
 0x148   : > { %v2468_v42 = vpop.f32.mrf.mxu0  ;;  %v1770_v10 = vadd.f32 %v2500_v6, %v1705_v2 }
 0x149   : > { %v2469_v47 = vadd.f32 %v2468_v42, %v2467_v18  ;;  %v2508_v60 = vpop.f32.mrf.mxu1  ;;  %v2231_v18 = vld [vmem:[%s3264_s3] ss:$0 sm:$0xff]  ;;  %v1713_v42 = vadd.f32 %v2466_v17, %v1648_v12 }
 0x14a   : > { %v2470_v24 = vpop.f32.mrf.mxu0  ;;  %v2509_v36 = vadd.f32 %v2508_v60, %v2507_v28  ;;  %v3284_v60 = vld [vmem:[#allocation7_spill] sm:$0xff] }
 0x14b   : > { %v1718_v35 = vadd.f32 %v2469_v47, %v1653_v37  ;;  %v2510_v1 = vpop.f32.mrf.mxu1  ;;  %v2494_v52 = vadd.f32 %v3285_v49, %v3284_v60 }
 0x14c   : > { %v2471_v63 = vpop.f32.mrf.mxu0 }
 0x14d   : > { %v2472_v48 = vadd.f32 %v2471_v63, %v2470_v24  ;;  %v2511_v50 = vpop.f32.mrf.mxu1  ;;  %v1783_v3 = vadd.f32 %v2509_v36, %v1718_v35  ;;  %v1762_v36 = vadd.f32 %v2494_v52, %v1697_v32 }
 0x14e   : > { %v2531_v14 = vpop.f32.mrf.mxu0  ;;  %v2512_v25 = vadd.f32 %v2511_v50, %v2510_v1  ;;  %v1778_v1 = vadd.f32 %v2506_v54, %v1713_v42 }
 0x14f   : > { %v1721_v20 = vadd.f32 %v2472_v48, %v1656_v45  ;;  %v1832_v27 = vadd.f32 %v2531_v14, %v1767_v22  ;;  %v2535_v9 = vpop.f32.mrf.mxu1 }
 0x150   : > { %v1848_v23 = vadd.f32 %v2535_v9, %v1783_v3  ;;  %v1823_v29 = vpop.f32.mrf.mxu0 }
 0x151   : > { %v1863_v19 = vmul.f32 %v2230_v15, %v1832_v27  ;;  %v1824_v26 = vadd.f32 %v1823_v29, %v1759_v16  ;;  %v1839_v28 = vpop.f32.mrf.mxu1  ;;  %v1786_v31 = vadd.f32 %v2512_v25, %v1721_v20 }
 0x152   : > { %v1867_v34 = vmul.f32 %v2230_v15, %v1848_v23  ;;  %v1840_v53 = vadd.f32 %v1839_v28, %v1775_v13  ;;  %v2532_v58 = vpop.f32.mrf.mxu0 }
 0x153   : > { %v1878_v37 = vadd.f32 %v2231_v18, %v1863_v19  ;;  %v1835_v8 = vadd.f32 %v2532_v58, %v1770_v10  ;;  %v2536_v46 = vpop.f32.mrf.mxu1  ;;  %v1861_v51 = vmul.f32 %v2230_v15, %v1824_v26 }
 0x154   : > { %v1882_v44 = vadd.f32 %v2231_v18, %v1867_v34  ;;  %v1851_v47 = vadd.f32 %v2536_v46, %v1786_v31  ;;  %v1865_v24 = vmul.f32 %v2230_v15, %v1840_v53  ;;  %v1826_v33 = vpop.f32.mrf.mxu0 }
 0x155   : > { %v1864_v21 = vmul.f32 %v2230_v15, %v1835_v8  ;;  %v1894_v43 = vmul.f32 0.1, %v1878_v37  ;;  %v1842_v38 = vpop.f32.mrf.mxu1  ;;  %vm1886_vm1 = vcmp.ge.f32.partialorder %v1878_v37, 0.0  ;;  %v1876_v45 = vadd.f32 %v2231_v18, %v1861_v51 }
 0x156   : > { %v1868_v30 = vmul.f32 %v2230_v15, %v1851_v47  ;;  %v1898_v40 = vmul.f32 0.1, %v1882_v44  ;;  %vm1890_vm2 = vcmp.ge.f32.partialorder %v1882_v44, 0.0  ;;  %v1827_v59 = vadd.f32 %v1826_v33, %v1762_v36 }
 0x157   : > { %v1879_v35 = vadd.f32 %v2231_v18, %v1864_v21  ;;  %v1880_v61 = vadd.f32 %v2231_v18, %v1865_v24  ;;  %v1843_v55 = vadd.f32 %v1842_v38, %v1778_v1  ;;  %v1902_v63 = vsel %vm1886_vm1, %v1878_v37, %v1894_v43 }
 0x158   : > { %v1883_v56 = vadd.f32 %v2231_v18, %v1868_v30  ;;  %v1862_v48 = vmul.f32 %v2230_v15, %v1827_v59  ;;  %v1906_v50 = vsel %vm1890_vm2, %v1882_v44, %v1898_v40  ;;  %v1892_v5 = vmul.f32 0.1, %v1876_v45 }
 0x159   : > { %vm1887_vm3 = vcmp.ge.f32.partialorder %v1879_v35, 0.0  ;;  %v1895_v57 = vmul.f32 0.1, %v1879_v35  ;;  %v1866_v4 = vmul.f32 %v2230_v15, %v1843_v55  ;;  %vm1884_vm5 = vcmp.ge.f32.partialorder %v1876_v45, 0.0 }
 0x15a   : > { %vm1891_vm4 = vcmp.ge.f32.partialorder %v1883_v56, 0.0  ;;  %v1899_v41 = vmul.f32 0.1, %v1883_v56  ;;  %v1877_v62 = vadd.f32 %v2231_v18, %v1862_v48  ;;  %v1896_v0 = vmul.f32 0.1, %v1880_v61 }
 0x15b   : > { %v1903_v2 = vsel %vm1887_vm3, %v1879_v35, %v1895_v57  ;;  %v1881_v6 = vadd.f32 %v2231_v18, %v1866_v4  ;;  %vm1888_vm6 = vcmp.ge.f32.partialorder %v1880_v61, 0.0  ;;  %v1900_v16 = vsel %vm1884_vm5, %v1876_v45, %v1892_v5 }
 0x15c   : > { %v2258_v22 = vpack.c.bf16 %v1903_v2, %v1902_v63  ;;  %v1907_v3 = vsel %vm1891_vm4, %v1883_v56, %v1899_v41  ;;  %vm1885_vm7 = vcmp.ge.f32.partialorder %v1877_v62, 0.0  ;;  %v1893_v7 = vmul.f32 0.1, %v1877_v62 }
 0x15d   : > { %v2268_v39 = vpack.c.bf16 %v1907_v3, %v1906_v50  ;;  %vm1889_vm8 = vcmp.ge.f32.partialorder %v1881_v6, 0.0  ;;  %v1897_v14 = vmul.f32 0.1, %v1881_v6  ;;  %v1904_v20 = vsel %vm1888_vm6, %v1880_v61, %v1896_v0 }
 0x15e   : > { %2270 = vst [vmem:[%s267_s11 + $0x8] sm:$0xff] %v2258_v22   ;;  %v1901_v17 = vsel %vm1885_vm7, %v1877_v62, %v1893_v7 }
 0x15f   : > { %2272 = vst [vmem:[%s267_s11 + $0x18] sm:$0xff] %v2268_v39   ;;  %v2253_v25 = vpack.c.bf16 %v1901_v17, %v1900_v16  ;;  %v1905_v27 = vsel %vm1889_vm8, %v1881_v6, %v1897_v14 }
 0x160   : > { %v2263_v9 = vpack.c.bf16 %v1905_v27, %v1904_v20 }
 0x161   : > { %2254 = vst [vmem:[%s267_s11] sm:$0xff] %v2253_v25  }
 0x162   : > { %2271 = vst [vmem:[%s267_s11 + $0x10] sm:$0xff] %v2263_v9  }
 0x163 PF: > { %s14_s17 = sadd.s32 1, %s2768_s17   ;;  %s3286_s15 = smov %s2764_s16 }
 0x164   : > { %p11_p5 = scmp.ge.s32.totalorder %s14_s17, 4   ;;  %s3287_s16 = smov %s3289_s18 }
 0x166   :  { %13 = sbr.rel (!%p11_p5) target bundleno = 2 (0x2), region = 75 }

// kernel: extract_features.7
= control target key start
LH: loop header
LB: loop body
LE: loop exit
PB: predicated region body
PF: predicated region fallthrough
CT: control target
= control target key end

     0   :  { %s5498_s1 = inlined_call_operand.vmem [shape: bf16[3200,256], index: 1, kind: input, shape index: {}]   ;;  %s5499_s0 = inlined_call_operand.vmem [shape: bf16[8,3200], index: 0, kind: input, shape index: {}]   ;;  %s5500_s2 = inlined_call_operand.vmem [shape: f32[1,256], index: 2, kind: input, shape index: {}]   ;;  %s5501_s3 = inlined_call_operand.vmem [shape: f32[1,256], index: 3, kind: input, shape index: {}]   ;;  %s5502_s4 = inlined_call_operand.vmem [shape: bf16[8,256], index: 4, kind: output, shape index: {}]  }
   0x1   :  { %v3527_v0 = vld [vmem:[%s5498_s1 + $0x74] ss:$8 sps:$4 sm:$0xff]   ;;  %v3531_v2 = vld [vmem:[%s5498_s1 + $0x70] ss:$8 sps:$4 sm:$0xff]   ;;  %v3533_v4 = vld [vmem:[%s5498_s1 + $0x64] ss:$8 sps:$4 sm:$0xff]  }
   0x2   :  { %v3529_v1 = vld [vmem:[%s5498_s1 + $0x174] ss:$8 sps:$4 sm:$0xff]   ;;  %2519 = vmatprep.subr.bf16.mxu0 %v3527_v0  ;;  %v3532_v3 = vld [vmem:[%s5498_s1 + $0x170] ss:$8 sps:$4 sm:$0xff]   ;;  %v3535_v5 = vld [vmem:[%s5498_s1 + $0x164] ss:$8 sps:$4 sm:$0xff]  }
   0x3   :  { %2560 = vmatprep.subr.bf16.mxu1 %v3529_v1  ;;  %2520 = vmatpush1.bf16.msra.mxu0 %v3531_v2  ;;  %v3537_v6 = vld [vmem:[%s5498_s1 + $0x60] ss:$8 sps:$4 sm:$0xff]   ;;  %v3539_v8 = vld [vmem:[%s5498_s1 + $0x54] ss:$8 sps:$4 sm:$0xff]   ;;  %v3543_v10 = vld [vmem:[%s5498_s1 + $0x50] ss:$8 sps:$4 sm:$0xff]  }
   0x4   :  { %2561 = vmatpush1.bf16.msra.mxu1 %v3532_v3  ;;  %2521 = vmatprep.subr.bf16.mxu0 %v3533_v4  ;;  %v3538_v7 = vld [vmem:[%s5498_s1 + $0x160] ss:$8 sps:$4 sm:$0xff]   ;;  %v3541_v9 = vld [vmem:[%s5498_s1 + $0x154] ss:$8 sps:$4 sm:$0xff]   ;;  %v3544_v11 = vld [vmem:[%s5498_s1 + $0x150] ss:$8 sps:$4 sm:$0xff]  }
   0x5   :  { %2562 = vmatprep.subr.bf16.mxu1 %v3535_v5  ;;  %v3545_v12 = vld [vmem:[%s5498_s1 + $0x44] ss:$8 sps:$4 sm:$0xff]   ;;  %v3549_v14 = vld [vmem:[%s5498_s1 + $0x40] ss:$8 sps:$4 sm:$0xff]   ;;  %v3551_v16 = vld [vmem:[%s5498_s1 + $0x34] ss:$8 sps:$4 sm:$0xff]  }
   0x6   :  { %v3547_v13 = vld [vmem:[%s5498_s1 + $0x144] ss:$8 sps:$4 sm:$0xff]   ;;  %v3550_v15 = vld [vmem:[%s5498_s1 + $0x140] ss:$8 sps:$4 sm:$0xff]   ;;  %v3553_v17 = vld [vmem:[%s5498_s1 + $0x134] ss:$8 sps:$4 sm:$0xff]  }
   0x7   :  { %2522 = vmatpush1.bf16.msra.mxu0 %v3537_v6  ;;  %v3555_v18 = vld [vmem:[%s5498_s1 + $0x30] ss:$8 sps:$4 sm:$0xff]   ;;  %v3557_v20 = vld [vmem:[%s5498_s1 + $0x24] ss:$8 sps:$4 sm:$0xff]   ;;  %v3561_v22 = vld [vmem:[%s5498_s1 + $0x20] ss:$8 sps:$4 sm:$0xff]  }
   0x8   :  { %2563 = vmatpush1.bf16.msra.mxu1 %v3538_v7  ;;  %2523 = vmatprep.subr.bf16.mxu0 %v3539_v8  ;;  %v3556_v19 = vld [vmem:[%s5498_s1 + $0x130] ss:$8 sps:$4 sm:$0xff]   ;;  %v3559_v21 = vld [vmem:[%s5498_s1 + $0x124] ss:$8 sps:$4 sm:$0xff]   ;;  %v3562_v23 = vld [vmem:[%s5498_s1 + $0x120] ss:$8 sps:$4 sm:$0xff]  }
   0x9   :  { %2564 = vmatprep.subr.bf16.mxu1 %v3541_v9  ;;  %v3563_v24 = vld [vmem:[%s5498_s1 + $0x14] ss:$8 sps:$4 sm:$0xff]   ;;  %v3567_v26 = vld [vmem:[%s5498_s1 + $0x10] ss:$8 sps:$4 sm:$0xff]   ;;  %v3569_v28 = vld [vmem:[%s5498_s1 + $0x4] ss:$8 sps:$4 sm:$0xff]  }
   0xa   :  { %v3565_v25 = vld [vmem:[%s5498_s1 + $0x114] ss:$8 sps:$4 sm:$0xff]   ;;  %v3568_v27 = vld [vmem:[%s5498_s1 + $0x110] ss:$8 sps:$4 sm:$0xff]   ;;  %v3571_v29 = vld [vmem:[%s5498_s1 + $0x104] ss:$8 sps:$4 sm:$0xff]  }
   0xb   :  { %2524 = vmatpush1.bf16.msra.mxu0 %v3543_v10  ;;  %v3573_v30 = vld [vmem:[%s5498_s1] ss:$8 sps:$4 sm:$0xff]   ;;  %v3575_v32 = vld [vmem:[%s5498_s1 + $0xf4] ss:$8 sps:$4 sm:$0xff]   ;;  %v3579_v34 = vld [vmem:[%s5498_s1 + $0xf0] ss:$8 sps:$4 sm:$0xff]  }
   0xc   :  { %2565 = vmatpush1.bf16.msra.mxu1 %v3544_v11  ;;  %2525 = vmatprep.subr.bf16.mxu0 %v3545_v12  ;;  %v3574_v31 = vld [vmem:[%s5498_s1 + $0x100] ss:$8 sps:$4 sm:$0xff]   ;;  %v3577_v33 = vld [vmem:[%s5498_s1 + $0x1f4] ss:$8 sps:$4 sm:$0xff]   ;;  %v3580_v35 = vld [vmem:[%s5498_s1 + $0x1f0] ss:$8 sps:$4 sm:$0xff]  }
   0xd   :  { %2566 = vmatprep.subr.bf16.mxu1 %v3547_v13  ;;  %v3581_v36 = vld [vmem:[%s5498_s1 + $0xe4] ss:$8 sps:$4 sm:$0xff]   ;;  %v3585_v38 = vld [vmem:[%s5498_s1 + $0xe0] ss:$8 sps:$4 sm:$0xff]   ;;  %v3587_v40 = vld [vmem:[%s5498_s1 + $0xd4] ss:$8 sps:$4 sm:$0xff]  }
   0xe   :  { %v3583_v37 = vld [vmem:[%s5498_s1 + $0x1e4] ss:$8 sps:$4 sm:$0xff]   ;;  %v3586_v39 = vld [vmem:[%s5498_s1 + $0x1e0] ss:$8 sps:$4 sm:$0xff]   ;;  %v3589_v41 = vld [vmem:[%s5498_s1 + $0x1d4] ss:$8 sps:$4 sm:$0xff]  }
   0xf   :  { %2526 = vmatpush1.bf16.msra.mxu0 %v3549_v14  ;;  %v3591_v42 = vld [vmem:[%s5498_s1 + $0xd0] ss:$8 sps:$4 sm:$0xff]   ;;  %v3593_v44 = vld [vmem:[%s5498_s1 + $0xc4] ss:$8 sps:$4 sm:$0xff]   ;;  %v3597_v49 = vld [vmem:[%s5498_s1 + $0xc0] ss:$8 sps:$4 sm:$0xff]  }
  0x10   :  { %2567 = vmatpush1.bf16.msra.mxu1 %v3550_v15  ;;  %2527 = vmatprep.subr.bf16.mxu0 %v3551_v16  ;;  %v3592_v43 = vld [vmem:[%s5498_s1 + $0x1d0] ss:$8 sps:$4 sm:$0xff]   ;;  %v3595_v45 = vld [vmem:[%s5498_s1 + $0x1c4] ss:$8 sps:$4 sm:$0xff]   ;;  %v3598_v50 = vld [vmem:[%s5498_s1 + $0x1c0] ss:$8 sps:$4 sm:$0xff]  }
  0x11   :  { %2568 = vmatprep.subr.bf16.mxu1 %v3553_v17  ;;  %v18_v46 = vld [vmem:[%s5499_s0] sm:$0xff]  ;;  %v19_v48 = vld [vmem:[%s5499_s0 + $0x8] sm:$0xff]  ;;  %v3599_v52 = vld [vmem:[%s5498_s1 + $0xb4] ss:$8 sps:$4 sm:$0xff]  }
  0x12   :  { %v3100_v47 = vcombine.high %v18_v46, %v18_v46  ;;  %v3102_v51 = vcombine.high %v19_v48, %v19_v48  ;;  %v3601_v53 = vld [vmem:[%s5498_s1 + $0x1b4] ss:$8 sps:$4 sm:$0xff]   ;;  %v3603_v54 = vld [vmem:[%s5498_s1 + $0xb0] ss:$8 sps:$4 sm:$0xff]   ;;  %v3605_v56 = vld [vmem:[%s5498_s1 + $0xa4] ss:$8 sps:$4 sm:$0xff]   ;;  %v3099_v6 = vcombine.low %v18_v46, %v18_v46  ;;  %v3101_v7 = vcombine.low %v19_v48, %v19_v48 }
  0x13   :  { %2528 = vmatpush1.bf16.msra.mxu0 %v3555_v18  ;;  %v3604_v55 = vld [vmem:[%s5498_s1 + $0x1b0] ss:$8 sps:$4 sm:$0xff]   ;;  %v3607_v57 = vld [vmem:[%s5498_s1 + $0x1a4] ss:$8 sps:$4 sm:$0xff]   ;;  %v3609_v58 = vld [vmem:[%s5498_s1 + $0xa0] ss:$8 sps:$4 sm:$0xff]  }
  0x14   :  { %2569 = vmatpush1.bf16.msra.mxu1 %v3556_v19  ;;  %2529 = vmatprep.subr.bf16.mxu0 %v3557_v20  ;;  %v3610_v59 = vld [vmem:[%s5498_s1 + $0x1a0] ss:$8 sps:$4 sm:$0xff]   ;;  %v3611_v60 = vld [vmem:[%s5498_s1 + $0x94] ss:$8 sps:$4 sm:$0xff]   ;;  %v3615_v62 = vld [vmem:[%s5498_s1 + $0x90] ss:$8 sps:$4 sm:$0xff]  }
  0x15   :  { %2570 = vmatprep.subr.bf16.mxu1 %v3559_v21  ;;  %2551 = vmatprep.mubr.bf16.mxu0 %v3100_v47  ;;  %v3613_v61 = vld [vmem:[%s5498_s1 + $0x194] ss:$8 sps:$4 sm:$0xff]   ;;  %v3616_v63 = vld [vmem:[%s5498_s1 + $0x190] ss:$8 sps:$4 sm:$0xff]   ;;  %v3617_v0 = vld [vmem:[%s5498_s1 + $0x84] ss:$8 sps:$4 sm:$0xff]  }
  0x16   :  { %2592 = vmatprep.mubr.bf16.mxu1 %v3102_v51  ;;  %v3619_v1 = vld [vmem:[%s5498_s1 + $0x184] ss:$8 sps:$4 sm:$0xff]   ;;  %v3621_v2 = vld [vmem:[%s5498_s1 + $0x80] ss:$8 sps:$4 sm:$0xff]   ;;  %v3629_v4 = vld [vmem:[%s5498_s1 + $0x274] ss:$8 sps:$4 sm:$0xff]  }
  0x17   :  { %2530 = vmatpush1.bf16.msra.mxu0 %v3561_v22  ;;  %v3622_v3 = vld [vmem:[%s5498_s1 + $0x180] ss:$8 sps:$4 sm:$0xff]   ;;  %v3632_v5 = vld [vmem:[%s5498_s1 + $0x374] ss:$8 sps:$4 sm:$0xff]   ;;  %v3627_v8 = vld [vmem:[%s5498_s1 + $0x270] ss:$8 sps:$4 sm:$0xff]  }
  0x18   :  { %2571 = vmatpush1.bf16.msra.mxu1 %v3562_v23  ;;  %2531 = vmatprep.subr.bf16.mxu0 %v3563_v24  ;;  %v3630_v9 = vld [vmem:[%s5498_s1 + $0x370] ss:$8 sps:$4 sm:$0xff]   ;;  %v3635_v10 = vld [vmem:[%s5498_s1 + $0x264] ss:$8 sps:$4 sm:$0xff]   ;;  %v3633_v12 = vld [vmem:[%s5498_s1 + $0x260] ss:$8 sps:$4 sm:$0xff]  }
  0x19   :  { %2572 = vmatprep.subr.bf16.mxu1 %v3565_v25  ;;  %v3638_v11 = vld [vmem:[%s5498_s1 + $0x364] ss:$8 sps:$4 sm:$0xff]   ;;  %v3636_v13 = vld [vmem:[%s5498_s1 + $0x360] ss:$8 sps:$4 sm:$0xff]   ;;  %v3641_v14 = vld [vmem:[%s5498_s1 + $0x254] ss:$8 sps:$4 sm:$0xff]  }
  0x1a   :  { %v3644_v15 = vld [vmem:[%s5498_s1 + $0x354] ss:$8 sps:$4 sm:$0xff]   ;;  %v3639_v16 = vld [vmem:[%s5498_s1 + $0x250] ss:$8 sps:$4 sm:$0xff]   ;;  %v3647_v18 = vld [vmem:[%s5498_s1 + $0x244] ss:$8 sps:$4 sm:$0xff]  }
  0x1b   :  { %2532 = vmatpush1.bf16.msra.mxu0 %v3567_v26  ;;  %v3642_v17 = vld [vmem:[%s5498_s1 + $0x350] ss:$8 sps:$4 sm:$0xff]   ;;  %v3650_v19 = vld [vmem:[%s5498_s1 + $0x344] ss:$8 sps:$4 sm:$0xff]   ;;  %v3645_v20 = vld [vmem:[%s5498_s1 + $0x240] ss:$8 sps:$4 sm:$0xff]  }
  0x1c   :  { %2573 = vmatpush1.bf16.msra.mxu1 %v3568_v27  ;;  %2533 = vmatprep.subr.bf16.mxu0 %v3569_v28  ;;  %v3648_v21 = vld [vmem:[%s5498_s1 + $0x340] ss:$8 sps:$4 sm:$0xff]   ;;  %v3653_v22 = vld [vmem:[%s5498_s1 + $0x234] ss:$8 sps:$4 sm:$0xff]   ;;  %v3651_v24 = vld [vmem:[%s5498_s1 + $0x230] ss:$8 sps:$4 sm:$0xff]  }
  0x1d   :  { %2574 = vmatprep.subr.bf16.mxu1 %v3571_v29  ;;  %v3656_v23 = vld [vmem:[%s5498_s1 + $0x334] ss:$8 sps:$4 sm:$0xff]   ;;  %v3654_v25 = vld [vmem:[%s5498_s1 + $0x330] ss:$8 sps:$4 sm:$0xff]   ;;  %v3659_v26 = vld [vmem:[%s5498_s1 + $0x224] ss:$8 sps:$4 sm:$0xff]  }
  0x1e   :  { %v3662_v27 = vld [vmem:[%s5498_s1 + $0x324] ss:$8 sps:$4 sm:$0xff]   ;;  %v3657_v28 = vld [vmem:[%s5498_s1 + $0x220] ss:$8 sps:$4 sm:$0xff]   ;;  %v3692_v51 = vld [vmem:[%s5498_s1 + $0x3d4] ss:$8 sps:$4 sm:$0xff]  }
  0x1f   :  { %2534 = vmatpush1.bf16.msra.mxu0 %v3573_v30  ;;  %v3660_v29 = vld [vmem:[%s5498_s1 + $0x320] ss:$8 sps:$4 sm:$0xff]   ;;  %v3665_v30 = vld [vmem:[%s5498_s1 + $0x214] ss:$8 sps:$4 sm:$0xff]   ;;  %v3683_v46 = vld [vmem:[%s5498_s1 + $0x2e4] ss:$8 sps:$4 sm:$0xff]  }
  0x20   :  { %2575 = vmatpush1.bf16.msra.mxu1 %v3574_v31  ;;  %2535 = vmatprep.subr.bf16.mxu0 %v3575_v32  ;;  %v3668_v31 = vld [vmem:[%s5498_s1 + $0x314] ss:$8 sps:$4 sm:$0xff]   ;;  %v3686_v47 = vld [vmem:[%s5498_s1 + $0x3e4] ss:$8 sps:$4 sm:$0xff]   ;;  %v3681_v48 = vld [vmem:[%s5498_s1 + $0x2e0] ss:$8 sps:$4 sm:$0xff]  }
  0x21   :  { %2576 = vmatprep.subr.bf16.mxu1 %v3577_v33  ;;  %v4457_v32 = vld [vmem:[%s5499_s0 + $0x10] sm:$0xff] }
  0x22   :  { %v3663_v33 = vld [vmem:[%s5498_s1 + $0x210] ss:$8 sps:$4 sm:$0xff]  }
  0x23   :  { %2536 = vmatpush2.bf16.msra.mxu0 %v3579_v34  ;;  %v3666_v34 = vld [vmem:[%s5498_s1 + $0x310] ss:$8 sps:$4 sm:$0xff]  }
  0x24   :  { %2577 = vmatpush2.bf16.msra.mxu1 %v3580_v35  ;;  %2537 = vmatprep.subr.bf16.mxu0 %v3581_v36  ;;  %v3104_v35 = vcombine.high %v4457_v32, %v4457_v32  ;;  %v4470_v36 = vld [vmem:[%s5499_s0 + $0x18] sm:$0xff] }
  0x25   :  { %2578 = vmatprep.subr.bf16.mxu1 %v3583_v37  ;;  %v3671_v37 = vld [vmem:[%s5498_s1 + $0x204] ss:$8 sps:$4 sm:$0xff]  }
  0x27   :  { %2538 = vmatpush2.bf16.msra.mxu0 %v3585_v38  ;;  %v3106_v38 = vcombine.high %v4470_v36, %v4470_v36 }
  0x28   :  { %2579 = vmatpush2.bf16.msra.mxu1 %v3586_v39  ;;  %2539 = vmatprep.subr.bf16.mxu0 %v3587_v40  ;;  %v3674_v39 = vld [vmem:[%s5498_s1 + $0x304] ss:$8 sps:$4 sm:$0xff]   ;;  %v3669_v40 = vld [vmem:[%s5498_s1 + $0x200] ss:$8 sps:$4 sm:$0xff]  }
  0x29   :  { %2580 = vmatprep.subr.bf16.mxu1 %v3589_v41  ;;  %v3672_v41 = vld [vmem:[%s5498_s1 + $0x300] ss:$8 sps:$4 sm:$0xff]  }
  0x2b   :  { %2540 = vmatpush2.bf16.msra.mxu0 %v3591_v42  ;;  %v3677_v42 = vld [vmem:[%s5498_s1 + $0x2f4] ss:$8 sps:$4 sm:$0xff]  }
  0x2c   :  { %2581 = vmatpush2.bf16.msra.mxu1 %v3592_v43  ;;  %2541 = vmatprep.subr.bf16.mxu0 %v3593_v44  ;;  %v3680_v43 = vld [vmem:[%s5498_s1 + $0x3f4] ss:$8 sps:$4 sm:$0xff]   ;;  %v3675_v44 = vld [vmem:[%s5498_s1 + $0x2f0] ss:$8 sps:$4 sm:$0xff]  }
  0x2d   :  { %2582 = vmatprep.subr.bf16.mxu1 %v3595_v45  ;;  %v3678_v45 = vld [vmem:[%s5498_s1 + $0x3f0] ss:$8 sps:$4 sm:$0xff]  }
  0x2f   :  { %2542 = vmatpush2.bf16.msra.mxu0 %v3597_v49  ;;  %v3684_v49 = vld [vmem:[%s5498_s1 + $0x3e0] ss:$8 sps:$4 sm:$0xff]  }
  0x30   :  { %2583 = vmatpush2.bf16.msra.mxu1 %v3598_v50  ;;  %2543 = vmatprep.subr.bf16.mxu0 %v3599_v52  ;;  %v3689_v50 = vld [vmem:[%s5498_s1 + $0x2d4] ss:$8 sps:$4 sm:$0xff]   ;;  %v3687_v52 = vld [vmem:[%s5498_s1 + $0x2d0] ss:$8 sps:$4 sm:$0xff]  }
  0x31   :  { %2584 = vmatprep.subr.bf16.mxu1 %v3601_v53  ;;  %v3690_v53 = vld [vmem:[%s5498_s1 + $0x3d0] ss:$8 sps:$4 sm:$0xff]  }
  0x33   :  { %2544 = vmatpush2.bf16.msra.mxu0 %v3603_v54  ;;  %v3695_v54 = vld [vmem:[%s5498_s1 + $0x2c4] ss:$8 sps:$4 sm:$0xff]  }
  0x34   :  { %2585 = vmatpush2.bf16.msra.mxu1 %v3604_v55  ;;  %2545 = vmatprep.subr.bf16.mxu0 %v3605_v56  ;;  %v3698_v55 = vld [vmem:[%s5498_s1 + $0x3c4] ss:$8 sps:$4 sm:$0xff]   ;;  %v3693_v56 = vld [vmem:[%s5498_s1 + $0x2c0] ss:$8 sps:$4 sm:$0xff]  }
  0x35   :  { %2586 = vmatprep.subr.bf16.mxu1 %v3607_v57  ;;  %v3696_v57 = vld [vmem:[%s5498_s1 + $0x3c0] ss:$8 sps:$4 sm:$0xff]  }
  0x37   :  { %2546 = vmatpush2.bf16.msra.mxu0 %v3609_v58  ;;  %v3701_v58 = vld [vmem:[%s5498_s1 + $0x2b4] ss:$8 sps:$4 sm:$0xff]  }
  0x38   :  { %2587 = vmatpush2.bf16.msra.mxu1 %v3610_v59  ;;  %2547 = vmatprep.subr.bf16.mxu0 %v3611_v60  ;;  %v3704_v59 = vld [vmem:[%s5498_s1 + $0x3b4] ss:$8 sps:$4 sm:$0xff]   ;;  %v3699_v60 = vld [vmem:[%s5498_s1 + $0x2b0] ss:$8 sps:$4 sm:$0xff]  }
  0x39   :  { %2588 = vmatprep.subr.bf16.mxu1 %v3613_v61  ;;  %v3702_v61 = vld [vmem:[%s5498_s1 + $0x3b0] ss:$8 sps:$4 sm:$0xff]  }
  0x3b   :  { %2548 = vmatpush2.bf16.msra.mxu0 %v3615_v62  ;;  %v3707_v62 = vld [vmem:[%s5498_s1 + $0x2a4] ss:$8 sps:$4 sm:$0xff]  }
  0x3c   :  { %2589 = vmatpush2.bf16.msra.mxu1 %v3616_v63  ;;  %2549 = vmatprep.subr.bf16.mxu0 %v3617_v0  ;;  %v3710_v63 = vld [vmem:[%s5498_s1 + $0x3a4] ss:$8 sps:$4 sm:$0xff]   ;;  %v3705_v0 = vld [vmem:[%s5498_s1 + $0x2a0] ss:$8 sps:$4 sm:$0xff]  }
  0x3d   :  { %2590 = vmatprep.subr.bf16.mxu1 %v3619_v1  ;;  %v3708_v1 = vld [vmem:[%s5498_s1 + $0x3a0] ss:$8 sps:$4 sm:$0xff]  }
  0x3f   :  { %2550 = vmatpush2.bf16.msra.mxu0 %v3621_v2  ;;  %v3713_v2 = vld [vmem:[%s5498_s1 + $0x294] ss:$8 sps:$4 sm:$0xff]  }
  0x40   :  { %2591 = vmatpush2.bf16.msra.mxu1 %v3622_v3  ;;  %2601 = vmatprep.subr.bf16.mxu0 %v3629_v4  ;;  %v3716_v3 = vld [vmem:[%s5498_s1 + $0x394] ss:$8 sps:$4 sm:$0xff]   ;;  %v3711_v4 = vld [vmem:[%s5498_s1 + $0x290] ss:$8 sps:$4 sm:$0xff]  }
  0x41   :  { %2642 = vmatprep.subr.bf16.mxu1 %v3632_v5  ;;  %v3714_v5 = vld [vmem:[%s5498_s1 + $0x390] ss:$8 sps:$4 sm:$0xff]  }
  0x42   :  { %2552 = vmatmul.mubr.bf16.vlgmr.msra.gmra.mxu0 %v3099_v6  ;;  %v3719_v6 = vld [vmem:[%s5498_s1 + $0x284] ss:$8 sps:$4 sm:$0xff]  }
  0x43   :  { %2593 = vmatmul.mubr.bf16.vlgmr.msra.gmra.mxu1 %v3101_v7  ;;  %2602 = vmatpush1.bf16.msra.mxu0 %v3627_v8  ;;  %v3722_v7 = vld [vmem:[%s5498_s1 + $0x384] ss:$8 sps:$4 sm:$0xff]   ;;  %v3717_v8 = vld [vmem:[%s5498_s1 + $0x280] ss:$8 sps:$4 sm:$0xff]  }
  0x44   :  { %2643 = vmatpush1.bf16.msra.mxu1 %v3630_v9  ;;  %2603 = vmatprep.subr.bf16.mxu0 %v3635_v10  ;;  %v3720_v9 = vld [vmem:[%s5498_s1 + $0x380] ss:$8 sps:$4 sm:$0xff]   ;;  %v3727_v10 = vld [vmem:[%s5498_s1 + $0x474] ss:$8 sps:$4 sm:$0xff]  }
  0x45   :  { %2644 = vmatprep.subr.bf16.mxu1 %v3638_v11  ;;  %2633 = vmatprep.mubr.bf16.mxu0 %v3104_v35  ;;  %v3732_v11 = vld [vmem:[%s5498_s1 + $0x574] ss:$8 sps:$4 sm:$0xff]   ;;  %v3754_v35 = vld [vmem:[%s5498_s1 + $0x530] ss:$8 sps:$4 sm:$0xff]  }
  0x46   :  { %2674 = vmatprep.mubr.bf16.mxu1 %v3106_v38  ;;  %v3757_v38 = vld [vmem:[%s5498_s1 + $0x420] ss:$8 sps:$4 sm:$0xff]  }
  0x47   :  { %2604 = vmatpush1.bf16.msra.mxu0 %v3633_v12  ;;  %v3103_v12 = vcombine.low %v4457_v32, %v4457_v32  ;;  %v3753_v32 = vld [vmem:[%s5498_s1 + $0x434] ss:$8 sps:$4 sm:$0xff]  }
  0x48   :  { %2645 = vmatpush1.bf16.msra.mxu1 %v3636_v13  ;;  %2605 = vmatprep.subr.bf16.mxu0 %v3641_v14  ;;  %v3725_v13 = vld [vmem:[%s5498_s1 + $0x470] ss:$8 sps:$4 sm:$0xff]   ;;  %v3105_v14 = vcombine.low %v4470_v36, %v4470_v36  ;;  %v3759_v36 = vld [vmem:[%s5498_s1 + $0x424] ss:$8 sps:$4 sm:$0xff]  }
  0x49   :  { %2646 = vmatprep.subr.bf16.mxu1 %v3644_v15  ;;  %v3730_v15 = vld [vmem:[%s5498_s1 + $0x570] ss:$8 sps:$4 sm:$0xff]  }
  0x4b   :  { %2606 = vmatpush1.bf16.msra.mxu0 %v3639_v16  ;;  %v3735_v16 = vld [vmem:[%s5498_s1 + $0x464] ss:$8 sps:$4 sm:$0xff]  }
  0x4c   :  { %2647 = vmatpush1.bf16.msra.mxu1 %v3642_v17  ;;  %2607 = vmatprep.subr.bf16.mxu0 %v3647_v18  ;;  %v3738_v17 = vld [vmem:[%s5498_s1 + $0x564] ss:$8 sps:$4 sm:$0xff]  }
  0x4d   :  { %2648 = vmatprep.subr.bf16.mxu1 %v3650_v19  ;;  %v4607_v18 = vld [vmem:[%s5499_s0 + $0x20] sm:$0xff] }
  0x4e   :  { %v3108_v19 = vcombine.high %v4607_v18, %v4607_v18 }
  0x4f   :  { %2608 = vmatpush1.bf16.msra.mxu0 %v3645_v20  ;;  %v4614_v20 = vld [vmem:[%s5499_s0 + $0x28] sm:$0xff] }
  0x50   :  { %2649 = vmatpush1.bf16.msra.mxu1 %v3648_v21  ;;  %2609 = vmatprep.subr.bf16.mxu0 %v3653_v22  ;;  %v3733_v21 = vld [vmem:[%s5498_s1 + $0x460] ss:$8 sps:$4 sm:$0xff]  }
  0x51   :  { %2650 = vmatprep.subr.bf16.mxu1 %v3656_v23  ;;  %v3736_v22 = vld [vmem:[%s5498_s1 + $0x560] ss:$8 sps:$4 sm:$0xff]   ;;  %v3110_v23 = vcombine.high %v4614_v20, %v4614_v20 }
  0x53   :  { %2610 = vmatpush1.bf16.msra.mxu0 %v3651_v24  ;;  %v3741_v24 = vld [vmem:[%s5498_s1 + $0x454] ss:$8 sps:$4 sm:$0xff]  }
  0x54   :  { %2651 = vmatpush1.bf16.msra.mxu1 %v3654_v25  ;;  %2611 = vmatprep.subr.bf16.mxu0 %v3659_v26  ;;  %v3744_v25 = vld [vmem:[%s5498_s1 + $0x554] ss:$8 sps:$4 sm:$0xff]   ;;  %v3739_v26 = vld [vmem:[%s5498_s1 + $0x450] ss:$8 sps:$4 sm:$0xff]  }
  0x55   :  { %2652 = vmatprep.subr.bf16.mxu1 %v3662_v27  ;;  %v3742_v27 = vld [vmem:[%s5498_s1 + $0x550] ss:$8 sps:$4 sm:$0xff]  }
  0x57   :  { %2612 = vmatpush1.bf16.msra.mxu0 %v3657_v28  ;;  %v3747_v28 = vld [vmem:[%s5498_s1 + $0x444] ss:$8 sps:$4 sm:$0xff]  }
  0x58   :  { %2653 = vmatpush1.bf16.msra.mxu1 %v3660_v29  ;;  %2613 = vmatprep.subr.bf16.mxu0 %v3665_v30  ;;  %v3750_v29 = vld [vmem:[%s5498_s1 + $0x544] ss:$8 sps:$4 sm:$0xff]   ;;  %v3745_v30 = vld [vmem:[%s5498_s1 + $0x440] ss:$8 sps:$4 sm:$0xff]  }
  0x59   :  { %2654 = vmatprep.subr.bf16.mxu1 %v3668_v31  ;;  %v3748_v31 = vld [vmem:[%s5498_s1 + $0x540] ss:$8 sps:$4 sm:$0xff]  }
  0x5b   :  { %2614 = vmatpush1.bf16.msra.mxu0 %v3663_v33  ;;  %v3756_v33 = vld [vmem:[%s5498_s1 + $0x534] ss:$8 sps:$4 sm:$0xff]  }
  0x5c   :  { %2655 = vmatpush1.bf16.msra.mxu1 %v3666_v34  ;;  %2615 = vmatprep.subr.bf16.mxu0 %v3671_v37  ;;  %v3751_v34 = vld [vmem:[%s5498_s1 + $0x430] ss:$8 sps:$4 sm:$0xff]   ;;  %v3762_v37 = vld [vmem:[%s5498_s1 + $0x524] ss:$8 sps:$4 sm:$0xff]  }
  0x5d   :  { %2656 = vmatprep.subr.bf16.mxu1 %v3674_v39  ;;  %v3760_v39 = vld [vmem:[%s5498_s1 + $0x520] ss:$8 sps:$4 sm:$0xff]  }
  0x5f   :  { %2616 = vmatpush1.bf16.msra.mxu0 %v3669_v40  ;;  %v3765_v40 = vld [vmem:[%s5498_s1 + $0x414] ss:$8 sps:$4 sm:$0xff]  }
  0x60   :  { %2657 = vmatpush1.bf16.msra.mxu1 %v3672_v41  ;;  %2617 = vmatprep.subr.bf16.mxu0 %v3677_v42  ;;  %v3768_v41 = vld [vmem:[%s5498_s1 + $0x514] ss:$8 sps:$4 sm:$0xff]   ;;  %v3763_v42 = vld [vmem:[%s5498_s1 + $0x410] ss:$8 sps:$4 sm:$0xff]  }
  0x61   :  { %2658 = vmatprep.subr.bf16.mxu1 %v3680_v43  ;;  %v3766_v43 = vld [vmem:[%s5498_s1 + $0x510] ss:$8 sps:$4 sm:$0xff]  }
  0x63   :  { %2618 = vmatpush2.bf16.msra.mxu0 %v3675_v44  ;;  %v3771_v44 = vld [vmem:[%s5498_s1 + $0x404] ss:$8 sps:$4 sm:$0xff]  }
  0x64   :  { %2659 = vmatpush2.bf16.msra.mxu1 %v3678_v45  ;;  %2619 = vmatprep.subr.bf16.mxu0 %v3683_v46  ;;  %v3774_v45 = vld [vmem:[%s5498_s1 + $0x504] ss:$8 sps:$4 sm:$0xff]   ;;  %v3769_v46 = vld [vmem:[%s5498_s1 + $0x400] ss:$8 sps:$4 sm:$0xff]  }
  0x65   :  { %2660 = vmatprep.subr.bf16.mxu1 %v3686_v47  ;;  %v3772_v47 = vld [vmem:[%s5498_s1 + $0x500] ss:$8 sps:$4 sm:$0xff]  }
  0x67   :  { %2620 = vmatpush2.bf16.msra.mxu0 %v3681_v48  ;;  %v3777_v48 = vld [vmem:[%s5498_s1 + $0x4f4] ss:$8 sps:$4 sm:$0xff]  }
  0x68   :  { %2661 = vmatpush2.bf16.msra.mxu1 %v3684_v49  ;;  %2621 = vmatprep.subr.bf16.mxu0 %v3689_v50  ;;  %v3780_v49 = vld [vmem:[%s5498_s1 + $0x5f4] ss:$8 sps:$4 sm:$0xff]   ;;  %v3775_v50 = vld [vmem:[%s5498_s1 + $0x4f0] ss:$8 sps:$4 sm:$0xff]  }
  0x69   :  { %2662 = vmatprep.subr.bf16.mxu1 %v3692_v51  ;;  %v3778_v51 = vld [vmem:[%s5498_s1 + $0x5f0] ss:$8 sps:$4 sm:$0xff]  }
  0x6b   :  { %2622 = vmatpush2.bf16.msra.mxu0 %v3687_v52  ;;  %v3783_v52 = vld [vmem:[%s5498_s1 + $0x4e4] ss:$8 sps:$4 sm:$0xff]  }
  0x6c   :  { %2663 = vmatpush2.bf16.msra.mxu1 %v3690_v53  ;;  %2623 = vmatprep.subr.bf16.mxu0 %v3695_v54  ;;  %v3786_v53 = vld [vmem:[%s5498_s1 + $0x5e4] ss:$8 sps:$4 sm:$0xff]   ;;  %v3781_v54 = vld [vmem:[%s5498_s1 + $0x4e0] ss:$8 sps:$4 sm:$0xff]  }
  0x6d   :  { %2664 = vmatprep.subr.bf16.mxu1 %v3698_v55  ;;  %v3784_v55 = vld [vmem:[%s5498_s1 + $0x5e0] ss:$8 sps:$4 sm:$0xff]  }
  0x6f   :  { %2624 = vmatpush2.bf16.msra.mxu0 %v3693_v56  ;;  %v3789_v56 = vld [vmem:[%s5498_s1 + $0x4d4] ss:$8 sps:$4 sm:$0xff]  }
  0x70   :  { %2665 = vmatpush2.bf16.msra.mxu1 %v3696_v57  ;;  %2625 = vmatprep.subr.bf16.mxu0 %v3701_v58  ;;  %v3792_v57 = vld [vmem:[%s5498_s1 + $0x5d4] ss:$8 sps:$4 sm:$0xff]   ;;  %v3787_v58 = vld [vmem:[%s5498_s1 + $0x4d0] ss:$8 sps:$4 sm:$0xff]  }
  0x71   :  { %2666 = vmatprep.subr.bf16.mxu1 %v3704_v59  ;;  %v3790_v59 = vld [vmem:[%s5498_s1 + $0x5d0] ss:$8 sps:$4 sm:$0xff]  }
  0x73   :  { %2626 = vmatpush2.bf16.msra.mxu0 %v3699_v60  ;;  %v3795_v60 = vld [vmem:[%s5498_s1 + $0x4c4] ss:$8 sps:$4 sm:$0xff]  }
  0x74   :  { %2667 = vmatpush2.bf16.msra.mxu1 %v3702_v61  ;;  %2627 = vmatprep.subr.bf16.mxu0 %v3707_v62  ;;  %v3798_v61 = vld [vmem:[%s5498_s1 + $0x5c4] ss:$8 sps:$4 sm:$0xff]   ;;  %v3793_v62 = vld [vmem:[%s5498_s1 + $0x4c0] ss:$8 sps:$4 sm:$0xff]  }
  0x75   :  { %2668 = vmatprep.subr.bf16.mxu1 %v3710_v63  ;;  %v3796_v63 = vld [vmem:[%s5498_s1 + $0x5c0] ss:$8 sps:$4 sm:$0xff]  }
  0x77   :  { %2628 = vmatpush2.bf16.msra.mxu0 %v3705_v0  ;;  %v3801_v0 = vld [vmem:[%s5498_s1 + $0x4b4] ss:$8 sps:$4 sm:$0xff]  }
  0x78   :  { %2669 = vmatpush2.bf16.msra.mxu1 %v3708_v1  ;;  %2629 = vmatprep.subr.bf16.mxu0 %v3713_v2  ;;  %v3804_v1 = vld [vmem:[%s5498_s1 + $0x5b4] ss:$8 sps:$4 sm:$0xff]   ;;  %v3799_v2 = vld [vmem:[%s5498_s1 + $0x4b0] ss:$8 sps:$4 sm:$0xff]  }
  0x79   :  { %2670 = vmatprep.subr.bf16.mxu1 %v3716_v3  ;;  %v3802_v3 = vld [vmem:[%s5498_s1 + $0x5b0] ss:$8 sps:$4 sm:$0xff]  }
  0x7b   :  { %2630 = vmatpush2.bf16.msra.mxu0 %v3711_v4  ;;  %v3807_v4 = vld [vmem:[%s5498_s1 + $0x4a4] ss:$8 sps:$4 sm:$0xff]  }
  0x7c   :  { %2671 = vmatpush2.bf16.msra.mxu1 %v3714_v5  ;;  %2631 = vmatprep.subr.bf16.mxu0 %v3719_v6  ;;  %v3810_v5 = vld [vmem:[%s5498_s1 + $0x5a4] ss:$8 sps:$4 sm:$0xff]   ;;  %v3805_v6 = vld [vmem:[%s5498_s1 + $0x4a0] ss:$8 sps:$4 sm:$0xff]  }
  0x7d   :  { %2672 = vmatprep.subr.bf16.mxu1 %v3722_v7  ;;  %v3808_v7 = vld [vmem:[%s5498_s1 + $0x5a0] ss:$8 sps:$4 sm:$0xff]  }
  0x7f   :  { %2632 = vmatpush2.bf16.msra.mxu0 %v3717_v8  ;;  %v3813_v8 = vld [vmem:[%s5498_s1 + $0x494] ss:$8 sps:$4 sm:$0xff]  }
  0x80   :  { %2673 = vmatpush2.bf16.msra.mxu1 %v3720_v9  ;;  %2683 = vmatprep.subr.bf16.mxu0 %v3727_v10  ;;  %v3816_v9 = vld [vmem:[%s5498_s1 + $0x594] ss:$8 sps:$4 sm:$0xff]   ;;  %v3811_v10 = vld [vmem:[%s5498_s1 + $0x490] ss:$8 sps:$4 sm:$0xff]  }
  0x81   :  { %2724 = vmatprep.subr.bf16.mxu1 %v3732_v11  ;;  %v3814_v11 = vld [vmem:[%s5498_s1 + $0x590] ss:$8 sps:$4 sm:$0xff]  }
  0x82   :  { %2634 = vmatmul.mubr.bf16.vlgmr.msra.gmra.mxu0 %v3103_v12  ;;  %v3819_v12 = vld [vmem:[%s5498_s1 + $0x484] ss:$8 sps:$4 sm:$0xff]  }
  0x83   :  { %2675 = vmatmul.mubr.bf16.vlgmr.msra.gmra.mxu1 %v3105_v14  ;;  %2684 = vmatpush1.bf16.msra.mxu0 %v3725_v13  ;;  %v3822_v13 = vld [vmem:[%s5498_s1 + $0x584] ss:$8 sps:$4 sm:$0xff]   ;;  %v3817_v14 = vld [vmem:[%s5498_s1 + $0x480] ss:$8 sps:$4 sm:$0xff]  }
  0x84   :  { %2725 = vmatpush1.bf16.msra.mxu1 %v3730_v15  ;;  %2685 = vmatprep.subr.bf16.mxu0 %v3735_v16  ;;  %v3820_v15 = vld [vmem:[%s5498_s1 + $0x580] ss:$8 sps:$4 sm:$0xff]   ;;  %v3827_v16 = vld [vmem:[%s5498_s1 + $0x674] ss:$8 sps:$4 sm:$0xff]  }
  0x85   :  { %2726 = vmatprep.subr.bf16.mxu1 %v3738_v17  ;;  %2715 = vmatprep.mubr.bf16.mxu0 %v3108_v19  ;;  %v3832_v17 = vld [vmem:[%s5498_s1 + $0x774] ss:$8 sps:$4 sm:$0xff]   ;;  %v3825_v19 = vld [vmem:[%s5498_s1 + $0x670] ss:$8 sps:$4 sm:$0xff]  }
  0x86   :  { %2756 = vmatprep.mubr.bf16.mxu1 %v3110_v23  ;;  %v3109_v23 = vcombine.low %v4614_v20, %v4614_v20 }
  0x87   :  { %2686 = vmatpush1.bf16.msra.mxu0 %v3733_v21  ;;  %v3830_v21 = vld [vmem:[%s5498_s1 + $0x770] ss:$8 sps:$4 sm:$0xff]  }
  0x88   :  { %2727 = vmatpush1.bf16.msra.mxu1 %v3736_v22  ;;  %2687 = vmatprep.subr.bf16.mxu0 %v3741_v24  ;;  %v3107_v22 = vcombine.low %v4607_v18, %v4607_v18  ;;  %v4811_v24 = vld [vmem:[%s5499_s0 + $0x30] sm:$0xff]  ;;  %v3838_v18 = vld [vmem:[%s5498_s1 + $0x764] ss:$8 sps:$4 sm:$0xff]  }
  0x89   :  { %2728 = vmatprep.subr.bf16.mxu1 %v3744_v25  ;;  %v4816_v25 = vld [vmem:[%s5499_s0 + $0x38] sm:$0xff]  ;;  %v3112_v20 = vcombine.high %v4811_v24, %v4811_v24 }
  0x8b   :  { %2688 = vmatpush1.bf16.msra.mxu0 %v3739_v26  ;;  %v3835_v26 = vld [vmem:[%s5498_s1 + $0x664] ss:$8 sps:$4 sm:$0xff]  }
  0x8c   :  { %2729 = vmatpush1.bf16.msra.mxu1 %v3742_v27  ;;  %2689 = vmatprep.subr.bf16.mxu0 %v3747_v28  ;;  %v3114_v27 = vcombine.high %v4816_v25, %v4816_v25  ;;  %v3833_v28 = vld [vmem:[%s5498_s1 + $0x660] ss:$8 sps:$4 sm:$0xff]  }
  0x8d   :  { %2730 = vmatprep.subr.bf16.mxu1 %v3750_v29  ;;  %v3836_v29 = vld [vmem:[%s5498_s1 + $0x760] ss:$8 sps:$4 sm:$0xff]  }
  0x8f   :  { %2690 = vmatpush1.bf16.msra.mxu0 %v3745_v30  ;;  %v3841_v30 = vld [vmem:[%s5498_s1 + $0x654] ss:$8 sps:$4 sm:$0xff]  }
  0x90   :  { %2731 = vmatpush1.bf16.msra.mxu1 %v3748_v31  ;;  %2691 = vmatprep.subr.bf16.mxu0 %v3753_v32  ;;  %v3844_v31 = vld [vmem:[%s5498_s1 + $0x754] ss:$8 sps:$4 sm:$0xff]   ;;  %v3839_v32 = vld [vmem:[%s5498_s1 + $0x650] ss:$8 sps:$4 sm:$0xff]  }
  0x91   :  { %2732 = vmatprep.subr.bf16.mxu1 %v3756_v33  ;;  %v3842_v33 = vld [vmem:[%s5498_s1 + $0x750] ss:$8 sps:$4 sm:$0xff]  }
  0x93   :  { %2692 = vmatpush1.bf16.msra.mxu0 %v3751_v34  ;;  %v3847_v34 = vld [vmem:[%s5498_s1 + $0x644] ss:$8 sps:$4 sm:$0xff]  }
  0x94   :  { %2733 = vmatpush1.bf16.msra.mxu1 %v3754_v35  ;;  %2693 = vmatprep.subr.bf16.mxu0 %v3759_v36  ;;  %v3850_v35 = vld [vmem:[%s5498_s1 + $0x744] ss:$8 sps:$4 sm:$0xff]   ;;  %v3845_v36 = vld [vmem:[%s5498_s1 + $0x640] ss:$8 sps:$4 sm:$0xff]  }
  0x95   :  { %2734 = vmatprep.subr.bf16.mxu1 %v3762_v37  ;;  %v3848_v37 = vld [vmem:[%s5498_s1 + $0x740] ss:$8 sps:$4 sm:$0xff]  }
  0x97   :  { %2694 = vmatpush1.bf16.msra.mxu0 %v3757_v38  ;;  %v3853_v38 = vld [vmem:[%s5498_s1 + $0x634] ss:$8 sps:$4 sm:$0xff]  }
  0x98   :  { %2735 = vmatpush1.bf16.msra.mxu1 %v3760_v39  ;;  %2695 = vmatprep.subr.bf16.mxu0 %v3765_v40  ;;  %v3856_v39 = vld [vmem:[%s5498_s1 + $0x734] ss:$8 sps:$4 sm:$0xff]   ;;  %v3851_v40 = vld [vmem:[%s5498_s1 + $0x630] ss:$8 sps:$4 sm:$0xff]  }
  0x99   :  { %2736 = vmatprep.subr.bf16.mxu1 %v3768_v41  ;;  %v3854_v41 = vld [vmem:[%s5498_s1 + $0x730] ss:$8 sps:$4 sm:$0xff]  }
  0x9b   :  { %2696 = vmatpush1.bf16.msra.mxu0 %v3763_v42  ;;  %v3859_v42 = vld [vmem:[%s5498_s1 + $0x624] ss:$8 sps:$4 sm:$0xff]  }
  0x9c   :  { %2737 = vmatpush1.bf16.msra.mxu1 %v3766_v43  ;;  %2697 = vmatprep.subr.bf16.mxu0 %v3771_v44  ;;  %v3862_v43 = vld [vmem:[%s5498_s1 + $0x724] ss:$8 sps:$4 sm:$0xff]   ;;  %v3857_v44 = vld [vmem:[%s5498_s1 + $0x620] ss:$8 sps:$4 sm:$0xff]  }
  0x9d   :  { %2738 = vmatprep.subr.bf16.mxu1 %v3774_v45  ;;  %v3860_v45 = vld [vmem:[%s5498_s1 + $0x720] ss:$8 sps:$4 sm:$0xff]  }
  0x9f   :  { %2698 = vmatpush1.bf16.msra.mxu0 %v3769_v46  ;;  %v3865_v46 = vld [vmem:[%s5498_s1 + $0x614] ss:$8 sps:$4 sm:$0xff]  }
  0xa0   :  { %2739 = vmatpush1.bf16.msra.mxu1 %v3772_v47  ;;  %2699 = vmatprep.subr.bf16.mxu0 %v3777_v48  ;;  %v3868_v47 = vld [vmem:[%s5498_s1 + $0x714] ss:$8 sps:$4 sm:$0xff]   ;;  %v3863_v48 = vld [vmem:[%s5498_s1 + $0x610] ss:$8 sps:$4 sm:$0xff]  }
  0xa1   :  { %2740 = vmatprep.subr.bf16.mxu1 %v3780_v49  ;;  %v3866_v49 = vld [vmem:[%s5498_s1 + $0x710] ss:$8 sps:$4 sm:$0xff]  }
  0xa3   :  { %2700 = vmatpush2.bf16.msra.mxu0 %v3775_v50  ;;  %v3871_v50 = vld [vmem:[%s5498_s1 + $0x604] ss:$8 sps:$4 sm:$0xff]  }
  0xa4   :  { %2741 = vmatpush2.bf16.msra.mxu1 %v3778_v51  ;;  %2701 = vmatprep.subr.bf16.mxu0 %v3783_v52  ;;  %v3874_v51 = vld [vmem:[%s5498_s1 + $0x704] ss:$8 sps:$4 sm:$0xff]   ;;  %v3869_v52 = vld [vmem:[%s5498_s1 + $0x600] ss:$8 sps:$4 sm:$0xff]  }
  0xa5   :  { %2742 = vmatprep.subr.bf16.mxu1 %v3786_v53  ;;  %v3872_v53 = vld [vmem:[%s5498_s1 + $0x700] ss:$8 sps:$4 sm:$0xff]  }
  0xa7   :  { %2702 = vmatpush2.bf16.msra.mxu0 %v3781_v54  ;;  %v3877_v54 = vld [vmem:[%s5498_s1 + $0x6f4] ss:$8 sps:$4 sm:$0xff]  }
  0xa8   :  { %2743 = vmatpush2.bf16.msra.mxu1 %v3784_v55  ;;  %2703 = vmatprep.subr.bf16.mxu0 %v3789_v56  ;;  %v3880_v55 = vld [vmem:[%s5498_s1 + $0x7f4] ss:$8 sps:$4 sm:$0xff]   ;;  %v3875_v56 = vld [vmem:[%s5498_s1 + $0x6f0] ss:$8 sps:$4 sm:$0xff]  }
  0xa9   :  { %2744 = vmatprep.subr.bf16.mxu1 %v3792_v57  ;;  %v3878_v57 = vld [vmem:[%s5498_s1 + $0x7f0] ss:$8 sps:$4 sm:$0xff]  }
  0xab   :  { %2704 = vmatpush2.bf16.msra.mxu0 %v3787_v58  ;;  %v3883_v58 = vld [vmem:[%s5498_s1 + $0x6e4] ss:$8 sps:$4 sm:$0xff]  }
  0xac   :  { %2745 = vmatpush2.bf16.msra.mxu1 %v3790_v59  ;;  %2705 = vmatprep.subr.bf16.mxu0 %v3795_v60  ;;  %v3886_v59 = vld [vmem:[%s5498_s1 + $0x7e4] ss:$8 sps:$4 sm:$0xff]   ;;  %v3881_v60 = vld [vmem:[%s5498_s1 + $0x6e0] ss:$8 sps:$4 sm:$0xff]  }
  0xad   :  { %2746 = vmatprep.subr.bf16.mxu1 %v3798_v61  ;;  %v3884_v61 = vld [vmem:[%s5498_s1 + $0x7e0] ss:$8 sps:$4 sm:$0xff]  }
  0xaf   :  { %2706 = vmatpush2.bf16.msra.mxu0 %v3793_v62  ;;  %v3889_v62 = vld [vmem:[%s5498_s1 + $0x6d4] ss:$8 sps:$4 sm:$0xff]  }
  0xb0   :  { %2747 = vmatpush2.bf16.msra.mxu1 %v3796_v63  ;;  %2707 = vmatprep.subr.bf16.mxu0 %v3801_v0  ;;  %v3892_v63 = vld [vmem:[%s5498_s1 + $0x7d4] ss:$8 sps:$4 sm:$0xff]   ;;  %v3887_v0 = vld [vmem:[%s5498_s1 + $0x6d0] ss:$8 sps:$4 sm:$0xff]  }
  0xb1   :  { %2748 = vmatprep.subr.bf16.mxu1 %v3804_v1  ;;  %v3890_v1 = vld [vmem:[%s5498_s1 + $0x7d0] ss:$8 sps:$4 sm:$0xff]  }
  0xb3   :  { %2708 = vmatpush2.bf16.msra.mxu0 %v3799_v2  ;;  %v3895_v2 = vld [vmem:[%s5498_s1 + $0x6c4] ss:$8 sps:$4 sm:$0xff]  }
  0xb4   :  { %2749 = vmatpush2.bf16.msra.mxu1 %v3802_v3  ;;  %2709 = vmatprep.subr.bf16.mxu0 %v3807_v4  ;;  %v3898_v3 = vld [vmem:[%s5498_s1 + $0x7c4] ss:$8 sps:$4 sm:$0xff]   ;;  %v3893_v4 = vld [vmem:[%s5498_s1 + $0x6c0] ss:$8 sps:$4 sm:$0xff]  }
  0xb5   :  { %2750 = vmatprep.subr.bf16.mxu1 %v3810_v5  ;;  %v3896_v5 = vld [vmem:[%s5498_s1 + $0x7c0] ss:$8 sps:$4 sm:$0xff]  }
  0xb7   :  { %2710 = vmatpush2.bf16.msra.mxu0 %v3805_v6  ;;  %v3901_v6 = vld [vmem:[%s5498_s1 + $0x6b4] ss:$8 sps:$4 sm:$0xff]  }
  0xb8   :  { %2751 = vmatpush2.bf16.msra.mxu1 %v3808_v7  ;;  %2711 = vmatprep.subr.bf16.mxu0 %v3813_v8  ;;  %v3904_v7 = vld [vmem:[%s5498_s1 + $0x7b4] ss:$8 sps:$4 sm:$0xff]   ;;  %v3899_v8 = vld [vmem:[%s5498_s1 + $0x6b0] ss:$8 sps:$4 sm:$0xff]  }
  0xb9   :  { %2752 = vmatprep.subr.bf16.mxu1 %v3816_v9  ;;  %v3902_v9 = vld [vmem:[%s5498_s1 + $0x7b0] ss:$8 sps:$4 sm:$0xff]  }
  0xbb   :  { %2712 = vmatpush2.bf16.msra.mxu0 %v3811_v10  ;;  %v3907_v10 = vld [vmem:[%s5498_s1 + $0x6a4] ss:$8 sps:$4 sm:$0xff]  }
  0xbc   :  { %2753 = vmatpush2.bf16.msra.mxu1 %v3814_v11  ;;  %2713 = vmatprep.subr.bf16.mxu0 %v3819_v12  ;;  %v3910_v11 = vld [vmem:[%s5498_s1 + $0x7a4] ss:$8 sps:$4 sm:$0xff]   ;;  %v3905_v12 = vld [vmem:[%s5498_s1 + $0x6a0] ss:$8 sps:$4 sm:$0xff]  }
  0xbd   :  { %2754 = vmatprep.subr.bf16.mxu1 %v3822_v13  ;;  %v3908_v13 = vld [vmem:[%s5498_s1 + $0x7a0] ss:$8 sps:$4 sm:$0xff]  }
  0xbf   :  { %2714 = vmatpush2.bf16.msra.mxu0 %v3817_v14  ;;  %v3913_v14 = vld [vmem:[%s5498_s1 + $0x694] ss:$8 sps:$4 sm:$0xff]  }
  0xc0   :  { %2755 = vmatpush2.bf16.msra.mxu1 %v3820_v15  ;;  %2765 = vmatprep.subr.bf16.mxu0 %v3827_v16  ;;  %v3916_v15 = vld [vmem:[%s5498_s1 + $0x794] ss:$8 sps:$4 sm:$0xff]   ;;  %v3911_v16 = vld [vmem:[%s5498_s1 + $0x690] ss:$8 sps:$4 sm:$0xff]  }
  0xc1   :  { %2806 = vmatprep.subr.bf16.mxu1 %v3832_v17  ;;  %v3914_v17 = vld [vmem:[%s5498_s1 + $0x790] ss:$8 sps:$4 sm:$0xff]  }
  0xc2   :  { %2716 = vmatmul.mubr.bf16.vlgmr.msra.gmra.mxu0 %v3107_v22  ;;  %v3917_v22 = vld [vmem:[%s5498_s1 + $0x680] ss:$8 sps:$4 sm:$0xff]  }
  0xc3   :  { %2757 = vmatmul.mubr.bf16.vlgmr.msra.gmra.mxu1 %v3109_v23  ;;  %2766 = vmatpush1.bf16.msra.mxu0 %v3825_v19  ;;  %v3919_v19 = vld [vmem:[%s5498_s1 + $0x684] ss:$8 sps:$4 sm:$0xff]   ;;  %v3920_v23 = vld [vmem:[%s5498_s1 + $0x780] ss:$8 sps:$4 sm:$0xff]  }
  0xc4   :  { %2807 = vmatpush1.bf16.msra.mxu1 %v3830_v21  ;;  %2767 = vmatprep.subr.bf16.mxu0 %v3835_v26  ;;  %v3922_v21 = vld [vmem:[%s5498_s1 + $0x784] ss:$8 sps:$4 sm:$0xff]   ;;  %v3927_v26 = vld [vmem:[%s5498_s1 + $0x874] ss:$8 sps:$4 sm:$0xff]  }
  0xc5   :  { %2808 = vmatprep.subr.bf16.mxu1 %v3838_v18  ;;  %2797 = vmatprep.mubr.bf16.mxu0 %v3112_v20  ;;  %v3932_v18 = vld [vmem:[%s5498_s1 + $0x974] ss:$8 sps:$4 sm:$0xff]   ;;  %v5011_v20 = vld [vmem:[%s5499_s0 + $0x40] sm:$0xff] }
  0xc6   :  { %2838 = vmatprep.mubr.bf16.mxu1 %v3114_v27  ;;  %v3111_v27 = vcombine.low %v4811_v24, %v4811_v24  ;;  %v3935_v24 = vld [vmem:[%s5498_s1 + $0x864] ss:$8 sps:$4 sm:$0xff]  }
  0xc7   :  { %2768 = vmatpush1.bf16.msra.mxu0 %v3833_v28  ;;  %v3113_v28 = vcombine.low %v4816_v25, %v4816_v25  ;;  %v3938_v25 = vld [vmem:[%s5498_s1 + $0x964] ss:$8 sps:$4 sm:$0xff]  }
  0xc8   :  { %2809 = vmatpush1.bf16.msra.mxu1 %v3836_v29  ;;  %2769 = vmatprep.subr.bf16.mxu0 %v3841_v30  ;;  %v5020_v29 = vld [vmem:[%s5499_s0 + $0x48] sm:$0xff]  ;;  %v3925_v30 = vld [vmem:[%s5498_s1 + $0x870] ss:$8 sps:$4 sm:$0xff]  }
  0xc9   :  { %2810 = vmatprep.subr.bf16.mxu1 %v3844_v31  ;;  %v3930_v31 = vld [vmem:[%s5498_s1 + $0x970] ss:$8 sps:$4 sm:$0xff]  }
  0xcb   :  { %2770 = vmatpush1.bf16.msra.mxu0 %v3839_v32  ;;  %v3116_v32 = vcombine.high %v5011_v20, %v5011_v20 }
  0xcc   :  { %2811 = vmatpush1.bf16.msra.mxu1 %v3842_v33  ;;  %2771 = vmatprep.subr.bf16.mxu0 %v3847_v34  ;;  %v3118_v33 = vcombine.high %v5020_v29, %v5020_v29 }
  0xcd   :  { %2812 = vmatprep.subr.bf16.mxu1 %v3850_v35 }
  0xcf   :  { %2772 = vmatpush1.bf16.msra.mxu0 %v3845_v36  ;;  %v3933_v36 = vld [vmem:[%s5498_s1 + $0x860] ss:$8 sps:$4 sm:$0xff]  }
  0xd0   :  { %2813 = vmatpush1.bf16.msra.mxu1 %v3848_v37  ;;  %2773 = vmatprep.subr.bf16.mxu0 %v3853_v38  ;;  %v3936_v38 = vld [vmem:[%s5498_s1 + $0x960] ss:$8 sps:$4 sm:$0xff]  }
  0xd1   :  { %2814 = vmatprep.subr.bf16.mxu1 %v3856_v39  ;;  %v3941_v39 = vld [vmem:[%s5498_s1 + $0x854] ss:$8 sps:$4 sm:$0xff]  }
  0xd3   :  { %2774 = vmatpush1.bf16.msra.mxu0 %v3851_v40 }
  0xd4   :  { %2815 = vmatpush1.bf16.msra.mxu1 %v3854_v41  ;;  %2775 = vmatprep.subr.bf16.mxu0 %v3859_v42  ;;  %v3944_v42 = vld [vmem:[%s5498_s1 + $0x954] ss:$8 sps:$4 sm:$0xff]  }
  0xd5   :  { %2816 = vmatprep.subr.bf16.mxu1 %v3862_v43 }
  0xd7   :  { %2776 = vmatpush1.bf16.msra.mxu0 %v3857_v44  ;;  %v3939_v44 = vld [vmem:[%s5498_s1 + $0x850] ss:$8 sps:$4 sm:$0xff]  }
  0xd8   :  { %2817 = vmatpush1.bf16.msra.mxu1 %v3860_v45  ;;  %2777 = vmatprep.subr.bf16.mxu0 %v3865_v46  ;;  %v3942_v45 = vld [vmem:[%s5498_s1 + $0x950] ss:$8 sps:$4 sm:$0xff]  }
  0xd9   :  { %2818 = vmatprep.subr.bf16.mxu1 %v3868_v47 }
  0xdb   :  { %2778 = vmatpush1.bf16.msra.mxu0 %v3863_v48 }
  0xdc   :  { %2819 = vmatpush1.bf16.msra.mxu1 %v3866_v49  ;;  %2779 = vmatprep.subr.bf16.mxu0 %v3871_v50  ;;  %v3947_v49 = vld [vmem:[%s5498_s1 + $0x844] ss:$8 sps:$4 sm:$0xff]  }
  0xdd   :  { %2820 = vmatprep.subr.bf16.mxu1 %v3874_v51  ;;  %v3950_v50 = vld [vmem:[%s5498_s1 + $0x944] ss:$8 sps:$4 sm:$0xff]  }
  0xdf   :  { %2780 = vmatpush1.bf16.msra.mxu0 %v3869_v52  ;;  %v3945_v52 = vld [vmem:[%s5498_s1 + $0x840] ss:$8 sps:$4 sm:$0xff]  }
  0xe0   :  { %2821 = vmatpush1.bf16.msra.mxu1 %v3872_v53  ;;  %2781 = vmatprep.subr.bf16.mxu0 %v3877_v54  ;;  %v3948_v53 = vld [vmem:[%s5498_s1 + $0x940] ss:$8 sps:$4 sm:$0xff]   ;;  %v3953_v54 = vld [vmem:[%s5498_s1 + $0x834] ss:$8 sps:$4 sm:$0xff]  }
  0xe1   :  { %2822 = vmatprep.subr.bf16.mxu1 %v3880_v55  ;;  %v3956_v55 = vld [vmem:[%s5498_s1 + $0x934] ss:$8 sps:$4 sm:$0xff]  }
  0xe3   :  { %2782 = vmatpush2.bf16.msra.mxu0 %v3875_v56  ;;  %v3951_v56 = vld [vmem:[%s5498_s1 + $0x830] ss:$8 sps:$4 sm:$0xff]  }
  0xe4   :  { %2823 = vmatpush2.bf16.msra.mxu1 %v3878_v57  ;;  %2783 = vmatprep.subr.bf16.mxu0 %v3883_v58  ;;  %v3954_v57 = vld [vmem:[%s5498_s1 + $0x930] ss:$8 sps:$4 sm:$0xff]   ;;  %v3959_v58 = vld [vmem:[%s5498_s1 + $0x824] ss:$8 sps:$4 sm:$0xff]  }
  0xe5   :  { %2824 = vmatprep.subr.bf16.mxu1 %v3886_v59  ;;  %v3962_v59 = vld [vmem:[%s5498_s1 + $0x924] ss:$8 sps:$4 sm:$0xff]  }
  0xe7   :  { %2784 = vmatpush2.bf16.msra.mxu0 %v3881_v60  ;;  %v3957_v60 = vld [vmem:[%s5498_s1 + $0x820] ss:$8 sps:$4 sm:$0xff]  }
  0xe8   :  { %2825 = vmatpush2.bf16.msra.mxu1 %v3884_v61  ;;  %2785 = vmatprep.subr.bf16.mxu0 %v3889_v62  ;;  %v3960_v61 = vld [vmem:[%s5498_s1 + $0x920] ss:$8 sps:$4 sm:$0xff]   ;;  %v3965_v62 = vld [vmem:[%s5498_s1 + $0x814] ss:$8 sps:$4 sm:$0xff]  }
  0xe9   :  { %2826 = vmatprep.subr.bf16.mxu1 %v3892_v63  ;;  %v3968_v63 = vld [vmem:[%s5498_s1 + $0x914] ss:$8 sps:$4 sm:$0xff]  }
  0xeb   :  { %2786 = vmatpush2.bf16.msra.mxu0 %v3887_v0  ;;  %v3963_v0 = vld [vmem:[%s5498_s1 + $0x810] ss:$8 sps:$4 sm:$0xff]  }
  0xec   :  { %2827 = vmatpush2.bf16.msra.mxu1 %v3890_v1  ;;  %2787 = vmatprep.subr.bf16.mxu0 %v3895_v2  ;;  %v3966_v1 = vld [vmem:[%s5498_s1 + $0x910] ss:$8 sps:$4 sm:$0xff]   ;;  %v3971_v2 = vld [vmem:[%s5498_s1 + $0x804] ss:$8 sps:$4 sm:$0xff]  }
  0xed   :  { %2828 = vmatprep.subr.bf16.mxu1 %v3898_v3  ;;  %v3974_v3 = vld [vmem:[%s5498_s1 + $0x904] ss:$8 sps:$4 sm:$0xff]  }
  0xef   :  { %2788 = vmatpush2.bf16.msra.mxu0 %v3893_v4  ;;  %v3969_v4 = vld [vmem:[%s5498_s1 + $0x800] ss:$8 sps:$4 sm:$0xff]  }
  0xf0   :  { %2829 = vmatpush2.bf16.msra.mxu1 %v3896_v5  ;;  %2789 = vmatprep.subr.bf16.mxu0 %v3901_v6  ;;  %v3972_v5 = vld [vmem:[%s5498_s1 + $0x900] ss:$8 sps:$4 sm:$0xff]   ;;  %v3977_v6 = vld [vmem:[%s5498_s1 + $0x8f4] ss:$8 sps:$4 sm:$0xff]  }
  0xf1   :  { %2830 = vmatprep.subr.bf16.mxu1 %v3904_v7  ;;  %v3980_v7 = vld [vmem:[%s5498_s1 + $0x9f4] ss:$8 sps:$4 sm:$0xff]  }
  0xf3   :  { %2790 = vmatpush2.bf16.msra.mxu0 %v3899_v8  ;;  %v3975_v8 = vld [vmem:[%s5498_s1 + $0x8f0] ss:$8 sps:$4 sm:$0xff]  }
  0xf4   :  { %2831 = vmatpush2.bf16.msra.mxu1 %v3902_v9  ;;  %2791 = vmatprep.subr.bf16.mxu0 %v3907_v10  ;;  %v3978_v9 = vld [vmem:[%s5498_s1 + $0x9f0] ss:$8 sps:$4 sm:$0xff]   ;;  %v3983_v10 = vld [vmem:[%s5498_s1 + $0x8e4] ss:$8 sps:$4 sm:$0xff]  }
  0xf5   :  { %2832 = vmatprep.subr.bf16.mxu1 %v3910_v11  ;;  %v3986_v11 = vld [vmem:[%s5498_s1 + $0x9e4] ss:$8 sps:$4 sm:$0xff]  }
  0xf7   :  { %2792 = vmatpush2.bf16.msra.mxu0 %v3905_v12  ;;  %v3981_v12 = vld [vmem:[%s5498_s1 + $0x8e0] ss:$8 sps:$4 sm:$0xff]  }
  0xf8   :  { %2833 = vmatpush2.bf16.msra.mxu1 %v3908_v13  ;;  %2793 = vmatprep.subr.bf16.mxu0 %v3913_v14  ;;  %v3984_v13 = vld [vmem:[%s5498_s1 + $0x9e0] ss:$8 sps:$4 sm:$0xff]   ;;  %v3989_v14 = vld [vmem:[%s5498_s1 + $0x8d4] ss:$8 sps:$4 sm:$0xff]  }
  0xf9   :  { %2834 = vmatprep.subr.bf16.mxu1 %v3916_v15  ;;  %v3992_v15 = vld [vmem:[%s5498_s1 + $0x9d4] ss:$8 sps:$4 sm:$0xff]  }
  0xfb   :  { %2794 = vmatpush2.bf16.msra.mxu0 %v3911_v16  ;;  %v3987_v16 = vld [vmem:[%s5498_s1 + $0x8d0] ss:$8 sps:$4 sm:$0xff]  }
  0xfc   :  { %2835 = vmatpush2.bf16.msra.mxu1 %v3914_v17  ;;  %2795 = vmatprep.subr.bf16.mxu0 %v3919_v19  ;;  %v3990_v17 = vld [vmem:[%s5498_s1 + $0x9d0] ss:$8 sps:$4 sm:$0xff]   ;;  %v3995_v19 = vld [vmem:[%s5498_s1 + $0x8c4] ss:$8 sps:$4 sm:$0xff]  }
  0xfd   :  { %2836 = vmatprep.subr.bf16.mxu1 %v3922_v21  ;;  %v3998_v21 = vld [vmem:[%s5498_s1 + $0x9c4] ss:$8 sps:$4 sm:$0xff]  }
  0xff   :  { %2796 = vmatpush2.bf16.msra.mxu0 %v3917_v22  ;;  %v3993_v22 = vld [vmem:[%s5498_s1 + $0x8c0] ss:$8 sps:$4 sm:$0xff]  }
 0x100   :  { %2837 = vmatpush2.bf16.msra.mxu1 %v3920_v23  ;;  %2847 = vmatprep.subr.bf16.mxu0 %v3927_v26  ;;  %v3996_v23 = vld [vmem:[%s5498_s1 + $0x9c0] ss:$8 sps:$4 sm:$0xff]   ;;  %v4001_v26 = vld [vmem:[%s5498_s1 + $0x8b4] ss:$8 sps:$4 sm:$0xff]  }
 0x101   :  { %2888 = vmatprep.subr.bf16.mxu1 %v3932_v18  ;;  %v4004_v18 = vld [vmem:[%s5498_s1 + $0x9b4] ss:$8 sps:$4 sm:$0xff]  }
 0x102   :  { %v2553_v34 = vpop.f32.mrf.mxu0  ;;  %2798 = vmatmul.mubr.bf16.vlgmr.msra.gmra.mxu0 %v3111_v27  ;;  %v3999_v27 = vld [vmem:[%s5498_s1 + $0x8b0] ss:$8 sps:$4 sm:$0xff]  }
 0x103   :  { %v2594_v35 = vpop.f32.mrf.mxu1  ;;  %2839 = vmatmul.mubr.bf16.vlgmr.msra.gmra.mxu1 %v3113_v28  ;;  %2848 = vmatpush1.bf16.msra.mxu0 %v3925_v30  ;;  %v4002_v28 = vld [vmem:[%s5498_s1 + $0x9b0] ss:$8 sps:$4 sm:$0xff]   ;;  %v4007_v30 = vld [vmem:[%s5498_s1 + $0x8a4] ss:$8 sps:$4 sm:$0xff]  }
 0x104   :  { %v5041_v37 = vadd.f32 %v2594_v35, %v2553_v34  ;;  %2889 = vmatpush1.bf16.msra.mxu1 %v3930_v31  ;;  %v2555_v40 = vpop.f32.mrf.mxu0  ;;  %2849 = vmatprep.subr.bf16.mxu0 %v3935_v24  ;;  %v4010_v31 = vld [vmem:[%s5498_s1 + $0x9a4] ss:$8 sps:$4 sm:$0xff]   ;;  %v4005_v24 = vld [vmem:[%s5498_s1 + $0x8a0] ss:$8 sps:$4 sm:$0xff]   ;;  %v4011_v34 = vld [vmem:[%s5498_s1 + $0x890] ss:$8 sps:$4 sm:$0xff]  }
 0x105   :  { %v2596_v41 = vpop.f32.mrf.mxu1  ;;  %2890 = vmatprep.subr.bf16.mxu1 %v3938_v25  ;;  %2879 = vmatprep.mubr.bf16.mxu0 %v3116_v32  ;;  %v4008_v25 = vld [vmem:[%s5498_s1 + $0x9a0] ss:$8 sps:$4 sm:$0xff]   ;;  %v4013_v32 = vld [vmem:[%s5498_s1 + $0x894] ss:$8 sps:$4 sm:$0xff]   ;;  %v4014_v35 = vld [vmem:[%s5498_s1 + $0x990] ss:$8 sps:$4 sm:$0xff]  }
 0x106   :  { %v5052_v43 = vadd.f32 %v2596_v41, %v2555_v40  ;;  %2920 = vmatprep.mubr.bf16.mxu1 %v3118_v33  ;;  %v2557_v46 = vpop.f32.mrf.mxu0  ;;  %v4016_v33 = vld [vmem:[%s5498_s1 + $0x994] ss:$8 sps:$4 sm:$0xff]   ;;  %v4020_v40 = vld [vmem:[%s5498_s1 + $0x980] ss:$8 sps:$4 sm:$0xff]  }
 0x107   :  { %v2598_v47 = vpop.f32.mrf.mxu1  ;;  %2850 = vmatpush1.bf16.msra.mxu0 %v3933_v36  ;;  %v4019_v36 = vld [vmem:[%s5498_s1 + $0x884] ss:$8 sps:$4 sm:$0xff]   ;;  %v4027_v41 = vld [vmem:[%s5498_s1 + $0xa74] ss:$8 sps:$4 sm:$0xff]  }
 0x108   :  { %2891 = vmatpush1.bf16.msra.mxu1 %v3936_v38  ;;  %v2558_v48 = vpop.f32.mrf.mxu0  ;;  %2851 = vmatprep.subr.bf16.mxu0 %v3941_v39  ;;  %v4022_v38 = vld [vmem:[%s5498_s1 + $0x984] ss:$8 sps:$4 sm:$0xff]   ;;  %v4017_v39 = vld [vmem:[%s5498_s1 + $0x880] ss:$8 sps:$4 sm:$0xff]   ;;  %v5229_v46 = vld [vmem:[%s5499_s0 + $0x50] sm:$0xff] }
 0x109   :  { %2892 = vmatprep.subr.bf16.mxu1 %v3944_v42  ;;  %v2599_v51 = vpop.f32.mrf.mxu1  ;;  %v4032_v42 = vld [vmem:[%s5498_s1 + $0xb74] ss:$8 sps:$4 sm:$0xff]   ;;  %v4025_v48 = vld [vmem:[%s5498_s1 + $0xa70] ss:$8 sps:$4 sm:$0xff]  }
 0x10a   :  { %v5234_v47 = vld [vmem:[%s5499_s0 + $0x58] sm:$0xff] }
 0x10b   :  { %2852 = vmatpush1.bf16.msra.mxu0 %v3939_v44  ;;  %v3115_v44 = vcombine.low %v5011_v20, %v5011_v20  ;;  %v4030_v20 = vld [vmem:[%s5498_s1 + $0xb70] ss:$8 sps:$4 sm:$0xff]   ;;  %v3122_v51 = vcombine.high %v5234_v47, %v5234_v47 }
 0x10c   :  { %2893 = vmatpush1.bf16.msra.mxu1 %v3942_v45  ;;  %2853 = vmatprep.subr.bf16.mxu0 %v3947_v49  ;;  %v3117_v45 = vcombine.low %v5020_v29, %v5020_v29  ;;  %v4035_v29 = vld [vmem:[%s5498_s1 + $0xa64] ss:$8 sps:$4 sm:$0xff]  }
 0x10d   :  { %2894 = vmatprep.subr.bf16.mxu1 %v3950_v50  ;;  %v4038_v49 = vld [vmem:[%s5498_s1 + $0xb64] ss:$8 sps:$4 sm:$0xff]   ;;  %v3120_v50 = vcombine.high %v5229_v46, %v5229_v46 }
 0x10f   :  { %2854 = vmatpush1.bf16.msra.mxu0 %v3945_v52 }
 0x110   :  { %2895 = vmatpush1.bf16.msra.mxu1 %v3948_v53  ;;  %2855 = vmatprep.subr.bf16.mxu0 %v3953_v54 }
 0x111   :  { %2896 = vmatprep.subr.bf16.mxu1 %v3956_v55  ;;  %v4033_v55 = vld [vmem:[%s5498_s1 + $0xa60] ss:$8 sps:$4 sm:$0xff]  }
 0x113   :  { %2856 = vmatpush1.bf16.msra.mxu0 %v3951_v56  ;;  %v4036_v56 = vld [vmem:[%s5498_s1 + $0xb60] ss:$8 sps:$4 sm:$0xff]  }
 0x114   :  { %2897 = vmatpush1.bf16.msra.mxu1 %v3954_v57  ;;  %2857 = vmatprep.subr.bf16.mxu0 %v3959_v58 }
 0x115   :  { %2898 = vmatprep.subr.bf16.mxu1 %v3962_v59  ;;  %v4041_v59 = vld [vmem:[%s5498_s1 + $0xa54] ss:$8 sps:$4 sm:$0xff]  }
 0x117   :  { %2858 = vmatpush1.bf16.msra.mxu0 %v3957_v60 }
 0x118   :  { %2899 = vmatpush1.bf16.msra.mxu1 %v3960_v61  ;;  %2859 = vmatprep.subr.bf16.mxu0 %v3965_v62 }
 0x119   :  { %2900 = vmatprep.subr.bf16.mxu1 %v3968_v63 }
 0x11b   :  { %2860 = vmatpush1.bf16.msra.mxu0 %v3963_v0 }
 0x11c   :  { %2901 = vmatpush1.bf16.msra.mxu1 %v3966_v1  ;;  %2861 = vmatprep.subr.bf16.mxu0 %v3971_v2  ;;  %v4039_v1 = vld [vmem:[%s5498_s1 + $0xa50] ss:$8 sps:$4 sm:$0xff]  }
 0x11d   :  { %2902 = vmatprep.subr.bf16.mxu1 %v3974_v3  ;;  %v4042_v2 = vld [vmem:[%s5498_s1 + $0xb50] ss:$8 sps:$4 sm:$0xff]  }
 0x11f   :  { %2862 = vmatpush1.bf16.msra.mxu0 %v3969_v4  ;;  %v4050_v4 = vld [vmem:[%s5498_s1 + $0xb44] ss:$8 sps:$4 sm:$0xff]  }
 0x120   :  { %2903 = vmatpush1.bf16.msra.mxu1 %v3972_v5  ;;  %2863 = vmatprep.subr.bf16.mxu0 %v3977_v6  ;;  %v4045_v6 = vld [vmem:[%s5498_s1 + $0xa40] ss:$8 sps:$4 sm:$0xff]  }
 0x121   :  { %2904 = vmatprep.subr.bf16.mxu1 %v3980_v7  ;;  %v4048_v7 = vld [vmem:[%s5498_s1 + $0xb40] ss:$8 sps:$4 sm:$0xff]  }
 0x123   :  { %2864 = vmatpush2.bf16.msra.mxu0 %v3975_v8  ;;  %v4053_v8 = vld [vmem:[%s5498_s1 + $0xa34] ss:$8 sps:$4 sm:$0xff]  }
 0x124   :  { %2905 = vmatpush2.bf16.msra.mxu1 %v3978_v9  ;;  %2865 = vmatprep.subr.bf16.mxu0 %v3983_v10  ;;  %v4056_v9 = vld [vmem:[%s5498_s1 + $0xb34] ss:$8 sps:$4 sm:$0xff]   ;;  %v4051_v10 = vld [vmem:[%s5498_s1 + $0xa30] ss:$8 sps:$4 sm:$0xff]  }
 0x125   :  { %2906 = vmatprep.subr.bf16.mxu1 %v3986_v11  ;;  %v4054_v11 = vld [vmem:[%s5498_s1 + $0xb30] ss:$8 sps:$4 sm:$0xff]  }
 0x127   :  { %2866 = vmatpush2.bf16.msra.mxu0 %v3981_v12  ;;  %v4059_v12 = vld [vmem:[%s5498_s1 + $0xa24] ss:$8 sps:$4 sm:$0xff]  }
 0x128   :  { %2907 = vmatpush2.bf16.msra.mxu1 %v3984_v13  ;;  %2867 = vmatprep.subr.bf16.mxu0 %v3989_v14  ;;  %v4062_v13 = vld [vmem:[%s5498_s1 + $0xb24] ss:$8 sps:$4 sm:$0xff]   ;;  %v4057_v14 = vld [vmem:[%s5498_s1 + $0xa20] ss:$8 sps:$4 sm:$0xff]  }
 0x129   :  { %2908 = vmatprep.subr.bf16.mxu1 %v3992_v15  ;;  %v4060_v15 = vld [vmem:[%s5498_s1 + $0xb20] ss:$8 sps:$4 sm:$0xff]  }
 0x12b   :  { %2868 = vmatpush2.bf16.msra.mxu0 %v3987_v16  ;;  %v4065_v16 = vld [vmem:[%s5498_s1 + $0xa14] ss:$8 sps:$4 sm:$0xff]  }
 0x12c   :  { %2909 = vmatpush2.bf16.msra.mxu1 %v3990_v17  ;;  %2869 = vmatprep.subr.bf16.mxu0 %v3995_v19  ;;  %v4068_v17 = vld [vmem:[%s5498_s1 + $0xb14] ss:$8 sps:$4 sm:$0xff]   ;;  %v4063_v19 = vld [vmem:[%s5498_s1 + $0xa10] ss:$8 sps:$4 sm:$0xff]  }
 0x12d   :  { %2910 = vmatprep.subr.bf16.mxu1 %v3998_v21  ;;  %v4066_v21 = vld [vmem:[%s5498_s1 + $0xb10] ss:$8 sps:$4 sm:$0xff]  }
 0x12f   :  { %2870 = vmatpush2.bf16.msra.mxu0 %v3993_v22  ;;  %v4071_v22 = vld [vmem:[%s5498_s1 + $0xa04] ss:$8 sps:$4 sm:$0xff]  }
 0x130   :  { %2911 = vmatpush2.bf16.msra.mxu1 %v3996_v23  ;;  %2871 = vmatprep.subr.bf16.mxu0 %v4001_v26  ;;  %v4074_v23 = vld [vmem:[%s5498_s1 + $0xb04] ss:$8 sps:$4 sm:$0xff]   ;;  %v4069_v26 = vld [vmem:[%s5498_s1 + $0xa00] ss:$8 sps:$4 sm:$0xff]  }
 0x131   :  { %2912 = vmatprep.subr.bf16.mxu1 %v4004_v18  ;;  %v4072_v18 = vld [vmem:[%s5498_s1 + $0xb00] ss:$8 sps:$4 sm:$0xff]  }
 0x133   :  { %2872 = vmatpush2.bf16.msra.mxu0 %v3999_v27  ;;  %v4077_v27 = vld [vmem:[%s5498_s1 + $0xaf4] ss:$8 sps:$4 sm:$0xff]  }
 0x134   :  { %2913 = vmatpush2.bf16.msra.mxu1 %v4002_v28  ;;  %2873 = vmatprep.subr.bf16.mxu0 %v4007_v30  ;;  %v4080_v28 = vld [vmem:[%s5498_s1 + $0xbf4] ss:$8 sps:$4 sm:$0xff]   ;;  %v4075_v30 = vld [vmem:[%s5498_s1 + $0xaf0] ss:$8 sps:$4 sm:$0xff]  }
 0x135   :  { %2914 = vmatprep.subr.bf16.mxu1 %v4010_v31  ;;  %v4078_v31 = vld [vmem:[%s5498_s1 + $0xbf0] ss:$8 sps:$4 sm:$0xff]  }
 0x137   :  { %2874 = vmatpush2.bf16.msra.mxu0 %v4005_v24  ;;  %v4083_v24 = vld [vmem:[%s5498_s1 + $0xae4] ss:$8 sps:$4 sm:$0xff]  }
 0x138   :  { %2915 = vmatpush2.bf16.msra.mxu1 %v4008_v25  ;;  %2875 = vmatprep.subr.bf16.mxu0 %v4013_v32  ;;  %v4086_v25 = vld [vmem:[%s5498_s1 + $0xbe4] ss:$8 sps:$4 sm:$0xff]   ;;  %v4081_v32 = vld [vmem:[%s5498_s1 + $0xae0] ss:$8 sps:$4 sm:$0xff]  }
 0x139   :  { %2916 = vmatprep.subr.bf16.mxu1 %v4016_v33  ;;  %v4084_v33 = vld [vmem:[%s5498_s1 + $0xbe0] ss:$8 sps:$4 sm:$0xff]  }
 0x13b   :  { %2876 = vmatpush2.bf16.msra.mxu0 %v4011_v34  ;;  %v4089_v34 = vld [vmem:[%s5498_s1 + $0xad4] ss:$8 sps:$4 sm:$0xff]  }
 0x13c   :  { %2917 = vmatpush2.bf16.msra.mxu1 %v4014_v35  ;;  %2877 = vmatprep.subr.bf16.mxu0 %v4019_v36  ;;  %v4092_v35 = vld [vmem:[%s5498_s1 + $0xbd4] ss:$8 sps:$4 sm:$0xff]   ;;  %v4087_v36 = vld [vmem:[%s5498_s1 + $0xad0] ss:$8 sps:$4 sm:$0xff]  }
 0x13d   :  { %2918 = vmatprep.subr.bf16.mxu1 %v4022_v38  ;;  %v4090_v38 = vld [vmem:[%s5498_s1 + $0xbd0] ss:$8 sps:$4 sm:$0xff]  }
 0x13f   :  { %2878 = vmatpush2.bf16.msra.mxu0 %v4017_v39  ;;  %v4095_v39 = vld [vmem:[%s5498_s1 + $0xac4] ss:$8 sps:$4 sm:$0xff]  }
 0x140   :  { %2919 = vmatpush2.bf16.msra.mxu1 %v4020_v40  ;;  %2929 = vmatprep.subr.bf16.mxu0 %v4027_v41  ;;  %v4098_v40 = vld [vmem:[%s5498_s1 + $0xbc4] ss:$8 sps:$4 sm:$0xff]   ;;  %v4093_v41 = vld [vmem:[%s5498_s1 + $0xac0] ss:$8 sps:$4 sm:$0xff]  }
 0x141   :  { %2970 = vmatprep.subr.bf16.mxu1 %v4032_v42  ;;  %v4096_v42 = vld [vmem:[%s5498_s1 + $0xbc0] ss:$8 sps:$4 sm:$0xff]  }
 0x142   :  { %v2635_v52 = vpop.f32.mrf.mxu0  ;;  %2880 = vmatmul.mubr.bf16.vlgmr.msra.gmra.mxu0 %v3115_v44  ;;  %v4101_v44 = vld [vmem:[%s5498_s1 + $0xab4] ss:$8 sps:$4 sm:$0xff]  }
 0x143   :  { %v2676_v53 = vpop.f32.mrf.mxu1  ;;  %2921 = vmatmul.mubr.bf16.vlgmr.msra.gmra.mxu1 %v3117_v45  ;;  %v2636_v54 = vadd.f32 %v2635_v52, %v5041_v37  ;;  %2930 = vmatpush1.bf16.msra.mxu0 %v4025_v48  ;;  %v4044_v37 = vld [vmem:[%s5498_s1 + $0xb54] ss:$8 sps:$4 sm:$0xff]   ;;  %v4099_v48 = vld [vmem:[%s5498_s1 + $0xab0] ss:$8 sps:$4 sm:$0xff]  }
 0x144   :  { %2971 = vmatpush1.bf16.msra.mxu1 %v4030_v20  ;;  %v2637_v57 = vpop.f32.mrf.mxu0  ;;  %2931 = vmatprep.subr.bf16.mxu0 %v4035_v29  ;;  %v4104_v45 = vld [vmem:[%s5498_s1 + $0xbb4] ss:$8 sps:$4 sm:$0xff]   ;;  %v4102_v20 = vld [vmem:[%s5498_s1 + $0xbb0] ss:$8 sps:$4 sm:$0xff]   ;;  %v4107_v29 = vld [vmem:[%s5498_s1 + $0xaa4] ss:$8 sps:$4 sm:$0xff]  }
 0x145   :  { %v2678_v58 = vpop.f32.mrf.mxu1  ;;  %2972 = vmatprep.subr.bf16.mxu1 %v4038_v49  ;;  %v2638_v60 = vadd.f32 %v2637_v57, %v5052_v43  ;;  %v5266_v61 = vadd.f32 %v2676_v53, %v2636_v54  ;;  %2961 = vmatprep.mubr.bf16.mxu0 %v3120_v50  ;;  %v4047_v43 = vld [vmem:[%s5498_s1 + $0xa44] ss:$8 sps:$4 sm:$0xff]   ;;  %v4105_v50 = vld [vmem:[%s5498_s1 + $0xaa0] ss:$8 sps:$4 sm:$0xff]   ;;  %v4113_v52 = vld [vmem:[%s5498_s1 + $0xa94] ss:$8 sps:$4 sm:$0xff]  }
 0x146   :  { %3002 = vmatprep.mubr.bf16.mxu1 %v3122_v51  ;;  %v2639_v62 = vpop.f32.mrf.mxu0  ;;  %v4110_v49 = vld [vmem:[%s5498_s1 + $0xba4] ss:$8 sps:$4 sm:$0xff]   ;;  %v4108_v51 = vld [vmem:[%s5498_s1 + $0xba0] ss:$8 sps:$4 sm:$0xff]   ;;  %v4116_v53 = vld [vmem:[%s5498_s1 + $0xb94] ss:$8 sps:$4 sm:$0xff]  }
 0x147   :  { %v2680_v63 = vpop.f32.mrf.mxu1  ;;  %v5268_v0 = vadd.f32 %v2678_v58, %v2638_v60  ;;  %2932 = vmatpush1.bf16.msra.mxu0 %v4033_v55  ;;  %v4111_v54 = vld [vmem:[%s5498_s1 + $0xa90] ss:$8 sps:$4 sm:$0xff]   ;;  %v4122_v57 = vld [vmem:[%s5498_s1 + $0xb84] ss:$8 sps:$4 sm:$0xff]   ;;  %v4117_v58 = vld [vmem:[%s5498_s1 + $0xa80] ss:$8 sps:$4 sm:$0xff]   ;;  %v3119_v60 = vcombine.low %v5229_v46, %v5229_v46  ;;  %v3121_v62 = vcombine.low %v5234_v47, %v5234_v47 }
 0x148   :  { %2973 = vmatpush1.bf16.msra.mxu1 %v4036_v56  ;;  %v2640_v3 = vpop.f32.mrf.mxu0  ;;  %2933 = vmatprep.subr.bf16.mxu0 %v4041_v59  ;;  %v4114_v55 = vld [vmem:[%s5498_s1 + $0xb90] ss:$8 sps:$4 sm:$0xff]   ;;  %v4119_v56 = vld [vmem:[%s5498_s1 + $0xa84] ss:$8 sps:$4 sm:$0xff]   ;;  %v4120_v59 = vld [vmem:[%s5498_s1 + $0xb80] ss:$8 sps:$4 sm:$0xff]  }
 0x149   :  { %2974 = vmatprep.subr.bf16.mxu1 %v4044_v37  ;;  %v2681_v5 = vpop.f32.mrf.mxu1  ;;  %v4127_v37 = vld [vmem:[%s5498_s1 + $0xc74] ss:$8 sps:$4 sm:$0xff]   ;;  %v4125_v63 = vld [vmem:[%s5498_s1 + $0xc70] ss:$8 sps:$4 sm:$0xff]   ;;  %v4130_v47 = vld [vmem:[%s5498_s1 + $0xc60] ss:$8 sps:$4 sm:$0xff]  }
 0x14b   :  { %2934 = vmatpush1.bf16.msra.mxu0 %v4039_v1  ;;  %v4132_v1 = vld [vmem:[%s5498_s1 + $0xc64] ss:$8 sps:$4 sm:$0xff]  }
 0x14c   :  { %2975 = vmatpush1.bf16.msra.mxu1 %v4042_v2  ;;  %2935 = vmatprep.subr.bf16.mxu0 %v4047_v43  ;;  %v4152_v43 = vmov 0  }
 0x14d   :  { %2976 = vmatprep.subr.bf16.mxu1 %v4050_v4 }
 0x14f   :  { %2936 = vmatpush1.bf16.msra.mxu0 %v4045_v6  ;;  %v4135_v6 = vld [vmem:[%s5498_s1 + $0xc54] ss:$8 sps:$4 sm:$0xff]  }
 0x150   :  { %2977 = vmatpush1.bf16.msra.mxu1 %v4048_v7  ;;  %2937 = vmatprep.subr.bf16.mxu0 %v4053_v8 }
 0x151   :  { %2978 = vmatprep.subr.bf16.mxu1 %v4056_v9 }
 0x153   :  { %2938 = vmatpush1.bf16.msra.mxu0 %v4051_v10 }
 0x154   :  { %2979 = vmatpush1.bf16.msra.mxu1 %v4054_v11  ;;  %2939 = vmatprep.subr.bf16.mxu0 %v4059_v12  ;;  %v4133_v11 = vld [vmem:[%s5498_s1 + $0xc50] ss:$8 sps:$4 sm:$0xff]  }
 0x155   :  { %2980 = vmatprep.subr.bf16.mxu1 %v4062_v13  ;;  %v4138_v13 = vld [vmem:[%s5498_s1 + $0xc44] ss:$8 sps:$4 sm:$0xff]  }
 0x157   :  { %2940 = vmatpush1.bf16.msra.mxu0 %v4057_v14 }
 0x158   :  { %2981 = vmatpush1.bf16.msra.mxu1 %v4060_v15  ;;  %2941 = vmatprep.subr.bf16.mxu0 %v4065_v16  ;;  %v4141_v15 = vld [vmem:[%s5498_s1 + $0xc34] ss:$8 sps:$4 sm:$0xff]   ;;  %v4139_v16 = vld [vmem:[%s5498_s1 + $0xc30] ss:$8 sps:$4 sm:$0xff]  }
 0x159   :  { %2982 = vmatprep.subr.bf16.mxu1 %v4068_v17  ;;  %v4144_v17 = vld [vmem:[%s5498_s1 + $0xc24] ss:$8 sps:$4 sm:$0xff]  }
 0x15b   :  { %2942 = vmatpush1.bf16.msra.mxu0 %v4063_v19  ;;  %v4142_v19 = vld [vmem:[%s5498_s1 + $0xc20] ss:$8 sps:$4 sm:$0xff]  }
 0x15c   :  { %2983 = vmatpush1.bf16.msra.mxu1 %v4066_v21  ;;  %2943 = vmatprep.subr.bf16.mxu0 %v4071_v22  ;;  %v4147_v21 = vld [vmem:[%s5498_s1 + $0xc14] ss:$8 sps:$4 sm:$0xff]   ;;  %v4145_v22 = vld [vmem:[%s5498_s1 + $0xc10] ss:$8 sps:$4 sm:$0xff]  }
 0x15d   :  { %2984 = vmatprep.subr.bf16.mxu1 %v4074_v23  ;;  %v4150_v23 = vld [vmem:[%s5498_s1 + $0xc04] ss:$8 sps:$4 sm:$0xff]  }
 0x15f   :  { %2944 = vmatpush1.bf16.msra.mxu0 %v4069_v26  ;;  %v4148_v26 = vld [vmem:[%s5498_s1 + $0xc00] ss:$8 sps:$4 sm:$0xff]  }
 0x160   :  { %2985 = vmatpush1.bf16.msra.mxu1 %v4072_v18  ;;  %2945 = vmatprep.subr.bf16.mxu0 %v4077_v27  ;;  %v4151_v18 = vld [vmem:[%s5499_s0 + $0x60] ss:$0 sps:$4 sm:$0xff]  }
 0x161   :  { %2986 = vmatprep.subr.bf16.mxu1 %v4080_v28 }
 0x163   :  { %2946 = vmatpush2.bf16.msra.mxu0 %v4075_v30 }
 0x164   :  { %2987 = vmatpush2.bf16.msra.mxu1 %v4078_v31  ;;  %2947 = vmatprep.subr.bf16.mxu0 %v4083_v24 }
 0x165   :  { %2988 = vmatprep.subr.bf16.mxu1 %v4086_v25 }
 0x167   :  { %2948 = vmatpush2.bf16.msra.mxu0 %v4081_v32 }
 0x168   :  { %2989 = vmatpush2.bf16.msra.mxu1 %v4084_v33  ;;  %2949 = vmatprep.subr.bf16.mxu0 %v4089_v34 }
 0x169   :  { %2990 = vmatprep.subr.bf16.mxu1 %v4092_v35 }
 0x16b   :  { %2950 = vmatpush2.bf16.msra.mxu0 %v4087_v36 }
 0x16c   :  { %2991 = vmatpush2.bf16.msra.mxu1 %v4090_v38  ;;  %2951 = vmatprep.subr.bf16.mxu0 %v4095_v39 }
 0x16d   :  { %2992 = vmatprep.subr.bf16.mxu1 %v4098_v40 }
 0x16f   :  { %2952 = vmatpush2.bf16.msra.mxu0 %v4093_v41 }
 0x170   :  { %2993 = vmatpush2.bf16.msra.mxu1 %v4096_v42  ;;  %2953 = vmatprep.subr.bf16.mxu0 %v4101_v44 }
 0x171   :  { %2994 = vmatprep.subr.bf16.mxu1 %v4104_v45 }
 0x173   :  { %2954 = vmatpush2.bf16.msra.mxu0 %v4099_v48 }
 0x174   :  { %2995 = vmatpush2.bf16.msra.mxu1 %v4102_v20  ;;  %2955 = vmatprep.subr.bf16.mxu0 %v4107_v29 }
 0x175   :  { %2996 = vmatprep.subr.bf16.mxu1 %v4110_v49 }
 0x177   :  { %2956 = vmatpush2.bf16.msra.mxu0 %v4105_v50 }
 0x178   :  { %2997 = vmatpush2.bf16.msra.mxu1 %v4108_v51  ;;  %2957 = vmatprep.subr.bf16.mxu0 %v4113_v52 }
 0x179   :  { %2998 = vmatprep.subr.bf16.mxu1 %v4116_v53 }
 0x17b   :  { %2958 = vmatpush2.bf16.msra.mxu0 %v4111_v54 }
 0x17c   :  { %2999 = vmatpush2.bf16.msra.mxu1 %v4114_v55  ;;  %2959 = vmatprep.subr.bf16.mxu0 %v4119_v56 }
 0x17d   :  { %3000 = vmatprep.subr.bf16.mxu1 %v4122_v57 }
 0x17f   :  { %2960 = vmatpush2.bf16.msra.mxu0 %v4117_v58 }
 0x180   :  { %3001 = vmatpush2.bf16.msra.mxu1 %v4120_v59  ;;  %3011 = vmatprep.subr.bf16.mxu0 %v4127_v37  ;;  %v3054_v37 = vlaneseq }
 0x182   :  { %v2717_v2 = vpop.f32.mrf.mxu0  ;;  %2962 = vmatmul.mubr.bf16.vlgmr.msra.gmra.mxu0 %v3119_v60  ;;  %v3055_v60 = vshrl.u32 %v3054_v37, 7 }
 0x183   :  { %v2758_v3 = vpop.f32.mrf.mxu1  ;;  %3003 = vmatmul.mubr.bf16.vlgmr.msra.gmra.mxu1 %v3121_v62  ;;  %v2718_v46 = vadd.f32 %v2717_v2, %v5266_v61  ;;  %3012 = vmatpush1.bf16.msra.mxu0 %v4125_v63 }
 0x184   :  { %3043 = vmatprep.mubr.bf16.mxu0 %v4152_v43  ;;  %v2719_v4 = vpop.f32.mrf.mxu0  ;;  %3013 = vmatprep.subr.bf16.mxu0 %v4132_v1  ;;  %v3056_v63 = vsub.s32 0, %v3055_v60  ;;  %v3052_v1 = vld [vmem:[%s5500_s2] sm:$0x3] }
 0x185   :  { %v2760_v5 = vpop.f32.mrf.mxu1  ;;  %v2720_v7 = vadd.f32 %v2719_v4, %v5268_v0  ;;  %v2759_v8 = vadd.f32 %v2758_v3, %v2718_v46  ;;  %v4136_v0 = vld [vmem:[%s5498_s1 + $0xc40] ss:$8 sps:$4 sm:$0xff]   ;;  %v3060_v3 = vsub.s32 1, %v3055_v60 }
 0x186   :  { %v2721_v9 = vpop.f32.mrf.mxu0  ;;  %v3066_v46 = vld [vmem:[%s5501_s3] sm:$0x3]  ;;  %v3057_v43 = vrot.slane %v3052_v1, %v3056_v63 }
 0x187   :  { %v2762_v10 = vpop.f32.mrf.mxu1  ;;  %v2761_v61 = vadd.f32 %v2760_v5, %v2720_v7  ;;  %3014 = vmatpush1.bf16.msra.mxu0 %v4130_v47  ;;  %v3071_v7 = vrot.slane %v3066_v46, %v3056_v63 }
 0x188   :  { %v2722_v12 = vpop.f32.mrf.mxu0  ;;  %3015 = vmatprep.subr.bf16.mxu0 %v4135_v6 }
 0x189   :  { %v2763_v14 = vpop.f32.mrf.mxu1 }
 0x18b   :  { %3016 = vmatpush1.bf16.msra.mxu0 %v4133_v11  ;;  %v3075_v11 = vrot.slane %v3066_v46, %v3060_v3 }
 0x18c   :  { %3017 = vmatprep.subr.bf16.mxu0 %v4138_v13 }
 0x18f   :  { %3018 = vmatpush1.bf16.msra.mxu0 %v4136_v0 }
 0x190   :  { %3019 = vmatprep.subr.bf16.mxu0 %v4141_v15 }
 0x193   :  { %3020 = vmatpush1.bf16.msra.mxu0 %v4139_v16 }
 0x194   :  { %3021 = vmatprep.subr.bf16.mxu0 %v4144_v17 }
 0x197   :  { %3022 = vmatpush1.bf16.msra.mxu0 %v4142_v19 }
 0x198   :  { %3023 = vmatprep.subr.bf16.mxu0 %v4147_v21 }
 0x19b   :  { %3024 = vmatpush1.bf16.msra.mxu0 %v4145_v22 }
 0x19c   :  { %3025 = vmatprep.subr.bf16.mxu0 %v4150_v23 }
 0x19f   :  { %3026 = vmatpush1.bf16.msra.mxu0 %v4148_v26 }
 0x1a2   :  { %3044 = vmatmul.mubr.bf16.vlgmr.msra.gmra.mxu0 %v4151_v18 }
 0x1c2   :  { %v2799_v27 = vpop.f32.mrf.mxu0 }
 0x1c3   :  { %v2840_v28 = vpop.f32.mrf.mxu1  ;;  %v2800_v30 = vadd.f32 %v2799_v27, %v2759_v8  ;;  %v3061_v8 = vrot.slane %v3052_v1, %v3060_v3 }
 0x1c4   :  { %v2801_v31 = vpop.f32.mrf.mxu0 }
 0x1c5   :  { %v2842_v24 = vpop.f32.mrf.mxu1  ;;  %v2802_v25 = vadd.f32 %v2801_v31, %v2761_v61  ;;  %v2841_v32 = vadd.f32 %v2840_v28, %v2800_v30 }
 0x1c6   :  { %v2803_v33 = vpop.f32.mrf.mxu0 }
 0x1c7   :  { %v2844_v34 = vpop.f32.mrf.mxu1  ;;  %v2843_v35 = vadd.f32 %v2842_v24, %v2802_v25 }
 0x1c8   :  { %v2804_v36 = vpop.f32.mrf.mxu0 }
 0x1c9   :  { %v2845_v38 = vpop.f32.mrf.mxu1 }
 0x202   :  { %v2881_v39 = vpop.f32.mrf.mxu0 }
 0x203   :  { %v2922_v40 = vpop.f32.mrf.mxu1  ;;  %v2882_v41 = vadd.f32 %v2881_v39, %v2841_v32 }
 0x204   :  { %v2883_v42 = vpop.f32.mrf.mxu0 }
 0x205   :  { %v2924_v44 = vpop.f32.mrf.mxu1  ;;  %v2884_v45 = vadd.f32 %v2883_v42, %v2843_v35  ;;  %v2923_v48 = vadd.f32 %v2922_v40, %v2882_v41 }
 0x206   :  { %v2885_v20 = vpop.f32.mrf.mxu0 }
 0x207   :  { %v2926_v29 = vpop.f32.mrf.mxu1  ;;  %v2925_v49 = vadd.f32 %v2924_v44, %v2884_v45 }
 0x208   :  { %v2886_v50 = vpop.f32.mrf.mxu0 }
 0x209   :  { %v2927_v51 = vpop.f32.mrf.mxu1 }
 0x242   :  { %v2963_v52 = vpop.f32.mrf.mxu0 }
 0x243   :  { %v3004_v53 = vpop.f32.mrf.mxu1  ;;  %v2964_v62 = vadd.f32 %v2963_v52, %v2923_v48 }
 0x244   :  { %v2965_v54 = vpop.f32.mrf.mxu0 }
 0x245   :  { %v3006_v55 = vpop.f32.mrf.mxu1  ;;  %v2966_v2 = vadd.f32 %v2965_v54, %v2925_v49  ;;  %v3005_v47 = vadd.f32 %v3004_v53, %v2964_v62 }
 0x246   :  { %v2967_v56 = vpop.f32.mrf.mxu0 }
 0x247   :  { %v3008_v57 = vpop.f32.mrf.mxu1  ;;  %v3007_v5 = vadd.f32 %v3006_v55, %v2966_v2 }
 0x248   :  { %v2968_v58 = vpop.f32.mrf.mxu0 }
 0x249   :  { %v3009_v59 = vpop.f32.mrf.mxu1 }
 0x262   :  { %v3045_v4 = vpop.f32.mrf.mxu0 }
 0x263   :  { %v3046_v6 = vadd.f32 %v3045_v4, %v3005_v47 }
 0x264   :  { %v3047_v9 = vpop.f32.mrf.mxu0 }
 0x265   :  { %v3064_v10 = vmul.f32 %v3057_v43, %v3046_v6  ;;  %v3048_v61 = vadd.f32 %v3047_v9, %v3007_v5 }
 0x266   :  { %v3049_v12 = vpop.f32.mrf.mxu0 }
 0x267   :  { %v3078_v13 = vadd.f32 %v3071_v7, %v3064_v10  ;;  %v3065_v14 = vmul.f32 %v3061_v8, %v3048_v61 }
 0x268   :  { %v3050_v0 = vpop.f32.mrf.mxu0 }
 0x269   :  { %v3082_v15 = vmul.f32 0.1, %v3078_v13  ;;  %v3079_v16 = vadd.f32 %v3075_v11, %v3065_v14  ;;  %vm3080_vm0 = vcmp.ge.f32.partialorder %v3078_v13, 0.0 }
 0x26b   :  { %vm3081_vm1 = vcmp.ge.f32.partialorder %v3079_v16, 0.0  ;;  %v3083_v17 = vmul.f32 0.1, %v3079_v16  ;;  %v3084_v19 = vsel %vm3080_vm0, %v3078_v13, %v3082_v15 }
 0x26d   :  { %v3085_v21 = vsel %vm3081_vm1, %v3079_v16, %v3083_v17 }
 0x26e   :  { %v3525_v22 = vpack.c.bf16 %v3085_v21, %v3084_v19 }
 0x270   :  { %3094 = vst [vmem:[%s5502_s4] sm:$0xff] %v3525_v22 }

// kernel: extract_features.8
= control target key start
LH: loop header
LB: loop body
LE: loop exit
PB: predicated region body
PF: predicated region fallthrough
CT: control target
= control target key end

     0   :  { %s3964_s1 = inlined_call_operand.vmem [shape: bf16[2304,256], index: 1, kind: input, shape index: {}]   ;;  %s3965_s0 = inlined_call_operand.vmem [shape: bf16[8,2304], index: 0, kind: input, shape index: {}]   ;;  %s3966_s2 = inlined_call_operand.vmem [shape: f32[1,256], index: 2, kind: input, shape index: {}]   ;;  %s3967_s3 = inlined_call_operand.vmem [shape: f32[1,256], index: 3, kind: input, shape index: {}]   ;;  %s3968_s4 = inlined_call_operand.vmem [shape: bf16[8,256], index: 4, kind: output, shape index: {}]  }
   0x1   :  { %v2541_v0 = vld [vmem:[%s3964_s1 + $0x74] ss:$8 sps:$4 sm:$0xff]   ;;  %v2545_v2 = vld [vmem:[%s3964_s1 + $0x70] ss:$8 sps:$4 sm:$0xff]   ;;  %v2547_v4 = vld [vmem:[%s3964_s1 + $0x64] ss:$8 sps:$4 sm:$0xff]  }
   0x2   :  { %v2543_v1 = vld [vmem:[%s3964_s1 + $0x174] ss:$8 sps:$4 sm:$0xff]   ;;  %1817 = vmatprep.subr.bf16.mxu0 %v2541_v0  ;;  %v2546_v3 = vld [vmem:[%s3964_s1 + $0x170] ss:$8 sps:$4 sm:$0xff]   ;;  %v2549_v5 = vld [vmem:[%s3964_s1 + $0x164] ss:$8 sps:$4 sm:$0xff]  }
   0x3   :  { %1858 = vmatprep.subr.bf16.mxu1 %v2543_v1  ;;  %1818 = vmatpush1.bf16.msra.mxu0 %v2545_v2  ;;  %v2551_v6 = vld [vmem:[%s3964_s1 + $0x60] ss:$8 sps:$4 sm:$0xff]   ;;  %v2553_v8 = vld [vmem:[%s3964_s1 + $0x54] ss:$8 sps:$4 sm:$0xff]   ;;  %v2557_v10 = vld [vmem:[%s3964_s1 + $0x50] ss:$8 sps:$4 sm:$0xff]  }
   0x4   :  { %1859 = vmatpush1.bf16.msra.mxu1 %v2546_v3  ;;  %1819 = vmatprep.subr.bf16.mxu0 %v2547_v4  ;;  %v2552_v7 = vld [vmem:[%s3964_s1 + $0x160] ss:$8 sps:$4 sm:$0xff]   ;;  %v2555_v9 = vld [vmem:[%s3964_s1 + $0x154] ss:$8 sps:$4 sm:$0xff]   ;;  %v2558_v11 = vld [vmem:[%s3964_s1 + $0x150] ss:$8 sps:$4 sm:$0xff]  }
   0x5   :  { %1860 = vmatprep.subr.bf16.mxu1 %v2549_v5  ;;  %v2559_v12 = vld [vmem:[%s3964_s1 + $0x44] ss:$8 sps:$4 sm:$0xff]   ;;  %v2563_v14 = vld [vmem:[%s3964_s1 + $0x40] ss:$8 sps:$4 sm:$0xff]   ;;  %v2565_v16 = vld [vmem:[%s3964_s1 + $0x34] ss:$8 sps:$4 sm:$0xff]  }
   0x6   :  { %v2561_v13 = vld [vmem:[%s3964_s1 + $0x144] ss:$8 sps:$4 sm:$0xff]   ;;  %v2564_v15 = vld [vmem:[%s3964_s1 + $0x140] ss:$8 sps:$4 sm:$0xff]   ;;  %v2567_v17 = vld [vmem:[%s3964_s1 + $0x134] ss:$8 sps:$4 sm:$0xff]  }
   0x7   :  { %1820 = vmatpush1.bf16.msra.mxu0 %v2551_v6  ;;  %v2569_v18 = vld [vmem:[%s3964_s1 + $0x30] ss:$8 sps:$4 sm:$0xff]   ;;  %v2571_v20 = vld [vmem:[%s3964_s1 + $0x24] ss:$8 sps:$4 sm:$0xff]   ;;  %v2575_v22 = vld [vmem:[%s3964_s1 + $0x20] ss:$8 sps:$4 sm:$0xff]  }
   0x8   :  { %1861 = vmatpush1.bf16.msra.mxu1 %v2552_v7  ;;  %1821 = vmatprep.subr.bf16.mxu0 %v2553_v8  ;;  %v2570_v19 = vld [vmem:[%s3964_s1 + $0x130] ss:$8 sps:$4 sm:$0xff]   ;;  %v2573_v21 = vld [vmem:[%s3964_s1 + $0x124] ss:$8 sps:$4 sm:$0xff]   ;;  %v2576_v23 = vld [vmem:[%s3964_s1 + $0x120] ss:$8 sps:$4 sm:$0xff]  }
   0x9   :  { %1862 = vmatprep.subr.bf16.mxu1 %v2555_v9  ;;  %v2577_v24 = vld [vmem:[%s3964_s1 + $0x14] ss:$8 sps:$4 sm:$0xff]   ;;  %v2581_v26 = vld [vmem:[%s3964_s1 + $0x10] ss:$8 sps:$4 sm:$0xff]   ;;  %v2583_v28 = vld [vmem:[%s3964_s1 + $0x4] ss:$8 sps:$4 sm:$0xff]  }
   0xa   :  { %v2579_v25 = vld [vmem:[%s3964_s1 + $0x114] ss:$8 sps:$4 sm:$0xff]   ;;  %v2582_v27 = vld [vmem:[%s3964_s1 + $0x110] ss:$8 sps:$4 sm:$0xff]   ;;  %v2585_v29 = vld [vmem:[%s3964_s1 + $0x104] ss:$8 sps:$4 sm:$0xff]  }
   0xb   :  { %1822 = vmatpush1.bf16.msra.mxu0 %v2557_v10  ;;  %v2587_v30 = vld [vmem:[%s3964_s1] ss:$8 sps:$4 sm:$0xff]   ;;  %v2589_v32 = vld [vmem:[%s3964_s1 + $0xf4] ss:$8 sps:$4 sm:$0xff]   ;;  %v2593_v34 = vld [vmem:[%s3964_s1 + $0xf0] ss:$8 sps:$4 sm:$0xff]  }
   0xc   :  { %1863 = vmatpush1.bf16.msra.mxu1 %v2558_v11  ;;  %1823 = vmatprep.subr.bf16.mxu0 %v2559_v12  ;;  %v2588_v31 = vld [vmem:[%s3964_s1 + $0x100] ss:$8 sps:$4 sm:$0xff]   ;;  %v2591_v33 = vld [vmem:[%s3964_s1 + $0x1f4] ss:$8 sps:$4 sm:$0xff]   ;;  %v2594_v35 = vld [vmem:[%s3964_s1 + $0x1f0] ss:$8 sps:$4 sm:$0xff]  }
   0xd   :  { %1864 = vmatprep.subr.bf16.mxu1 %v2561_v13  ;;  %v2595_v36 = vld [vmem:[%s3964_s1 + $0xe4] ss:$8 sps:$4 sm:$0xff]   ;;  %v2599_v38 = vld [vmem:[%s3964_s1 + $0xe0] ss:$8 sps:$4 sm:$0xff]   ;;  %v2601_v40 = vld [vmem:[%s3964_s1 + $0xd4] ss:$8 sps:$4 sm:$0xff]  }
   0xe   :  { %v2597_v37 = vld [vmem:[%s3964_s1 + $0x1e4] ss:$8 sps:$4 sm:$0xff]   ;;  %v2600_v39 = vld [vmem:[%s3964_s1 + $0x1e0] ss:$8 sps:$4 sm:$0xff]   ;;  %v2603_v41 = vld [vmem:[%s3964_s1 + $0x1d4] ss:$8 sps:$4 sm:$0xff]  }
   0xf   :  { %1824 = vmatpush1.bf16.msra.mxu0 %v2563_v14  ;;  %v2605_v42 = vld [vmem:[%s3964_s1 + $0xd0] ss:$8 sps:$4 sm:$0xff]   ;;  %v2607_v44 = vld [vmem:[%s3964_s1 + $0xc4] ss:$8 sps:$4 sm:$0xff]   ;;  %v2611_v49 = vld [vmem:[%s3964_s1 + $0xc0] ss:$8 sps:$4 sm:$0xff]  }
  0x10   :  { %1865 = vmatpush1.bf16.msra.mxu1 %v2564_v15  ;;  %1825 = vmatprep.subr.bf16.mxu0 %v2565_v16  ;;  %v2606_v43 = vld [vmem:[%s3964_s1 + $0x1d0] ss:$8 sps:$4 sm:$0xff]   ;;  %v2609_v45 = vld [vmem:[%s3964_s1 + $0x1c4] ss:$8 sps:$4 sm:$0xff]   ;;  %v2612_v50 = vld [vmem:[%s3964_s1 + $0x1c0] ss:$8 sps:$4 sm:$0xff]  }
  0x11   :  { %1866 = vmatprep.subr.bf16.mxu1 %v2567_v17  ;;  %v17_v46 = vld [vmem:[%s3965_s0] sm:$0xff]  ;;  %v18_v48 = vld [vmem:[%s3965_s0 + $0x8] sm:$0xff]  ;;  %v2613_v52 = vld [vmem:[%s3964_s1 + $0xb4] ss:$8 sps:$4 sm:$0xff]  }
  0x12   :  { %v2234_v47 = vcombine.high %v17_v46, %v17_v46  ;;  %v2236_v51 = vcombine.high %v18_v48, %v18_v48  ;;  %v2615_v53 = vld [vmem:[%s3964_s1 + $0x1b4] ss:$8 sps:$4 sm:$0xff]   ;;  %v2617_v54 = vld [vmem:[%s3964_s1 + $0xb0] ss:$8 sps:$4 sm:$0xff]   ;;  %v2619_v56 = vld [vmem:[%s3964_s1 + $0xa4] ss:$8 sps:$4 sm:$0xff]   ;;  %v2233_v6 = vcombine.low %v17_v46, %v17_v46  ;;  %v2235_v7 = vcombine.low %v18_v48, %v18_v48 }
  0x13   :  { %1826 = vmatpush1.bf16.msra.mxu0 %v2569_v18  ;;  %v2618_v55 = vld [vmem:[%s3964_s1 + $0x1b0] ss:$8 sps:$4 sm:$0xff]   ;;  %v2621_v57 = vld [vmem:[%s3964_s1 + $0x1a4] ss:$8 sps:$4 sm:$0xff]   ;;  %v2623_v58 = vld [vmem:[%s3964_s1 + $0xa0] ss:$8 sps:$4 sm:$0xff]  }
  0x14   :  { %1867 = vmatpush1.bf16.msra.mxu1 %v2570_v19  ;;  %1827 = vmatprep.subr.bf16.mxu0 %v2571_v20  ;;  %v2624_v59 = vld [vmem:[%s3964_s1 + $0x1a0] ss:$8 sps:$4 sm:$0xff]   ;;  %v2625_v60 = vld [vmem:[%s3964_s1 + $0x94] ss:$8 sps:$4 sm:$0xff]   ;;  %v2629_v62 = vld [vmem:[%s3964_s1 + $0x90] ss:$8 sps:$4 sm:$0xff]  }
  0x15   :  { %1868 = vmatprep.subr.bf16.mxu1 %v2573_v21  ;;  %1849 = vmatprep.mubr.bf16.mxu0 %v2234_v47  ;;  %v2627_v61 = vld [vmem:[%s3964_s1 + $0x194] ss:$8 sps:$4 sm:$0xff]   ;;  %v2630_v63 = vld [vmem:[%s3964_s1 + $0x190] ss:$8 sps:$4 sm:$0xff]   ;;  %v2631_v0 = vld [vmem:[%s3964_s1 + $0x84] ss:$8 sps:$4 sm:$0xff]  }
  0x16   :  { %1890 = vmatprep.mubr.bf16.mxu1 %v2236_v51  ;;  %v2633_v1 = vld [vmem:[%s3964_s1 + $0x184] ss:$8 sps:$4 sm:$0xff]   ;;  %v2635_v2 = vld [vmem:[%s3964_s1 + $0x80] ss:$8 sps:$4 sm:$0xff]   ;;  %v2643_v4 = vld [vmem:[%s3964_s1 + $0x274] ss:$8 sps:$4 sm:$0xff]  }
  0x17   :  { %1828 = vmatpush1.bf16.msra.mxu0 %v2575_v22  ;;  %v2636_v3 = vld [vmem:[%s3964_s1 + $0x180] ss:$8 sps:$4 sm:$0xff]   ;;  %v2646_v5 = vld [vmem:[%s3964_s1 + $0x374] ss:$8 sps:$4 sm:$0xff]   ;;  %v2641_v8 = vld [vmem:[%s3964_s1 + $0x270] ss:$8 sps:$4 sm:$0xff]  }
  0x18   :  { %1869 = vmatpush1.bf16.msra.mxu1 %v2576_v23  ;;  %1829 = vmatprep.subr.bf16.mxu0 %v2577_v24  ;;  %v2644_v9 = vld [vmem:[%s3964_s1 + $0x370] ss:$8 sps:$4 sm:$0xff]   ;;  %v2649_v10 = vld [vmem:[%s3964_s1 + $0x264] ss:$8 sps:$4 sm:$0xff]   ;;  %v2647_v12 = vld [vmem:[%s3964_s1 + $0x260] ss:$8 sps:$4 sm:$0xff]  }
  0x19   :  { %1870 = vmatprep.subr.bf16.mxu1 %v2579_v25  ;;  %v2652_v11 = vld [vmem:[%s3964_s1 + $0x364] ss:$8 sps:$4 sm:$0xff]   ;;  %v2650_v13 = vld [vmem:[%s3964_s1 + $0x360] ss:$8 sps:$4 sm:$0xff]   ;;  %v2655_v14 = vld [vmem:[%s3964_s1 + $0x254] ss:$8 sps:$4 sm:$0xff]  }
  0x1a   :  { %v2658_v15 = vld [vmem:[%s3964_s1 + $0x354] ss:$8 sps:$4 sm:$0xff]   ;;  %v2653_v16 = vld [vmem:[%s3964_s1 + $0x250] ss:$8 sps:$4 sm:$0xff]   ;;  %v2661_v18 = vld [vmem:[%s3964_s1 + $0x244] ss:$8 sps:$4 sm:$0xff]  }
  0x1b   :  { %1830 = vmatpush1.bf16.msra.mxu0 %v2581_v26  ;;  %v2656_v17 = vld [vmem:[%s3964_s1 + $0x350] ss:$8 sps:$4 sm:$0xff]   ;;  %v2664_v19 = vld [vmem:[%s3964_s1 + $0x344] ss:$8 sps:$4 sm:$0xff]   ;;  %v2659_v20 = vld [vmem:[%s3964_s1 + $0x240] ss:$8 sps:$4 sm:$0xff]  }
  0x1c   :  { %1871 = vmatpush1.bf16.msra.mxu1 %v2582_v27  ;;  %1831 = vmatprep.subr.bf16.mxu0 %v2583_v28  ;;  %v2662_v21 = vld [vmem:[%s3964_s1 + $0x340] ss:$8 sps:$4 sm:$0xff]   ;;  %v2667_v22 = vld [vmem:[%s3964_s1 + $0x234] ss:$8 sps:$4 sm:$0xff]   ;;  %v2665_v24 = vld [vmem:[%s3964_s1 + $0x230] ss:$8 sps:$4 sm:$0xff]  }
  0x1d   :  { %1872 = vmatprep.subr.bf16.mxu1 %v2585_v29  ;;  %v2670_v23 = vld [vmem:[%s3964_s1 + $0x334] ss:$8 sps:$4 sm:$0xff]   ;;  %v2668_v25 = vld [vmem:[%s3964_s1 + $0x330] ss:$8 sps:$4 sm:$0xff]   ;;  %v2673_v26 = vld [vmem:[%s3964_s1 + $0x224] ss:$8 sps:$4 sm:$0xff]  }
  0x1e   :  { %v2676_v27 = vld [vmem:[%s3964_s1 + $0x324] ss:$8 sps:$4 sm:$0xff]   ;;  %v2671_v28 = vld [vmem:[%s3964_s1 + $0x220] ss:$8 sps:$4 sm:$0xff]   ;;  %v2706_v51 = vld [vmem:[%s3964_s1 + $0x3d4] ss:$8 sps:$4 sm:$0xff]  }
  0x1f   :  { %1832 = vmatpush1.bf16.msra.mxu0 %v2587_v30  ;;  %v2674_v29 = vld [vmem:[%s3964_s1 + $0x320] ss:$8 sps:$4 sm:$0xff]   ;;  %v2679_v30 = vld [vmem:[%s3964_s1 + $0x214] ss:$8 sps:$4 sm:$0xff]   ;;  %v2697_v46 = vld [vmem:[%s3964_s1 + $0x2e4] ss:$8 sps:$4 sm:$0xff]  }
  0x20   :  { %1873 = vmatpush1.bf16.msra.mxu1 %v2588_v31  ;;  %1833 = vmatprep.subr.bf16.mxu0 %v2589_v32  ;;  %v2682_v31 = vld [vmem:[%s3964_s1 + $0x314] ss:$8 sps:$4 sm:$0xff]   ;;  %v2700_v47 = vld [vmem:[%s3964_s1 + $0x3e4] ss:$8 sps:$4 sm:$0xff]   ;;  %v2695_v48 = vld [vmem:[%s3964_s1 + $0x2e0] ss:$8 sps:$4 sm:$0xff]  }
  0x21   :  { %1874 = vmatprep.subr.bf16.mxu1 %v2591_v33  ;;  %v3295_v32 = vld [vmem:[%s3965_s0 + $0x10] sm:$0xff] }
  0x22   :  { %v2677_v33 = vld [vmem:[%s3964_s1 + $0x210] ss:$8 sps:$4 sm:$0xff]  }
  0x23   :  { %1834 = vmatpush2.bf16.msra.mxu0 %v2593_v34  ;;  %v2680_v34 = vld [vmem:[%s3964_s1 + $0x310] ss:$8 sps:$4 sm:$0xff]  }
  0x24   :  { %1875 = vmatpush2.bf16.msra.mxu1 %v2594_v35  ;;  %1835 = vmatprep.subr.bf16.mxu0 %v2595_v36  ;;  %v2238_v35 = vcombine.high %v3295_v32, %v3295_v32  ;;  %v3308_v36 = vld [vmem:[%s3965_s0 + $0x18] sm:$0xff] }
  0x25   :  { %1876 = vmatprep.subr.bf16.mxu1 %v2597_v37  ;;  %v2685_v37 = vld [vmem:[%s3964_s1 + $0x204] ss:$8 sps:$4 sm:$0xff]  }
  0x27   :  { %1836 = vmatpush2.bf16.msra.mxu0 %v2599_v38  ;;  %v2240_v38 = vcombine.high %v3308_v36, %v3308_v36 }
  0x28   :  { %1877 = vmatpush2.bf16.msra.mxu1 %v2600_v39  ;;  %1837 = vmatprep.subr.bf16.mxu0 %v2601_v40  ;;  %v2688_v39 = vld [vmem:[%s3964_s1 + $0x304] ss:$8 sps:$4 sm:$0xff]   ;;  %v2683_v40 = vld [vmem:[%s3964_s1 + $0x200] ss:$8 sps:$4 sm:$0xff]  }
  0x29   :  { %1878 = vmatprep.subr.bf16.mxu1 %v2603_v41  ;;  %v2686_v41 = vld [vmem:[%s3964_s1 + $0x300] ss:$8 sps:$4 sm:$0xff]  }
  0x2b   :  { %1838 = vmatpush2.bf16.msra.mxu0 %v2605_v42  ;;  %v2691_v42 = vld [vmem:[%s3964_s1 + $0x2f4] ss:$8 sps:$4 sm:$0xff]  }
  0x2c   :  { %1879 = vmatpush2.bf16.msra.mxu1 %v2606_v43  ;;  %1839 = vmatprep.subr.bf16.mxu0 %v2607_v44  ;;  %v2694_v43 = vld [vmem:[%s3964_s1 + $0x3f4] ss:$8 sps:$4 sm:$0xff]   ;;  %v2689_v44 = vld [vmem:[%s3964_s1 + $0x2f0] ss:$8 sps:$4 sm:$0xff]  }
  0x2d   :  { %1880 = vmatprep.subr.bf16.mxu1 %v2609_v45  ;;  %v2692_v45 = vld [vmem:[%s3964_s1 + $0x3f0] ss:$8 sps:$4 sm:$0xff]  }
  0x2f   :  { %1840 = vmatpush2.bf16.msra.mxu0 %v2611_v49  ;;  %v2698_v49 = vld [vmem:[%s3964_s1 + $0x3e0] ss:$8 sps:$4 sm:$0xff]  }
  0x30   :  { %1881 = vmatpush2.bf16.msra.mxu1 %v2612_v50  ;;  %1841 = vmatprep.subr.bf16.mxu0 %v2613_v52  ;;  %v2703_v50 = vld [vmem:[%s3964_s1 + $0x2d4] ss:$8 sps:$4 sm:$0xff]   ;;  %v2701_v52 = vld [vmem:[%s3964_s1 + $0x2d0] ss:$8 sps:$4 sm:$0xff]  }
  0x31   :  { %1882 = vmatprep.subr.bf16.mxu1 %v2615_v53  ;;  %v2704_v53 = vld [vmem:[%s3964_s1 + $0x3d0] ss:$8 sps:$4 sm:$0xff]  }
  0x33   :  { %1842 = vmatpush2.bf16.msra.mxu0 %v2617_v54  ;;  %v2709_v54 = vld [vmem:[%s3964_s1 + $0x2c4] ss:$8 sps:$4 sm:$0xff]  }
  0x34   :  { %1883 = vmatpush2.bf16.msra.mxu1 %v2618_v55  ;;  %1843 = vmatprep.subr.bf16.mxu0 %v2619_v56  ;;  %v2712_v55 = vld [vmem:[%s3964_s1 + $0x3c4] ss:$8 sps:$4 sm:$0xff]   ;;  %v2707_v56 = vld [vmem:[%s3964_s1 + $0x2c0] ss:$8 sps:$4 sm:$0xff]  }
  0x35   :  { %1884 = vmatprep.subr.bf16.mxu1 %v2621_v57  ;;  %v2710_v57 = vld [vmem:[%s3964_s1 + $0x3c0] ss:$8 sps:$4 sm:$0xff]  }
  0x37   :  { %1844 = vmatpush2.bf16.msra.mxu0 %v2623_v58  ;;  %v2715_v58 = vld [vmem:[%s3964_s1 + $0x2b4] ss:$8 sps:$4 sm:$0xff]  }
  0x38   :  { %1885 = vmatpush2.bf16.msra.mxu1 %v2624_v59  ;;  %1845 = vmatprep.subr.bf16.mxu0 %v2625_v60  ;;  %v2718_v59 = vld [vmem:[%s3964_s1 + $0x3b4] ss:$8 sps:$4 sm:$0xff]   ;;  %v2713_v60 = vld [vmem:[%s3964_s1 + $0x2b0] ss:$8 sps:$4 sm:$0xff]  }
  0x39   :  { %1886 = vmatprep.subr.bf16.mxu1 %v2627_v61  ;;  %v2716_v61 = vld [vmem:[%s3964_s1 + $0x3b0] ss:$8 sps:$4 sm:$0xff]  }
  0x3b   :  { %1846 = vmatpush2.bf16.msra.mxu0 %v2629_v62  ;;  %v2721_v62 = vld [vmem:[%s3964_s1 + $0x2a4] ss:$8 sps:$4 sm:$0xff]  }
  0x3c   :  { %1887 = vmatpush2.bf16.msra.mxu1 %v2630_v63  ;;  %1847 = vmatprep.subr.bf16.mxu0 %v2631_v0  ;;  %v2724_v63 = vld [vmem:[%s3964_s1 + $0x3a4] ss:$8 sps:$4 sm:$0xff]   ;;  %v2719_v0 = vld [vmem:[%s3964_s1 + $0x2a0] ss:$8 sps:$4 sm:$0xff]  }
  0x3d   :  { %1888 = vmatprep.subr.bf16.mxu1 %v2633_v1  ;;  %v2722_v1 = vld [vmem:[%s3964_s1 + $0x3a0] ss:$8 sps:$4 sm:$0xff]  }
  0x3f   :  { %1848 = vmatpush2.bf16.msra.mxu0 %v2635_v2  ;;  %v2727_v2 = vld [vmem:[%s3964_s1 + $0x294] ss:$8 sps:$4 sm:$0xff]  }
  0x40   :  { %1889 = vmatpush2.bf16.msra.mxu1 %v2636_v3  ;;  %1899 = vmatprep.subr.bf16.mxu0 %v2643_v4  ;;  %v2730_v3 = vld [vmem:[%s3964_s1 + $0x394] ss:$8 sps:$4 sm:$0xff]   ;;  %v2725_v4 = vld [vmem:[%s3964_s1 + $0x290] ss:$8 sps:$4 sm:$0xff]  }
  0x41   :  { %1940 = vmatprep.subr.bf16.mxu1 %v2646_v5  ;;  %v2728_v5 = vld [vmem:[%s3964_s1 + $0x390] ss:$8 sps:$4 sm:$0xff]  }
  0x42   :  { %1850 = vmatmul.mubr.bf16.vlgmr.msra.gmra.mxu0 %v2233_v6  ;;  %v2733_v6 = vld [vmem:[%s3964_s1 + $0x284] ss:$8 sps:$4 sm:$0xff]  }
  0x43   :  { %1891 = vmatmul.mubr.bf16.vlgmr.msra.gmra.mxu1 %v2235_v7  ;;  %1900 = vmatpush1.bf16.msra.mxu0 %v2641_v8  ;;  %v2736_v7 = vld [vmem:[%s3964_s1 + $0x384] ss:$8 sps:$4 sm:$0xff]   ;;  %v2731_v8 = vld [vmem:[%s3964_s1 + $0x280] ss:$8 sps:$4 sm:$0xff]  }
  0x44   :  { %1941 = vmatpush1.bf16.msra.mxu1 %v2644_v9  ;;  %1901 = vmatprep.subr.bf16.mxu0 %v2649_v10  ;;  %v2734_v9 = vld [vmem:[%s3964_s1 + $0x380] ss:$8 sps:$4 sm:$0xff]   ;;  %v2741_v10 = vld [vmem:[%s3964_s1 + $0x474] ss:$8 sps:$4 sm:$0xff]  }
  0x45   :  { %1942 = vmatprep.subr.bf16.mxu1 %v2652_v11  ;;  %1931 = vmatprep.mubr.bf16.mxu0 %v2238_v35  ;;  %v2746_v11 = vld [vmem:[%s3964_s1 + $0x574] ss:$8 sps:$4 sm:$0xff]   ;;  %v2768_v35 = vld [vmem:[%s3964_s1 + $0x530] ss:$8 sps:$4 sm:$0xff]  }
  0x46   :  { %1972 = vmatprep.mubr.bf16.mxu1 %v2240_v38  ;;  %v2771_v38 = vld [vmem:[%s3964_s1 + $0x420] ss:$8 sps:$4 sm:$0xff]  }
  0x47   :  { %1902 = vmatpush1.bf16.msra.mxu0 %v2647_v12  ;;  %v2237_v12 = vcombine.low %v3295_v32, %v3295_v32  ;;  %v2767_v32 = vld [vmem:[%s3964_s1 + $0x434] ss:$8 sps:$4 sm:$0xff]  }
  0x48   :  { %1943 = vmatpush1.bf16.msra.mxu1 %v2650_v13  ;;  %1903 = vmatprep.subr.bf16.mxu0 %v2655_v14  ;;  %v2739_v13 = vld [vmem:[%s3964_s1 + $0x470] ss:$8 sps:$4 sm:$0xff]   ;;  %v2239_v14 = vcombine.low %v3308_v36, %v3308_v36  ;;  %v2773_v36 = vld [vmem:[%s3964_s1 + $0x424] ss:$8 sps:$4 sm:$0xff]  }
  0x49   :  { %1944 = vmatprep.subr.bf16.mxu1 %v2658_v15  ;;  %v2744_v15 = vld [vmem:[%s3964_s1 + $0x570] ss:$8 sps:$4 sm:$0xff]  }
  0x4b   :  { %1904 = vmatpush1.bf16.msra.mxu0 %v2653_v16  ;;  %v2749_v16 = vld [vmem:[%s3964_s1 + $0x464] ss:$8 sps:$4 sm:$0xff]  }
  0x4c   :  { %1945 = vmatpush1.bf16.msra.mxu1 %v2656_v17  ;;  %1905 = vmatprep.subr.bf16.mxu0 %v2661_v18  ;;  %v2752_v17 = vld [vmem:[%s3964_s1 + $0x564] ss:$8 sps:$4 sm:$0xff]  }
  0x4d   :  { %1946 = vmatprep.subr.bf16.mxu1 %v2664_v19  ;;  %v3445_v18 = vld [vmem:[%s3965_s0 + $0x20] sm:$0xff] }
  0x4e   :  { %v2242_v19 = vcombine.high %v3445_v18, %v3445_v18 }
  0x4f   :  { %1906 = vmatpush1.bf16.msra.mxu0 %v2659_v20  ;;  %v3452_v20 = vld [vmem:[%s3965_s0 + $0x28] sm:$0xff] }
  0x50   :  { %1947 = vmatpush1.bf16.msra.mxu1 %v2662_v21  ;;  %1907 = vmatprep.subr.bf16.mxu0 %v2667_v22  ;;  %v2747_v21 = vld [vmem:[%s3964_s1 + $0x460] ss:$8 sps:$4 sm:$0xff]  }
  0x51   :  { %1948 = vmatprep.subr.bf16.mxu1 %v2670_v23  ;;  %v2750_v22 = vld [vmem:[%s3964_s1 + $0x560] ss:$8 sps:$4 sm:$0xff]   ;;  %v2244_v23 = vcombine.high %v3452_v20, %v3452_v20 }
  0x53   :  { %1908 = vmatpush1.bf16.msra.mxu0 %v2665_v24  ;;  %v2755_v24 = vld [vmem:[%s3964_s1 + $0x454] ss:$8 sps:$4 sm:$0xff]  }
  0x54   :  { %1949 = vmatpush1.bf16.msra.mxu1 %v2668_v25  ;;  %1909 = vmatprep.subr.bf16.mxu0 %v2673_v26  ;;  %v2758_v25 = vld [vmem:[%s3964_s1 + $0x554] ss:$8 sps:$4 sm:$0xff]   ;;  %v2753_v26 = vld [vmem:[%s3964_s1 + $0x450] ss:$8 sps:$4 sm:$0xff]  }
  0x55   :  { %1950 = vmatprep.subr.bf16.mxu1 %v2676_v27  ;;  %v2756_v27 = vld [vmem:[%s3964_s1 + $0x550] ss:$8 sps:$4 sm:$0xff]  }
  0x57   :  { %1910 = vmatpush1.bf16.msra.mxu0 %v2671_v28  ;;  %v2761_v28 = vld [vmem:[%s3964_s1 + $0x444] ss:$8 sps:$4 sm:$0xff]  }
  0x58   :  { %1951 = vmatpush1.bf16.msra.mxu1 %v2674_v29  ;;  %1911 = vmatprep.subr.bf16.mxu0 %v2679_v30  ;;  %v2764_v29 = vld [vmem:[%s3964_s1 + $0x544] ss:$8 sps:$4 sm:$0xff]   ;;  %v2759_v30 = vld [vmem:[%s3964_s1 + $0x440] ss:$8 sps:$4 sm:$0xff]  }
  0x59   :  { %1952 = vmatprep.subr.bf16.mxu1 %v2682_v31  ;;  %v2762_v31 = vld [vmem:[%s3964_s1 + $0x540] ss:$8 sps:$4 sm:$0xff]  }
  0x5b   :  { %1912 = vmatpush1.bf16.msra.mxu0 %v2677_v33  ;;  %v2770_v33 = vld [vmem:[%s3964_s1 + $0x534] ss:$8 sps:$4 sm:$0xff]  }
  0x5c   :  { %1953 = vmatpush1.bf16.msra.mxu1 %v2680_v34  ;;  %1913 = vmatprep.subr.bf16.mxu0 %v2685_v37  ;;  %v2765_v34 = vld [vmem:[%s3964_s1 + $0x430] ss:$8 sps:$4 sm:$0xff]   ;;  %v2776_v37 = vld [vmem:[%s3964_s1 + $0x524] ss:$8 sps:$4 sm:$0xff]  }
  0x5d   :  { %1954 = vmatprep.subr.bf16.mxu1 %v2688_v39  ;;  %v2774_v39 = vld [vmem:[%s3964_s1 + $0x520] ss:$8 sps:$4 sm:$0xff]  }
  0x5f   :  { %1914 = vmatpush1.bf16.msra.mxu0 %v2683_v40  ;;  %v2779_v40 = vld [vmem:[%s3964_s1 + $0x414] ss:$8 sps:$4 sm:$0xff]  }
  0x60   :  { %1955 = vmatpush1.bf16.msra.mxu1 %v2686_v41  ;;  %1915 = vmatprep.subr.bf16.mxu0 %v2691_v42  ;;  %v2782_v41 = vld [vmem:[%s3964_s1 + $0x514] ss:$8 sps:$4 sm:$0xff]   ;;  %v2777_v42 = vld [vmem:[%s3964_s1 + $0x410] ss:$8 sps:$4 sm:$0xff]  }
  0x61   :  { %1956 = vmatprep.subr.bf16.mxu1 %v2694_v43  ;;  %v2780_v43 = vld [vmem:[%s3964_s1 + $0x510] ss:$8 sps:$4 sm:$0xff]  }
  0x63   :  { %1916 = vmatpush2.bf16.msra.mxu0 %v2689_v44  ;;  %v2785_v44 = vld [vmem:[%s3964_s1 + $0x404] ss:$8 sps:$4 sm:$0xff]  }
  0x64   :  { %1957 = vmatpush2.bf16.msra.mxu1 %v2692_v45  ;;  %1917 = vmatprep.subr.bf16.mxu0 %v2697_v46  ;;  %v2788_v45 = vld [vmem:[%s3964_s1 + $0x504] ss:$8 sps:$4 sm:$0xff]   ;;  %v2783_v46 = vld [vmem:[%s3964_s1 + $0x400] ss:$8 sps:$4 sm:$0xff]  }
  0x65   :  { %1958 = vmatprep.subr.bf16.mxu1 %v2700_v47  ;;  %v2786_v47 = vld [vmem:[%s3964_s1 + $0x500] ss:$8 sps:$4 sm:$0xff]  }
  0x67   :  { %1918 = vmatpush2.bf16.msra.mxu0 %v2695_v48  ;;  %v2791_v48 = vld [vmem:[%s3964_s1 + $0x4f4] ss:$8 sps:$4 sm:$0xff]  }
  0x68   :  { %1959 = vmatpush2.bf16.msra.mxu1 %v2698_v49  ;;  %1919 = vmatprep.subr.bf16.mxu0 %v2703_v50  ;;  %v2794_v49 = vld [vmem:[%s3964_s1 + $0x5f4] ss:$8 sps:$4 sm:$0xff]   ;;  %v2789_v50 = vld [vmem:[%s3964_s1 + $0x4f0] ss:$8 sps:$4 sm:$0xff]  }
  0x69   :  { %1960 = vmatprep.subr.bf16.mxu1 %v2706_v51  ;;  %v2792_v51 = vld [vmem:[%s3964_s1 + $0x5f0] ss:$8 sps:$4 sm:$0xff]  }
  0x6b   :  { %1920 = vmatpush2.bf16.msra.mxu0 %v2701_v52  ;;  %v2797_v52 = vld [vmem:[%s3964_s1 + $0x4e4] ss:$8 sps:$4 sm:$0xff]  }
  0x6c   :  { %1961 = vmatpush2.bf16.msra.mxu1 %v2704_v53  ;;  %1921 = vmatprep.subr.bf16.mxu0 %v2709_v54  ;;  %v2800_v53 = vld [vmem:[%s3964_s1 + $0x5e4] ss:$8 sps:$4 sm:$0xff]   ;;  %v2795_v54 = vld [vmem:[%s3964_s1 + $0x4e0] ss:$8 sps:$4 sm:$0xff]  }
  0x6d   :  { %1962 = vmatprep.subr.bf16.mxu1 %v2712_v55  ;;  %v2798_v55 = vld [vmem:[%s3964_s1 + $0x5e0] ss:$8 sps:$4 sm:$0xff]  }
  0x6f   :  { %1922 = vmatpush2.bf16.msra.mxu0 %v2707_v56  ;;  %v2803_v56 = vld [vmem:[%s3964_s1 + $0x4d4] ss:$8 sps:$4 sm:$0xff]  }
  0x70   :  { %1963 = vmatpush2.bf16.msra.mxu1 %v2710_v57  ;;  %1923 = vmatprep.subr.bf16.mxu0 %v2715_v58  ;;  %v2806_v57 = vld [vmem:[%s3964_s1 + $0x5d4] ss:$8 sps:$4 sm:$0xff]   ;;  %v2801_v58 = vld [vmem:[%s3964_s1 + $0x4d0] ss:$8 sps:$4 sm:$0xff]  }
  0x71   :  { %1964 = vmatprep.subr.bf16.mxu1 %v2718_v59  ;;  %v2804_v59 = vld [vmem:[%s3964_s1 + $0x5d0] ss:$8 sps:$4 sm:$0xff]  }
  0x73   :  { %1924 = vmatpush2.bf16.msra.mxu0 %v2713_v60  ;;  %v2809_v60 = vld [vmem:[%s3964_s1 + $0x4c4] ss:$8 sps:$4 sm:$0xff]  }
  0x74   :  { %1965 = vmatpush2.bf16.msra.mxu1 %v2716_v61  ;;  %1925 = vmatprep.subr.bf16.mxu0 %v2721_v62  ;;  %v2812_v61 = vld [vmem:[%s3964_s1 + $0x5c4] ss:$8 sps:$4 sm:$0xff]   ;;  %v2807_v62 = vld [vmem:[%s3964_s1 + $0x4c0] ss:$8 sps:$4 sm:$0xff]  }
  0x75   :  { %1966 = vmatprep.subr.bf16.mxu1 %v2724_v63  ;;  %v2810_v63 = vld [vmem:[%s3964_s1 + $0x5c0] ss:$8 sps:$4 sm:$0xff]  }
  0x77   :  { %1926 = vmatpush2.bf16.msra.mxu0 %v2719_v0  ;;  %v2815_v0 = vld [vmem:[%s3964_s1 + $0x4b4] ss:$8 sps:$4 sm:$0xff]  }
  0x78   :  { %1967 = vmatpush2.bf16.msra.mxu1 %v2722_v1  ;;  %1927 = vmatprep.subr.bf16.mxu0 %v2727_v2  ;;  %v2818_v1 = vld [vmem:[%s3964_s1 + $0x5b4] ss:$8 sps:$4 sm:$0xff]   ;;  %v2813_v2 = vld [vmem:[%s3964_s1 + $0x4b0] ss:$8 sps:$4 sm:$0xff]  }
  0x79   :  { %1968 = vmatprep.subr.bf16.mxu1 %v2730_v3  ;;  %v2816_v3 = vld [vmem:[%s3964_s1 + $0x5b0] ss:$8 sps:$4 sm:$0xff]  }
  0x7b   :  { %1928 = vmatpush2.bf16.msra.mxu0 %v2725_v4  ;;  %v2821_v4 = vld [vmem:[%s3964_s1 + $0x4a4] ss:$8 sps:$4 sm:$0xff]  }
  0x7c   :  { %1969 = vmatpush2.bf16.msra.mxu1 %v2728_v5  ;;  %1929 = vmatprep.subr.bf16.mxu0 %v2733_v6  ;;  %v2824_v5 = vld [vmem:[%s3964_s1 + $0x5a4] ss:$8 sps:$4 sm:$0xff]   ;;  %v2819_v6 = vld [vmem:[%s3964_s1 + $0x4a0] ss:$8 sps:$4 sm:$0xff]  }
  0x7d   :  { %1970 = vmatprep.subr.bf16.mxu1 %v2736_v7  ;;  %v2822_v7 = vld [vmem:[%s3964_s1 + $0x5a0] ss:$8 sps:$4 sm:$0xff]  }
  0x7f   :  { %1930 = vmatpush2.bf16.msra.mxu0 %v2731_v8  ;;  %v2827_v8 = vld [vmem:[%s3964_s1 + $0x494] ss:$8 sps:$4 sm:$0xff]  }
  0x80   :  { %1971 = vmatpush2.bf16.msra.mxu1 %v2734_v9  ;;  %1981 = vmatprep.subr.bf16.mxu0 %v2741_v10  ;;  %v2830_v9 = vld [vmem:[%s3964_s1 + $0x594] ss:$8 sps:$4 sm:$0xff]   ;;  %v2825_v10 = vld [vmem:[%s3964_s1 + $0x490] ss:$8 sps:$4 sm:$0xff]  }
  0x81   :  { %2022 = vmatprep.subr.bf16.mxu1 %v2746_v11  ;;  %v2828_v11 = vld [vmem:[%s3964_s1 + $0x590] ss:$8 sps:$4 sm:$0xff]  }
  0x82   :  { %1932 = vmatmul.mubr.bf16.vlgmr.msra.gmra.mxu0 %v2237_v12  ;;  %v2833_v12 = vld [vmem:[%s3964_s1 + $0x484] ss:$8 sps:$4 sm:$0xff]  }
  0x83   :  { %1973 = vmatmul.mubr.bf16.vlgmr.msra.gmra.mxu1 %v2239_v14  ;;  %1982 = vmatpush1.bf16.msra.mxu0 %v2739_v13  ;;  %v2836_v13 = vld [vmem:[%s3964_s1 + $0x584] ss:$8 sps:$4 sm:$0xff]   ;;  %v2831_v14 = vld [vmem:[%s3964_s1 + $0x480] ss:$8 sps:$4 sm:$0xff]  }
  0x84   :  { %2023 = vmatpush1.bf16.msra.mxu1 %v2744_v15  ;;  %1983 = vmatprep.subr.bf16.mxu0 %v2749_v16  ;;  %v2834_v15 = vld [vmem:[%s3964_s1 + $0x580] ss:$8 sps:$4 sm:$0xff]   ;;  %v2841_v16 = vld [vmem:[%s3964_s1 + $0x674] ss:$8 sps:$4 sm:$0xff]  }
  0x85   :  { %2024 = vmatprep.subr.bf16.mxu1 %v2752_v17  ;;  %2013 = vmatprep.mubr.bf16.mxu0 %v2242_v19  ;;  %v2846_v17 = vld [vmem:[%s3964_s1 + $0x774] ss:$8 sps:$4 sm:$0xff]   ;;  %v2839_v19 = vld [vmem:[%s3964_s1 + $0x670] ss:$8 sps:$4 sm:$0xff]  }
  0x86   :  { %2054 = vmatprep.mubr.bf16.mxu1 %v2244_v23  ;;  %v2243_v23 = vcombine.low %v3452_v20, %v3452_v20 }
  0x87   :  { %1984 = vmatpush1.bf16.msra.mxu0 %v2747_v21  ;;  %v2844_v21 = vld [vmem:[%s3964_s1 + $0x770] ss:$8 sps:$4 sm:$0xff]  }
  0x88   :  { %2025 = vmatpush1.bf16.msra.mxu1 %v2750_v22  ;;  %1985 = vmatprep.subr.bf16.mxu0 %v2755_v24  ;;  %v2241_v22 = vcombine.low %v3445_v18, %v3445_v18  ;;  %v3649_v24 = vld [vmem:[%s3965_s0 + $0x30] sm:$0xff]  ;;  %v2852_v18 = vld [vmem:[%s3964_s1 + $0x764] ss:$8 sps:$4 sm:$0xff]  }
  0x89   :  { %2026 = vmatprep.subr.bf16.mxu1 %v2758_v25  ;;  %v3654_v25 = vld [vmem:[%s3965_s0 + $0x38] sm:$0xff]  ;;  %v2246_v20 = vcombine.high %v3649_v24, %v3649_v24 }
  0x8b   :  { %1986 = vmatpush1.bf16.msra.mxu0 %v2753_v26  ;;  %v2849_v26 = vld [vmem:[%s3964_s1 + $0x664] ss:$8 sps:$4 sm:$0xff]  }
  0x8c   :  { %2027 = vmatpush1.bf16.msra.mxu1 %v2756_v27  ;;  %1987 = vmatprep.subr.bf16.mxu0 %v2761_v28  ;;  %v2248_v27 = vcombine.high %v3654_v25, %v3654_v25  ;;  %v2847_v28 = vld [vmem:[%s3964_s1 + $0x660] ss:$8 sps:$4 sm:$0xff]  }
  0x8d   :  { %2028 = vmatprep.subr.bf16.mxu1 %v2764_v29  ;;  %v2850_v29 = vld [vmem:[%s3964_s1 + $0x760] ss:$8 sps:$4 sm:$0xff]  }
  0x8f   :  { %1988 = vmatpush1.bf16.msra.mxu0 %v2759_v30  ;;  %v2855_v30 = vld [vmem:[%s3964_s1 + $0x654] ss:$8 sps:$4 sm:$0xff]  }
  0x90   :  { %2029 = vmatpush1.bf16.msra.mxu1 %v2762_v31  ;;  %1989 = vmatprep.subr.bf16.mxu0 %v2767_v32  ;;  %v2858_v31 = vld [vmem:[%s3964_s1 + $0x754] ss:$8 sps:$4 sm:$0xff]   ;;  %v2853_v32 = vld [vmem:[%s3964_s1 + $0x650] ss:$8 sps:$4 sm:$0xff]  }
  0x91   :  { %2030 = vmatprep.subr.bf16.mxu1 %v2770_v33  ;;  %v2856_v33 = vld [vmem:[%s3964_s1 + $0x750] ss:$8 sps:$4 sm:$0xff]  }
  0x93   :  { %1990 = vmatpush1.bf16.msra.mxu0 %v2765_v34  ;;  %v2861_v34 = vld [vmem:[%s3964_s1 + $0x644] ss:$8 sps:$4 sm:$0xff]  }
  0x94   :  { %2031 = vmatpush1.bf16.msra.mxu1 %v2768_v35  ;;  %1991 = vmatprep.subr.bf16.mxu0 %v2773_v36  ;;  %v2864_v35 = vld [vmem:[%s3964_s1 + $0x744] ss:$8 sps:$4 sm:$0xff]   ;;  %v2859_v36 = vld [vmem:[%s3964_s1 + $0x640] ss:$8 sps:$4 sm:$0xff]  }
  0x95   :  { %2032 = vmatprep.subr.bf16.mxu1 %v2776_v37  ;;  %v2862_v37 = vld [vmem:[%s3964_s1 + $0x740] ss:$8 sps:$4 sm:$0xff]  }
  0x97   :  { %1992 = vmatpush1.bf16.msra.mxu0 %v2771_v38  ;;  %v2867_v38 = vld [vmem:[%s3964_s1 + $0x634] ss:$8 sps:$4 sm:$0xff]  }
  0x98   :  { %2033 = vmatpush1.bf16.msra.mxu1 %v2774_v39  ;;  %1993 = vmatprep.subr.bf16.mxu0 %v2779_v40  ;;  %v2870_v39 = vld [vmem:[%s3964_s1 + $0x734] ss:$8 sps:$4 sm:$0xff]   ;;  %v2865_v40 = vld [vmem:[%s3964_s1 + $0x630] ss:$8 sps:$4 sm:$0xff]  }
  0x99   :  { %2034 = vmatprep.subr.bf16.mxu1 %v2782_v41  ;;  %v2868_v41 = vld [vmem:[%s3964_s1 + $0x730] ss:$8 sps:$4 sm:$0xff]  }
  0x9b   :  { %1994 = vmatpush1.bf16.msra.mxu0 %v2777_v42  ;;  %v2873_v42 = vld [vmem:[%s3964_s1 + $0x624] ss:$8 sps:$4 sm:$0xff]  }
  0x9c   :  { %2035 = vmatpush1.bf16.msra.mxu1 %v2780_v43  ;;  %1995 = vmatprep.subr.bf16.mxu0 %v2785_v44  ;;  %v2876_v43 = vld [vmem:[%s3964_s1 + $0x724] ss:$8 sps:$4 sm:$0xff]   ;;  %v2871_v44 = vld [vmem:[%s3964_s1 + $0x620] ss:$8 sps:$4 sm:$0xff]  }
  0x9d   :  { %2036 = vmatprep.subr.bf16.mxu1 %v2788_v45  ;;  %v2874_v45 = vld [vmem:[%s3964_s1 + $0x720] ss:$8 sps:$4 sm:$0xff]  }
  0x9f   :  { %1996 = vmatpush1.bf16.msra.mxu0 %v2783_v46  ;;  %v2879_v46 = vld [vmem:[%s3964_s1 + $0x614] ss:$8 sps:$4 sm:$0xff]  }
  0xa0   :  { %2037 = vmatpush1.bf16.msra.mxu1 %v2786_v47  ;;  %1997 = vmatprep.subr.bf16.mxu0 %v2791_v48  ;;  %v2882_v47 = vld [vmem:[%s3964_s1 + $0x714] ss:$8 sps:$4 sm:$0xff]   ;;  %v2877_v48 = vld [vmem:[%s3964_s1 + $0x610] ss:$8 sps:$4 sm:$0xff]  }
  0xa1   :  { %2038 = vmatprep.subr.bf16.mxu1 %v2794_v49  ;;  %v2880_v49 = vld [vmem:[%s3964_s1 + $0x710] ss:$8 sps:$4 sm:$0xff]  }
  0xa3   :  { %1998 = vmatpush2.bf16.msra.mxu0 %v2789_v50  ;;  %v2885_v50 = vld [vmem:[%s3964_s1 + $0x604] ss:$8 sps:$4 sm:$0xff]  }
  0xa4   :  { %2039 = vmatpush2.bf16.msra.mxu1 %v2792_v51  ;;  %1999 = vmatprep.subr.bf16.mxu0 %v2797_v52  ;;  %v2888_v51 = vld [vmem:[%s3964_s1 + $0x704] ss:$8 sps:$4 sm:$0xff]   ;;  %v2883_v52 = vld [vmem:[%s3964_s1 + $0x600] ss:$8 sps:$4 sm:$0xff]  }
  0xa5   :  { %2040 = vmatprep.subr.bf16.mxu1 %v2800_v53  ;;  %v2886_v53 = vld [vmem:[%s3964_s1 + $0x700] ss:$8 sps:$4 sm:$0xff]  }
  0xa7   :  { %2000 = vmatpush2.bf16.msra.mxu0 %v2795_v54  ;;  %v2891_v54 = vld [vmem:[%s3964_s1 + $0x6f4] ss:$8 sps:$4 sm:$0xff]  }
  0xa8   :  { %2041 = vmatpush2.bf16.msra.mxu1 %v2798_v55  ;;  %2001 = vmatprep.subr.bf16.mxu0 %v2803_v56  ;;  %v2894_v55 = vld [vmem:[%s3964_s1 + $0x7f4] ss:$8 sps:$4 sm:$0xff]   ;;  %v2889_v56 = vld [vmem:[%s3964_s1 + $0x6f0] ss:$8 sps:$4 sm:$0xff]  }
  0xa9   :  { %2042 = vmatprep.subr.bf16.mxu1 %v2806_v57  ;;  %v2892_v57 = vld [vmem:[%s3964_s1 + $0x7f0] ss:$8 sps:$4 sm:$0xff]  }
  0xab   :  { %2002 = vmatpush2.bf16.msra.mxu0 %v2801_v58  ;;  %v2897_v58 = vld [vmem:[%s3964_s1 + $0x6e4] ss:$8 sps:$4 sm:$0xff]  }
  0xac   :  { %2043 = vmatpush2.bf16.msra.mxu1 %v2804_v59  ;;  %2003 = vmatprep.subr.bf16.mxu0 %v2809_v60  ;;  %v2900_v59 = vld [vmem:[%s3964_s1 + $0x7e4] ss:$8 sps:$4 sm:$0xff]   ;;  %v2895_v60 = vld [vmem:[%s3964_s1 + $0x6e0] ss:$8 sps:$4 sm:$0xff]  }
  0xad   :  { %2044 = vmatprep.subr.bf16.mxu1 %v2812_v61  ;;  %v2898_v61 = vld [vmem:[%s3964_s1 + $0x7e0] ss:$8 sps:$4 sm:$0xff]  }
  0xaf   :  { %2004 = vmatpush2.bf16.msra.mxu0 %v2807_v62  ;;  %v2903_v62 = vld [vmem:[%s3964_s1 + $0x6d4] ss:$8 sps:$4 sm:$0xff]  }
  0xb0   :  { %2045 = vmatpush2.bf16.msra.mxu1 %v2810_v63  ;;  %2005 = vmatprep.subr.bf16.mxu0 %v2815_v0  ;;  %v2906_v63 = vld [vmem:[%s3964_s1 + $0x7d4] ss:$8 sps:$4 sm:$0xff]   ;;  %v2901_v0 = vld [vmem:[%s3964_s1 + $0x6d0] ss:$8 sps:$4 sm:$0xff]  }
  0xb1   :  { %2046 = vmatprep.subr.bf16.mxu1 %v2818_v1  ;;  %v2904_v1 = vld [vmem:[%s3964_s1 + $0x7d0] ss:$8 sps:$4 sm:$0xff]  }
  0xb3   :  { %2006 = vmatpush2.bf16.msra.mxu0 %v2813_v2  ;;  %v2909_v2 = vld [vmem:[%s3964_s1 + $0x6c4] ss:$8 sps:$4 sm:$0xff]  }
  0xb4   :  { %2047 = vmatpush2.bf16.msra.mxu1 %v2816_v3  ;;  %2007 = vmatprep.subr.bf16.mxu0 %v2821_v4  ;;  %v2912_v3 = vld [vmem:[%s3964_s1 + $0x7c4] ss:$8 sps:$4 sm:$0xff]   ;;  %v2907_v4 = vld [vmem:[%s3964_s1 + $0x6c0] ss:$8 sps:$4 sm:$0xff]  }
  0xb5   :  { %2048 = vmatprep.subr.bf16.mxu1 %v2824_v5  ;;  %v2910_v5 = vld [vmem:[%s3964_s1 + $0x7c0] ss:$8 sps:$4 sm:$0xff]  }
  0xb7   :  { %2008 = vmatpush2.bf16.msra.mxu0 %v2819_v6  ;;  %v2915_v6 = vld [vmem:[%s3964_s1 + $0x6b4] ss:$8 sps:$4 sm:$0xff]  }
  0xb8   :  { %2049 = vmatpush2.bf16.msra.mxu1 %v2822_v7  ;;  %2009 = vmatprep.subr.bf16.mxu0 %v2827_v8  ;;  %v2918_v7 = vld [vmem:[%s3964_s1 + $0x7b4] ss:$8 sps:$4 sm:$0xff]   ;;  %v2913_v8 = vld [vmem:[%s3964_s1 + $0x6b0] ss:$8 sps:$4 sm:$0xff]  }
  0xb9   :  { %2050 = vmatprep.subr.bf16.mxu1 %v2830_v9  ;;  %v2916_v9 = vld [vmem:[%s3964_s1 + $0x7b0] ss:$8 sps:$4 sm:$0xff]  }
  0xbb   :  { %2010 = vmatpush2.bf16.msra.mxu0 %v2825_v10  ;;  %v2921_v10 = vld [vmem:[%s3964_s1 + $0x6a4] ss:$8 sps:$4 sm:$0xff]  }
  0xbc   :  { %2051 = vmatpush2.bf16.msra.mxu1 %v2828_v11  ;;  %2011 = vmatprep.subr.bf16.mxu0 %v2833_v12  ;;  %v2924_v11 = vld [vmem:[%s3964_s1 + $0x7a4] ss:$8 sps:$4 sm:$0xff]   ;;  %v2919_v12 = vld [vmem:[%s3964_s1 + $0x6a0] ss:$8 sps:$4 sm:$0xff]  }
  0xbd   :  { %2052 = vmatprep.subr.bf16.mxu1 %v2836_v13  ;;  %v2922_v13 = vld [vmem:[%s3964_s1 + $0x7a0] ss:$8 sps:$4 sm:$0xff]  }
  0xbf   :  { %2012 = vmatpush2.bf16.msra.mxu0 %v2831_v14  ;;  %v2927_v14 = vld [vmem:[%s3964_s1 + $0x694] ss:$8 sps:$4 sm:$0xff]  }
  0xc0   :  { %2053 = vmatpush2.bf16.msra.mxu1 %v2834_v15  ;;  %2063 = vmatprep.subr.bf16.mxu0 %v2841_v16  ;;  %v2930_v15 = vld [vmem:[%s3964_s1 + $0x794] ss:$8 sps:$4 sm:$0xff]   ;;  %v2925_v16 = vld [vmem:[%s3964_s1 + $0x690] ss:$8 sps:$4 sm:$0xff]  }
  0xc1   :  { %2104 = vmatprep.subr.bf16.mxu1 %v2846_v17  ;;  %v2928_v17 = vld [vmem:[%s3964_s1 + $0x790] ss:$8 sps:$4 sm:$0xff]  }
  0xc2   :  { %2014 = vmatmul.mubr.bf16.vlgmr.msra.gmra.mxu0 %v2241_v22  ;;  %v2931_v22 = vld [vmem:[%s3964_s1 + $0x680] ss:$8 sps:$4 sm:$0xff]  }
  0xc3   :  { %2055 = vmatmul.mubr.bf16.vlgmr.msra.gmra.mxu1 %v2243_v23  ;;  %2064 = vmatpush1.bf16.msra.mxu0 %v2839_v19  ;;  %v2933_v19 = vld [vmem:[%s3964_s1 + $0x684] ss:$8 sps:$4 sm:$0xff]   ;;  %v2934_v23 = vld [vmem:[%s3964_s1 + $0x780] ss:$8 sps:$4 sm:$0xff]  }
  0xc4   :  { %2105 = vmatpush1.bf16.msra.mxu1 %v2844_v21  ;;  %2065 = vmatprep.subr.bf16.mxu0 %v2849_v26  ;;  %v2936_v21 = vld [vmem:[%s3964_s1 + $0x784] ss:$8 sps:$4 sm:$0xff]   ;;  %v2941_v26 = vld [vmem:[%s3964_s1 + $0x874] ss:$8 sps:$4 sm:$0xff]  }
  0xc5   :  { %2106 = vmatprep.subr.bf16.mxu1 %v2852_v18  ;;  %2095 = vmatprep.mubr.bf16.mxu0 %v2246_v20  ;;  %v3846_v18 = vld [vmem:[%s3965_s0 + $0x40] sm:$0xff]  ;;  %v2245_v20 = vcombine.low %v3649_v24, %v3649_v24 }
  0xc6   :  { %2136 = vmatprep.mubr.bf16.mxu1 %v2248_v27  ;;  %v2247_v27 = vcombine.low %v3654_v25, %v3654_v25  ;;  %v2944_v25 = vld [vmem:[%s3964_s1 + $0x860] ss:$8 sps:$4 sm:$0xff]  }
  0xc7   :  { %2066 = vmatpush1.bf16.msra.mxu0 %v2847_v28  ;;  %v2939_v28 = vld [vmem:[%s3964_s1 + $0x870] ss:$8 sps:$4 sm:$0xff]  }
  0xc8   :  { %2107 = vmatpush1.bf16.msra.mxu1 %v2850_v29  ;;  %2067 = vmatprep.subr.bf16.mxu0 %v2855_v30  ;;  %v2250_v29 = vcombine.high %v3846_v18, %v3846_v18  ;;  %v2946_v30 = vld [vmem:[%s3964_s1 + $0x864] ss:$8 sps:$4 sm:$0xff]  }
  0xc9   :  { %2108 = vmatprep.subr.bf16.mxu1 %v2858_v31 }
  0xcb   :  { %2068 = vmatpush1.bf16.msra.mxu0 %v2853_v32 }
  0xcc   :  { %2109 = vmatpush1.bf16.msra.mxu1 %v2856_v33  ;;  %2069 = vmatprep.subr.bf16.mxu0 %v2861_v34 }
  0xcd   :  { %2110 = vmatprep.subr.bf16.mxu1 %v2864_v35  ;;  %v2949_v35 = vld [vmem:[%s3964_s1 + $0x854] ss:$8 sps:$4 sm:$0xff]  }
  0xcf   :  { %2070 = vmatpush1.bf16.msra.mxu0 %v2859_v36 }
  0xd0   :  { %2111 = vmatpush1.bf16.msra.mxu1 %v2862_v37  ;;  %2071 = vmatprep.subr.bf16.mxu0 %v2867_v38 }
  0xd1   :  { %2112 = vmatprep.subr.bf16.mxu1 %v2870_v39  ;;  %v2947_v39 = vld [vmem:[%s3964_s1 + $0x850] ss:$8 sps:$4 sm:$0xff]  }
  0xd3   :  { %2072 = vmatpush1.bf16.msra.mxu0 %v2865_v40 }
  0xd4   :  { %2113 = vmatpush1.bf16.msra.mxu1 %v2868_v41  ;;  %2073 = vmatprep.subr.bf16.mxu0 %v2873_v42  ;;  %v2952_v41 = vld [vmem:[%s3964_s1 + $0x844] ss:$8 sps:$4 sm:$0xff]  }
  0xd5   :  { %2114 = vmatprep.subr.bf16.mxu1 %v2876_v43  ;;  %v2950_v43 = vld [vmem:[%s3964_s1 + $0x840] ss:$8 sps:$4 sm:$0xff]  }
  0xd7   :  { %2074 = vmatpush1.bf16.msra.mxu0 %v2871_v44  ;;  %v2955_v44 = vld [vmem:[%s3964_s1 + $0x834] ss:$8 sps:$4 sm:$0xff]  }
  0xd8   :  { %2115 = vmatpush1.bf16.msra.mxu1 %v2874_v45  ;;  %2075 = vmatprep.subr.bf16.mxu0 %v2879_v46  ;;  %v2953_v45 = vld [vmem:[%s3964_s1 + $0x830] ss:$8 sps:$4 sm:$0xff]   ;;  %v2958_v46 = vld [vmem:[%s3964_s1 + $0x824] ss:$8 sps:$4 sm:$0xff]  }
  0xd9   :  { %2116 = vmatprep.subr.bf16.mxu1 %v2882_v47  ;;  %v2956_v47 = vld [vmem:[%s3964_s1 + $0x820] ss:$8 sps:$4 sm:$0xff]  }
  0xdb   :  { %2076 = vmatpush1.bf16.msra.mxu0 %v2877_v48  ;;  %v2961_v48 = vld [vmem:[%s3964_s1 + $0x814] ss:$8 sps:$4 sm:$0xff]  }
  0xdc   :  { %2117 = vmatpush1.bf16.msra.mxu1 %v2880_v49  ;;  %2077 = vmatprep.subr.bf16.mxu0 %v2885_v50  ;;  %v2959_v49 = vld [vmem:[%s3964_s1 + $0x810] ss:$8 sps:$4 sm:$0xff]   ;;  %v2964_v50 = vld [vmem:[%s3964_s1 + $0x804] ss:$8 sps:$4 sm:$0xff]  }
  0xdd   :  { %2118 = vmatprep.subr.bf16.mxu1 %v2888_v51  ;;  %v2962_v51 = vld [vmem:[%s3964_s1 + $0x800] ss:$8 sps:$4 sm:$0xff]  }
  0xdf   :  { %2078 = vmatpush1.bf16.msra.mxu0 %v2883_v52  ;;  %v2967_v52 = vld [vmem:[%s3964_s1 + $0x8f4] ss:$8 sps:$4 sm:$0xff]  }
  0xe0   :  { %2119 = vmatpush1.bf16.msra.mxu1 %v2886_v53  ;;  %2079 = vmatprep.subr.bf16.mxu0 %v2891_v54  ;;  %v2965_v53 = vld [vmem:[%s3964_s1 + $0x8f0] ss:$8 sps:$4 sm:$0xff]   ;;  %v2970_v54 = vld [vmem:[%s3964_s1 + $0x8e4] ss:$8 sps:$4 sm:$0xff]  }
  0xe1   :  { %2120 = vmatprep.subr.bf16.mxu1 %v2894_v55  ;;  %v2968_v55 = vld [vmem:[%s3964_s1 + $0x8e0] ss:$8 sps:$4 sm:$0xff]  }
  0xe3   :  { %2080 = vmatpush2.bf16.msra.mxu0 %v2889_v56  ;;  %v2973_v56 = vld [vmem:[%s3964_s1 + $0x8d4] ss:$8 sps:$4 sm:$0xff]  }
  0xe4   :  { %2121 = vmatpush2.bf16.msra.mxu1 %v2892_v57  ;;  %2081 = vmatprep.subr.bf16.mxu0 %v2897_v58  ;;  %v2971_v57 = vld [vmem:[%s3964_s1 + $0x8d0] ss:$8 sps:$4 sm:$0xff]   ;;  %v2976_v58 = vld [vmem:[%s3964_s1 + $0x8c4] ss:$8 sps:$4 sm:$0xff]  }
  0xe5   :  { %2122 = vmatprep.subr.bf16.mxu1 %v2900_v59  ;;  %v2974_v59 = vld [vmem:[%s3964_s1 + $0x8c0] ss:$8 sps:$4 sm:$0xff]  }
  0xe7   :  { %2082 = vmatpush2.bf16.msra.mxu0 %v2895_v60  ;;  %v2979_v60 = vld [vmem:[%s3964_s1 + $0x8b4] ss:$8 sps:$4 sm:$0xff]  }
  0xe8   :  { %2123 = vmatpush2.bf16.msra.mxu1 %v2898_v61  ;;  %2083 = vmatprep.subr.bf16.mxu0 %v2903_v62  ;;  %v2977_v61 = vld [vmem:[%s3964_s1 + $0x8b0] ss:$8 sps:$4 sm:$0xff]   ;;  %v2982_v62 = vld [vmem:[%s3964_s1 + $0x8a4] ss:$8 sps:$4 sm:$0xff]  }
  0xe9   :  { %2124 = vmatprep.subr.bf16.mxu1 %v2906_v63  ;;  %v2980_v63 = vld [vmem:[%s3964_s1 + $0x8a0] ss:$8 sps:$4 sm:$0xff]  }
  0xeb   :  { %2084 = vmatpush2.bf16.msra.mxu0 %v2901_v0  ;;  %v2985_v0 = vld [vmem:[%s3964_s1 + $0x894] ss:$8 sps:$4 sm:$0xff]  }
  0xec   :  { %2125 = vmatpush2.bf16.msra.mxu1 %v2904_v1  ;;  %2085 = vmatprep.subr.bf16.mxu0 %v2909_v2  ;;  %v2983_v1 = vld [vmem:[%s3964_s1 + $0x890] ss:$8 sps:$4 sm:$0xff]   ;;  %v2988_v2 = vld [vmem:[%s3964_s1 + $0x884] ss:$8 sps:$4 sm:$0xff]  }
  0xed   :  { %2126 = vmatprep.subr.bf16.mxu1 %v2912_v3  ;;  %v2986_v3 = vld [vmem:[%s3964_s1 + $0x880] ss:$8 sps:$4 sm:$0xff]  }
  0xef   :  { %2086 = vmatpush2.bf16.msra.mxu0 %v2907_v4  ;;  %v2249_v4 = vcombine.low %v3846_v18, %v3846_v18 }
  0xf0   :  { %2127 = vmatpush2.bf16.msra.mxu1 %v2910_v5  ;;  %2087 = vmatprep.subr.bf16.mxu0 %v2915_v6 }
  0xf1   :  { %2128 = vmatprep.subr.bf16.mxu1 %v2918_v7 }
  0xf3   :  { %2088 = vmatpush2.bf16.msra.mxu0 %v2913_v8 }
  0xf4   :  { %2129 = vmatpush2.bf16.msra.mxu1 %v2916_v9  ;;  %2089 = vmatprep.subr.bf16.mxu0 %v2921_v10 }
  0xf5   :  { %2130 = vmatprep.subr.bf16.mxu1 %v2924_v11 }
  0xf7   :  { %2090 = vmatpush2.bf16.msra.mxu0 %v2919_v12 }
  0xf8   :  { %2131 = vmatpush2.bf16.msra.mxu1 %v2922_v13  ;;  %2091 = vmatprep.subr.bf16.mxu0 %v2927_v14 }
  0xf9   :  { %2132 = vmatprep.subr.bf16.mxu1 %v2930_v15 }
  0xfb   :  { %2092 = vmatpush2.bf16.msra.mxu0 %v2925_v16 }
  0xfc   :  { %2133 = vmatpush2.bf16.msra.mxu1 %v2928_v17  ;;  %2093 = vmatprep.subr.bf16.mxu0 %v2933_v19 }
  0xfd   :  { %2134 = vmatprep.subr.bf16.mxu1 %v2936_v21 }
  0xff   :  { %2094 = vmatpush2.bf16.msra.mxu0 %v2931_v22 }
 0x100   :  { %2135 = vmatpush2.bf16.msra.mxu1 %v2934_v23  ;;  %2145 = vmatprep.subr.bf16.mxu0 %v2941_v26 }
 0x102   :  { %v1851_v31 = vpop.f32.mrf.mxu0  ;;  %2096 = vmatmul.mubr.bf16.vlgmr.msra.gmra.mxu0 %v2245_v20 }
 0x103   :  { %v1892_v32 = vpop.f32.mrf.mxu1  ;;  %2137 = vmatmul.mubr.bf16.vlgmr.msra.gmra.mxu1 %v2247_v27  ;;  %2146 = vmatpush1.bf16.msra.mxu0 %v2939_v28 }
 0x104   :  { %v3860_v24 = vadd.f32 %v1892_v32, %v1851_v31  ;;  %2177 = vmatprep.mubr.bf16.mxu0 %v2250_v29  ;;  %v1853_v33 = vpop.f32.mrf.mxu0  ;;  %2147 = vmatprep.subr.bf16.mxu0 %v2946_v30 }
 0x105   :  { %v1894_v34 = vpop.f32.mrf.mxu1 }
 0x106   :  { %v3868_v36 = vadd.f32 %v1894_v34, %v1853_v33  ;;  %v1855_v37 = vpop.f32.mrf.mxu0 }
 0x107   :  { %v1896_v38 = vpop.f32.mrf.mxu1  ;;  %2148 = vmatpush1.bf16.msra.mxu0 %v2944_v25 }
 0x108   :  { %v1856_v40 = vpop.f32.mrf.mxu0  ;;  %2149 = vmatprep.subr.bf16.mxu0 %v2949_v35 }
 0x109   :  { %v1897_v42 = vpop.f32.mrf.mxu1 }
 0x10a   :  { %v2186_v42 = vld [vmem:[%s3966_s2] sm:$0x3] }
 0x10b   :  { %2150 = vmatpush1.bf16.msra.mxu0 %v2947_v39  ;;  %v2188_v39 = vlaneseq }
 0x10c   :  { %2151 = vmatprep.subr.bf16.mxu0 %v2952_v41 }
 0x10d   :  { %v2189_v40 = vshrl.u32 %v2188_v39, 7 }
 0x10f   :  { %2152 = vmatpush1.bf16.msra.mxu0 %v2950_v43  ;;  %v2190_v41 = vsub.s32 0, %v2189_v40 }
 0x110   :  { %2153 = vmatprep.subr.bf16.mxu0 %v2955_v44  ;;  %v2194_v44 = vsub.s32 1, %v2189_v40 }
 0x113   :  { %2154 = vmatpush1.bf16.msra.mxu0 %v2953_v45  ;;  %v2200_v45 = vld [vmem:[%s3967_s3] sm:$0x3] }
 0x114   :  { %2155 = vmatprep.subr.bf16.mxu0 %v2958_v46  ;;  %v2191_v46 = vrot.slane %v2186_v42, %v2190_v41 }
 0x117   :  { %2156 = vmatpush1.bf16.msra.mxu0 %v2956_v47 }
 0x118   :  { %2157 = vmatprep.subr.bf16.mxu0 %v2961_v48 }
 0x11b   :  { %2158 = vmatpush1.bf16.msra.mxu0 %v2959_v49 }
 0x11c   :  { %2159 = vmatprep.subr.bf16.mxu0 %v2964_v50  ;;  %v2205_v50 = vrot.slane %v2200_v45, %v2190_v41 }
 0x11f   :  { %2160 = vmatpush1.bf16.msra.mxu0 %v2962_v51  ;;  %v2195_v51 = vrot.slane %v2186_v42, %v2194_v44 }
 0x120   :  { %2161 = vmatprep.subr.bf16.mxu0 %v2967_v52 }
 0x123   :  { %2162 = vmatpush2.bf16.msra.mxu0 %v2965_v53 }
 0x124   :  { %2163 = vmatprep.subr.bf16.mxu0 %v2970_v54 }
 0x127   :  { %2164 = vmatpush2.bf16.msra.mxu0 %v2968_v55  ;;  %v2209_v55 = vrot.slane %v2200_v45, %v2194_v44 }
 0x128   :  { %2165 = vmatprep.subr.bf16.mxu0 %v2973_v56 }
 0x12b   :  { %2166 = vmatpush2.bf16.msra.mxu0 %v2971_v57 }
 0x12c   :  { %2167 = vmatprep.subr.bf16.mxu0 %v2976_v58 }
 0x12f   :  { %2168 = vmatpush2.bf16.msra.mxu0 %v2974_v59 }
 0x130   :  { %2169 = vmatprep.subr.bf16.mxu0 %v2979_v60 }
 0x133   :  { %2170 = vmatpush2.bf16.msra.mxu0 %v2977_v61 }
 0x134   :  { %2171 = vmatprep.subr.bf16.mxu0 %v2982_v62 }
 0x137   :  { %2172 = vmatpush2.bf16.msra.mxu0 %v2980_v63 }
 0x138   :  { %2173 = vmatprep.subr.bf16.mxu0 %v2985_v0 }
 0x13b   :  { %2174 = vmatpush2.bf16.msra.mxu0 %v2983_v1 }
 0x13c   :  { %2175 = vmatprep.subr.bf16.mxu0 %v2988_v2 }
 0x13f   :  { %2176 = vmatpush2.bf16.msra.mxu0 %v2986_v3 }
 0x142   :  { %v1933_v5 = vpop.f32.mrf.mxu0  ;;  %2178 = vmatmul.mubr.bf16.vlgmr.msra.gmra.mxu0 %v2249_v4 }
 0x143   :  { %v1974_v6 = vpop.f32.mrf.mxu1  ;;  %v1934_v7 = vadd.f32 %v1933_v5, %v3860_v24 }
 0x144   :  { %v1935_v8 = vpop.f32.mrf.mxu0 }
 0x145   :  { %v1976_v9 = vpop.f32.mrf.mxu1  ;;  %v1936_v10 = vadd.f32 %v1935_v8, %v3868_v36  ;;  %v1975_v11 = vadd.f32 %v1974_v6, %v1934_v7 }
 0x146   :  { %v1937_v12 = vpop.f32.mrf.mxu0 }
 0x147   :  { %v1978_v13 = vpop.f32.mrf.mxu1  ;;  %v1977_v14 = vadd.f32 %v1976_v9, %v1936_v10 }
 0x148   :  { %v1938_v15 = vpop.f32.mrf.mxu0 }
 0x149   :  { %v1979_v16 = vpop.f32.mrf.mxu1 }
 0x182   :  { %v2015_v17 = vpop.f32.mrf.mxu0 }
 0x183   :  { %v2056_v19 = vpop.f32.mrf.mxu1  ;;  %v2016_v21 = vadd.f32 %v2015_v17, %v1975_v11 }
 0x184   :  { %v2017_v22 = vpop.f32.mrf.mxu0 }
 0x185   :  { %v2058_v23 = vpop.f32.mrf.mxu1  ;;  %v2018_v26 = vadd.f32 %v2017_v22, %v1977_v14  ;;  %v2057_v18 = vadd.f32 %v2056_v19, %v2016_v21 }
 0x186   :  { %v2019_v20 = vpop.f32.mrf.mxu0 }
 0x187   :  { %v2060_v27 = vpop.f32.mrf.mxu1  ;;  %v2059_v28 = vadd.f32 %v2058_v23, %v2018_v26 }
 0x188   :  { %v2020_v29 = vpop.f32.mrf.mxu0 }
 0x189   :  { %v2061_v30 = vpop.f32.mrf.mxu1 }
 0x1c2   :  { %v2097_v31 = vpop.f32.mrf.mxu0 }
 0x1c3   :  { %v2138_v32 = vpop.f32.mrf.mxu1  ;;  %v2098_v24 = vadd.f32 %v2097_v31, %v2057_v18 }
 0x1c4   :  { %v2099_v25 = vpop.f32.mrf.mxu0 }
 0x1c5   :  { %v2140_v33 = vpop.f32.mrf.mxu1  ;;  %v2139_v34 = vadd.f32 %v2138_v32, %v2098_v24  ;;  %v2100_v43 = vadd.f32 %v2099_v25, %v2059_v28 }
 0x1c6   :  { %v2101_v35 = vpop.f32.mrf.mxu0 }
 0x1c7   :  { %v2142_v36 = vpop.f32.mrf.mxu1  ;;  %v2141_v48 = vadd.f32 %v2140_v33, %v2100_v43 }
 0x1c8   :  { %v2102_v37 = vpop.f32.mrf.mxu0 }
 0x1c9   :  { %v2143_v38 = vpop.f32.mrf.mxu1 }
 0x202   :  { %v2179_v47 = vpop.f32.mrf.mxu0 }
 0x203   :  { %v2180_v49 = vadd.f32 %v2179_v47, %v2139_v34 }
 0x204   :  { %v2181_v52 = vpop.f32.mrf.mxu0 }
 0x205   :  { %v2198_v53 = vmul.f32 %v2191_v46, %v2180_v49  ;;  %v2182_v54 = vadd.f32 %v2181_v52, %v2141_v48 }
 0x206   :  { %v2183_v56 = vpop.f32.mrf.mxu0 }
 0x207   :  { %v2212_v57 = vadd.f32 %v2205_v50, %v2198_v53  ;;  %v2199_v58 = vmul.f32 %v2195_v51, %v2182_v54 }
 0x208   :  { %v2184_v59 = vpop.f32.mrf.mxu0 }
 0x209   :  { %v2216_v60 = vmul.f32 0.1, %v2212_v57  ;;  %v2213_v61 = vadd.f32 %v2209_v55, %v2199_v58  ;;  %vm2214_vm0 = vcmp.ge.f32.partialorder %v2212_v57, 0.0 }
 0x20b   :  { %vm2215_vm1 = vcmp.ge.f32.partialorder %v2213_v61, 0.0  ;;  %v2217_v62 = vmul.f32 0.1, %v2213_v61  ;;  %v2218_v63 = vsel %vm2214_vm0, %v2212_v57, %v2216_v60 }
 0x20d   :  { %v2219_v0 = vsel %vm2215_vm1, %v2213_v61, %v2217_v62 }
 0x20e   :  { %v2540_v1 = vpack.c.bf16 %v2219_v0, %v2218_v63 }
 0x210   :  { %2228 = vst [vmem:[%s3968_s4] sm:$0xff] %v2540_v1 }

// kernel: extract_features.9
= control target key start
LH: loop header
LB: loop body
LE: loop exit
PB: predicated region body
PF: predicated region fallthrough
CT: control target
= control target key end

     0   :  { %v5752_v38 = vmov 1966171168   ;;  %v158_v40 = vlaneseq  ;;  %s7475_s1 = inlined_call_operand.vmem [shape: bf16[4,512,512], index: 1, kind: input, shape index: {}]   ;;  %s7476_s0 = inlined_call_operand.vmem [shape: bf16[2,512], index: 0, kind: input, shape index: {}]   ;;  %s7477_s2 = inlined_call_operand.vmem [shape: f32[4,512], index: 2, kind: input, shape index: {}]   ;;  %s7478_s3 = inlined_call_operand.vmem [shape: f32[4,512], index: 3, kind: input, shape index: {}]   ;;  %s7479_s4 = inlined_call_operand.vmem [shape: f32[2,512], index: 4, kind: output, shape index: {}]  }
   0x1   :  { %v4984_v0 = vld [vmem:[%s7475_s1 + $0xe4] ss:$16 sps:$4 sm:$0xff]   ;;  %v4988_v2 = vld [vmem:[%s7475_s1 + $0xe0] ss:$16 sps:$4 sm:$0xff]   ;;  %v156_v39 = vunpack.c.l.s4 %v5752_v38  ;;  %v5116_v38 = vld [vmem:[%s7475_s1 + $0x28] ss:$16 sps:$4 sm:$0xff]  }
   0x2   :  { %v4986_v1 = vld [vmem:[%s7475_s1 + $0x2e4] ss:$16 sps:$4 sm:$0xff]   ;;  %815 = vmatprep.subr.bf16.mxu0 %v4984_v0  ;;  %v4989_v3 = vld [vmem:[%s7475_s1 + $0x2e0] ss:$16 sps:$4 sm:$0xff]   ;;  %v5905_v46 = vshrl.u32 %v158_v40, 7 }
   0x3   :  { %856 = vmatprep.subr.bf16.mxu1 %v4986_v1  ;;  %v4990_v4 = vld [vmem:[%s7475_s1 + $0xc4] ss:$16 sps:$4 sm:$0xff]   ;;  %816 = vmatpush1.bf16.msra.mxu0 %v4988_v2  ;;  %v4994_v6 = vld [vmem:[%s7475_s1 + $0xc0] ss:$16 sps:$4 sm:$0xff]   ;;  %v157_v45 = vunpack.c.0.s8 %v156_v39  ;;  %v5119_v39 = vld [vmem:[%s7475_s1 + $0x228] ss:$16 sps:$4 sm:$0xff]  }
   0x4   :  { %857 = vmatpush1.bf16.msra.mxu1 %v4989_v3  ;;  %v4992_v5 = vld [vmem:[%s7475_s1 + $0x2c4] ss:$16 sps:$4 sm:$0xff]   ;;  %817 = vmatprep.subr.bf16.mxu0 %v4990_v4  ;;  %v4995_v7 = vld [vmem:[%s7475_s1 + $0x2c0] ss:$16 sps:$4 sm:$0xff]   ;;  %v5124_v40 = vld [vmem:[%s7475_s1 + $0xc] ss:$16 sps:$4 sm:$0xff]  }
   0x5   :  { %858 = vmatprep.subr.bf16.mxu1 %v4992_v5  ;;  %v4996_v8 = vld [vmem:[%s7475_s1 + $0xa4] ss:$16 sps:$4 sm:$0xff]   ;;  %v5000_v10 = vld [vmem:[%s7475_s1 + $0xa0] ss:$16 sps:$4 sm:$0xff]   ;;  %v160_v51 = vsub.s32 %v157_v45, %v5905_v46  ;;  %v5133_v45 = vld [vmem:[%s7475_s1 + $0x3ec] ss:$16 sps:$4 sm:$0xff]  }
   0x6   :  { %v4998_v9 = vld [vmem:[%s7475_s1 + $0x2a4] ss:$16 sps:$4 sm:$0xff]   ;;  %v5001_v11 = vld [vmem:[%s7475_s1 + $0x2a0] ss:$16 sps:$4 sm:$0xff]  }
   0x7   :  { %818 = vmatpush1.bf16.msra.mxu0 %v4994_v6  ;;  %v5002_v12 = vld [vmem:[%s7475_s1 + $0x84] ss:$16 sps:$4 sm:$0xff]   ;;  %v5006_v14 = vld [vmem:[%s7475_s1 + $0x80] ss:$16 sps:$4 sm:$0xff]  }
   0x8   :  { %859 = vmatpush1.bf16.msra.mxu1 %v4995_v7  ;;  %819 = vmatprep.subr.bf16.mxu0 %v4996_v8  ;;  %v5004_v13 = vld [vmem:[%s7475_s1 + $0x284] ss:$16 sps:$4 sm:$0xff]   ;;  %v5007_v15 = vld [vmem:[%s7475_s1 + $0x280] ss:$16 sps:$4 sm:$0xff]  }
   0x9   :  { %860 = vmatprep.subr.bf16.mxu1 %v4998_v9  ;;  %v5008_v16 = vld [vmem:[%s7475_s1 + $0x64] ss:$16 sps:$4 sm:$0xff]   ;;  %v5012_v18 = vld [vmem:[%s7475_s1 + $0x60] ss:$16 sps:$4 sm:$0xff]  }
   0xa   :  { %v5010_v17 = vld [vmem:[%s7475_s1 + $0x264] ss:$16 sps:$4 sm:$0xff]   ;;  %v5013_v19 = vld [vmem:[%s7475_s1 + $0x260] ss:$16 sps:$4 sm:$0xff]  }
   0xb   :  { %820 = vmatpush1.bf16.msra.mxu0 %v5000_v10  ;;  %v5014_v20 = vld [vmem:[%s7475_s1 + $0x44] ss:$16 sps:$4 sm:$0xff]   ;;  %v5018_v22 = vld [vmem:[%s7475_s1 + $0x40] ss:$16 sps:$4 sm:$0xff]  }
   0xc   :  { %861 = vmatpush1.bf16.msra.mxu1 %v5001_v11  ;;  %821 = vmatprep.subr.bf16.mxu0 %v5002_v12  ;;  %v5016_v21 = vld [vmem:[%s7475_s1 + $0x244] ss:$16 sps:$4 sm:$0xff]   ;;  %v5019_v23 = vld [vmem:[%s7475_s1 + $0x240] ss:$16 sps:$4 sm:$0xff]   ;;  %v5082_v11 = vld [vmem:[%s7475_s1 + $0xec] ss:$16 sps:$4 sm:$0xff]  }
   0xd   :  { %862 = vmatprep.subr.bf16.mxu1 %v5004_v13  ;;  %v5020_v24 = vld [vmem:[%s7475_s1 + $0x24] ss:$16 sps:$4 sm:$0xff]   ;;  %v5024_v26 = vld [vmem:[%s7475_s1 + $0x20] ss:$16 sps:$4 sm:$0xff]   ;;  %v5085_v12 = vld [vmem:[%s7475_s1 + $0x2ec] ss:$16 sps:$4 sm:$0xff]  }
   0xe   :  { %v5022_v25 = vld [vmem:[%s7475_s1 + $0x224] ss:$16 sps:$4 sm:$0xff]   ;;  %v5025_v27 = vld [vmem:[%s7475_s1 + $0x220] ss:$16 sps:$4 sm:$0xff]  }
   0xf   :  { %822 = vmatpush1.bf16.msra.mxu0 %v5006_v14  ;;  %v5026_v28 = vld [vmem:[%s7475_s1 + $0x4] ss:$16 sps:$4 sm:$0xff]   ;;  %v5030_v30 = vld [vmem:[%s7475_s1] ss:$16 sps:$4 sm:$0xff]   ;;  %v5080_v14 = vld [vmem:[%s7475_s1 + $0xe8] ss:$16 sps:$4 sm:$0xff]  }
  0x10   :  { %863 = vmatpush1.bf16.msra.mxu1 %v5007_v15  ;;  %823 = vmatprep.subr.bf16.mxu0 %v5008_v16  ;;  %v5028_v29 = vld [vmem:[%s7475_s1 + $0x204] ss:$16 sps:$4 sm:$0xff]   ;;  %v5031_v31 = vld [vmem:[%s7475_s1 + $0x200] ss:$16 sps:$4 sm:$0xff]   ;;  %v5083_v15 = vld [vmem:[%s7475_s1 + $0x2e8] ss:$16 sps:$4 sm:$0xff]  }
  0x11   :  { %864 = vmatprep.subr.bf16.mxu1 %v5010_v17  ;;  %v5032_v32 = vld [vmem:[%s7475_s1 + $0x1e4] ss:$16 sps:$4 sm:$0xff]   ;;  %v5036_v34 = vld [vmem:[%s7475_s1 + $0x1e0] ss:$16 sps:$4 sm:$0xff]   ;;  %v5088_v16 = vld [vmem:[%s7475_s1 + $0xcc] ss:$16 sps:$4 sm:$0xff]  }
  0x12   :  { %v5034_v33 = vld [vmem:[%s7475_s1 + $0x3e4] ss:$16 sps:$4 sm:$0xff]   ;;  %v5037_v35 = vld [vmem:[%s7475_s1 + $0x3e0] ss:$16 sps:$4 sm:$0xff]   ;;  %v5091_v17 = vld [vmem:[%s7475_s1 + $0x2cc] ss:$16 sps:$4 sm:$0xff]  }
  0x13   :  { %824 = vmatpush1.bf16.msra.mxu0 %v5012_v18  ;;  %v5038_v36 = vld [vmem:[%s7475_s1 + $0x1c4] ss:$16 sps:$4 sm:$0xff]   ;;  %v5042_v41 = vld [vmem:[%s7475_s1 + $0x1c0] ss:$16 sps:$4 sm:$0xff]   ;;  %v5086_v18 = vld [vmem:[%s7475_s1 + $0xc8] ss:$16 sps:$4 sm:$0xff]  }
  0x14   :  { %865 = vmatpush1.bf16.msra.mxu1 %v5013_v19  ;;  %825 = vmatprep.subr.bf16.mxu0 %v5014_v20  ;;  %v5040_v37 = vld [vmem:[%s7475_s1 + $0x3c4] ss:$16 sps:$4 sm:$0xff]   ;;  %v5043_v42 = vld [vmem:[%s7475_s1 + $0x3c0] ss:$16 sps:$4 sm:$0xff]   ;;  %v5089_v19 = vld [vmem:[%s7475_s1 + $0x2c8] ss:$16 sps:$4 sm:$0xff]  }
  0x15   :  { %866 = vmatprep.subr.bf16.mxu1 %v5016_v21  ;;  %v5044_v43 = vld [vmem:[%s7475_s1 + $0x1a4] ss:$16 sps:$4 sm:$0xff]   ;;  %v5048_v47 = vld [vmem:[%s7475_s1 + $0x1a0] ss:$16 sps:$4 sm:$0xff]   ;;  %v5094_v20 = vld [vmem:[%s7475_s1 + $0xac] ss:$16 sps:$4 sm:$0xff]  }
  0x16   :  { %v5046_v44 = vld [vmem:[%s7475_s1 + $0x3a4] ss:$16 sps:$4 sm:$0xff]   ;;  %v5049_v48 = vld [vmem:[%s7475_s1 + $0x3a0] ss:$16 sps:$4 sm:$0xff]   ;;  %v5097_v21 = vld [vmem:[%s7475_s1 + $0x2ac] ss:$16 sps:$4 sm:$0xff]  }
  0x17   :  { %826 = vmatpush1.bf16.msra.mxu0 %v5018_v22  ;;  %v5050_v49 = vld [vmem:[%s7475_s1 + $0x184] ss:$16 sps:$4 sm:$0xff]   ;;  %v4079_v52 = vld.sshfl [vmem:[%s7476_s0] sm:$0x33 pattern:$0x75316420] }
  0x18   :  { %867 = vmatpush1.bf16.msra.mxu1 %v5019_v23  ;;  %827 = vmatprep.subr.bf16.mxu0 %v5020_v24  ;;  %v5052_v50 = vld [vmem:[%s7475_s1 + $0x384] ss:$16 sps:$4 sm:$0xff]   ;;  %v5054_v53 = vld [vmem:[%s7475_s1 + $0x180] ss:$16 sps:$4 sm:$0xff]   ;;  %v154_v55 = vcombine.high %v4079_v52, %v4079_v52  ;;  %v5974_v9 = vrot.slane %v4079_v52, %v160_v51  ;;  %v5092_v22 = vld [vmem:[%s7475_s1 + $0xa8] ss:$16 sps:$4 sm:$0xff]  }
  0x19   :  { %868 = vmatprep.subr.bf16.mxu1 %v5022_v25  ;;  %v5055_v54 = vld [vmem:[%s7475_s1 + $0x380] ss:$16 sps:$4 sm:$0xff]   ;;  %v5056_v56 = vld [vmem:[%s7475_s1 + $0x164] ss:$16 sps:$4 sm:$0xff]   ;;  %v5095_v23 = vld [vmem:[%s7475_s1 + $0x2a8] ss:$16 sps:$4 sm:$0xff]  }
  0x1a   :  { %v5058_v57 = vld [vmem:[%s7475_s1 + $0x364] ss:$16 sps:$4 sm:$0xff]   ;;  %v168_v58 = vrot.slane %v154_v55, %v160_v51  ;;  %v5060_v59 = vld [vmem:[%s7475_s1 + $0x160] ss:$16 sps:$4 sm:$0xff]   ;;  %v5987_v13 = vcombine.high %v5974_v9, %v5974_v9  ;;  %v5100_v24 = vld [vmem:[%s7475_s1 + $0x8c] ss:$16 sps:$4 sm:$0xff]  }
  0x1b   :  { %828 = vmatpush1.bf16.msra.mxu0 %v5024_v26  ;;  %v5061_v60 = vld [vmem:[%s7475_s1 + $0x360] ss:$16 sps:$4 sm:$0xff]   ;;  %v5062_v62 = vld [vmem:[%s7475_s1 + $0x144] ss:$16 sps:$4 sm:$0xff]   ;;  %v5103_v25 = vld [vmem:[%s7475_s1 + $0x28c] ss:$16 sps:$4 sm:$0xff]  }
  0x1c   :  { %869 = vmatpush1.bf16.msra.mxu1 %v5025_v27  ;;  %829 = vmatprep.subr.bf16.mxu0 %v5026_v28  ;;  %v170_v61 = vcombine.high %v168_v58, %v168_v58  ;;  %v5064_v63 = vld [vmem:[%s7475_s1 + $0x344] ss:$16 sps:$4 sm:$0xff]   ;;  %v5066_v0 = vld [vmem:[%s7475_s1 + $0x140] ss:$16 sps:$4 sm:$0xff]   ;;  %v5098_v26 = vld [vmem:[%s7475_s1 + $0x88] ss:$16 sps:$4 sm:$0xff]  }
  0x1d   :  { %870 = vmatprep.subr.bf16.mxu1 %v5028_v29  ;;  %847 = vmatprep.mubr.bf16.mxu0 %v168_v58  ;;  %v5067_v1 = vld [vmem:[%s7475_s1 + $0x340] ss:$16 sps:$4 sm:$0xff]   ;;  %v5068_v2 = vld [vmem:[%s7475_s1 + $0x124] ss:$16 sps:$4 sm:$0xff]   ;;  %v5101_v27 = vld [vmem:[%s7475_s1 + $0x288] ss:$16 sps:$4 sm:$0xff]  }
  0x1e   :  { %888 = vmatprep.mubr.bf16.mxu1 %v170_v61  ;;  %v5070_v3 = vld [vmem:[%s7475_s1 + $0x324] ss:$16 sps:$4 sm:$0xff]   ;;  %v5072_v4 = vld [vmem:[%s7475_s1 + $0x120] ss:$16 sps:$4 sm:$0xff]   ;;  %v5106_v28 = vld [vmem:[%s7475_s1 + $0x6c] ss:$16 sps:$4 sm:$0xff]  }
  0x1f   :  { %830 = vmatpush1.bf16.msra.mxu0 %v5030_v30  ;;  %v5073_v5 = vld [vmem:[%s7475_s1 + $0x320] ss:$16 sps:$4 sm:$0xff]   ;;  %v5074_v6 = vld [vmem:[%s7475_s1 + $0x104] ss:$16 sps:$4 sm:$0xff]   ;;  %v5109_v29 = vld [vmem:[%s7475_s1 + $0x26c] ss:$16 sps:$4 sm:$0xff]  }
  0x20   :  { %871 = vmatpush1.bf16.msra.mxu1 %v5031_v31  ;;  %831 = vmatprep.subr.bf16.mxu0 %v5032_v32  ;;  %v5076_v7 = vld [vmem:[%s7475_s1 + $0x304] ss:$16 sps:$4 sm:$0xff]   ;;  %v5078_v8 = vld [vmem:[%s7475_s1 + $0x100] ss:$16 sps:$4 sm:$0xff]   ;;  %v5104_v30 = vld [vmem:[%s7475_s1 + $0x68] ss:$16 sps:$4 sm:$0xff]  }
  0x21   :  { %872 = vmatprep.subr.bf16.mxu1 %v5034_v33  ;;  %v5079_v10 = vld [vmem:[%s7475_s1 + $0x300] ss:$16 sps:$4 sm:$0xff]   ;;  %v5107_v31 = vld [vmem:[%s7475_s1 + $0x268] ss:$16 sps:$4 sm:$0xff]   ;;  %v5112_v32 = vld [vmem:[%s7475_s1 + $0x4c] ss:$16 sps:$4 sm:$0xff]  }
  0x22   :  { %v5115_v33 = vld [vmem:[%s7475_s1 + $0x24c] ss:$16 sps:$4 sm:$0xff]   ;;  %v5134_v51 = vld [vmem:[%s7475_s1 + $0x1c8] ss:$16 sps:$4 sm:$0xff]  }
  0x23   :  { %832 = vmatpush2.bf16.msra.mxu0 %v5036_v34  ;;  %v5110_v34 = vld [vmem:[%s7475_s1 + $0x48] ss:$16 sps:$4 sm:$0xff]  }
  0x24   :  { %873 = vmatpush2.bf16.msra.mxu1 %v5037_v35  ;;  %833 = vmatprep.subr.bf16.mxu0 %v5038_v36  ;;  %v5113_v35 = vld [vmem:[%s7475_s1 + $0x248] ss:$16 sps:$4 sm:$0xff]   ;;  %v5118_v36 = vld [vmem:[%s7475_s1 + $0x2c] ss:$16 sps:$4 sm:$0xff]  }
  0x25   :  { %874 = vmatprep.subr.bf16.mxu1 %v5040_v37  ;;  %v5121_v37 = vld [vmem:[%s7475_s1 + $0x22c] ss:$16 sps:$4 sm:$0xff]   ;;  %v5137_v52 = vld [vmem:[%s7475_s1 + $0x3c8] ss:$16 sps:$4 sm:$0xff]  }
  0x26   :  { %v5140_v55 = vld [vmem:[%s7475_s1 + $0x1a8] ss:$16 sps:$4 sm:$0xff]  }
  0x27   :  { %834 = vmatpush2.bf16.msra.mxu0 %v5042_v41  ;;  %v5127_v41 = vld [vmem:[%s7475_s1 + $0x20c] ss:$16 sps:$4 sm:$0xff]  }
  0x28   :  { %875 = vmatpush2.bf16.msra.mxu1 %v5043_v42  ;;  %835 = vmatprep.subr.bf16.mxu0 %v5044_v43  ;;  %v5122_v42 = vld [vmem:[%s7475_s1 + $0x8] ss:$16 sps:$4 sm:$0xff]  }
  0x29   :  { %876 = vmatprep.subr.bf16.mxu1 %v5046_v44  ;;  %v5125_v43 = vld [vmem:[%s7475_s1 + $0x208] ss:$16 sps:$4 sm:$0xff]   ;;  %v5130_v44 = vld [vmem:[%s7475_s1 + $0x1ec] ss:$16 sps:$4 sm:$0xff]  }
  0x2b   :  { %836 = vmatpush2.bf16.msra.mxu0 %v5048_v47  ;;  %v5128_v47 = vld [vmem:[%s7475_s1 + $0x1e8] ss:$16 sps:$4 sm:$0xff]  }
  0x2c   :  { %877 = vmatpush2.bf16.msra.mxu1 %v5049_v48  ;;  %837 = vmatprep.subr.bf16.mxu0 %v5050_v49  ;;  %v5131_v48 = vld [vmem:[%s7475_s1 + $0x3e8] ss:$16 sps:$4 sm:$0xff]   ;;  %v5136_v49 = vld [vmem:[%s7475_s1 + $0x1cc] ss:$16 sps:$4 sm:$0xff]  }
  0x2d   :  { %878 = vmatprep.subr.bf16.mxu1 %v5052_v50  ;;  %v5139_v50 = vld [vmem:[%s7475_s1 + $0x3cc] ss:$16 sps:$4 sm:$0xff]  }
  0x2f   :  { %838 = vmatpush2.bf16.msra.mxu0 %v5054_v53  ;;  %v5142_v53 = vld [vmem:[%s7475_s1 + $0x1ac] ss:$16 sps:$4 sm:$0xff]  }
  0x30   :  { %879 = vmatpush2.bf16.msra.mxu1 %v5055_v54  ;;  %839 = vmatprep.subr.bf16.mxu0 %v5056_v56  ;;  %v5145_v54 = vld [vmem:[%s7475_s1 + $0x3ac] ss:$16 sps:$4 sm:$0xff]   ;;  %v5143_v56 = vld [vmem:[%s7475_s1 + $0x3a8] ss:$16 sps:$4 sm:$0xff]  }
  0x31   :  { %880 = vmatprep.subr.bf16.mxu1 %v5058_v57  ;;  %v5148_v57 = vld [vmem:[%s7475_s1 + $0x18c] ss:$16 sps:$4 sm:$0xff]  }
  0x33   :  { %840 = vmatpush2.bf16.msra.mxu0 %v5060_v59  ;;  %v5146_v59 = vld [vmem:[%s7475_s1 + $0x188] ss:$16 sps:$4 sm:$0xff]  }
  0x34   :  { %881 = vmatpush2.bf16.msra.mxu1 %v5061_v60  ;;  %841 = vmatprep.subr.bf16.mxu0 %v5062_v62  ;;  %v5149_v60 = vld [vmem:[%s7475_s1 + $0x388] ss:$16 sps:$4 sm:$0xff]   ;;  %v5157_v62 = vld [vmem:[%s7475_s1 + $0x36c] ss:$16 sps:$4 sm:$0xff]  }
  0x35   :  { %882 = vmatprep.subr.bf16.mxu1 %v5064_v63  ;;  %v5152_v63 = vld [vmem:[%s7475_s1 + $0x168] ss:$16 sps:$4 sm:$0xff]  }
  0x37   :  { %842 = vmatpush2.bf16.msra.mxu0 %v5066_v0  ;;  %v5155_v0 = vld [vmem:[%s7475_s1 + $0x368] ss:$16 sps:$4 sm:$0xff]  }
  0x38   :  { %883 = vmatpush2.bf16.msra.mxu1 %v5067_v1  ;;  %843 = vmatprep.subr.bf16.mxu0 %v5068_v2  ;;  %v5160_v1 = vld [vmem:[%s7475_s1 + $0x14c] ss:$16 sps:$4 sm:$0xff]  }
  0x39   :  { %884 = vmatprep.subr.bf16.mxu1 %v5070_v3  ;;  %v5163_v2 = vld [vmem:[%s7475_s1 + $0x34c] ss:$16 sps:$4 sm:$0xff]   ;;  %v5158_v3 = vld [vmem:[%s7475_s1 + $0x148] ss:$16 sps:$4 sm:$0xff]  }
  0x3b   :  { %844 = vmatpush2.bf16.msra.mxu0 %v5072_v4  ;;  %v5161_v4 = vld [vmem:[%s7475_s1 + $0x348] ss:$16 sps:$4 sm:$0xff]  }
  0x3c   :  { %885 = vmatpush2.bf16.msra.mxu1 %v5073_v5  ;;  %845 = vmatprep.subr.bf16.mxu0 %v5074_v6  ;;  %v5166_v5 = vld [vmem:[%s7475_s1 + $0x12c] ss:$16 sps:$4 sm:$0xff]  }
  0x3d   :  { %886 = vmatprep.subr.bf16.mxu1 %v5076_v7  ;;  %v5169_v6 = vld [vmem:[%s7475_s1 + $0x32c] ss:$16 sps:$4 sm:$0xff]   ;;  %v5164_v7 = vld [vmem:[%s7475_s1 + $0x128] ss:$16 sps:$4 sm:$0xff]  }
  0x3f   :  { %846 = vmatpush2.bf16.msra.mxu0 %v5078_v8  ;;  %v5167_v8 = vld [vmem:[%s7475_s1 + $0x328] ss:$16 sps:$4 sm:$0xff]  }
  0x40   :  { %887 = vmatpush2.bf16.msra.mxu1 %v5079_v10  ;;  %897 = vmatprep.subr.bf16.mxu0 %v5082_v11  ;;  %v5172_v10 = vld [vmem:[%s7475_s1 + $0x10c] ss:$16 sps:$4 sm:$0xff]  }
  0x41   :  { %938 = vmatprep.subr.bf16.mxu1 %v5085_v12  ;;  %v5175_v11 = vld [vmem:[%s7475_s1 + $0x30c] ss:$16 sps:$4 sm:$0xff]   ;;  %v5170_v12 = vld [vmem:[%s7475_s1 + $0x108] ss:$16 sps:$4 sm:$0xff]  }
  0x42   :  { %848 = vmatmul.mubr.bf16.vlgmr.msra.gmra.mxu0 %v5974_v9 }
  0x43   :  { %889 = vmatmul.mubr.bf16.vlgmr.msra.gmra.mxu1 %v5987_v13  ;;  %898 = vmatpush1.bf16.msra.mxu0 %v5080_v14  ;;  %v5173_v14 = vld [vmem:[%s7475_s1 + $0x308] ss:$16 sps:$4 sm:$0xff]  }
  0x44   :  { %939 = vmatpush1.bf16.msra.mxu1 %v5083_v15  ;;  %899 = vmatprep.subr.bf16.mxu0 %v5088_v16  ;;  %v5178_v15 = vld [vmem:[%s7475_s1 + $0x4e4] ss:$16 sps:$4 sm:$0xff]   ;;  %v5176_v16 = vld [vmem:[%s7475_s1 + $0x4e0] ss:$16 sps:$4 sm:$0xff]  }
  0x45   :  { %940 = vmatprep.subr.bf16.mxu1 %v5091_v17  ;;  %929 = vmatprep.mubr.bf16.mxu0 %v168_v58  ;;  %v5151_v58 = vld [vmem:[%s7475_s1 + $0x38c] ss:$16 sps:$4 sm:$0xff]   ;;  %v5181_v17 = vld [vmem:[%s7475_s1 + $0x4c4] ss:$16 sps:$4 sm:$0xff]  }
  0x46   :  { %970 = vmatprep.mubr.bf16.mxu1 %v170_v61  ;;  %v5154_v61 = vld [vmem:[%s7475_s1 + $0x16c] ss:$16 sps:$4 sm:$0xff]  }
  0x47   :  { %900 = vmatpush1.bf16.msra.mxu0 %v5086_v18  ;;  %v5179_v18 = vld [vmem:[%s7475_s1 + $0x4c0] ss:$16 sps:$4 sm:$0xff]  }
  0x48   :  { %941 = vmatpush1.bf16.msra.mxu1 %v5089_v19  ;;  %901 = vmatprep.subr.bf16.mxu0 %v5094_v20  ;;  %v5184_v19 = vld [vmem:[%s7475_s1 + $0x4a4] ss:$16 sps:$4 sm:$0xff]   ;;  %v5182_v20 = vld [vmem:[%s7475_s1 + $0x4a0] ss:$16 sps:$4 sm:$0xff]  }
  0x49   :  { %942 = vmatprep.subr.bf16.mxu1 %v5097_v21  ;;  %v5190_v21 = vld [vmem:[%s7475_s1 + $0x464] ss:$16 sps:$4 sm:$0xff]  }
  0x4b   :  { %902 = vmatpush1.bf16.msra.mxu0 %v5092_v22  ;;  %v5188_v22 = vld [vmem:[%s7475_s1 + $0x460] ss:$16 sps:$4 sm:$0xff]  }
  0x4c   :  { %943 = vmatpush1.bf16.msra.mxu1 %v5095_v23  ;;  %903 = vmatprep.subr.bf16.mxu0 %v5100_v24  ;;  %v5226_v23 = vld [vmem:[%s7475_s1 + $0x6e4] ss:$16 sps:$4 sm:$0xff]  }
  0x4d   :  { %944 = vmatprep.subr.bf16.mxu1 %v5103_v25  ;;  %v5193_v24 = vld [vmem:[%s7475_s1 + $0x444] ss:$16 sps:$4 sm:$0xff]   ;;  %v5224_v25 = vld [vmem:[%s7475_s1 + $0x6e0] ss:$16 sps:$4 sm:$0xff]  }
  0x4f   :  { %904 = vmatpush1.bf16.msra.mxu0 %v5098_v26  ;;  %v5191_v26 = vld [vmem:[%s7475_s1 + $0x440] ss:$16 sps:$4 sm:$0xff]  }
  0x50   :  { %945 = vmatpush1.bf16.msra.mxu1 %v5101_v27  ;;  %905 = vmatprep.subr.bf16.mxu0 %v5106_v28  ;;  %v5230_v27 = vld [vmem:[%s7475_s1 + $0x6c0] ss:$16 sps:$4 sm:$0xff]   ;;  %v5232_v28 = vld [vmem:[%s7475_s1 + $0x6c4] ss:$16 sps:$4 sm:$0xff]  }
  0x51   :  { %946 = vmatprep.subr.bf16.mxu1 %v5109_v29  ;;  %v5196_v29 = vld [vmem:[%s7475_s1 + $0x424] ss:$16 sps:$4 sm:$0xff]  }
  0x53   :  { %906 = vmatpush1.bf16.msra.mxu0 %v5104_v30  ;;  %v5194_v30 = vld [vmem:[%s7475_s1 + $0x420] ss:$16 sps:$4 sm:$0xff]  }
  0x54   :  { %947 = vmatpush1.bf16.msra.mxu1 %v5107_v31  ;;  %907 = vmatprep.subr.bf16.mxu0 %v5112_v32  ;;  %v5236_v31 = vld [vmem:[%s7475_s1 + $0x6a0] ss:$16 sps:$4 sm:$0xff]   ;;  %v5238_v32 = vld [vmem:[%s7475_s1 + $0x6a4] ss:$16 sps:$4 sm:$0xff]  }
  0x55   :  { %948 = vmatprep.subr.bf16.mxu1 %v5115_v33  ;;  %v5199_v33 = vld [vmem:[%s7475_s1 + $0x404] ss:$16 sps:$4 sm:$0xff]  }
  0x57   :  { %908 = vmatpush1.bf16.msra.mxu0 %v5110_v34  ;;  %v5197_v34 = vld [vmem:[%s7475_s1 + $0x400] ss:$16 sps:$4 sm:$0xff]  }
  0x58   :  { %949 = vmatpush1.bf16.msra.mxu1 %v5113_v35  ;;  %909 = vmatprep.subr.bf16.mxu0 %v5118_v36  ;;  %v5242_v35 = vld [vmem:[%s7475_s1 + $0x680] ss:$16 sps:$4 sm:$0xff]   ;;  %v5244_v36 = vld [vmem:[%s7475_s1 + $0x684] ss:$16 sps:$4 sm:$0xff]  }
  0x59   :  { %950 = vmatprep.subr.bf16.mxu1 %v5121_v37  ;;  %v5202_v37 = vld [vmem:[%s7475_s1 + $0x5e4] ss:$16 sps:$4 sm:$0xff]  }
  0x5b   :  { %910 = vmatpush1.bf16.msra.mxu0 %v5116_v38  ;;  %v5200_v38 = vld [vmem:[%s7475_s1 + $0x5e0] ss:$16 sps:$4 sm:$0xff]  }
  0x5c   :  { %951 = vmatpush1.bf16.msra.mxu1 %v5119_v39  ;;  %911 = vmatprep.subr.bf16.mxu0 %v5124_v40  ;;  %v5248_v39 = vld [vmem:[%s7475_s1 + $0x660] ss:$16 sps:$4 sm:$0xff]   ;;  %v5250_v40 = vld [vmem:[%s7475_s1 + $0x664] ss:$16 sps:$4 sm:$0xff]  }
  0x5d   :  { %952 = vmatprep.subr.bf16.mxu1 %v5127_v41  ;;  %v5205_v41 = vld [vmem:[%s7475_s1 + $0x5c4] ss:$16 sps:$4 sm:$0xff]  }
  0x5f   :  { %912 = vmatpush1.bf16.msra.mxu0 %v5122_v42  ;;  %v5203_v42 = vld [vmem:[%s7475_s1 + $0x5c0] ss:$16 sps:$4 sm:$0xff]  }
  0x60   :  { %953 = vmatpush1.bf16.msra.mxu1 %v5125_v43  ;;  %913 = vmatprep.subr.bf16.mxu0 %v5130_v44  ;;  %v5254_v43 = vld [vmem:[%s7475_s1 + $0x640] ss:$16 sps:$4 sm:$0xff]   ;;  %v5256_v44 = vld [vmem:[%s7475_s1 + $0x644] ss:$16 sps:$4 sm:$0xff]  }
  0x61   :  { %954 = vmatprep.subr.bf16.mxu1 %v5133_v45  ;;  %v5208_v45 = vld [vmem:[%s7475_s1 + $0x5a4] ss:$16 sps:$4 sm:$0xff]  }
  0x63   :  { %914 = vmatpush2.bf16.msra.mxu0 %v5128_v47  ;;  %v5206_v47 = vld [vmem:[%s7475_s1 + $0x5a0] ss:$16 sps:$4 sm:$0xff]  }
  0x64   :  { %955 = vmatpush2.bf16.msra.mxu1 %v5131_v48  ;;  %915 = vmatprep.subr.bf16.mxu0 %v5136_v49  ;;  %v5260_v48 = vld [vmem:[%s7475_s1 + $0x620] ss:$16 sps:$4 sm:$0xff]   ;;  %v5262_v49 = vld [vmem:[%s7475_s1 + $0x624] ss:$16 sps:$4 sm:$0xff]  }
  0x65   :  { %956 = vmatprep.subr.bf16.mxu1 %v5139_v50  ;;  %v5211_v50 = vld [vmem:[%s7475_s1 + $0x584] ss:$16 sps:$4 sm:$0xff]  }
  0x67   :  { %916 = vmatpush2.bf16.msra.mxu0 %v5134_v51  ;;  %v5209_v51 = vld [vmem:[%s7475_s1 + $0x580] ss:$16 sps:$4 sm:$0xff]  }
  0x68   :  { %957 = vmatpush2.bf16.msra.mxu1 %v5137_v52  ;;  %917 = vmatprep.subr.bf16.mxu0 %v5142_v53  ;;  %v5266_v52 = vld [vmem:[%s7475_s1 + $0x600] ss:$16 sps:$4 sm:$0xff]   ;;  %v5268_v53 = vld [vmem:[%s7475_s1 + $0x604] ss:$16 sps:$4 sm:$0xff]  }
  0x69   :  { %958 = vmatprep.subr.bf16.mxu1 %v5145_v54  ;;  %v5214_v54 = vld [vmem:[%s7475_s1 + $0x564] ss:$16 sps:$4 sm:$0xff]  }
  0x6b   :  { %918 = vmatpush2.bf16.msra.mxu0 %v5140_v55  ;;  %v5212_v55 = vld [vmem:[%s7475_s1 + $0x560] ss:$16 sps:$4 sm:$0xff]  }
  0x6c   :  { %959 = vmatpush2.bf16.msra.mxu1 %v5143_v56  ;;  %919 = vmatprep.subr.bf16.mxu0 %v5148_v57  ;;  %v5272_v56 = vld [vmem:[%s7475_s1 + $0x7e0] ss:$16 sps:$4 sm:$0xff]   ;;  %v5274_v57 = vld [vmem:[%s7475_s1 + $0x7e4] ss:$16 sps:$4 sm:$0xff]  }
  0x6d   :  { %960 = vmatprep.subr.bf16.mxu1 %v5151_v58  ;;  %v5217_v58 = vld [vmem:[%s7475_s1 + $0x544] ss:$16 sps:$4 sm:$0xff]  }
  0x6f   :  { %920 = vmatpush2.bf16.msra.mxu0 %v5146_v59  ;;  %v5215_v59 = vld [vmem:[%s7475_s1 + $0x540] ss:$16 sps:$4 sm:$0xff]  }
  0x70   :  { %961 = vmatpush2.bf16.msra.mxu1 %v5149_v60  ;;  %921 = vmatprep.subr.bf16.mxu0 %v5154_v61  ;;  %v5278_v60 = vld [vmem:[%s7475_s1 + $0x7c0] ss:$16 sps:$4 sm:$0xff]   ;;  %v5280_v61 = vld [vmem:[%s7475_s1 + $0x7c4] ss:$16 sps:$4 sm:$0xff]  }
  0x71   :  { %962 = vmatprep.subr.bf16.mxu1 %v5157_v62  ;;  %v5220_v62 = vld [vmem:[%s7475_s1 + $0x524] ss:$16 sps:$4 sm:$0xff]  }
  0x73   :  { %922 = vmatpush2.bf16.msra.mxu0 %v5152_v63  ;;  %v5218_v63 = vld [vmem:[%s7475_s1 + $0x520] ss:$16 sps:$4 sm:$0xff]  }
  0x74   :  { %963 = vmatpush2.bf16.msra.mxu1 %v5155_v0  ;;  %923 = vmatprep.subr.bf16.mxu0 %v5160_v1  ;;  %v5284_v0 = vld [vmem:[%s7475_s1 + $0x7a0] ss:$16 sps:$4 sm:$0xff]   ;;  %v5286_v1 = vld [vmem:[%s7475_s1 + $0x7a4] ss:$16 sps:$4 sm:$0xff]  }
  0x75   :  { %964 = vmatprep.subr.bf16.mxu1 %v5163_v2  ;;  %v5223_v2 = vld [vmem:[%s7475_s1 + $0x504] ss:$16 sps:$4 sm:$0xff]  }
  0x77   :  { %924 = vmatpush2.bf16.msra.mxu0 %v5158_v3  ;;  %v5221_v3 = vld [vmem:[%s7475_s1 + $0x500] ss:$16 sps:$4 sm:$0xff]  }
  0x78   :  { %965 = vmatpush2.bf16.msra.mxu1 %v5161_v4  ;;  %925 = vmatprep.subr.bf16.mxu0 %v5166_v5  ;;  %v5290_v4 = vld [vmem:[%s7475_s1 + $0x780] ss:$16 sps:$4 sm:$0xff]   ;;  %v5292_v5 = vld [vmem:[%s7475_s1 + $0x784] ss:$16 sps:$4 sm:$0xff]  }
  0x79   :  { %966 = vmatprep.subr.bf16.mxu1 %v5169_v6  ;;  %v5229_v6 = vld [vmem:[%s7475_s1 + $0x4ec] ss:$16 sps:$4 sm:$0xff]  }
  0x7b   :  { %926 = vmatpush2.bf16.msra.mxu0 %v5164_v7  ;;  %v5296_v7 = vld [vmem:[%s7475_s1 + $0x760] ss:$16 sps:$4 sm:$0xff]  }
  0x7c   :  { %967 = vmatpush2.bf16.msra.mxu1 %v5167_v8  ;;  %927 = vmatprep.subr.bf16.mxu0 %v5172_v10  ;;  %v5298_v8 = vld [vmem:[%s7475_s1 + $0x764] ss:$16 sps:$4 sm:$0xff]  }
  0x7d   :  { %968 = vmatprep.subr.bf16.mxu1 %v5175_v11  ;;  %v5304_v10 = vld [vmem:[%s7475_s1 + $0x744] ss:$16 sps:$4 sm:$0xff]   ;;  %v5302_v11 = vld [vmem:[%s7475_s1 + $0x740] ss:$16 sps:$4 sm:$0xff]  }
  0x7f   :  { %928 = vmatpush2.bf16.msra.mxu0 %v5170_v12  ;;  %v5310_v12 = vld [vmem:[%s7475_s1 + $0x724] ss:$16 sps:$4 sm:$0xff]  }
  0x80   :  { %969 = vmatpush2.bf16.msra.mxu1 %v5173_v14  ;;  %1816 = vmatprep.subr.bf16.mxu0 %v5178_v15  ;;  %v5308_v14 = vld [vmem:[%s7475_s1 + $0x720] ss:$16 sps:$4 sm:$0xff]  }
  0x81   :  { %1857 = vmatprep.subr.bf16.mxu1 %v5226_v23  ;;  %v5314_v15 = vld [vmem:[%s7475_s1 + $0x700] ss:$16 sps:$4 sm:$0xff]  }
  0x82   :  { %930 = vmatmul.mubr.bf16.vlgmr.msra.gmra.mxu0 %v5974_v9  ;;  %v5187_v9 = vld [vmem:[%s7475_s1 + $0x484] ss:$16 sps:$4 sm:$0xff]  }
  0x83   :  { %971 = vmatmul.mubr.bf16.vlgmr.msra.gmra.mxu1 %v5987_v13  ;;  %1817 = vmatpush1.bf16.msra.mxu0 %v5176_v16  ;;  %v5185_v13 = vld [vmem:[%s7475_s1 + $0x480] ss:$16 sps:$4 sm:$0xff]   ;;  %v5316_v16 = vld [vmem:[%s7475_s1 + $0x704] ss:$16 sps:$4 sm:$0xff]  }
  0x84   :  { %1818 = vmatprep.subr.bf16.mxu0 %v5181_v17  ;;  %1858 = vmatpush1.bf16.msra.mxu1 %v5224_v25  ;;  %v5322_v17 = vld [vmem:[%s7475_s1 + $0x6ec] ss:$16 sps:$4 sm:$0xff]  }
  0x85   :  { %1859 = vmatprep.subr.bf16.mxu1 %v5232_v28 }
  0x87   :  { %1819 = vmatpush1.bf16.msra.mxu0 %v5179_v18  ;;  %v6378_v18 = vsub.s32 0, %v5905_v46 }
  0x88   :  { %1820 = vmatprep.subr.bf16.mxu0 %v5184_v19  ;;  %1860 = vmatpush1.bf16.msra.mxu1 %v5230_v27  ;;  %v6383_v19 = vld [vmem:[%s7477_s2] ss:$4 sm:$0xf] }
  0x89   :  { %1861 = vmatprep.subr.bf16.mxu1 %v5238_v32 }
  0x8b   :  { %1821 = vmatpush1.bf16.msra.mxu0 %v5182_v20  ;;  %v6386_v20 = vsub.s32 1, %v5905_v46 }
  0x8c   :  { %1822 = vmatprep.subr.bf16.mxu0 %v5187_v9  ;;  %1862 = vmatpush1.bf16.msra.mxu1 %v5236_v31  ;;  %v6391_v9 = vld [vmem:[%s7478_s3] ss:$4 sm:$0xf] }
  0x8d   :  { %1863 = vmatprep.subr.bf16.mxu1 %v5244_v36  ;;  %v988_v25 = vrot.slane %v6383_v19, %v6386_v20 }
  0x8f   :  { %1823 = vmatpush1.bf16.msra.mxu0 %v5185_v13  ;;  %v984_v13 = vrot.slane %v6383_v19, %v6378_v18 }
  0x90   :  { %1824 = vmatprep.subr.bf16.mxu0 %v5190_v21  ;;  %1864 = vmatpush1.bf16.msra.mxu1 %v5242_v35 }
  0x91   :  { %1865 = vmatprep.subr.bf16.mxu1 %v5250_v40 }
  0x93   :  { %1825 = vmatpush1.bf16.msra.mxu0 %v5188_v22 }
  0x94   :  { %1826 = vmatprep.subr.bf16.mxu0 %v5193_v24  ;;  %1866 = vmatpush1.bf16.msra.mxu1 %v5248_v39  ;;  %v1010_v24 = vrot.slane %v6391_v9, %v6378_v18 }
  0x95   :  { %1867 = vmatprep.subr.bf16.mxu1 %v5256_v44 }
  0x97   :  { %1827 = vmatpush1.bf16.msra.mxu0 %v5191_v26 }
  0x98   :  { %1828 = vmatprep.subr.bf16.mxu0 %v5196_v29  ;;  %1868 = vmatpush1.bf16.msra.mxu1 %v5254_v43  ;;  %v5227_v43 = vld [vmem:[%s7475_s1 + $0x4e8] ss:$16 sps:$4 sm:$0xff]  }
  0x99   :  { %1869 = vmatprep.subr.bf16.mxu1 %v5262_v49  ;;  %v5239_v49 = vld [vmem:[%s7475_s1 + $0x4a8] ss:$16 sps:$4 sm:$0xff]  }
  0x9b   :  { %1829 = vmatpush1.bf16.msra.mxu0 %v5194_v30  ;;  %v1014_v30 = vrot.slane %v6391_v9, %v6386_v20 }
  0x9c   :  { %1830 = vmatprep.subr.bf16.mxu0 %v5199_v33  ;;  %1870 = vmatpush1.bf16.msra.mxu1 %v5260_v48  ;;  %v5241_v48 = vld [vmem:[%s7475_s1 + $0x4ac] ss:$16 sps:$4 sm:$0xff]  }
  0x9d   :  { %1871 = vmatprep.subr.bf16.mxu1 %v5268_v53  ;;  %v5251_v53 = vld [vmem:[%s7475_s1 + $0x468] ss:$16 sps:$4 sm:$0xff]  }
  0x9f   :  { %1831 = vmatpush1.bf16.msra.mxu0 %v5197_v34 }
  0xa0   :  { %1832 = vmatprep.subr.bf16.mxu0 %v5202_v37  ;;  %1872 = vmatpush1.bf16.msra.mxu1 %v5266_v52  ;;  %v5253_v52 = vld [vmem:[%s7475_s1 + $0x46c] ss:$16 sps:$4 sm:$0xff]  }
  0xa1   :  { %1873 = vmatprep.subr.bf16.mxu1 %v5274_v57  ;;  %v5263_v57 = vld [vmem:[%s7475_s1 + $0x428] ss:$16 sps:$4 sm:$0xff]  }
  0xa3   :  { %1833 = vmatpush2.bf16.msra.mxu0 %v5200_v38 }
  0xa4   :  { %1834 = vmatprep.subr.bf16.mxu0 %v5205_v41  ;;  %1874 = vmatpush2.bf16.msra.mxu1 %v5272_v56  ;;  %v5265_v56 = vld [vmem:[%s7475_s1 + $0x42c] ss:$16 sps:$4 sm:$0xff]  }
  0xa5   :  { %1875 = vmatprep.subr.bf16.mxu1 %v5280_v61  ;;  %v5275_v61 = vld [vmem:[%s7475_s1 + $0x5e8] ss:$16 sps:$4 sm:$0xff]  }
  0xa7   :  { %1835 = vmatpush2.bf16.msra.mxu0 %v5203_v42 }
  0xa8   :  { %1836 = vmatprep.subr.bf16.mxu0 %v5208_v45  ;;  %1876 = vmatpush2.bf16.msra.mxu1 %v5278_v60  ;;  %v5235_v45 = vld [vmem:[%s7475_s1 + $0x4cc] ss:$16 sps:$4 sm:$0xff]  }
  0xa9   :  { %1877 = vmatprep.subr.bf16.mxu1 %v5286_v1  ;;  %v5277_v60 = vld [vmem:[%s7475_s1 + $0x5ec] ss:$16 sps:$4 sm:$0xff]   ;;  %v5287_v1 = vld [vmem:[%s7475_s1 + $0x5a8] ss:$16 sps:$4 sm:$0xff]  }
  0xab   :  { %1837 = vmatpush2.bf16.msra.mxu0 %v5206_v47  ;;  %v5233_v47 = vld [vmem:[%s7475_s1 + $0x4c8] ss:$16 sps:$4 sm:$0xff]  }
  0xac   :  { %1838 = vmatprep.subr.bf16.mxu0 %v5211_v50  ;;  %1878 = vmatpush2.bf16.msra.mxu1 %v5284_v0  ;;  %v5247_v50 = vld [vmem:[%s7475_s1 + $0x48c] ss:$16 sps:$4 sm:$0xff]  }
  0xad   :  { %1879 = vmatprep.subr.bf16.mxu1 %v5292_v5  ;;  %v5289_v0 = vld [vmem:[%s7475_s1 + $0x5ac] ss:$16 sps:$4 sm:$0xff]   ;;  %v6477_v5 = vsub.s32 2, %v5905_v46 }
  0xaf   :  { %1839 = vmatpush2.bf16.msra.mxu0 %v5209_v51  ;;  %v5245_v51 = vld [vmem:[%s7475_s1 + $0x488] ss:$16 sps:$4 sm:$0xff]  }
  0xb0   :  { %1840 = vmatprep.subr.bf16.mxu0 %v5214_v54  ;;  %1880 = vmatpush2.bf16.msra.mxu1 %v5290_v4  ;;  %v5259_v54 = vld [vmem:[%s7475_s1 + $0x44c] ss:$16 sps:$4 sm:$0xff]  }
  0xb1   :  { %1881 = vmatprep.subr.bf16.mxu1 %v5298_v8  ;;  %v5301_v4 = vld [vmem:[%s7475_s1 + $0x56c] ss:$16 sps:$4 sm:$0xff]  }
  0xb2   :  { %v5307_v8 = vld [vmem:[%s7475_s1 + $0x54c] ss:$16 sps:$4 sm:$0xff]  }
  0xb3   :  { %1841 = vmatpush2.bf16.msra.mxu0 %v5212_v55  ;;  %v5257_v55 = vld [vmem:[%s7475_s1 + $0x448] ss:$16 sps:$4 sm:$0xff]  }
  0xb4   :  { %1842 = vmatprep.subr.bf16.mxu0 %v5217_v58  ;;  %1882 = vmatpush2.bf16.msra.mxu1 %v5296_v7  ;;  %v5271_v58 = vld [vmem:[%s7475_s1 + $0x40c] ss:$16 sps:$4 sm:$0xff]   ;;  %v6483_v7 = vsub.s32 3, %v5905_v46 }
  0xb5   :  { %1883 = vmatprep.subr.bf16.mxu1 %v5304_v10  ;;  %v992_v10 = vrot.slane %v6383_v19, %v6477_v5 }
  0xb7   :  { %1843 = vmatpush2.bf16.msra.mxu0 %v5215_v59  ;;  %v5269_v59 = vld [vmem:[%s7475_s1 + $0x408] ss:$16 sps:$4 sm:$0xff]  }
  0xb8   :  { %1844 = vmatprep.subr.bf16.mxu0 %v5220_v62  ;;  %1884 = vmatpush2.bf16.msra.mxu1 %v5302_v11  ;;  %v5283_v62 = vld [vmem:[%s7475_s1 + $0x5cc] ss:$16 sps:$4 sm:$0xff]  }
  0xb9   :  { %1885 = vmatprep.subr.bf16.mxu1 %v5310_v12 }
  0xbb   :  { %1845 = vmatpush2.bf16.msra.mxu0 %v5218_v63  ;;  %v5281_v63 = vld [vmem:[%s7475_s1 + $0x5c8] ss:$16 sps:$4 sm:$0xff]  }
  0xbc   :  { %1846 = vmatprep.subr.bf16.mxu0 %v5223_v2  ;;  %1886 = vmatpush2.bf16.msra.mxu1 %v5308_v14  ;;  %v5295_v2 = vld [vmem:[%s7475_s1 + $0x58c] ss:$16 sps:$4 sm:$0xff]   ;;  %v5305_v14 = vld [vmem:[%s7475_s1 + $0x548] ss:$16 sps:$4 sm:$0xff]  }
  0xbd   :  { %1887 = vmatprep.subr.bf16.mxu1 %v5316_v16  ;;  %v1018_v16 = vrot.slane %v6391_v9, %v6477_v5 }
  0xbf   :  { %1847 = vmatpush2.bf16.msra.mxu0 %v5221_v3  ;;  %v5293_v3 = vld [vmem:[%s7475_s1 + $0x588] ss:$16 sps:$4 sm:$0xff]  }
  0xc0   :  { %1898 = vmatprep.subr.bf16.mxu0 %v5229_v6  ;;  %1888 = vmatpush2.bf16.msra.mxu1 %v5314_v15  ;;  %v5299_v6 = vld [vmem:[%s7475_s1 + $0x568] ss:$16 sps:$4 sm:$0xff]  }
  0xc1   :  { %1939 = vmatprep.subr.bf16.mxu1 %v5322_v17  ;;  %v996_v17 = vrot.slane %v6383_v19, %v6483_v7 }
 0x102   :  { %v849_v21 = vpop.f32.mrf.mxu0 }
 0x103   :  { %v890_v22 = vpop.f32.mrf.mxu1 }
 0x104   :  { %v891_v23 = vadd.f32 %v890_v22, %v849_v21  ;;  %v851_v26 = vpop.f32.mrf.mxu0 }
 0x105   :  { %v892_v27 = vpop.f32.mrf.mxu1 }
 0x106   :  { %v1001_v28 = vmul.f32 %v984_v13, %v891_v23  ;;  %v893_v29 = vadd.f32 %v892_v27, %v851_v26  ;;  %v853_v31 = vpop.f32.mrf.mxu0  ;;  %v5313_v13 = vld [vmem:[%s7475_s1 + $0x52c] ss:$16 sps:$4 sm:$0xff]  }
 0x107   :  { %v894_v32 = vpop.f32.mrf.mxu1 }
 0x108   :  { %v1027_v33 = vadd.f32 %v1010_v24, %v1001_v28  ;;  %v1002_v34 = vmul.f32 %v988_v25, %v893_v29  ;;  %v854_v35 = vpop.f32.mrf.mxu0  ;;  %v1022_v25 = vrot.slane %v6391_v9, %v6483_v7  ;;  %v5311_v28 = vld [vmem:[%s7475_s1 + $0x528] ss:$16 sps:$4 sm:$0xff]  }
 0x109   :  { %v895_v36 = vpop.f32.mrf.mxu1  ;;  %v5317_v9 = vld [vmem:[%s7475_s1 + $0x508] ss:$16 sps:$4 sm:$0xff]  }
 0x10a   :  { %vm1031_vm0 = vcmp.ge.f32.partialorder %v1027_v33, 0.0  ;;  %v1035_v37 = vmul.f32 0.1, %v1027_v33  ;;  %v1028_v38 = vadd.f32 %v1014_v30, %v1002_v34  ;;  %v5319_v30 = vld [vmem:[%s7475_s1 + $0x50c] ss:$16 sps:$4 sm:$0xff]  }
 0x10c   :  { %vm1032_vm1 = vcmp.ge.f32.partialorder %v1028_v38, 0.0  ;;  %v1036_v39 = vmul.f32 0.1, %v1028_v38  ;;  %v1039_v40 = vsel %vm1031_vm0, %v1027_v33, %v1035_v37 }
 0x10d   :  { %v6404_v44 = vpack.c.bf16 %v1039_v40, %v1039_v40 }
 0x10e   :  { %v1040_v41 = vsel %vm1032_vm1, %v1028_v38, %v1036_v39  ;;  %v5320_v39 = vld [vmem:[%s7475_s1 + $0x6e8] ss:$16 sps:$4 sm:$0xff]  }
 0x10f   :  { %v1044_v42 = vpack.c.bf16 %v1040_v41, %v1040_v41  ;;  %v5325_v41 = vld [vmem:[%s7475_s1 + $0x6cc] ss:$16 sps:$4 sm:$0xff]  }
 0x111   :  { %1848 = vmatprep.mubr.bf16.mxu0 %v1044_v42 }
 0x112   :  { %1849 = vmatmul.mubr.bf16.vlgmr.msra.gmra.mxu0 %v6404_v44 }
 0x113   :  { %1899 = vmatpush1.bf16.msra.mxu0 %v5227_v43  ;;  %1930 = vmatprep.mubr.bf16.mxu0 %v1044_v42  ;;  %v5323_v42 = vld [vmem:[%s7475_s1 + $0x6c8] ss:$16 sps:$4 sm:$0xff]   ;;  %v5328_v43 = vld [vmem:[%s7475_s1 + $0x6ac] ss:$16 sps:$4 sm:$0xff]  }
 0x114   :  { %1900 = vmatprep.subr.bf16.mxu0 %v5235_v45  ;;  %v5326_v45 = vld [vmem:[%s7475_s1 + $0x6a8] ss:$16 sps:$4 sm:$0xff]  }
 0x117   :  { %1901 = vmatpush1.bf16.msra.mxu0 %v5233_v47  ;;  %v5368_v47 = vld [vmem:[%s7475_s1 + $0x8e0] ss:$16 sps:$4 sm:$0xff]  }
 0x118   :  { %1902 = vmatprep.subr.bf16.mxu0 %v5241_v48  ;;  %v5370_v48 = vld [vmem:[%s7475_s1 + $0x8e4] ss:$16 sps:$4 sm:$0xff]  }
 0x11b   :  { %1903 = vmatpush1.bf16.msra.mxu0 %v5239_v49  ;;  %v5373_v49 = vld [vmem:[%s7475_s1 + $0x8c4] ss:$16 sps:$4 sm:$0xff]  }
 0x11c   :  { %1904 = vmatprep.subr.bf16.mxu0 %v5247_v50  ;;  %v5329_v50 = vld [vmem:[%s7475_s1 + $0x688] ss:$16 sps:$4 sm:$0xff]  }
 0x11f   :  { %1905 = vmatpush1.bf16.msra.mxu0 %v5245_v51  ;;  %v5371_v51 = vld [vmem:[%s7475_s1 + $0x8c0] ss:$16 sps:$4 sm:$0xff]  }
 0x120   :  { %1906 = vmatprep.subr.bf16.mxu0 %v5253_v52  ;;  %v5334_v52 = vld [vmem:[%s7475_s1 + $0x66c] ss:$16 sps:$4 sm:$0xff]  }
 0x123   :  { %1907 = vmatpush1.bf16.msra.mxu0 %v5251_v53  ;;  %v5376_v53 = vld [vmem:[%s7475_s1 + $0x8a4] ss:$16 sps:$4 sm:$0xff]  }
 0x124   :  { %1908 = vmatprep.subr.bf16.mxu0 %v5259_v54  ;;  %v5332_v54 = vld [vmem:[%s7475_s1 + $0x668] ss:$16 sps:$4 sm:$0xff]  }
 0x127   :  { %1909 = vmatpush1.bf16.msra.mxu0 %v5257_v55  ;;  %v5374_v55 = vld [vmem:[%s7475_s1 + $0x8a0] ss:$16 sps:$4 sm:$0xff]  }
 0x128   :  { %1910 = vmatprep.subr.bf16.mxu0 %v5265_v56  ;;  %v5337_v56 = vld [vmem:[%s7475_s1 + $0x64c] ss:$16 sps:$4 sm:$0xff]  }
 0x12b   :  { %1911 = vmatpush1.bf16.msra.mxu0 %v5263_v57  ;;  %v5379_v57 = vld [vmem:[%s7475_s1 + $0x884] ss:$16 sps:$4 sm:$0xff]  }
 0x12c   :  { %1912 = vmatprep.subr.bf16.mxu0 %v5271_v58  ;;  %v5335_v58 = vld [vmem:[%s7475_s1 + $0x648] ss:$16 sps:$4 sm:$0xff]  }
 0x12f   :  { %1913 = vmatpush1.bf16.msra.mxu0 %v5269_v59  ;;  %v5377_v59 = vld [vmem:[%s7475_s1 + $0x880] ss:$16 sps:$4 sm:$0xff]  }
 0x130   :  { %1914 = vmatprep.subr.bf16.mxu0 %v5277_v60  ;;  %v5340_v60 = vld [vmem:[%s7475_s1 + $0x62c] ss:$16 sps:$4 sm:$0xff]  }
 0x133   :  { %1915 = vmatpush2.bf16.msra.mxu0 %v5275_v61  ;;  %v5382_v61 = vld [vmem:[%s7475_s1 + $0x864] ss:$16 sps:$4 sm:$0xff]  }
 0x134   :  { %1916 = vmatprep.subr.bf16.mxu0 %v5283_v62  ;;  %v5338_v62 = vld [vmem:[%s7475_s1 + $0x628] ss:$16 sps:$4 sm:$0xff]  }
 0x137   :  { %1917 = vmatpush2.bf16.msra.mxu0 %v5281_v63  ;;  %v5380_v63 = vld [vmem:[%s7475_s1 + $0x860] ss:$16 sps:$4 sm:$0xff]  }
 0x138   :  { %1918 = vmatprep.subr.bf16.mxu0 %v5289_v0  ;;  %v5343_v0 = vld [vmem:[%s7475_s1 + $0x60c] ss:$16 sps:$4 sm:$0xff]  }
 0x13b   :  { %1919 = vmatpush2.bf16.msra.mxu0 %v5287_v1  ;;  %v5385_v1 = vld [vmem:[%s7475_s1 + $0x844] ss:$16 sps:$4 sm:$0xff]  }
 0x13c   :  { %1920 = vmatprep.subr.bf16.mxu0 %v5295_v2  ;;  %v5341_v2 = vld [vmem:[%s7475_s1 + $0x608] ss:$16 sps:$4 sm:$0xff]  }
 0x13f   :  { %1921 = vmatpush2.bf16.msra.mxu0 %v5293_v3  ;;  %v5383_v3 = vld [vmem:[%s7475_s1 + $0x840] ss:$16 sps:$4 sm:$0xff]  }
 0x140   :  { %1922 = vmatprep.subr.bf16.mxu0 %v5301_v4  ;;  %v5346_v4 = vld [vmem:[%s7475_s1 + $0x7ec] ss:$16 sps:$4 sm:$0xff]  }
 0x142   :  { %v931_v11 = vpop.f32.mrf.mxu0 }
 0x143   :  { %1923 = vmatpush2.bf16.msra.mxu0 %v5299_v6  ;;  %v972_v12 = vpop.f32.mrf.mxu1  ;;  %v5388_v6 = vld [vmem:[%s7475_s1 + $0x824] ss:$16 sps:$4 sm:$0xff]  }
 0x144   :  { %v973_v15 = vadd.f32 %v972_v12, %v931_v11  ;;  %1924 = vmatprep.subr.bf16.mxu0 %v5307_v8  ;;  %v933_v21 = vpop.f32.mrf.mxu0  ;;  %v5344_v8 = vld [vmem:[%s7475_s1 + $0x7e8] ss:$16 sps:$4 sm:$0xff]   ;;  %v5349_v11 = vld [vmem:[%s7475_s1 + $0x7cc] ss:$16 sps:$4 sm:$0xff]   ;;  %v5391_v12 = vld [vmem:[%s7475_s1 + $0x804] ss:$16 sps:$4 sm:$0xff]  }
 0x145   :  { %v974_v22 = vpop.f32.mrf.mxu1 }
 0x146   :  { %v1003_v23 = vmul.f32 %v992_v10, %v973_v15  ;;  %v975_v24 = vadd.f32 %v974_v22, %v933_v21  ;;  %v935_v26 = vpop.f32.mrf.mxu0  ;;  %v5386_v10 = vld [vmem:[%s7475_s1 + $0x820] ss:$16 sps:$4 sm:$0xff]   ;;  %v5355_v22 = vld [vmem:[%s7475_s1 + $0x78c] ss:$16 sps:$4 sm:$0xff]  }
 0x147   :  { %1925 = vmatpush2.bf16.msra.mxu0 %v5305_v14  ;;  %v976_v27 = vpop.f32.mrf.mxu1  ;;  %v5347_v14 = vld [vmem:[%s7475_s1 + $0x7c8] ss:$16 sps:$4 sm:$0xff]   ;;  %v5389_v15 = vld [vmem:[%s7475_s1 + $0x800] ss:$16 sps:$4 sm:$0xff]   ;;  %v5358_v26 = vld [vmem:[%s7475_s1 + $0x76c] ss:$16 sps:$4 sm:$0xff]  }
 0x148   :  { %v1029_v19 = vadd.f32 %v1018_v16, %v1003_v23  ;;  %v1004_v29 = vmul.f32 %v996_v17, %v975_v24  ;;  %1926 = vmatprep.subr.bf16.mxu0 %v5313_v13  ;;  %v936_v31 = vpop.f32.mrf.mxu0  ;;  %v5352_v16 = vld [vmem:[%s7475_s1 + $0x7ac] ss:$16 sps:$4 sm:$0xff]   ;;  %v5394_v17 = vld [vmem:[%s7475_s1 + $0x9e4] ss:$16 sps:$4 sm:$0xff]   ;;  %v5350_v13 = vld [vmem:[%s7475_s1 + $0x7a8] ss:$16 sps:$4 sm:$0xff]  }
 0x149   :  { %v977_v32 = vpop.f32.mrf.mxu1  ;;  %v5392_v21 = vld [vmem:[%s7475_s1 + $0x9e0] ss:$16 sps:$4 sm:$0xff]   ;;  %v5397_v23 = vld [vmem:[%s7475_s1 + $0x9c4] ss:$16 sps:$4 sm:$0xff]   ;;  %v5353_v24 = vld [vmem:[%s7475_s1 + $0x788] ss:$16 sps:$4 sm:$0xff]  }
 0x14a   :  { %vm1033_vm2 = vcmp.ge.f32.partialorder %v1029_v19, 0.0  ;;  %v1037_v33 = vmul.f32 0.1, %v1029_v19  ;;  %v1030_v34 = vadd.f32 %v1022_v25, %v1004_v29  ;;  %v5395_v25 = vld [vmem:[%s7475_s1 + $0x9c0] ss:$16 sps:$4 sm:$0xff]  }
 0x14b   :  { %1927 = vmatpush2.bf16.msra.mxu0 %v5311_v28  ;;  %v5400_v27 = vld [vmem:[%s7475_s1 + $0x9a4] ss:$16 sps:$4 sm:$0xff]   ;;  %v5356_v28 = vld [vmem:[%s7475_s1 + $0x768] ss:$16 sps:$4 sm:$0xff]   ;;  %v5361_v29 = vld [vmem:[%s7475_s1 + $0x74c] ss:$16 sps:$4 sm:$0xff]  }
 0x14c   :  { %1928 = vmatprep.subr.bf16.mxu0 %v5319_v30  ;;  %vm1034_vm3 = vcmp.ge.f32.partialorder %v1030_v34, 0.0  ;;  %v1038_v35 = vmul.f32 0.1, %v1030_v34  ;;  %v1041_v36 = vsel %vm1033_vm2, %v1029_v19, %v1037_v33  ;;  %v5398_v19 = vld [vmem:[%s7475_s1 + $0x9a0] ss:$16 sps:$4 sm:$0xff]  }
 0x14d   :  { %v6514_v40 = vpack.c.bf16 %v1041_v36, %v1041_v36  ;;  %v5403_v30 = vld [vmem:[%s7475_s1 + $0x984] ss:$16 sps:$4 sm:$0xff]   ;;  %v5359_v31 = vld [vmem:[%s7475_s1 + $0x748] ss:$16 sps:$4 sm:$0xff]   ;;  %v5401_v32 = vld [vmem:[%s7475_s1 + $0x980] ss:$16 sps:$4 sm:$0xff]  }
 0x14e   :  { %v1042_v37 = vsel %vm1034_vm3, %v1030_v34, %v1038_v35  ;;  %v5364_v33 = vld [vmem:[%s7475_s1 + $0x72c] ss:$16 sps:$4 sm:$0xff]   ;;  %v5406_v34 = vld [vmem:[%s7475_s1 + $0x964] ss:$16 sps:$4 sm:$0xff]   ;;  %v5404_v35 = vld [vmem:[%s7475_s1 + $0x960] ss:$16 sps:$4 sm:$0xff]  }
 0x14f   :  { %1929 = vmatpush2.bf16.msra.mxu0 %v5317_v9  ;;  %v1046_v38 = vpack.c.bf16 %v1042_v37, %v1042_v37  ;;  %v5362_v9 = vld [vmem:[%s7475_s1 + $0x728] ss:$16 sps:$4 sm:$0xff]   ;;  %v5367_v36 = vld [vmem:[%s7475_s1 + $0x70c] ss:$16 sps:$4 sm:$0xff]  }
 0x150   :  { %2819 = vmatprep.subr.bf16.mxu0 %v5370_v48  ;;  %v5365_v37 = vld [vmem:[%s7475_s1 + $0x708] ss:$16 sps:$4 sm:$0xff]   ;;  %v5422_v48 = vld [vmem:[%s7475_s1 + $0xac0] ss:$16 sps:$4 sm:$0xff]  }
 0x151   :  { %1889 = vmatprep.mubr.bf16.mxu1 %v1046_v38 }
 0x152   :  { %1931 = vmatmul.mubr.bf16.vlgmr.msra.gmra.mxu0 %v6404_v44  ;;  %1890 = vmatmul.mubr.bf16.vlgmr.msra.gmra.mxu1 %v6514_v40  ;;  %v5331_v44 = vld [vmem:[%s7475_s1 + $0x68c] ss:$16 sps:$4 sm:$0xff]  }
 0x153   :  { %1940 = vmatpush1.bf16.msra.mxu1 %v5320_v39  ;;  %1971 = vmatprep.mubr.bf16.mxu1 %v1046_v38  ;;  %v5409_v38 = vld [vmem:[%s7475_s1 + $0x944] ss:$16 sps:$4 sm:$0xff]   ;;  %v5407_v39 = vld [vmem:[%s7475_s1 + $0x940] ss:$16 sps:$4 sm:$0xff]  }
 0x154   :  { %1941 = vmatprep.subr.bf16.mxu1 %v5325_v41  ;;  %2820 = vmatpush1.bf16.msra.mxu0 %v5368_v47  ;;  %v5412_v41 = vld [vmem:[%s7475_s1 + $0x924] ss:$16 sps:$4 sm:$0xff]   ;;  %v5421_v47 = vld [vmem:[%s7475_s1 + $0x8ec] ss:$16 sps:$4 sm:$0xff]  }
 0x155   :  { %2821 = vmatprep.subr.bf16.mxu0 %v5373_v49  ;;  %v5424_v49 = vld [vmem:[%s7475_s1 + $0xac4] ss:$16 sps:$4 sm:$0xff]  }
 0x157   :  { %1942 = vmatpush1.bf16.msra.mxu1 %v5323_v42  ;;  %v5410_v42 = vld [vmem:[%s7475_s1 + $0x920] ss:$16 sps:$4 sm:$0xff]  }
 0x158   :  { %1943 = vmatprep.subr.bf16.mxu1 %v5328_v43  ;;  %2822 = vmatpush1.bf16.msra.mxu0 %v5371_v51  ;;  %v5416_v43 = vld [vmem:[%s7475_s1 + $0xae0] ss:$16 sps:$4 sm:$0xff]   ;;  %v5430_v51 = vld [vmem:[%s7475_s1 + $0xaa4] ss:$16 sps:$4 sm:$0xff]  }
 0x159   :  { %2823 = vmatprep.subr.bf16.mxu0 %v5376_v53  ;;  %v5436_v53 = vld [vmem:[%s7475_s1 + $0xa84] ss:$16 sps:$4 sm:$0xff]  }
 0x15b   :  { %1944 = vmatpush1.bf16.msra.mxu1 %v5326_v45  ;;  %v5413_v45 = vld [vmem:[%s7475_s1 + $0x900] ss:$16 sps:$4 sm:$0xff]  }
 0x15c   :  { %1945 = vmatprep.subr.bf16.mxu1 %v5331_v44  ;;  %2824 = vmatpush1.bf16.msra.mxu0 %v5374_v55  ;;  %v5418_v44 = vld [vmem:[%s7475_s1 + $0xae4] ss:$16 sps:$4 sm:$0xff]  }
 0x15d   :  { %2825 = vmatprep.subr.bf16.mxu0 %v5379_v57  ;;  %v5442_v55 = vld [vmem:[%s7475_s1 + $0xa64] ss:$16 sps:$4 sm:$0xff]  }
 0x15e   :  { %v5448_v57 = vld [vmem:[%s7475_s1 + $0xa44] ss:$16 sps:$4 sm:$0xff]  }
 0x15f   :  { %1946 = vmatpush1.bf16.msra.mxu1 %v5329_v50  ;;  %v5428_v50 = vld [vmem:[%s7475_s1 + $0xaa0] ss:$16 sps:$4 sm:$0xff]  }
 0x160   :  { %1947 = vmatprep.subr.bf16.mxu1 %v5334_v52  ;;  %2826 = vmatpush1.bf16.msra.mxu0 %v5377_v59  ;;  %v5434_v52 = vld [vmem:[%s7475_s1 + $0xa80] ss:$16 sps:$4 sm:$0xff]   ;;  %v5454_v59 = vld [vmem:[%s7475_s1 + $0xa24] ss:$16 sps:$4 sm:$0xff]  }
 0x161   :  { %2827 = vmatprep.subr.bf16.mxu0 %v5382_v61  ;;  %v5460_v61 = vld [vmem:[%s7475_s1 + $0xa04] ss:$16 sps:$4 sm:$0xff]  }
 0x163   :  { %1948 = vmatpush1.bf16.msra.mxu1 %v5332_v54  ;;  %v5440_v54 = vld [vmem:[%s7475_s1 + $0xa60] ss:$16 sps:$4 sm:$0xff]  }
 0x164   :  { %1949 = vmatprep.subr.bf16.mxu1 %v5337_v56  ;;  %2828 = vmatpush1.bf16.msra.mxu0 %v5380_v63  ;;  %v5446_v56 = vld [vmem:[%s7475_s1 + $0xa40] ss:$16 sps:$4 sm:$0xff]   ;;  %v5466_v63 = vld [vmem:[%s7475_s1 + $0xbe4] ss:$16 sps:$4 sm:$0xff]  }
 0x165   :  { %2829 = vmatprep.subr.bf16.mxu0 %v5385_v1  ;;  %v5472_v1 = vld [vmem:[%s7475_s1 + $0xbc4] ss:$16 sps:$4 sm:$0xff]  }
 0x167   :  { %1950 = vmatpush1.bf16.msra.mxu1 %v5335_v58  ;;  %v5452_v58 = vld [vmem:[%s7475_s1 + $0xa20] ss:$16 sps:$4 sm:$0xff]  }
 0x168   :  { %1951 = vmatprep.subr.bf16.mxu1 %v5340_v60  ;;  %2830 = vmatpush1.bf16.msra.mxu0 %v5383_v3  ;;  %v5458_v60 = vld [vmem:[%s7475_s1 + $0xa00] ss:$16 sps:$4 sm:$0xff]   ;;  %v5478_v3 = vld [vmem:[%s7475_s1 + $0xba4] ss:$16 sps:$4 sm:$0xff]  }
 0x169   :  { %2831 = vmatprep.subr.bf16.mxu0 %v5388_v6  ;;  %v5484_v6 = vld [vmem:[%s7475_s1 + $0xb84] ss:$16 sps:$4 sm:$0xff]  }
 0x16b   :  { %1952 = vmatpush1.bf16.msra.mxu1 %v5338_v62  ;;  %v5464_v62 = vld [vmem:[%s7475_s1 + $0xbe0] ss:$16 sps:$4 sm:$0xff]  }
 0x16c   :  { %1953 = vmatprep.subr.bf16.mxu1 %v5343_v0  ;;  %2832 = vmatpush1.bf16.msra.mxu0 %v5386_v10  ;;  %v5470_v0 = vld [vmem:[%s7475_s1 + $0xbc0] ss:$16 sps:$4 sm:$0xff]   ;;  %v5490_v10 = vld [vmem:[%s7475_s1 + $0xb64] ss:$16 sps:$4 sm:$0xff]  }
 0x16d   :  { %2833 = vmatprep.subr.bf16.mxu0 %v5391_v12  ;;  %v5496_v12 = vld [vmem:[%s7475_s1 + $0xb44] ss:$16 sps:$4 sm:$0xff]  }
 0x16f   :  { %1954 = vmatpush1.bf16.msra.mxu1 %v5341_v2  ;;  %v5476_v2 = vld [vmem:[%s7475_s1 + $0xba0] ss:$16 sps:$4 sm:$0xff]  }
 0x170   :  { %1955 = vmatprep.subr.bf16.mxu1 %v5346_v4  ;;  %2834 = vmatpush1.bf16.msra.mxu0 %v5389_v15  ;;  %v5482_v4 = vld [vmem:[%s7475_s1 + $0xb80] ss:$16 sps:$4 sm:$0xff]  }
 0x171   :  { %2835 = vmatprep.subr.bf16.mxu0 %v5394_v17  ;;  %v5502_v17 = vld [vmem:[%s7475_s1 + $0xb24] ss:$16 sps:$4 sm:$0xff]  }
 0x173   :  { %1956 = vmatpush2.bf16.msra.mxu1 %v5344_v8  ;;  %v5488_v8 = vld [vmem:[%s7475_s1 + $0xb60] ss:$16 sps:$4 sm:$0xff]  }
 0x174   :  { %1957 = vmatprep.subr.bf16.mxu1 %v5349_v11  ;;  %2836 = vmatpush2.bf16.msra.mxu0 %v5392_v21 }
 0x175   :  { %2837 = vmatprep.subr.bf16.mxu0 %v5397_v23  ;;  %v5508_v23 = vld [vmem:[%s7475_s1 + $0xb04] ss:$16 sps:$4 sm:$0xff]  }
 0x177   :  { %1958 = vmatpush2.bf16.msra.mxu1 %v5347_v14  ;;  %v5494_v14 = vld [vmem:[%s7475_s1 + $0xb40] ss:$16 sps:$4 sm:$0xff]  }
 0x178   :  { %1959 = vmatprep.subr.bf16.mxu1 %v5352_v16  ;;  %2838 = vmatpush2.bf16.msra.mxu0 %v5395_v25  ;;  %v6810_v25 = vld [vmem:[%s7477_s2 + $0x1] ss:$4 sm:$0xf] }
 0x179   :  { %2839 = vmatprep.subr.bf16.mxu0 %v5400_v27  ;;  %v1986_v27 = vrot.slane %v6810_v25, %v6378_v18 }
 0x17b   :  { %1960 = vmatpush2.bf16.msra.mxu1 %v5350_v13  ;;  %v5500_v13 = vld [vmem:[%s7475_s1 + $0xb20] ss:$16 sps:$4 sm:$0xff]  }
 0x17c   :  { %1961 = vmatprep.subr.bf16.mxu1 %v5355_v22  ;;  %2840 = vmatpush2.bf16.msra.mxu0 %v5398_v19  ;;  %v5506_v22 = vld [vmem:[%s7475_s1 + $0xb00] ss:$16 sps:$4 sm:$0xff]  }
 0x17d   :  { %2841 = vmatprep.subr.bf16.mxu0 %v5403_v30 }
 0x17f   :  { %1962 = vmatpush2.bf16.msra.mxu1 %v5353_v24  ;;  %v5514_v24 = vld [vmem:[%s7475_s1 + $0xaec] ss:$16 sps:$4 sm:$0xff]  }
 0x180   :  { %1963 = vmatprep.subr.bf16.mxu1 %v5358_v26  ;;  %2842 = vmatpush2.bf16.msra.mxu0 %v5401_v32  ;;  %v6815_v26 = vld [vmem:[%s7478_s3 + $0x1] ss:$4 sm:$0xf] }
 0x181   :  { %2843 = vmatprep.subr.bf16.mxu0 %v5406_v34  ;;  %v2013_v30 = vrot.slane %v6815_v26, %v6378_v18 }
 0x183   :  { %1964 = vmatpush2.bf16.msra.mxu1 %v5356_v28 }
 0x184   :  { %1965 = vmatprep.subr.bf16.mxu1 %v5361_v29  ;;  %2844 = vmatpush2.bf16.msra.mxu0 %v5404_v35  ;;  %v2017_v35 = vrot.slane %v6815_v26, %v6386_v20 }
 0x185   :  { %2845 = vmatprep.subr.bf16.mxu0 %v5409_v38 }
 0x187   :  { %1966 = vmatpush2.bf16.msra.mxu1 %v5359_v31  ;;  %v1990_v31 = vrot.slane %v6810_v25, %v6386_v20 }
 0x188   :  { %1967 = vmatprep.subr.bf16.mxu1 %v5364_v33  ;;  %2846 = vmatpush2.bf16.msra.mxu0 %v5407_v39 }
 0x189   :  { %2847 = vmatprep.subr.bf16.mxu0 %v5412_v41 }
 0x18b   :  { %1968 = vmatpush2.bf16.msra.mxu1 %v5362_v9 }
 0x18c   :  { %1969 = vmatprep.subr.bf16.mxu1 %v5367_v36  ;;  %2848 = vmatpush2.bf16.msra.mxu0 %v5410_v42 }
 0x18f   :  { %1970 = vmatpush2.bf16.msra.mxu1 %v5365_v37 }
 0x190   :  { %2860 = vmatprep.subr.bf16.mxu1 %v5418_v44 }
 0x192   :  { %1972 = vmatmul.mubr.bf16.vlgmr.msra.gmra.mxu1 %v6514_v40  ;;  %v5415_v40 = vld [vmem:[%s7475_s1 + $0x904] ss:$16 sps:$4 sm:$0xff]  }
 0x193   :  { %2849 = vmatprep.subr.bf16.mxu0 %v5415_v40  ;;  %2861 = vmatpush1.bf16.msra.mxu1 %v5416_v43 }
 0x194   :  { %2850 = vmatpush2.bf16.msra.mxu0 %v5413_v45  ;;  %2862 = vmatprep.subr.bf16.mxu1 %v5424_v49  ;;  %v5419_v49 = vld [vmem:[%s7475_s1 + $0x8e8] ss:$16 sps:$4 sm:$0xff]  }
 0x195   :  { %2901 = vmatprep.subr.bf16.mxu0 %v5421_v47 }
 0x197   :  { %2863 = vmatpush1.bf16.msra.mxu1 %v5422_v48 }
 0x198   :  { %2864 = vmatprep.subr.bf16.mxu1 %v5430_v51  ;;  %v5427_v51 = vld [vmem:[%s7475_s1 + $0x8cc] ss:$16 sps:$4 sm:$0xff]  }
 0x19b   :  { %2865 = vmatpush1.bf16.msra.mxu1 %v5428_v50 }
 0x19c   :  { %2866 = vmatprep.subr.bf16.mxu1 %v5436_v53  ;;  %v5433_v53 = vld [vmem:[%s7475_s1 + $0x8ac] ss:$16 sps:$4 sm:$0xff]  }
 0x19f   :  { %2867 = vmatpush1.bf16.msra.mxu1 %v5434_v52  ;;  %v5425_v52 = vld [vmem:[%s7475_s1 + $0x8c8] ss:$16 sps:$4 sm:$0xff]  }
 0x1a0   :  { %2868 = vmatprep.subr.bf16.mxu1 %v5442_v55  ;;  %v5439_v55 = vld [vmem:[%s7475_s1 + $0x88c] ss:$16 sps:$4 sm:$0xff]  }
 0x1a3   :  { %2869 = vmatpush1.bf16.msra.mxu1 %v5440_v54  ;;  %v5431_v54 = vld [vmem:[%s7475_s1 + $0x8a8] ss:$16 sps:$4 sm:$0xff]  }
 0x1a4   :  { %2870 = vmatprep.subr.bf16.mxu1 %v5448_v57  ;;  %v5445_v57 = vld [vmem:[%s7475_s1 + $0x86c] ss:$16 sps:$4 sm:$0xff]  }
 0x1a7   :  { %2871 = vmatpush1.bf16.msra.mxu1 %v5446_v56  ;;  %v5437_v56 = vld [vmem:[%s7475_s1 + $0x888] ss:$16 sps:$4 sm:$0xff]  }
 0x1a8   :  { %2872 = vmatprep.subr.bf16.mxu1 %v5454_v59  ;;  %v5451_v59 = vld [vmem:[%s7475_s1 + $0x84c] ss:$16 sps:$4 sm:$0xff]  }
 0x1ab   :  { %2873 = vmatpush1.bf16.msra.mxu1 %v5452_v58  ;;  %v5443_v58 = vld [vmem:[%s7475_s1 + $0x868] ss:$16 sps:$4 sm:$0xff]  }
 0x1ac   :  { %2874 = vmatprep.subr.bf16.mxu1 %v5460_v61  ;;  %v5457_v61 = vld [vmem:[%s7475_s1 + $0x82c] ss:$16 sps:$4 sm:$0xff]  }
 0x1af   :  { %2875 = vmatpush1.bf16.msra.mxu1 %v5458_v60  ;;  %v5449_v60 = vld [vmem:[%s7475_s1 + $0x848] ss:$16 sps:$4 sm:$0xff]  }
 0x1b0   :  { %2876 = vmatprep.subr.bf16.mxu1 %v5466_v63  ;;  %v5463_v63 = vld [vmem:[%s7475_s1 + $0x80c] ss:$16 sps:$4 sm:$0xff]  }
 0x1b3   :  { %2877 = vmatpush2.bf16.msra.mxu1 %v5464_v62  ;;  %v5455_v62 = vld [vmem:[%s7475_s1 + $0x828] ss:$16 sps:$4 sm:$0xff]  }
 0x1b4   :  { %2878 = vmatprep.subr.bf16.mxu1 %v5472_v1  ;;  %v5469_v1 = vld [vmem:[%s7475_s1 + $0x9ec] ss:$16 sps:$4 sm:$0xff]  }
 0x1b7   :  { %2879 = vmatpush2.bf16.msra.mxu1 %v5470_v0  ;;  %v5461_v0 = vld [vmem:[%s7475_s1 + $0x808] ss:$16 sps:$4 sm:$0xff]  }
 0x1b8   :  { %2880 = vmatprep.subr.bf16.mxu1 %v5478_v3  ;;  %v5475_v3 = vld [vmem:[%s7475_s1 + $0x9cc] ss:$16 sps:$4 sm:$0xff]  }
 0x1bb   :  { %2881 = vmatpush2.bf16.msra.mxu1 %v5476_v2  ;;  %v5467_v2 = vld [vmem:[%s7475_s1 + $0x9e8] ss:$16 sps:$4 sm:$0xff]  }
 0x1bc   :  { %2882 = vmatprep.subr.bf16.mxu1 %v5484_v6  ;;  %v5481_v6 = vld [vmem:[%s7475_s1 + $0x9ac] ss:$16 sps:$4 sm:$0xff]  }
 0x1bf   :  { %2883 = vmatpush2.bf16.msra.mxu1 %v5482_v4  ;;  %v5473_v4 = vld [vmem:[%s7475_s1 + $0x9c8] ss:$16 sps:$4 sm:$0xff]  }
 0x1c0   :  { %2884 = vmatprep.subr.bf16.mxu1 %v5490_v10  ;;  %v5487_v10 = vld [vmem:[%s7475_s1 + $0x98c] ss:$16 sps:$4 sm:$0xff]  }
 0x1c3   :  { %2885 = vmatpush2.bf16.msra.mxu1 %v5488_v8  ;;  %v5479_v8 = vld [vmem:[%s7475_s1 + $0x9a8] ss:$16 sps:$4 sm:$0xff]  }
 0x1c4   :  { %2886 = vmatprep.subr.bf16.mxu1 %v5496_v12  ;;  %v5493_v12 = vld [vmem:[%s7475_s1 + $0x96c] ss:$16 sps:$4 sm:$0xff]  }
 0x1c7   :  { %2887 = vmatpush2.bf16.msra.mxu1 %v5494_v14  ;;  %v5491_v14 = vld [vmem:[%s7475_s1 + $0x968] ss:$16 sps:$4 sm:$0xff]  }
 0x1c8   :  { %2888 = vmatprep.subr.bf16.mxu1 %v5502_v17 }
 0x1cb   :  { %2889 = vmatpush2.bf16.msra.mxu1 %v5500_v13  ;;  %v5497_v13 = vld [vmem:[%s7475_s1 + $0x948] ss:$16 sps:$4 sm:$0xff]  }
 0x1cc   :  { %2890 = vmatprep.subr.bf16.mxu1 %v5508_v23  ;;  %v1998_v23 = vrot.slane %v6810_v25, %v6483_v7 }
 0x1cf   :  { %2891 = vmatpush2.bf16.msra.mxu1 %v5506_v22  ;;  %v2021_v22 = vrot.slane %v6815_v26, %v6477_v5 }
 0x1d0   :  { %2942 = vmatprep.subr.bf16.mxu1 %v5514_v24  ;;  %v5505_v24 = vld [vmem:[%s7475_s1 + $0x92c] ss:$16 sps:$4 sm:$0xff]  }
 0x1d2   :  { %v1850_v11 = vpop.f32.mrf.mxu0 }
 0x1d4   :  { %v1852_v15 = vpop.f32.mrf.mxu0 }
 0x1d6   :  { %v1854_v16 = vpop.f32.mrf.mxu0 }
 0x1d7   :  { %v1994_v16 = vrot.slane %v6810_v25, %v6477_v5 }
 0x1d8   :  { %v1855_v21 = vpop.f32.mrf.mxu0 }
 0x212   :  { %v6819_v28 = vpop.f32.mrf.mxu0  ;;  %v1891_v19 = vpop.f32.mrf.mxu1 }
 0x213   :  { %v1892_v29 = vadd.f32 %v1891_v19, %v1850_v11  ;;  %v5485_v11 = vld [vmem:[%s7475_s1 + $0x988] ss:$16 sps:$4 sm:$0xff]  }
 0x214   :  { %v6825_v32 = vpop.f32.mrf.mxu0  ;;  %v1893_v33 = vpop.f32.mrf.mxu1 }
 0x215   :  { %v2003_v34 = vmul.f32 %v1986_v27, %v1892_v29  ;;  %v1894_v9 = vadd.f32 %v1893_v33, %v1852_v15  ;;  %v5499_v15 = vld [vmem:[%s7475_s1 + $0x94c] ss:$16 sps:$4 sm:$0xff]  }
 0x216   :  { %v1936_v36 = vpop.f32.mrf.mxu0  ;;  %v1895_v37 = vpop.f32.mrf.mxu1 }
 0x217   :  { %v2030_v38 = vadd.f32 %v2013_v30, %v2003_v34  ;;  %v2004_v39 = vmul.f32 %v1990_v31, %v1894_v9  ;;  %v2025_v30 = vrot.slane %v6815_v26, %v6483_v7  ;;  %v5511_v34 = vld [vmem:[%s7475_s1 + $0x90c] ss:$16 sps:$4 sm:$0xff]   ;;  %v5509_v26 = vld [vmem:[%s7475_s1 + $0x908] ss:$16 sps:$4 sm:$0xff]  }
 0x218   :  { %v1937_v41 = vpop.f32.mrf.mxu0  ;;  %v1896_v42 = vpop.f32.mrf.mxu1 }
 0x219   :  { %vm2034_vm4 = vcmp.ge.f32.partialorder %v2030_v38, 0.0  ;;  %v2038_v40 = vmul.f32 0.1, %v2030_v38  ;;  %v2031_v43 = vadd.f32 %v2017_v35, %v2004_v39  ;;  %v5512_v41 = vld [vmem:[%s7475_s1 + $0xae8] ss:$16 sps:$4 sm:$0xff]  }
 0x21b   :  { %vm2035_vm5 = vcmp.ge.f32.partialorder %v2031_v43, 0.0  ;;  %v2039_v45 = vmul.f32 0.1, %v2031_v43  ;;  %v2042_v44 = vsel %vm2034_vm4, %v2030_v38, %v2038_v40  ;;  %v5517_v40 = vld [vmem:[%s7475_s1 + $0xacc] ss:$16 sps:$4 sm:$0xff]  }
 0x21c   :  { %v6832_v50 = vpack.c.bf16 %v2042_v44, %v2042_v44  ;;  %v5518_v44 = vld [vmem:[%s7475_s1 + $0xaa8] ss:$16 sps:$4 sm:$0xff]  }
 0x21d   :  { %v2043_v47 = vsel %vm2035_vm5, %v2031_v43, %v2039_v45  ;;  %v5515_v43 = vld [vmem:[%s7475_s1 + $0xac8] ss:$16 sps:$4 sm:$0xff]   ;;  %v5520_v45 = vld [vmem:[%s7475_s1 + $0xaac] ss:$16 sps:$4 sm:$0xff]  }
 0x21e   :  { %v2047_v48 = vpack.c.bf16 %v2043_v47, %v2043_v47  ;;  %v5523_v47 = vld [vmem:[%s7475_s1 + $0xa8c] ss:$16 sps:$4 sm:$0xff]  }
 0x220   :  { %2851 = vmatprep.mubr.bf16.mxu0 %v2047_v48 }
 0x221   :  { %2852 = vmatmul.mubr.bf16.vlgmr.msra.gmra.mxu0 %v6832_v50 }
 0x222   :  { %2902 = vmatpush1.bf16.msra.mxu0 %v5419_v49  ;;  %2933 = vmatprep.mubr.bf16.mxu0 %v2047_v48  ;;  %v5560_v48 = vld [vmem:[%s7475_s1 + $0xce0] ss:$16 sps:$4 sm:$0xff]   ;;  %v5562_v49 = vld [vmem:[%s7475_s1 + $0xce4] ss:$16 sps:$4 sm:$0xff]  }
 0x223   :  { %2903 = vmatprep.subr.bf16.mxu0 %v5427_v51  ;;  %v5521_v51 = vld [vmem:[%s7475_s1 + $0xa88] ss:$16 sps:$4 sm:$0xff]  }
 0x226   :  { %2904 = vmatpush1.bf16.msra.mxu0 %v5425_v52  ;;  %v5563_v52 = vld [vmem:[%s7475_s1 + $0xcc0] ss:$16 sps:$4 sm:$0xff]  }
 0x227   :  { %2905 = vmatprep.subr.bf16.mxu0 %v5433_v53  ;;  %v5526_v53 = vld [vmem:[%s7475_s1 + $0xa6c] ss:$16 sps:$4 sm:$0xff]  }
 0x22a   :  { %2906 = vmatpush1.bf16.msra.mxu0 %v5431_v54  ;;  %v5568_v54 = vld [vmem:[%s7475_s1 + $0xca4] ss:$16 sps:$4 sm:$0xff]  }
 0x22b   :  { %2907 = vmatprep.subr.bf16.mxu0 %v5439_v55  ;;  %v5524_v55 = vld [vmem:[%s7475_s1 + $0xa68] ss:$16 sps:$4 sm:$0xff]  }
 0x22e   :  { %2908 = vmatpush1.bf16.msra.mxu0 %v5437_v56  ;;  %v5566_v56 = vld [vmem:[%s7475_s1 + $0xca0] ss:$16 sps:$4 sm:$0xff]  }
 0x22f   :  { %2909 = vmatprep.subr.bf16.mxu0 %v5445_v57  ;;  %v5529_v57 = vld [vmem:[%s7475_s1 + $0xa4c] ss:$16 sps:$4 sm:$0xff]  }
 0x232   :  { %2910 = vmatpush1.bf16.msra.mxu0 %v5443_v58  ;;  %v5571_v58 = vld [vmem:[%s7475_s1 + $0xc84] ss:$16 sps:$4 sm:$0xff]  }
 0x233   :  { %2911 = vmatprep.subr.bf16.mxu0 %v5451_v59  ;;  %v5527_v59 = vld [vmem:[%s7475_s1 + $0xa48] ss:$16 sps:$4 sm:$0xff]  }
 0x236   :  { %2912 = vmatpush1.bf16.msra.mxu0 %v5449_v60  ;;  %v5569_v60 = vld [vmem:[%s7475_s1 + $0xc80] ss:$16 sps:$4 sm:$0xff]  }
 0x237   :  { %2913 = vmatprep.subr.bf16.mxu0 %v5457_v61  ;;  %v5532_v61 = vld [vmem:[%s7475_s1 + $0xa2c] ss:$16 sps:$4 sm:$0xff]  }
 0x23a   :  { %2914 = vmatpush1.bf16.msra.mxu0 %v5455_v62  ;;  %v5574_v62 = vld [vmem:[%s7475_s1 + $0xc64] ss:$16 sps:$4 sm:$0xff]  }
 0x23b   :  { %2915 = vmatprep.subr.bf16.mxu0 %v5463_v63  ;;  %v5530_v63 = vld [vmem:[%s7475_s1 + $0xa28] ss:$16 sps:$4 sm:$0xff]  }
 0x23e   :  { %2916 = vmatpush1.bf16.msra.mxu0 %v5461_v0  ;;  %v5572_v0 = vld [vmem:[%s7475_s1 + $0xc60] ss:$16 sps:$4 sm:$0xff]  }
 0x23f   :  { %2917 = vmatprep.subr.bf16.mxu0 %v5469_v1  ;;  %v5535_v1 = vld [vmem:[%s7475_s1 + $0xa0c] ss:$16 sps:$4 sm:$0xff]  }
 0x242   :  { %2918 = vmatpush2.bf16.msra.mxu0 %v5467_v2  ;;  %v5577_v2 = vld [vmem:[%s7475_s1 + $0xc44] ss:$16 sps:$4 sm:$0xff]  }
 0x243   :  { %2919 = vmatprep.subr.bf16.mxu0 %v5475_v3  ;;  %v5533_v3 = vld [vmem:[%s7475_s1 + $0xa08] ss:$16 sps:$4 sm:$0xff]  }
 0x246   :  { %2920 = vmatpush2.bf16.msra.mxu0 %v5473_v4  ;;  %v5575_v4 = vld [vmem:[%s7475_s1 + $0xc40] ss:$16 sps:$4 sm:$0xff]  }
 0x247   :  { %2921 = vmatprep.subr.bf16.mxu0 %v5481_v6  ;;  %v5538_v6 = vld [vmem:[%s7475_s1 + $0xbec] ss:$16 sps:$4 sm:$0xff]  }
 0x24a   :  { %2922 = vmatpush2.bf16.msra.mxu0 %v5479_v8  ;;  %v5580_v8 = vld [vmem:[%s7475_s1 + $0xc24] ss:$16 sps:$4 sm:$0xff]  }
 0x24b   :  { %2923 = vmatprep.subr.bf16.mxu0 %v5487_v10  ;;  %v5536_v10 = vld [vmem:[%s7475_s1 + $0xbe8] ss:$16 sps:$4 sm:$0xff]  }
 0x24e   :  { %2924 = vmatpush2.bf16.msra.mxu0 %v5485_v11  ;;  %v5578_v11 = vld [vmem:[%s7475_s1 + $0xc20] ss:$16 sps:$4 sm:$0xff]  }
 0x24f   :  { %2925 = vmatprep.subr.bf16.mxu0 %v5493_v12  ;;  %v5541_v12 = vld [vmem:[%s7475_s1 + $0xbcc] ss:$16 sps:$4 sm:$0xff]  }
 0x252   :  { %v1973_v17 = vpop.f32.mrf.mxu1  ;;  %2926 = vmatpush2.bf16.msra.mxu0 %v5491_v14  ;;  %v5583_v14 = vld [vmem:[%s7475_s1 + $0xc04] ss:$16 sps:$4 sm:$0xff]  }
 0x253   :  { %v1974_v21 = vadd.f32 %v1973_v17, %v6819_v28  ;;  %2927 = vmatprep.subr.bf16.mxu0 %v5499_v15  ;;  %v5503_v28 = vld [vmem:[%s7475_s1 + $0x928] ss:$16 sps:$4 sm:$0xff]   ;;  %v5544_v17 = vld [vmem:[%s7475_s1 + $0xbac] ss:$16 sps:$4 sm:$0xff]  }
 0x254   :  { %v1975_v27 = vpop.f32.mrf.mxu1  ;;  %v5539_v15 = vld [vmem:[%s7475_s1 + $0xbc8] ss:$16 sps:$4 sm:$0xff]  }
 0x255   :  { %v2005_v19 = vmul.f32 %v1994_v16, %v1974_v21  ;;  %v1976_v29 = vadd.f32 %v1975_v27, %v6825_v32  ;;  %v5581_v16 = vld [vmem:[%s7475_s1 + $0xc00] ss:$16 sps:$4 sm:$0xff]   ;;  %v5542_v21 = vld [vmem:[%s7475_s1 + $0xba8] ss:$16 sps:$4 sm:$0xff]  }
 0x256   :  { %v1977_v31 = vpop.f32.mrf.mxu1  ;;  %2928 = vmatpush2.bf16.msra.mxu0 %v5497_v13  ;;  %v5586_v13 = vld [vmem:[%s7475_s1 + $0xde4] ss:$16 sps:$4 sm:$0xff]   ;;  %v5545_v27 = vld [vmem:[%s7475_s1 + $0xb88] ss:$16 sps:$4 sm:$0xff]  }
 0x257   :  { %v2032_v33 = vadd.f32 %v2021_v22, %v2005_v19  ;;  %v2006_v25 = vmul.f32 %v1998_v23, %v1976_v29  ;;  %2929 = vmatprep.subr.bf16.mxu0 %v5505_v24  ;;  %v5584_v22 = vld [vmem:[%s7475_s1 + $0xde0] ss:$16 sps:$4 sm:$0xff]   ;;  %v5547_v23 = vld [vmem:[%s7475_s1 + $0xb8c] ss:$16 sps:$4 sm:$0xff]   ;;  %v5589_v24 = vld [vmem:[%s7475_s1 + $0xdc4] ss:$16 sps:$4 sm:$0xff]  }
 0x258   :  { %v1978_v9 = vpop.f32.mrf.mxu1  ;;  %v5587_v19 = vld [vmem:[%s7475_s1 + $0xdc0] ss:$16 sps:$4 sm:$0xff]   ;;  %v5550_v29 = vld [vmem:[%s7475_s1 + $0xb6c] ss:$16 sps:$4 sm:$0xff]   ;;  %v5548_v31 = vld [vmem:[%s7475_s1 + $0xb68] ss:$16 sps:$4 sm:$0xff]  }
 0x259   :  { %vm2036_vm6 = vcmp.ge.f32.partialorder %v2032_v33, 0.0  ;;  %v2040_v35 = vmul.f32 0.1, %v2032_v33  ;;  %v2033_v32 = vadd.f32 %v2025_v30, %v2006_v25  ;;  %v5592_v30 = vld [vmem:[%s7475_s1 + $0xda4] ss:$16 sps:$4 sm:$0xff]  }
 0x25a   :  { %2930 = vmatpush2.bf16.msra.mxu0 %v5503_v28  ;;  %v5590_v28 = vld [vmem:[%s7475_s1 + $0xda0] ss:$16 sps:$4 sm:$0xff]   ;;  %v5595_v25 = vld [vmem:[%s7475_s1 + $0xd84] ss:$16 sps:$4 sm:$0xff]  }
 0x25b   :  { %2931 = vmatprep.subr.bf16.mxu0 %v5511_v34  ;;  %vm2037_vm7 = vcmp.ge.f32.partialorder %v2033_v32, 0.0  ;;  %v2041_v36 = vmul.f32 0.1, %v2033_v32  ;;  %v2044_v37 = vsel %vm2036_vm6, %v2032_v33, %v2040_v35  ;;  %v5553_v33 = vld [vmem:[%s7475_s1 + $0xb4c] ss:$16 sps:$4 sm:$0xff]  }
 0x25c   :  { %v6938_v42 = vpack.c.bf16 %v2044_v37, %v2044_v37  ;;  %v5551_v34 = vld [vmem:[%s7475_s1 + $0xb48] ss:$16 sps:$4 sm:$0xff]   ;;  %v5593_v9 = vld [vmem:[%s7475_s1 + $0xd80] ss:$16 sps:$4 sm:$0xff]   ;;  %v5556_v35 = vld [vmem:[%s7475_s1 + $0xb2c] ss:$16 sps:$4 sm:$0xff]  }
 0x25d   :  { %v2045_v38 = vsel %vm2037_vm7, %v2033_v32, %v2041_v36  ;;  %v5598_v32 = vld [vmem:[%s7475_s1 + $0xd64] ss:$16 sps:$4 sm:$0xff]   ;;  %v5596_v36 = vld [vmem:[%s7475_s1 + $0xd60] ss:$16 sps:$4 sm:$0xff]   ;;  %v5559_v37 = vld [vmem:[%s7475_s1 + $0xb0c] ss:$16 sps:$4 sm:$0xff]  }
 0x25e   :  { %2932 = vmatpush2.bf16.msra.mxu0 %v5509_v26  ;;  %v2049_v39 = vpack.c.bf16 %v2045_v38, %v2045_v38  ;;  %v5554_v26 = vld [vmem:[%s7475_s1 + $0xb28] ss:$16 sps:$4 sm:$0xff]  }
 0x25f   :  { %3822 = vmatprep.subr.bf16.mxu0 %v5562_v49  ;;  %v5557_v38 = vld [vmem:[%s7475_s1 + $0xb08] ss:$16 sps:$4 sm:$0xff]   ;;  %v5614_v49 = vld [vmem:[%s7475_s1 + $0xec0] ss:$16 sps:$4 sm:$0xff]  }
 0x260   :  { %2892 = vmatprep.mubr.bf16.mxu1 %v2049_v39 }
 0x261   :  { %2893 = vmatmul.mubr.bf16.vlgmr.msra.gmra.mxu1 %v6938_v42  ;;  %2934 = vmatmul.mubr.bf16.vlgmr.msra.gmra.mxu0 %v6832_v50  ;;  %v5565_v50 = vld [vmem:[%s7475_s1 + $0xcc4] ss:$16 sps:$4 sm:$0xff]  }
 0x262   :  { %2943 = vmatpush1.bf16.msra.mxu1 %v5512_v41  ;;  %2974 = vmatprep.mubr.bf16.mxu1 %v2049_v39  ;;  %v5601_v39 = vld [vmem:[%s7475_s1 + $0xd44] ss:$16 sps:$4 sm:$0xff]   ;;  %v5599_v41 = vld [vmem:[%s7475_s1 + $0xd40] ss:$16 sps:$4 sm:$0xff]  }
 0x263   :  { %2944 = vmatprep.subr.bf16.mxu1 %v5517_v40  ;;  %3823 = vmatpush1.bf16.msra.mxu0 %v5560_v48  ;;  %v5604_v40 = vld [vmem:[%s7475_s1 + $0xd24] ss:$16 sps:$4 sm:$0xff]   ;;  %v5613_v48 = vld [vmem:[%s7475_s1 + $0xcec] ss:$16 sps:$4 sm:$0xff]  }
 0x264   :  { %3824 = vmatprep.subr.bf16.mxu0 %v5565_v50  ;;  %v5616_v50 = vld [vmem:[%s7475_s1 + $0xec4] ss:$16 sps:$4 sm:$0xff]  }
 0x266   :  { %2945 = vmatpush1.bf16.msra.mxu1 %v5515_v43  ;;  %v5602_v43 = vld [vmem:[%s7475_s1 + $0xd20] ss:$16 sps:$4 sm:$0xff]  }
 0x267   :  { %2946 = vmatprep.subr.bf16.mxu1 %v5520_v45  ;;  %3825 = vmatpush1.bf16.msra.mxu0 %v5563_v52  ;;  %v5608_v45 = vld [vmem:[%s7475_s1 + $0xee0] ss:$16 sps:$4 sm:$0xff]   ;;  %v5622_v52 = vld [vmem:[%s7475_s1 + $0xea4] ss:$16 sps:$4 sm:$0xff]  }
 0x268   :  { %3826 = vmatprep.subr.bf16.mxu0 %v5568_v54  ;;  %v5628_v54 = vld [vmem:[%s7475_s1 + $0xe84] ss:$16 sps:$4 sm:$0xff]  }
 0x26a   :  { %2947 = vmatpush1.bf16.msra.mxu1 %v5518_v44  ;;  %v5605_v44 = vld [vmem:[%s7475_s1 + $0xd00] ss:$16 sps:$4 sm:$0xff]  }
 0x26b   :  { %2948 = vmatprep.subr.bf16.mxu1 %v5523_v47  ;;  %3827 = vmatpush1.bf16.msra.mxu0 %v5566_v56  ;;  %v5610_v47 = vld [vmem:[%s7475_s1 + $0xee4] ss:$16 sps:$4 sm:$0xff]  }
 0x26c   :  { %3828 = vmatprep.subr.bf16.mxu0 %v5571_v58  ;;  %v5634_v56 = vld [vmem:[%s7475_s1 + $0xe64] ss:$16 sps:$4 sm:$0xff]  }
 0x26d   :  { %v5640_v58 = vld [vmem:[%s7475_s1 + $0xe44] ss:$16 sps:$4 sm:$0xff]  }
 0x26e   :  { %2949 = vmatpush1.bf16.msra.mxu1 %v5521_v51  ;;  %v5620_v51 = vld [vmem:[%s7475_s1 + $0xea0] ss:$16 sps:$4 sm:$0xff]  }
 0x26f   :  { %2950 = vmatprep.subr.bf16.mxu1 %v5526_v53  ;;  %3829 = vmatpush1.bf16.msra.mxu0 %v5569_v60  ;;  %v5626_v53 = vld [vmem:[%s7475_s1 + $0xe80] ss:$16 sps:$4 sm:$0xff]   ;;  %v5646_v60 = vld [vmem:[%s7475_s1 + $0xe24] ss:$16 sps:$4 sm:$0xff]  }
 0x270   :  { %3830 = vmatprep.subr.bf16.mxu0 %v5574_v62  ;;  %v5652_v62 = vld [vmem:[%s7475_s1 + $0xe04] ss:$16 sps:$4 sm:$0xff]  }
 0x272   :  { %2951 = vmatpush1.bf16.msra.mxu1 %v5524_v55  ;;  %v5632_v55 = vld [vmem:[%s7475_s1 + $0xe60] ss:$16 sps:$4 sm:$0xff]  }
 0x273   :  { %2952 = vmatprep.subr.bf16.mxu1 %v5529_v57  ;;  %3831 = vmatpush1.bf16.msra.mxu0 %v5572_v0  ;;  %v5638_v57 = vld [vmem:[%s7475_s1 + $0xe40] ss:$16 sps:$4 sm:$0xff]   ;;  %v5658_v0 = vld [vmem:[%s7475_s1 + $0xfe4] ss:$16 sps:$4 sm:$0xff]  }
 0x274   :  { %3832 = vmatprep.subr.bf16.mxu0 %v5577_v2  ;;  %v5664_v2 = vld [vmem:[%s7475_s1 + $0xfc4] ss:$16 sps:$4 sm:$0xff]  }
 0x276   :  { %2953 = vmatpush1.bf16.msra.mxu1 %v5527_v59  ;;  %v5644_v59 = vld [vmem:[%s7475_s1 + $0xe20] ss:$16 sps:$4 sm:$0xff]  }
 0x277   :  { %2954 = vmatprep.subr.bf16.mxu1 %v5532_v61  ;;  %3833 = vmatpush1.bf16.msra.mxu0 %v5575_v4  ;;  %v5650_v61 = vld [vmem:[%s7475_s1 + $0xe00] ss:$16 sps:$4 sm:$0xff]   ;;  %v5670_v4 = vld [vmem:[%s7475_s1 + $0xfa4] ss:$16 sps:$4 sm:$0xff]  }
 0x278   :  { %3834 = vmatprep.subr.bf16.mxu0 %v5580_v8  ;;  %v5676_v8 = vld [vmem:[%s7475_s1 + $0xf84] ss:$16 sps:$4 sm:$0xff]  }
 0x27a   :  { %2955 = vmatpush1.bf16.msra.mxu1 %v5530_v63  ;;  %v5656_v63 = vld [vmem:[%s7475_s1 + $0xfe0] ss:$16 sps:$4 sm:$0xff]  }
 0x27b   :  { %2956 = vmatprep.subr.bf16.mxu1 %v5535_v1  ;;  %3835 = vmatpush1.bf16.msra.mxu0 %v5578_v11  ;;  %v5662_v1 = vld [vmem:[%s7475_s1 + $0xfc0] ss:$16 sps:$4 sm:$0xff]   ;;  %v5682_v11 = vld [vmem:[%s7475_s1 + $0xf64] ss:$16 sps:$4 sm:$0xff]  }
 0x27c   :  { %3836 = vmatprep.subr.bf16.mxu0 %v5583_v14  ;;  %v5688_v14 = vld [vmem:[%s7475_s1 + $0xf44] ss:$16 sps:$4 sm:$0xff]  }
 0x27e   :  { %2957 = vmatpush1.bf16.msra.mxu1 %v5533_v3  ;;  %v5668_v3 = vld [vmem:[%s7475_s1 + $0xfa0] ss:$16 sps:$4 sm:$0xff]  }
 0x27f   :  { %2958 = vmatprep.subr.bf16.mxu1 %v5538_v6  ;;  %3837 = vmatpush1.bf16.msra.mxu0 %v5581_v16  ;;  %v5674_v6 = vld [vmem:[%s7475_s1 + $0xf80] ss:$16 sps:$4 sm:$0xff]  }
 0x280   :  { %3838 = vmatprep.subr.bf16.mxu0 %v5586_v13  ;;  %v5694_v13 = vld [vmem:[%s7475_s1 + $0xf24] ss:$16 sps:$4 sm:$0xff]  }
 0x282   :  { %2959 = vmatpush2.bf16.msra.mxu1 %v5536_v10  ;;  %v5680_v10 = vld [vmem:[%s7475_s1 + $0xf60] ss:$16 sps:$4 sm:$0xff]  }
 0x283   :  { %2960 = vmatprep.subr.bf16.mxu1 %v5541_v12  ;;  %3839 = vmatpush2.bf16.msra.mxu0 %v5584_v22 }
 0x284   :  { %3840 = vmatprep.subr.bf16.mxu0 %v5589_v24  ;;  %v5700_v24 = vld [vmem:[%s7475_s1 + $0xf04] ss:$16 sps:$4 sm:$0xff]  }
 0x286   :  { %2961 = vmatpush2.bf16.msra.mxu1 %v5539_v15  ;;  %v5686_v15 = vld [vmem:[%s7475_s1 + $0xf40] ss:$16 sps:$4 sm:$0xff]  }
 0x287   :  { %2962 = vmatprep.subr.bf16.mxu1 %v5544_v17  ;;  %3841 = vmatpush2.bf16.msra.mxu0 %v5587_v19  ;;  %v7234_v19 = vld [vmem:[%s7477_s2 + $0x2] ss:$4 sm:$0xf] }
 0x288   :  { %3842 = vmatprep.subr.bf16.mxu0 %v5592_v30  ;;  %v2989_v30 = vrot.slane %v7234_v19, %v6378_v18 }
 0x28a   :  { %2963 = vmatpush2.bf16.msra.mxu1 %v5542_v21  ;;  %v5692_v21 = vld [vmem:[%s7475_s1 + $0xf20] ss:$16 sps:$4 sm:$0xff]  }
 0x28b   :  { %2964 = vmatprep.subr.bf16.mxu1 %v5547_v23  ;;  %3843 = vmatpush2.bf16.msra.mxu0 %v5590_v28  ;;  %v5698_v23 = vld [vmem:[%s7475_s1 + $0xf00] ss:$16 sps:$4 sm:$0xff]  }
 0x28c   :  { %3844 = vmatprep.subr.bf16.mxu0 %v5595_v25 }
 0x28e   :  { %2965 = vmatpush2.bf16.msra.mxu1 %v5545_v27  ;;  %v5706_v27 = vld [vmem:[%s7475_s1 + $0xeec] ss:$16 sps:$4 sm:$0xff]  }
 0x28f   :  { %2966 = vmatprep.subr.bf16.mxu1 %v5550_v29  ;;  %3845 = vmatpush2.bf16.msra.mxu0 %v5593_v9  ;;  %v7239_v29 = vld [vmem:[%s7478_s3 + $0x2] ss:$4 sm:$0xf] }
 0x290   :  { %3846 = vmatprep.subr.bf16.mxu0 %v5598_v32  ;;  %v3016_v25 = vrot.slane %v7239_v29, %v6378_v18 }
 0x292   :  { %2967 = vmatpush2.bf16.msra.mxu1 %v5548_v31 }
 0x293   :  { %2968 = vmatprep.subr.bf16.mxu1 %v5553_v33  ;;  %3847 = vmatpush2.bf16.msra.mxu0 %v5596_v36  ;;  %v3020_v36 = vrot.slane %v7239_v29, %v6386_v20 }
 0x294   :  { %3848 = vmatprep.subr.bf16.mxu0 %v5601_v39 }
 0x296   :  { %2969 = vmatpush2.bf16.msra.mxu1 %v5551_v34  ;;  %v2993_v34 = vrot.slane %v7234_v19, %v6386_v20 }
 0x297   :  { %2970 = vmatprep.subr.bf16.mxu1 %v5556_v35  ;;  %3849 = vmatpush2.bf16.msra.mxu0 %v5599_v41 }
 0x298   :  { %3850 = vmatprep.subr.bf16.mxu0 %v5604_v40 }
 0x29a   :  { %2971 = vmatpush2.bf16.msra.mxu1 %v5554_v26 }
 0x29b   :  { %2972 = vmatprep.subr.bf16.mxu1 %v5559_v37  ;;  %3851 = vmatpush2.bf16.msra.mxu0 %v5602_v43 }
 0x29e   :  { %2973 = vmatpush2.bf16.msra.mxu1 %v5557_v38 }
 0x29f   :  { %3863 = vmatprep.subr.bf16.mxu1 %v5610_v47 }
 0x2a1   :  { %2975 = vmatmul.mubr.bf16.vlgmr.msra.gmra.mxu1 %v6938_v42  ;;  %v5607_v42 = vld [vmem:[%s7475_s1 + $0xd04] ss:$16 sps:$4 sm:$0xff]  }
 0x2a2   :  { %3852 = vmatprep.subr.bf16.mxu0 %v5607_v42  ;;  %3864 = vmatpush1.bf16.msra.mxu1 %v5608_v45 }
 0x2a3   :  { %3853 = vmatpush2.bf16.msra.mxu0 %v5605_v44  ;;  %3865 = vmatprep.subr.bf16.mxu1 %v5616_v50  ;;  %v5611_v50 = vld [vmem:[%s7475_s1 + $0xce8] ss:$16 sps:$4 sm:$0xff]  }
 0x2a4   :  { %3904 = vmatprep.subr.bf16.mxu0 %v5613_v48 }
 0x2a6   :  { %3866 = vmatpush1.bf16.msra.mxu1 %v5614_v49 }
 0x2a7   :  { %3867 = vmatprep.subr.bf16.mxu1 %v5622_v52  ;;  %v5619_v52 = vld [vmem:[%s7475_s1 + $0xccc] ss:$16 sps:$4 sm:$0xff]  }
 0x2aa   :  { %3868 = vmatpush1.bf16.msra.mxu1 %v5620_v51 }
 0x2ab   :  { %3869 = vmatprep.subr.bf16.mxu1 %v5628_v54  ;;  %v5625_v54 = vld [vmem:[%s7475_s1 + $0xcac] ss:$16 sps:$4 sm:$0xff]  }
 0x2ae   :  { %3870 = vmatpush1.bf16.msra.mxu1 %v5626_v53  ;;  %v5617_v53 = vld [vmem:[%s7475_s1 + $0xcc8] ss:$16 sps:$4 sm:$0xff]  }
 0x2af   :  { %3871 = vmatprep.subr.bf16.mxu1 %v5634_v56  ;;  %v5631_v56 = vld [vmem:[%s7475_s1 + $0xc8c] ss:$16 sps:$4 sm:$0xff]  }
 0x2b2   :  { %3872 = vmatpush1.bf16.msra.mxu1 %v5632_v55  ;;  %v5623_v55 = vld [vmem:[%s7475_s1 + $0xca8] ss:$16 sps:$4 sm:$0xff]  }
 0x2b3   :  { %3873 = vmatprep.subr.bf16.mxu1 %v5640_v58  ;;  %v5637_v58 = vld [vmem:[%s7475_s1 + $0xc6c] ss:$16 sps:$4 sm:$0xff]  }
 0x2b6   :  { %3874 = vmatpush1.bf16.msra.mxu1 %v5638_v57  ;;  %v5629_v57 = vld [vmem:[%s7475_s1 + $0xc88] ss:$16 sps:$4 sm:$0xff]  }
 0x2b7   :  { %3875 = vmatprep.subr.bf16.mxu1 %v5646_v60  ;;  %v5643_v60 = vld [vmem:[%s7475_s1 + $0xc4c] ss:$16 sps:$4 sm:$0xff]  }
 0x2ba   :  { %3876 = vmatpush1.bf16.msra.mxu1 %v5644_v59  ;;  %v5635_v59 = vld [vmem:[%s7475_s1 + $0xc68] ss:$16 sps:$4 sm:$0xff]  }
 0x2bb   :  { %3877 = vmatprep.subr.bf16.mxu1 %v5652_v62  ;;  %v5649_v62 = vld [vmem:[%s7475_s1 + $0xc2c] ss:$16 sps:$4 sm:$0xff]  }
 0x2be   :  { %3878 = vmatpush1.bf16.msra.mxu1 %v5650_v61  ;;  %v5641_v61 = vld [vmem:[%s7475_s1 + $0xc48] ss:$16 sps:$4 sm:$0xff]  }
 0x2bf   :  { %3879 = vmatprep.subr.bf16.mxu1 %v5658_v0  ;;  %v5655_v0 = vld [vmem:[%s7475_s1 + $0xc0c] ss:$16 sps:$4 sm:$0xff]  }
 0x2c2   :  { %3880 = vmatpush2.bf16.msra.mxu1 %v5656_v63  ;;  %v5647_v63 = vld [vmem:[%s7475_s1 + $0xc28] ss:$16 sps:$4 sm:$0xff]  }
 0x2c3   :  { %3881 = vmatprep.subr.bf16.mxu1 %v5664_v2  ;;  %v5661_v2 = vld [vmem:[%s7475_s1 + $0xdec] ss:$16 sps:$4 sm:$0xff]  }
 0x2c6   :  { %3882 = vmatpush2.bf16.msra.mxu1 %v5662_v1  ;;  %v5653_v1 = vld [vmem:[%s7475_s1 + $0xc08] ss:$16 sps:$4 sm:$0xff]  }
 0x2c7   :  { %3883 = vmatprep.subr.bf16.mxu1 %v5670_v4  ;;  %v5667_v4 = vld [vmem:[%s7475_s1 + $0xdcc] ss:$16 sps:$4 sm:$0xff]  }
 0x2ca   :  { %3884 = vmatpush2.bf16.msra.mxu1 %v5668_v3  ;;  %v5659_v3 = vld [vmem:[%s7475_s1 + $0xde8] ss:$16 sps:$4 sm:$0xff]  }
 0x2cb   :  { %3885 = vmatprep.subr.bf16.mxu1 %v5676_v8  ;;  %v5673_v8 = vld [vmem:[%s7475_s1 + $0xdac] ss:$16 sps:$4 sm:$0xff]  }
 0x2ce   :  { %3886 = vmatpush2.bf16.msra.mxu1 %v5674_v6  ;;  %v5665_v6 = vld [vmem:[%s7475_s1 + $0xdc8] ss:$16 sps:$4 sm:$0xff]  }
 0x2cf   :  { %3887 = vmatprep.subr.bf16.mxu1 %v5682_v11  ;;  %v5679_v11 = vld [vmem:[%s7475_s1 + $0xd8c] ss:$16 sps:$4 sm:$0xff]  }
 0x2d2   :  { %3888 = vmatpush2.bf16.msra.mxu1 %v5680_v10  ;;  %v5671_v10 = vld [vmem:[%s7475_s1 + $0xda8] ss:$16 sps:$4 sm:$0xff]  }
 0x2d3   :  { %3889 = vmatprep.subr.bf16.mxu1 %v5688_v14  ;;  %v5685_v14 = vld [vmem:[%s7475_s1 + $0xd6c] ss:$16 sps:$4 sm:$0xff]  }
 0x2d6   :  { %3890 = vmatpush2.bf16.msra.mxu1 %v5686_v15  ;;  %v5683_v15 = vld [vmem:[%s7475_s1 + $0xd68] ss:$16 sps:$4 sm:$0xff]  }
 0x2d7   :  { %3891 = vmatprep.subr.bf16.mxu1 %v5694_v13 }
 0x2da   :  { %3892 = vmatpush2.bf16.msra.mxu1 %v5692_v21  ;;  %v5689_v21 = vld [vmem:[%s7475_s1 + $0xd48] ss:$16 sps:$4 sm:$0xff]  }
 0x2db   :  { %3893 = vmatprep.subr.bf16.mxu1 %v5700_v24  ;;  %v3001_v24 = vrot.slane %v7234_v19, %v6483_v7 }
 0x2de   :  { %3894 = vmatpush2.bf16.msra.mxu1 %v5698_v23  ;;  %v3024_v23 = vrot.slane %v7239_v29, %v6477_v5 }
 0x2df   :  { %3945 = vmatprep.subr.bf16.mxu1 %v5706_v27  ;;  %v5697_v27 = vld [vmem:[%s7475_s1 + $0xd2c] ss:$16 sps:$4 sm:$0xff]  }
 0x2e1   :  { %v2853_v12 = vpop.f32.mrf.mxu0 }
 0x2e3   :  { %v2855_v16 = vpop.f32.mrf.mxu0 }
 0x2e5   :  { %v2857_v17 = vpop.f32.mrf.mxu0 }
 0x2e6   :  { %v2997_v17 = vrot.slane %v7234_v19, %v6477_v5 }
 0x2e7   :  { %v2858_v22 = vpop.f32.mrf.mxu0 }
 0x321   :  { %v2894_v31 = vpop.f32.mrf.mxu1  ;;  %v7243_v28 = vpop.f32.mrf.mxu0 }
 0x322   :  { %v2895_v33 = vadd.f32 %v2894_v31, %v2853_v12  ;;  %v5677_v12 = vld [vmem:[%s7475_s1 + $0xd88] ss:$16 sps:$4 sm:$0xff]  }
 0x323   :  { %v2896_v9 = vpop.f32.mrf.mxu1  ;;  %v7249_v35 = vpop.f32.mrf.mxu0 }
 0x324   :  { %v3006_v32 = vmul.f32 %v2989_v30, %v2895_v33  ;;  %v2897_v26 = vadd.f32 %v2896_v9, %v2855_v16  ;;  %v5691_v16 = vld [vmem:[%s7475_s1 + $0xd4c] ss:$16 sps:$4 sm:$0xff]  }
 0x325   :  { %v2898_v37 = vpop.f32.mrf.mxu1  ;;  %v2939_v38 = vpop.f32.mrf.mxu0 }
 0x326   :  { %v3033_v39 = vadd.f32 %v3016_v25, %v3006_v32  ;;  %v3007_v41 = vmul.f32 %v2993_v34, %v2897_v26  ;;  %v3028_v25 = vrot.slane %v7239_v29, %v6483_v7  ;;  %v5703_v32 = vld [vmem:[%s7475_s1 + $0xd0c] ss:$16 sps:$4 sm:$0xff]   ;;  %v5701_v29 = vld [vmem:[%s7475_s1 + $0xd08] ss:$16 sps:$4 sm:$0xff]  }
 0x327   :  { %v2899_v40 = vpop.f32.mrf.mxu1  ;;  %v2940_v43 = vpop.f32.mrf.mxu0 }
 0x328   :  { %vm3037_vm8 = vcmp.ge.f32.partialorder %v3033_v39, 0.0  ;;  %v3041_v42 = vmul.f32 0.1, %v3033_v39  ;;  %v3034_v45 = vadd.f32 %v3020_v36, %v3007_v41  ;;  %v5704_v40 = vld [vmem:[%s7475_s1 + $0xee8] ss:$16 sps:$4 sm:$0xff]  }
 0x32a   :  { %vm3038_vm9 = vcmp.ge.f32.partialorder %v3034_v45, 0.0  ;;  %v3042_v44 = vmul.f32 0.1, %v3034_v45  ;;  %v3045_v47 = vsel %vm3037_vm8, %v3033_v39, %v3041_v42  ;;  %v5709_v42 = vld [vmem:[%s7475_s1 + $0xecc] ss:$16 sps:$4 sm:$0xff]  }
 0x32b   :  { %v7256_v51 = vpack.c.bf16 %v3045_v47, %v3045_v47  ;;  %v5710_v47 = vld [vmem:[%s7475_s1 + $0xea8] ss:$16 sps:$4 sm:$0xff]  }
 0x32c   :  { %v3046_v48 = vsel %vm3038_vm9, %v3034_v45, %v3042_v44  ;;  %v5707_v45 = vld [vmem:[%s7475_s1 + $0xec8] ss:$16 sps:$4 sm:$0xff]   ;;  %v5712_v44 = vld [vmem:[%s7475_s1 + $0xeac] ss:$16 sps:$4 sm:$0xff]  }
 0x32d   :  { %v3050_v49 = vpack.c.bf16 %v3046_v48, %v3046_v48  ;;  %v5715_v48 = vld [vmem:[%s7475_s1 + $0xe8c] ss:$16 sps:$4 sm:$0xff]  }
 0x32f   :  { %3854 = vmatprep.mubr.bf16.mxu0 %v3050_v49 }
 0x330   :  { %3855 = vmatmul.mubr.bf16.vlgmr.msra.gmra.mxu0 %v7256_v51 }
 0x331   :  { %3905 = vmatpush1.bf16.msra.mxu0 %v5611_v50  ;;  %3936 = vmatprep.mubr.bf16.mxu0 %v3050_v49  ;;  %v5713_v49 = vld [vmem:[%s7475_s1 + $0xe88] ss:$16 sps:$4 sm:$0xff]   ;;  %v5718_v50 = vld [vmem:[%s7475_s1 + $0xe6c] ss:$16 sps:$4 sm:$0xff]  }
 0x332   :  { %3906 = vmatprep.subr.bf16.mxu0 %v5619_v52  ;;  %v5721_v52 = vld [vmem:[%s7475_s1 + $0xe4c] ss:$16 sps:$4 sm:$0xff]  }
 0x335   :  { %3907 = vmatpush1.bf16.msra.mxu0 %v5617_v53  ;;  %v5719_v53 = vld [vmem:[%s7475_s1 + $0xe48] ss:$16 sps:$4 sm:$0xff]  }
 0x336   :  { %3908 = vmatprep.subr.bf16.mxu0 %v5625_v54  ;;  %v5724_v54 = vld [vmem:[%s7475_s1 + $0xe2c] ss:$16 sps:$4 sm:$0xff]  }
 0x339   :  { %3909 = vmatpush1.bf16.msra.mxu0 %v5623_v55  ;;  %v5722_v55 = vld [vmem:[%s7475_s1 + $0xe28] ss:$16 sps:$4 sm:$0xff]  }
 0x33a   :  { %3910 = vmatprep.subr.bf16.mxu0 %v5631_v56  ;;  %v5727_v56 = vld [vmem:[%s7475_s1 + $0xe0c] ss:$16 sps:$4 sm:$0xff]  }
 0x33d   :  { %3911 = vmatpush1.bf16.msra.mxu0 %v5629_v57  ;;  %v5725_v57 = vld [vmem:[%s7475_s1 + $0xe08] ss:$16 sps:$4 sm:$0xff]  }
 0x33e   :  { %3912 = vmatprep.subr.bf16.mxu0 %v5637_v58  ;;  %v5730_v58 = vld [vmem:[%s7475_s1 + $0xfec] ss:$16 sps:$4 sm:$0xff]  }
 0x341   :  { %3913 = vmatpush1.bf16.msra.mxu0 %v5635_v59  ;;  %v5728_v59 = vld [vmem:[%s7475_s1 + $0xfe8] ss:$16 sps:$4 sm:$0xff]  }
 0x342   :  { %3914 = vmatprep.subr.bf16.mxu0 %v5643_v60  ;;  %v5733_v60 = vld [vmem:[%s7475_s1 + $0xfcc] ss:$16 sps:$4 sm:$0xff]  }
 0x345   :  { %3915 = vmatpush1.bf16.msra.mxu0 %v5641_v61  ;;  %v5731_v61 = vld [vmem:[%s7475_s1 + $0xfc8] ss:$16 sps:$4 sm:$0xff]  }
 0x346   :  { %3916 = vmatprep.subr.bf16.mxu0 %v5649_v62  ;;  %v5736_v62 = vld [vmem:[%s7475_s1 + $0xfac] ss:$16 sps:$4 sm:$0xff]  }
 0x349   :  { %3917 = vmatpush1.bf16.msra.mxu0 %v5647_v63  ;;  %v5734_v63 = vld [vmem:[%s7475_s1 + $0xfa8] ss:$16 sps:$4 sm:$0xff]  }
 0x34a   :  { %3918 = vmatprep.subr.bf16.mxu0 %v5655_v0  ;;  %v5739_v0 = vld [vmem:[%s7475_s1 + $0xf8c] ss:$16 sps:$4 sm:$0xff]  }
 0x34d   :  { %3919 = vmatpush1.bf16.msra.mxu0 %v5653_v1  ;;  %v5737_v1 = vld [vmem:[%s7475_s1 + $0xf88] ss:$16 sps:$4 sm:$0xff]  }
 0x34e   :  { %3920 = vmatprep.subr.bf16.mxu0 %v5661_v2  ;;  %v5742_v2 = vld [vmem:[%s7475_s1 + $0xf6c] ss:$16 sps:$4 sm:$0xff]  }
 0x351   :  { %3921 = vmatpush2.bf16.msra.mxu0 %v5659_v3  ;;  %v5740_v3 = vld [vmem:[%s7475_s1 + $0xf68] ss:$16 sps:$4 sm:$0xff]  }
 0x352   :  { %3922 = vmatprep.subr.bf16.mxu0 %v5667_v4  ;;  %v5745_v4 = vld [vmem:[%s7475_s1 + $0xf4c] ss:$16 sps:$4 sm:$0xff]  }
 0x355   :  { %3923 = vmatpush2.bf16.msra.mxu0 %v5665_v6  ;;  %v5743_v6 = vld [vmem:[%s7475_s1 + $0xf48] ss:$16 sps:$4 sm:$0xff]  }
 0x356   :  { %3924 = vmatprep.subr.bf16.mxu0 %v5673_v8  ;;  %v5748_v8 = vld [vmem:[%s7475_s1 + $0xf2c] ss:$16 sps:$4 sm:$0xff]  }
 0x359   :  { %3925 = vmatpush2.bf16.msra.mxu0 %v5671_v10  ;;  %v5746_v10 = vld [vmem:[%s7475_s1 + $0xf28] ss:$16 sps:$4 sm:$0xff]  }
 0x35a   :  { %3926 = vmatprep.subr.bf16.mxu0 %v5679_v11  ;;  %v5751_v11 = vld [vmem:[%s7475_s1 + $0xf0c] ss:$16 sps:$4 sm:$0xff]  }
 0x35d   :  { %3927 = vmatpush2.bf16.msra.mxu0 %v5677_v12  ;;  %v5749_v12 = vld [vmem:[%s7475_s1 + $0xf08] ss:$16 sps:$4 sm:$0xff]  }
 0x35e   :  { %3928 = vmatprep.subr.bf16.mxu0 %v5685_v14 }
 0x361   :  { %v2976_v13 = vpop.f32.mrf.mxu1  ;;  %3929 = vmatpush2.bf16.msra.mxu0 %v5683_v15 }
 0x362   :  { %v2977_v22 = vadd.f32 %v2976_v13, %v7243_v28  ;;  %3930 = vmatprep.subr.bf16.mxu0 %v5691_v16  ;;  %v5695_v28 = vld [vmem:[%s7475_s1 + $0xd28] ss:$16 sps:$4 sm:$0xff]  }
 0x363   :  { %v2978_v30 = vpop.f32.mrf.mxu1  ;;  %v4980_v13 = vld [vmem:[%s7477_s2 + $0x3] ss:$4 sm:$0xf] }
 0x364   :  { %v3008_v31 = vmul.f32 %v2997_v17, %v2977_v22  ;;  %v2979_v33 = vadd.f32 %v2978_v30, %v7249_v35  ;;  %v3992_v22 = vrot.slane %v4980_v13, %v6378_v18 }
 0x365   :  { %v2980_v34 = vpop.f32.mrf.mxu1  ;;  %3931 = vmatpush2.bf16.msra.mxu0 %v5689_v21  ;;  %v4981_v21 = vld [vmem:[%s7478_s3 + $0x3] ss:$4 sm:$0xf] }
 0x366   :  { %v3035_v9 = vadd.f32 %v3024_v23, %v3008_v31  ;;  %v3009_v19 = vmul.f32 %v3001_v24, %v2979_v33  ;;  %3932 = vmatprep.subr.bf16.mxu0 %v5697_v27  ;;  %v4019_v30 = vrot.slane %v4981_v21, %v6378_v18  ;;  %v3996_v31 = vrot.slane %v4980_v13, %v6386_v20 }
 0x367   :  { %v2981_v26 = vpop.f32.mrf.mxu1 }
 0x368   :  { %vm3039_vm10 = vcmp.ge.f32.partialorder %v3035_v9, 0.0  ;;  %v3043_v36 = vmul.f32 0.1, %v3035_v9  ;;  %v3036_v35 = vadd.f32 %v3028_v25, %v3009_v19 }
 0x369   :  { %3933 = vmatpush2.bf16.msra.mxu0 %v5695_v28 }
 0x36a   :  { %3934 = vmatprep.subr.bf16.mxu0 %v5703_v32  ;;  %vm3040_vm11 = vcmp.ge.f32.partialorder %v3036_v35, 0.0  ;;  %v3044_v37 = vmul.f32 0.1, %v3036_v35  ;;  %v3047_v38 = vsel %vm3039_vm10, %v3035_v9, %v3043_v36  ;;  %v4023_v9 = vrot.slane %v4981_v21, %v6386_v20 }
 0x36b   :  { %v7362_v43 = vpack.c.bf16 %v3047_v38, %v3047_v38  ;;  %v4027_v20 = vrot.slane %v4981_v21, %v6477_v5 }
 0x36c   :  { %v3048_v39 = vsel %vm3040_vm11, %v3036_v35, %v3044_v37 }
 0x36d   :  { %3935 = vmatpush2.bf16.msra.mxu0 %v5701_v29  ;;  %v3052_v41 = vpack.c.bf16 %v3048_v39, %v3048_v39 }
 0x36f   :  { %3895 = vmatprep.mubr.bf16.mxu1 %v3052_v41 }
 0x370   :  { %3896 = vmatmul.mubr.bf16.vlgmr.msra.gmra.mxu1 %v7362_v43  ;;  %3937 = vmatmul.mubr.bf16.vlgmr.msra.gmra.mxu0 %v7256_v51  ;;  %v5716_v51 = vld [vmem:[%s7475_s1 + $0xe68] ss:$16 sps:$4 sm:$0xff]  }
 0x371   :  { %3946 = vmatpush1.bf16.msra.mxu1 %v5704_v40  ;;  %3977 = vmatprep.mubr.bf16.mxu1 %v3052_v41 }
 0x372   :  { %3947 = vmatprep.subr.bf16.mxu1 %v5709_v42 }
 0x375   :  { %3948 = vmatpush1.bf16.msra.mxu1 %v5707_v45 }
 0x376   :  { %3949 = vmatprep.subr.bf16.mxu1 %v5712_v44  ;;  %v4004_v44 = vrot.slane %v4980_v13, %v6483_v7 }
 0x379   :  { %3950 = vmatpush1.bf16.msra.mxu1 %v5710_v47  ;;  %v5753_v47 = vmov 1983009808  }
 0x37a   :  { %3951 = vmatprep.subr.bf16.mxu1 %v5715_v48  ;;  %v4059_v48 = vunpack.c.l.s4 %v5753_v47 }
 0x37d   :  { %3952 = vmatpush1.bf16.msra.mxu1 %v5713_v49 }
 0x37e   :  { %3953 = vmatprep.subr.bf16.mxu1 %v5718_v50 }
 0x381   :  { %3954 = vmatpush1.bf16.msra.mxu1 %v5716_v51 }
 0x382   :  { %3955 = vmatprep.subr.bf16.mxu1 %v5721_v52  ;;  %v4031_v52 = vrot.slane %v4981_v21, %v6483_v7 }
 0x385   :  { %3956 = vmatpush1.bf16.msra.mxu1 %v5719_v53 }
 0x386   :  { %3957 = vmatprep.subr.bf16.mxu1 %v5724_v54 }
 0x389   :  { %3958 = vmatpush1.bf16.msra.mxu1 %v5722_v55 }
 0x38a   :  { %3959 = vmatprep.subr.bf16.mxu1 %v5727_v56  ;;  %v4060_v56 = vunpack.c.0.s8 %v4059_v48 }
 0x38d   :  { %3960 = vmatpush1.bf16.msra.mxu1 %v5725_v57 }
 0x38e   :  { %3961 = vmatprep.subr.bf16.mxu1 %v5730_v58 }
 0x391   :  { %3962 = vmatpush2.bf16.msra.mxu1 %v5728_v59 }
 0x392   :  { %3963 = vmatprep.subr.bf16.mxu1 %v5733_v60 }
 0x395   :  { %3964 = vmatpush2.bf16.msra.mxu1 %v5731_v61 }
 0x396   :  { %3965 = vmatprep.subr.bf16.mxu1 %v5736_v62 }
 0x399   :  { %3966 = vmatpush2.bf16.msra.mxu1 %v5734_v63 }
 0x39a   :  { %3967 = vmatprep.subr.bf16.mxu1 %v5739_v0 }
 0x39d   :  { %3968 = vmatpush2.bf16.msra.mxu1 %v5737_v1 }
 0x39e   :  { %3969 = vmatprep.subr.bf16.mxu1 %v5742_v2 }
 0x3a1   :  { %3970 = vmatpush2.bf16.msra.mxu1 %v5740_v3 }
 0x3a2   :  { %3971 = vmatprep.subr.bf16.mxu1 %v5745_v4 }
 0x3a5   :  { %3972 = vmatpush2.bf16.msra.mxu1 %v5743_v6 }
 0x3a6   :  { %3973 = vmatprep.subr.bf16.mxu1 %v5748_v8 }
 0x3a9   :  { %3974 = vmatpush2.bf16.msra.mxu1 %v5746_v10 }
 0x3aa   :  { %3975 = vmatprep.subr.bf16.mxu1 %v5751_v11 }
 0x3ad   :  { %3976 = vmatpush2.bf16.msra.mxu1 %v5749_v12 }
 0x3b0   :  { %3978 = vmatmul.mubr.bf16.vlgmr.msra.gmra.mxu1 %v7362_v43  ;;  %v4000_v43 = vrot.slane %v4980_v13, %v6477_v5  ;;  %v4063_v5 = vsub.s32 %v4060_v56, %v5905_v46 }
 0x3f0   :  { %v3856_v14 = vpop.f32.mrf.mxu0 }
 0x3f2   :  { %v3858_v15 = vpop.f32.mrf.mxu0 }
 0x3f4   :  { %v3860_v16 = vpop.f32.mrf.mxu0 }
 0x3f6   :  { %v3861_v17 = vpop.f32.mrf.mxu0 }
 0x430   :  { %v3897_v23 = vpop.f32.mrf.mxu1  ;;  %v3938_v24 = vpop.f32.mrf.mxu0 }
 0x431   :  { %v3898_v27 = vadd.f32 %v3897_v23, %v3856_v14 }
 0x432   :  { %v3899_v33 = vpop.f32.mrf.mxu1  ;;  %v3940_v25 = vpop.f32.mrf.mxu0 }
 0x433   :  { %v4009_v34 = vmul.f32 %v3992_v22, %v3898_v27  ;;  %v3900_v28 = vadd.f32 %v3899_v33, %v3858_v15 }
 0x434   :  { %v3901_v19 = vpop.f32.mrf.mxu1  ;;  %v3942_v32 = vpop.f32.mrf.mxu0 }
 0x435   :  { %v4036_v26 = vadd.f32 %v4019_v30, %v4009_v34  ;;  %v4010_v36 = vmul.f32 %v3996_v31, %v3900_v28 }
 0x436   :  { %v3902_v35 = vpop.f32.mrf.mxu1  ;;  %v3943_v29 = vpop.f32.mrf.mxu0 }
 0x437   :  { %v4044_v37 = vmul.f32 0.1, %v4036_v26  ;;  %v4037_v38 = vadd.f32 %v4023_v9, %v4010_v36  ;;  %vm4040_vm12 = vcmp.ge.f32.partialorder %v4036_v26, 0.0 }
 0x439   :  { %vm4041_vm13 = vcmp.ge.f32.partialorder %v4037_v38, 0.0  ;;  %v4045_v39 = vmul.f32 0.1, %v4037_v38  ;;  %v4048_v18 = vsel %vm4040_vm12, %v4036_v26, %v4044_v37 }
 0x43b   :  { %v4049_v41 = vsel %vm4041_vm13, %v4037_v38, %v4045_v39 }
 0x43c   :  { %v4056_v40 = vcombine.low %v4048_v18, %v4049_v41 }
 0x43e   :  { %v4064_v0 = vrot.slane %v4056_v40, %v4063_v5 }
 0x470   :  { %v3979_v42 = vpop.f32.mrf.mxu1 }
 0x471   :  { %v3980_v45 = vadd.f32 %v3979_v42, %v3938_v24 }
 0x472   :  { %v3981_v49 = vpop.f32.mrf.mxu1 }
 0x473   :  { %v4011_v50 = vmul.f32 %v4000_v43, %v3980_v45  ;;  %v3982_v51 = vadd.f32 %v3981_v49, %v3940_v25 }
 0x474   :  { %v3983_v53 = vpop.f32.mrf.mxu1 }
 0x475   :  { %v4038_v54 = vadd.f32 %v4027_v20, %v4011_v50  ;;  %v4012_v55 = vmul.f32 %v4004_v44, %v3982_v51 }
 0x476   :  { %v3984_v57 = vpop.f32.mrf.mxu1 }
 0x477   :  { %v4046_v58 = vmul.f32 0.1, %v4038_v54  ;;  %v4039_v59 = vadd.f32 %v4031_v52, %v4012_v55  ;;  %vm4042_vm14 = vcmp.ge.f32.partialorder %v4038_v54, 0.0 }
 0x479   :  { %vm4043_vm15 = vcmp.ge.f32.partialorder %v4039_v59, 0.0  ;;  %v4047_v60 = vmul.f32 0.1, %v4039_v59  ;;  %v4050_v61 = vsel %vm4042_vm14, %v4038_v54, %v4046_v58 }
 0x47b   :  { %v4051_v62 = vsel %vm4043_vm15, %v4039_v59, %v4047_v60 }
 0x47c   :  { %v4057_v63 = vcombine.low %v4050_v61, %v4051_v62 }
 0x47e   :  { %v4071_v1 = vrot.slane %v4057_v63, %v4063_v5 }
 0x480   :  { %v4072_v2 = vcombine.low %v4064_v0, %v4071_v1 }
 0x482   :  { %4074 = vst [vmem:[%s7479_s4] sm:$0xff] %v4072_v2 }

</bundles_post_ra>
